<compile_context>
chip_gen: v7x
topology: tpu7x:2x2x1
jax: 0.10.0
libtpu: 0.0.40
codegen_flags: <defaults>
</compile_context>

<pallas_src>
import math
import functools
import numpy as np
import jax
import jax.numpy as jnp
from jax.experimental import pallas as pl
from jax.experimental.pallas import tpu as pltpu

GRID_SIZES = [12, 10, 8, 6, 4, 3, 2]   # fixed in the PyTorch module
BN_EPS = 1e-5


# ----------------------------------------------------------------------------
# Pallas kernels
# ----------------------------------------------------------------------------
def _mm_bias_kernel(x_ref, w_ref, b_ref, o_ref):
    # bf16 x bf16 -> f32 on the MXU, fused bias add epilogue.
    o_ref[...] = jnp.dot(x_ref[...].astype(jnp.bfloat16), w_ref[...],
                         preferred_element_type=jnp.float32) + b_ref[...]


def _mm_stats_kernel(x_ref, w_ref, o_ref, s_ref, q_ref):
    # bf16 matmul + per-tile column sum / sum-of-squares (for fused BN stats).
    y = jnp.dot(x_ref[...].astype(jnp.bfloat16), w_ref[...],
                preferred_element_type=jnp.float32)
    o_ref[...] = y
    s_ref[...] = jnp.broadcast_to(jnp.sum(y, axis=0, keepdims=True), s_ref.shape)
    q_ref[...] = jnp.broadcast_to(jnp.sum(y * y, axis=0, keepdims=True), q_ref.shape)


def _affine_relu_kernel(x_ref, s_ref, t_ref, o_ref):
    o_ref[...] = jnp.maximum(x_ref[...] * s_ref[...] + t_ref[...], 0.0)


def _round_up(a, m):
    return (a + m - 1) // m * m


def _tiles_mn(M, N):
    """Pick (tm, Mp, tn, Np).  Full-dim blocks for narrow dims (no padding);
    256/512-wide tiles for big dims; split M for megacore if grid would be 1x1."""
    if M > 256:
        tm, Mp = 256, _round_up(M, 256)
    else:
        tm, Mp = M, M
    if N > 512:
        tn, Np = 512, _round_up(N, 512)
    else:
        tn, Np = N, N
    if Mp // tm == 1 and Np // tn == 1 and M >= 32 and M % 16 == 0:
        tm = M // 2          # give both v7x TensorCores work
    return tm, Mp, tn, Np


def matmul_bias(x, w, b):
    """x:(M,K) f32 @ w:(K,N) bf16 + b:(N,) -> (M,N) f32 (fused bias epilogue)."""
    x = x.astype(jnp.float32)
    w = w.astype(jnp.bfloat16)
    M, K = x.shape
    N = w.shape[1]
    tm, Mp, tn, Np = _tiles_mn(M, N)
    xp = x if Mp == M else jnp.pad(x, ((0, Mp - M), (0, 0)))
    wp = w if Np == N else jnp.pad(w, ((0, 0), (0, Np - N)))
    bf = b.astype(jnp.float32)
    bp = (bf if Np == N else jnp.pad(bf, (0, Np - N))).reshape(1, Np)

    out = pl.pallas_call(
        _mm_bias_kernel,
        out_shape=jax.ShapeDtypeStruct((Mp, Np), jnp.float32),
        grid_spec=pltpu.PrefetchScalarGridSpec(
            num_scalar_prefetch=0,
            grid=(Mp // tm, Np // tn),
            in_specs=[
                pl.BlockSpec((tm, K), lambda i, j: (i, 0)),
                pl.BlockSpec((K, tn), lambda i, j: (0, j)),
                pl.BlockSpec((1, tn), lambda i, j: (0, j)),
            ],
            out_specs=pl.BlockSpec((tm, tn), lambda i, j: (i, j)),
        ),
        compiler_params=pltpu.CompilerParams(
            dimension_semantics=("parallel", "parallel")),
    )(xp, wp, bp)
    if Mp != M or Np != N:
        out = out[:M, :N]
    return out


def matmul_stats(x, w):
    """Bias-free matmul that also emits column sum / sum-of-squares of the
    output (BN training statistics) without an extra pass over y."""
    x = x.astype(jnp.float32)
    w = w.astype(jnp.bfloat16)
    M, K = x.shape
    N = w.shape[1]
    tm, Mp, tn, Np = _tiles_mn(M, N)
    gm, gn = Mp // tm, Np // tn
    xp = x if Mp == M else jnp.pad(x, ((0, Mp - M), (0, 0)))
    wp = w if Np == N else jnp.pad(w, ((0, 0), (0, Np - N)))

    y, s, q = pl.pallas_call(
        _mm_stats_kernel,
        out_shape=(jax.ShapeDtypeStruct((Mp, Np), jnp.float32),
                   jax.ShapeDtypeStruct((8 * gm, Np), jnp.float32),
                   jax.ShapeDtypeStruct((8 * gm, Np), jnp.float32)),
        grid_spec=pltpu.PrefetchScalarGridSpec(
            num_scalar_prefetch=0,
            grid=(gm, gn),
            in_specs=[
                pl.BlockSpec((tm, K), lambda i, j: (i, 0)),
                pl.BlockSpec((K, tn), lambda i, j: (0, j)),
            ],
            out_specs=(pl.BlockSpec((tm, tn), lambda i, j: (i, j)),
                       pl.BlockSpec((8, tn), lambda i, j: (i, j)),
                       pl.BlockSpec((8, tn), lambda i, j: (i, j))),
        ),
        compiler_params=pltpu.CompilerParams(
            dimension_semantics=("parallel", "parallel")),
    )(xp, wp)

    colsum = s.reshape(gm, 8, Np)[:, 0, :].sum(axis=0)[:N]
    colsq = q.reshape(gm, 8, Np)[:, 0, :].sum(axis=0)[:N]
    if Mp != M or Np != N:
        y = y[:M, :N]
    return y, colsum, colsq


def affine_relu(y, scale, shift):
    """Per-column affine + ReLU (BatchNorm(train) + ReLU), tiled over rows."""
    y = y.astype(jnp.float32)
    M, C = y.shape
    if M > 512:
        tr = 512
        Mp = _round_up(M, tr)
        yp = y if Mp == M else jnp.pad(y, ((0, Mp - M), (0, 0)))
    else:
        tr, Mp, yp = M, M, y
    s2 = scale.astype(jnp.float32).reshape(1, C)
    t2 = shift.astype(jnp.float32).reshape(1, C)
    out = pl.pallas_call(
        _affine_relu_kernel,
        out_shape=jax.ShapeDtypeStruct((Mp, C), jnp.float32),
        grid_spec=pltpu.PrefetchScalarGridSpec(
            num_scalar_prefetch=0,
            grid=(Mp // tr,),
            in_specs=[
                pl.BlockSpec((tr, C), lambda i: (i, 0)),
                pl.BlockSpec((1, C), lambda i: (0, 0)),
                pl.BlockSpec((1, C), lambda i: (0, 0)),
            ],
            out_specs=pl.BlockSpec((tr, C), lambda i: (i, 0)),
        ),
        compiler_params=pltpu.CompilerParams(dimension_semantics=("parallel",)),
    )(yp, s2, t2)
    return out if Mp == M else out[:M]


# ----------------------------------------------------------------------------
# Layer helpers (rows-major, channels-last)
# ----------------------------------------------------------------------------
def dense_bn_relu(x_rows, w):
    """Linear/1x1-conv (bias dropped: BN follows) + BatchNorm(train) + ReLU."""
    M = x_rows.shape[0]
    y, colsum, colsq = matmul_stats(x_rows, w)
    mean = colsum / M
    var = jnp.maximum(colsq / M - mean * mean, 0.0)     # biased variance
    scale = jax.lax.rsqrt(var + BN_EPS)                 # gamma = 1
    shift = -mean * scale                               # beta = 0
    return affine_relu(y, scale, shift)


def conv1x1_bn_relu_field(field, w):                    # field: (B,D,H,W,C)
    B, D, H, W, C = field.shape
    y = dense_bn_relu(field.reshape(-1, C), w)
    return y.reshape(B, D, H, W, -1)


def conv1x1_bias_field(field, wb):                      # plain Conv3d k=1
    w, b = wb
    B, D, H, W, C = field.shape
    y = matmul_bias(field.reshape(-1, C), w, b)
    return y.reshape(B, D, H, W, -1)


def conv3x3_bn_relu_field(field, w):                    # Conv3dBatchRelu k=3 p=1
    # TODO(synk): the 27 taps are still materialized (channels-last im2col) in
    # XLA; a fully on-chip tap-accumulating Pallas kernel would avoid the 27x
    # intermediate but needs strided window BlockSpecs.
    B, D, H, W, C = field.shape
    padf = jnp.pad(field, ((0, 0), (1, 1), (1, 1), (1, 1), (0, 0)))
    cols = jnp.concatenate(
        [padf[:, kd:kd + D, kh:kh + H, kw:kw + W, :]
         for kd in range(3) for kh in range(3) for kw in range(3)], axis=-1)
    y = dense_bn_relu(cols.reshape(-1, 27 * C), w)
    return y.reshape(B, D, H, W, -1)


# ----------------------------------------------------------------------------
# Point-cloud / grid glue (plain JAX; data-dependent gather/scatter)
# ----------------------------------------------------------------------------
def grid_sample_3d(field, pc):
    """F.grid_sample(field, pc[:,None,None]) semantics: trilinear,
    align_corners=False, zero padding.
    field:(B,D,H,W,C) channels-last, pc:(B,N,3) (x,y,z in ~[-1,1]) -> (B,N,C)."""
    B, D, H, W, C = field.shape
    N = pc.shape[1]
    x, y, z = pc[..., 0], pc[..., 1], pc[..., 2]
    ix = ((x + 1.0) * W - 1.0) * 0.5
    iy = ((y + 1.0) * H - 1.0) * 0.5
    iz = ((z + 1.0) * D - 1.0) * 0.5
    ix0, iy0, iz0 = jnp.floor(ix), jnp.floor(iy), jnp.floor(iz)
    tx, ty, tz = ix - ix0, iy - iy0, iz - iz0
    fieldf = field.reshape(B, D * H * W, C)
    out = jnp.zeros((B, N, C), jnp.float32)
    for dz in (0, 1):
        for dy in (0, 1):
            for dx in (0, 1):
                xi, yi, zi = ix0 + dx, iy0 + dy, iz0 + dz
                w = ((tx if dx else 1.0 - tx) *
                     (ty if dy else 1.0 - ty) *
                     (tz if dz else 1.0 - tz))
                valid = ((xi >= 0) & (xi < W) & (yi >= 0) & (yi < H) &
                         (zi >= 0) & (zi < D))
                xic = jnp.clip(xi, 0, W - 1).astype(jnp.int32)
                yic = jnp.clip(yi, 0, H - 1).astype(jnp.int32)
                zic = jnp.clip(zi, 0, D - 1).astype(jnp.int32)
                flat = (zic * H + yic) * W + xic
                idx = jnp.broadcast_to(flat[..., None], (B, N, C))
                vals = jnp.take_along_axis(fieldf, idx, axis=1)
                out = out + vals * (w * valid)[..., None]
    return out


def rev_trilinear(pc, value, G):
    """Reverse trilinear interpolation (normalized splatting of point features
    onto a G^3 grid).  pc:(B,N,3), value:(B,N,C) -> (B,G,G,G,C) channels-last.
    # TODO(synk): RevTrilinear source not provided; implemented as
    # weight-normalized trilinear splatting over a G^3 grid on [-1,1]^3."""
    B, N, C = value.shape
    coords = (pc + 1.0) * 0.5 * (G - 1)
    c0 = jnp.floor(coords)
    t = coords - c0

    def splat_one(c0b, tb, valb):               # (N,3),(N,3),(N,C)
        grid = jnp.zeros((G * G * G, C), jnp.float32)
        wsum = jnp.zeros((G * G * G,), jnp.float32)
        for dx in (0, 1):
            for dy in (0, 1):
                for dz in (0, 1):
                    xi, yi, zi = c0b[:, 0] + dx, c0b[:, 1] + dy, c0b[:, 2] + dz
                    w = ((tb[:, 0] if dx else 1.0 - tb[:, 0]) *
                         (tb[:, 1] if dy else 1.0 - tb[:, 1]) *
                         (tb[:, 2] if dz else 1.0 - tb[:, 2]))
                    valid = ((xi >= 0) & (xi < G) & (yi >= 0) & (yi < G) &
                             (zi >= 0) & (zi < G))
                    w = w * valid
                    xic = jnp.clip(xi, 0, G - 1).astype(jnp.int32)
                    yic = jnp.clip(yi, 0, G - 1).astype(jnp.int32)
                    zic = jnp.clip(zi, 0, G - 1).astype(jnp.int32)
                    flat = (xic * G + yic) * G + zic
                    grid = grid.at[flat].add(w[:, None] * valb)
                    wsum = wsum.at[flat].add(w)
        grid = grid / (wsum[:, None] + 1e-8)
        return grid.reshape(G, G, G, C)

    return jax.vmap(splat_one)(c0, t, value)


def grid_avg(pc, gs):
    """# TODO(synk): grid_avg source not provided; emits 6 channels per point:
    per-voxel mean coordinate + offset from it (matches 3+6*7=45 channels).
    pc:(B,N,3) -> (B,N,6)."""
    B, N, _ = pc.shape
    mn = pc.min(axis=1, keepdims=True)
    mx = pc.max(axis=1, keepdims=True)
    idx = jnp.clip(jnp.floor((pc - mn) / (mx - mn + 1e-8) * gs),
                   0, gs - 1).astype(jnp.int32)
    flat = (idx[..., 0] * gs + idx[..., 1]) * gs + idx[..., 2]      # (B,N)

    def one(flat_b, pc_b):
        sums = jnp.zeros((gs ** 3, 3), jnp.float32).at[flat_b].add(pc_b)
        cnt = jnp.zeros((gs ** 3,), jnp.float32).at[flat_b].add(1.0)
        mean = sums / jnp.maximum(cnt, 1.0)[:, None]
        mean_pts = mean[flat_b]                                     # (N,3)
        return jnp.concatenate([mean_pts, pc_b - mean_pts], axis=-1)

    return jax.vmap(one)(flat, pc)


def center_rescale(pc):
    """# TODO(synk): center_rescale source not provided; center per cloud and
    rescale into the unit ball.  pc:(B,N,3)."""
    pc = pc - pc.mean(axis=1, keepdims=True)
    r = jnp.sqrt((pc ** 2).sum(axis=-1, keepdims=True)).max(axis=1, keepdims=True)
    return pc / (r + 1e-8)


# ----------------------------------------------------------------------------
# Module forward passes
# ----------------------------------------------------------------------------
def advection_forward(p, pc, value, velocity, G, pic_flip):
    B, N, Cin = value.shape
    value1 = dense_bn_relu(value.reshape(B * N, Cin), p['fc']).reshape(B, N, 32)
    field = rev_trilinear(pc, value1, G)                        # (B,G,G,G,32)
    field = conv1x1_bn_relu_field(field, p['conv1'])
    field = conv3x3_bn_relu_field(field, p['conv2'])
    field = jnp.transpose(field, (0, 3, 2, 1, 4))               # == .permute(0,1,4,3,2)
    feature = grid_sample_3d(conv1x1_bn_relu_field(field, p['gf']), pc)   # (B,N,32)
    new_velocity = conv1x1_bias_field(field, p['gv'])           # (B,G,G,G,3)
    flip_diff = new_velocity - rev_trilinear(pc, velocity, G)
    pic_velocity = grid_sample_3d(new_velocity, pc) / G
    # TODO(synk): the reference adds a grid-shaped flip_diff to per-point
    # velocity (shape mismatch as written); we sample flip_diff at the points
    # (standard FLIP transfer) before blending.
    flip_pts = grid_sample_3d(flip_diff, pc)
    velocity = (velocity + flip_pts) * pic_flip + pic_velocity * (1.0 - pic_flip)
    pc = pc + velocity
    value = jnp.concatenate([value, feature, value1], axis=-1)
    return pc, value, velocity


def advection_core(params, pc_in, *, grid_size, time_step, pic_flip):
    """Everything except the label-dependent penalty (jit-able)."""
    B, N, _ = pc_in.shape
    pc = pc_in                                       # kept points-major (B,N,3)
    value = jnp.concatenate([pc] + [grid_avg(pc, gs) for gs in GRID_SIZES],
                            axis=-1)                 # (B,N,45)
    pc = center_rescale(pc)
    vr = dense_bn_relu(value.reshape(B * N, -1), params['indep_conv1'][0])
    vr = dense_bn_relu(vr, params['indep_conv1'][1])
    h = dense_bn_relu(vr, params['init_velocity'][0])
    w_v, b_v = params['init_velocity'][1]
    velocity = (matmul_bias(h, w_v, b_v) / grid_size).reshape(B, N, 3)
    value = vr.reshape(B, N, 64)
    pc = pc + velocity
    for i in range(time_step):
        pc, value, velocity = advection_forward(
            params['advection'][i], pc, value, velocity, grid_size, pic_flip)
    vr = dense_bn_relu(value.reshape(B * N, -1), params['indep_conv3'][0])
    vr = dense_bn_relu(vr, params['indep_conv3'][1])
    value = vr.reshape(B, N, 1024).max(axis=1)                    # (B,1024)
    value = dense_bn_relu(value, params['fc'][0])
    value = dense_bn_relu(value, params['fc'][1])
    # Dropout(p=0) == identity
    w_f, b_f = params['fc'][2]
    logits = matmul_bias(value, w_f, b_f)
    logits = jax.nn.log_softmax(logits, axis=1)
    return logits, pc


def compute_penalty(pc, label, batch_size):
    # Host-side loop over unique labels (data-dependent; kept outside jit).
    labels = np.asarray(label)
    penalty = jnp.asarray(0.0, jnp.float32)
    batch_centers = []
    for li in np.unique(labels):
        rows = np.nonzero(labels == li)[0]
        pc_i = pc[rows]                                  # (bi,N,3)
        centers_i = pc_i.mean(axis=1)                    # (bi,3)
        for j in range(pc_i.shape[0]):
            penalty = penalty + jnp.maximum(
                jnp.linalg.norm(pc_i[j], axis=-1).max() - 1.0, 0.0) * 20.0
        penalty = penalty + jnp.linalg.norm(
            centers_i - centers_i.mean(axis=0, keepdims=True))
        batch_centers.append(centers_i.mean(axis=0))
    for i in range(len(batch_centers)):
        for j in range(i + 1, len(batch_centers)):
            penalty = penalty + jnp.maximum(
                1.0 - jnp.linalg.norm(batch_centers[i] - batch_centers[j]), 0.0) / 2.0
    return penalty / batch_size


def advection_net_forward(params, pc_in, label, *, grid_size, time_step, pic_flip):
    logits, pc = advection_core(params, pc_in, grid_size=grid_size,
                                time_step=time_step, pic_flip=pic_flip)
    penalty = compute_penalty(pc, label, pc_in.shape[0])
    return logits, penalty


# ----------------------------------------------------------------------------
# Deterministic parameter init (mirrors the PyTorch __init__ shapes/std).
# Weights are stored matmul-ready (K, N) in bf16; biases (where kept) in f32.
# Bias is dropped for every conv/linear immediately followed by BatchNorm
# (training-mode BN subtracts the batch mean, so the bias is a no-op).
# ----------------------------------------------------------------------------
def init_params(key, *, num_class, time_step):
    keys = iter(jax.random.split(key, 256))

    def conv1d_w(cin, cout):
        w = jax.random.normal(next(keys), (cin, cout), jnp.float32) \
            * math.sqrt(2.0 / cout)
        return w.astype(jnp.bfloat16)

    def conv1d_wb(cin, cout):
        return (conv1d_w(cin, cout), jnp.zeros((cout,), jnp.float32))

    def conv3d_w(cin, cout, k):
        w = jax.random.normal(next(keys), (k ** 3 * cin, cout), jnp.float32) \
            * math.sqrt(2.0 / (k ** 3 * cout))
        return w.astype(jnp.bfloat16)

    def conv3d_wb(cin, cout, k):
        return (conv3d_w(cin, cout, k), jnp.zeros((cout,), jnp.float32))

    def linear_w(cin, cout):
        w = jax.random.normal(next(keys), (cin, cout), jnp.float32) / math.sqrt(cin)
        return w.astype(jnp.bfloat16)

    def linear_wb(cin, cout):
        return (linear_w(cin, cout), jnp.zeros((cout,), jnp.float32))

    in_c = 3 + 6 * len(GRID_SIZES)      # 45
    params = {
        'indep_conv1': [conv1d_w(in_c, 64), conv1d_w(64, 64)],
        'init_velocity': [conv1d_w(64, 64), conv1d_wb(64, 3)],
        'advection': [],
        'indep_conv3': [conv1d_w(64 * (time_step + 1), 512), conv1d_w(512, 1024)],
        'fc': [linear_w(1024, 512), linear_w(512, 256), linear_wb(256, num_class)],
    }
    for i in range(time_step):
        params['advection'].append({
            'fc': conv1d_w(64 * (i + 1), 32),
            'conv1': conv3d_w(32, 32, 1),
            'conv2': conv3d_w(32, 32, 3),
            'gf': conv3d_w(32, 32, 1),
            'gv': conv3d_wb(32, 3, 1),
        })
    return params


# ----------------------------------------------------------------------------
if __name__ == "__main__":
    key = jax.random.PRNGKey(0)
    kp, kx = jax.random.split(key)

    B, N = 2, 64
    num_class, time_step, grid_size, pic_flip = 10, 2, 4, 0.3

    params = init_params(kp, num_class=num_class, time_step=time_step)
    pc = jax.random.uniform(kx, (B, N, 3), jnp.float32, minval=-1.0, maxval=1.0)
    label = jnp.array([0, 1], dtype=jnp.int32)

    fwd = jax.jit(functools.partial(advection_core, grid_size=grid_size,
                                    time_step=time_step, pic_flip=pic_flip))
    logits, pc_final = fwd(params, pc)
    jax.block_until_ready((logits, pc_final))

    penalty = compute_penalty(pc_final, label, B)
    jax.block_until_ready(penalty)

    assert logits.shape == (B, num_class)
    assert bool(jnp.all(jnp.isfinite(logits))) and bool(jnp.isfinite(penalty))
    print("KERNEL_OK")
</pallas_src>

<mosaic_0001>
module attributes {stable_mosaic.version = 11 : i64} {
  func.func private @main(%arg0: i32) attributes {dimension_semantics = [#tpu.dimension_semantics<core_parallel>], iteration_bounds = array<i64: 2>, tpu.core_type = #tpu.core_type<sc_scalar_subcore>, window_params = []} {
    return
  }
}

module attributes {stable_mosaic.version = 11 : i64} {
  func.func private @main(%arg0: i32) attributes {dimension_semantics = [#tpu.dimension_semantics<core_parallel>], iteration_bounds = array<i64: 2>, tpu.core_type = #tpu.core_type<sc_scalar_subcore>, window_params = []} {
    return
  }
}

module attributes {stable_mosaic.version = 11 : i64} {
  func.func @_mm_stats_kernel(%arg0: i32, %arg1: i32, %arg2: memref<64x45xf32, #tpu.memory_space<vmem>>, %arg3: memref<45x64xbf16, #tpu.memory_space<vmem>>, %arg4: memref<64x64xf32, #tpu.memory_space<vmem>>, %arg5: memref<8x64xf32, #tpu.memory_space<vmem>>, %arg6: memref<8x64xf32, #tpu.memory_space<vmem>>) attributes {dimension_semantics = [#tpu.dimension_semantics<parallel>, #tpu.dimension_semantics<parallel>], iteration_bounds = array<i64: 2, 1>, scalar_prefetch = 0 : i64, scratch_operands = 0 : i64, tpu.core_type = #tpu.core_type<tc>, window_params = [{transform_indices = @transform_0, window_bounds = array<i64: 64, 45>}, {transform_indices = @transform_1, window_bounds = array<i64: 45, 64>}, {transform_indices = @transform_2, window_bounds = array<i64: 64, 64>}, {transform_indices = @transform_3, window_bounds = array<i64: 8, 64>}, {transform_indices = @transform_4, window_bounds = array<i64: 8, 64>}]} {
    %c0 = arith.constant 0 : index
    %c0_0 = arith.constant 0 : index
    %0 = vector.load %arg2[%c0, %c0_0] : memref<64x45xf32, #tpu.memory_space<vmem>>, vector<64x45xf32>
    %1 = arith.truncf %0 : vector<64x45xf32> to vector<64x45xbf16>
    %c0_1 = arith.constant 0 : index
    %c0_2 = arith.constant 0 : index
    %2 = vector.load %arg3[%c0_1, %c0_2] : memref<45x64xbf16, #tpu.memory_space<vmem>>, vector<45x64xbf16>
    %cst = arith.constant dense<0.000000e+00> : vector<64x64xf32>
    %3 = tpu.matmul %1, %2, %cst {dimension_numbers = #tpu.dot_dimension_numbers<[1], [0], [0], [1], [0, 0, 1, 1], [], []>} : vector<64x45xbf16>, vector<45x64xbf16>, vector<64x64xf32> -> vector<64x64xf32>
    %c0_3 = arith.constant 0 : index
    %c0_4 = arith.constant 0 : index
    %4 = vector.load %arg4[%c0_3, %c0_4] : memref<64x64xf32, #tpu.memory_space<vmem>>, vector<64x64xf32>
    tpu.vector_store %arg4[%c0_3, %c0_4], %3 {strides = array<i32>} : memref<64x64xf32, #tpu.memory_space<vmem>>, vector<64x64xf32>,
    %cst_5 = arith.constant dense<0.000000e+00> : vector<64xf32>
    %5 = vector.multi_reduction <add>, %3, %cst_5 [0] : vector<64x64xf32> to vector<64xf32>
    %6 = vector.shape_cast %5 : vector<64xf32> to vector<1x64xf32>
    %7 = vector.shape_cast %6 : vector<1x64xf32> to vector<1x64xf32>
    %8 = vector.broadcast %7 : vector<1x64xf32> to vector<8x64xf32>
    %c0_6 = arith.constant 0 : index
    %c0_7 = arith.constant 0 : index
    %9 = vector.load %arg5[%c0_6, %c0_7] : memref<8x64xf32, #tpu.memory_space<vmem>>, vector<8x64xf32>
    tpu.vector_store %arg5[%c0_6, %c0_7], %8 {strides = array<i32>} : memref<8x64xf32, #tpu.memory_space<vmem>>, vector<8x64xf32>,
    %10 = arith.mulf %3, %3 : vector<64x64xf32>
    %cst_8 = arith.constant dense<0.000000e+00> : vector<64xf32>
    %11 = vector.multi_reduction <add>, %10, %cst_8 [0] : vector<64x64xf32> to vector<64xf32>
    %12 = vector.shape_cast %11 : vector<64xf32> to vector<1x64xf32>
    %13 = vector.shape_cast %12 : vector<1x64xf32> to vector<1x64xf32>
    %14 = vector.broadcast %13 : vector<1x64xf32> to vector<8x64xf32>
    %c0_9 = arith.constant 0 : index
    %c0_10 = arith.constant 0 : index
    %15 = vector.load %arg6[%c0_9, %c0_10] : memref<8x64xf32, #tpu.memory_space<vmem>>, vector<8x64xf32>
    tpu.vector_store %arg6[%c0_9, %c0_10], %14 {strides = array<i32>} : memref<8x64xf32, #tpu.memory_space<vmem>>, vector<8x64xf32>,
    return
  }
  func.func @transform_0(%arg0: i32, %arg1: i32) -> (i32, i32) {
    %c0_i32 = arith.constant 0 : i32
    %c0_i32_0 = arith.constant 0 : i32
    return %arg0, %c0_i32 : i32, i32
  }
  func.func @transform_1(%arg0: i32, %arg1: i32) -> (i32, i32) {
    %c0_i32 = arith.constant 0 : i32
    %c0_i32_0 = arith.constant 0 : i32
    return %c0_i32, %arg1 : i32, i32
  }
  func.func @transform_2(%arg0: i32, %arg1: i32) -> (i32, i32) {
    %c0_i32 = arith.constant 0 : i32
    return %arg0, %arg1 : i32, i32
  }
  func.func @transform_3(%arg0: i32, %arg1: i32) -> (i32, i32) {
    %c0_i32 = arith.constant 0 : i32
    return %arg0, %arg1 : i32, i32
  }
  func.func @transform_4(%arg0: i32, %arg1: i32) -> (i32, i32) {
    %c0_i32 = arith.constant 0 : i32
    return %arg0, %arg1 : i32, i32
  }
}

module attributes {stable_mosaic.version = 11 : i64} {
  func.func @_affine_relu_kernel(%arg0: i32, %arg1: memref<128x64xf32, #tpu.memory_space<vmem>>, %arg2: memref<1x64xf32, #tpu.memory_space<vmem>>, %arg3: memref<1x64xf32, #tpu.memory_space<vmem>>, %arg4: memref<128x64xf32, #tpu.memory_space<vmem>>) attributes {dimension_semantics = [#tpu.dimension_semantics<parallel>], iteration_bounds = array<i64: 1>, scalar_prefetch = 0 : i64, scratch_operands = 0 : i64, tpu.core_type = #tpu.core_type<tc>, window_params = [{transform_indices = @transform_0, window_bounds = array<i64: 128, 64>}, {pipeline_mode = #tpu.pipeline_mode<synchronous>, transform_indices = @transform_1, window_bounds = array<i64: 1, 64>}, {pipeline_mode = #tpu.pipeline_mode<synchronous>, transform_indices = @transform_2, window_bounds = array<i64: 1, 64>}, {transform_indices = @transform_3, window_bounds = array<i64: 128, 64>}]} {
    %c0 = arith.constant 0 : index
    %c0_0 = arith.constant 0 : index
    %0 = vector.load %arg1[%c0, %c0_0] : memref<128x64xf32, #tpu.memory_space<vmem>>, vector<128x64xf32>
    %c0_1 = arith.constant 0 : index
    %c0_2 = arith.constant 0 : index
    %1 = vector.load %arg2[%c0_1, %c0_2] : memref<1x64xf32, #tpu.memory_space<vmem>>, vector<1x64xf32>
    %2 = vector.broadcast %1 : vector<1x64xf32> to vector<128x64xf32>
    %3 = arith.mulf %0, %2 : vector<128x64xf32>
    %c0_3 = arith.constant 0 : index
    %c0_4 = arith.constant 0 : index
    %4 = vector.load %arg3[%c0_3, %c0_4] : memref<1x64xf32, #tpu.memory_space<vmem>>, vector<1x64xf32>
    %5 = vector.broadcast %4 : vector<1x64xf32> to vector<128x64xf32>
    %6 = arith.addf %3, %5 : vector<128x64xf32>
    %cst = arith.constant 0.000000e+00 : f32
    %7 = vector.broadcast %cst : f32 to vector<128x64xf32>
    %8 = arith.maximumf %6, %7 : vector<128x64xf32>
    %c0_5 = arith.constant 0 : index
    %c0_6 = arith.constant 0 : index
    %9 = vector.load %arg4[%c0_5, %c0_6] : memref<128x64xf32, #tpu.memory_space<vmem>>, vector<128x64xf32>
    tpu.vector_store %arg4[%c0_5, %c0_6], %8 {strides = array<i32>} : memref<128x64xf32, #tpu.memory_space<vmem>>, vector<128x64xf32>,
    return
  }
  func.func @transform_0(%arg0: i32) -> (i32, i32) {
    %c0_i32 = arith.constant 0 : i32
    %c0_i32_0 = arith.constant 0 : i32
    return %arg0, %c0_i32 : i32, i32
  }
  func.func @transform_1(%arg0: i32) -> (i32, i32) {
    %c0_i32 = arith.constant 0 : i32
    %c0_i32_0 = arith.constant 0 : i32
    %c0_i32_1 = arith.constant 0 : i32
    return %c0_i32, %c0_i32_0 : i32, i32
  }
  func.func @transform_2(%arg0: i32) -> (i32, i32) {
    %c0_i32 = arith.constant 0 : i32
    %c0_i32_0 = arith.constant 0 : i32
    %c0_i32_1 = arith.constant 0 : i32
    return %c0_i32, %c0_i32_0 : i32, i32
  }
  func.func @transform_3(%arg0: i32) -> (i32, i32) {
    %c0_i32 = arith.constant 0 : i32
    %c0_i32_0 = arith.constant 0 : i32
    return %arg0, %c0_i32 : i32, i32
  }
}

module attributes {stable_mosaic.version = 11 : i64} {
  func.func @_mm_stats_kernel(%arg0: i32, %arg1: i32, %arg2: memref<64x64xf32, #tpu.memory_space<vmem>>, %arg3: memref<64x64xbf16, #tpu.memory_space<vmem>>, %arg4: memref<64x64xf32, #tpu.memory_space<vmem>>, %arg5: memref<8x64xf32, #tpu.memory_space<vmem>>, %arg6: memref<8x64xf32, #tpu.memory_space<vmem>>) attributes {dimension_semantics = [#tpu.dimension_semantics<parallel>, #tpu.dimension_semantics<parallel>], iteration_bounds = array<i64: 2, 1>, scalar_prefetch = 0 : i64, scratch_operands = 0 : i64, tpu.core_type = #tpu.core_type<tc>, window_params = [{transform_indices = @transform_0, window_bounds = array<i64: 64, 64>}, {transform_indices = @transform_1, window_bounds = array<i64: 64, 64>}, {transform_indices = @transform_2, window_bounds = array<i64: 64, 64>}, {transform_indices = @transform_3, window_bounds = array<i64: 8, 64>}, {transform_indices = @transform_4, window_bounds = array<i64: 8, 64>}]} {
    %c0 = arith.constant 0 : index
    %c0_0 = arith.constant 0 : index
    %0 = vector.load %arg2[%c0, %c0_0] : memref<64x64xf32, #tpu.memory_space<vmem>>, vector<64x64xf32>
    %1 = arith.truncf %0 : vector<64x64xf32> to vector<64x64xbf16>
    %c0_1 = arith.constant 0 : index
    %c0_2 = arith.constant 0 : index
    %2 = vector.load %arg3[%c0_1, %c0_2] : memref<64x64xbf16, #tpu.memory_space<vmem>>, vector<64x64xbf16>
    %cst = arith.constant dense<0.000000e+00> : vector<64x64xf32>
    %3 = tpu.matmul %1, %2, %cst {dimension_numbers = #tpu.dot_dimension_numbers<[1], [0], [0], [1], [0, 0, 1, 1], [], []>} : vector<64x64xbf16>, vector<64x64xbf16>, vector<64x64xf32> -> vector<64x64xf32>
    %c0_3 = arith.constant 0 : index
    %c0_4 = arith.constant 0 : index
    %4 = vector.load %arg4[%c0_3, %c0_4] : memref<64x64xf32, #tpu.memory_space<vmem>>, vector<64x64xf32>
    tpu.vector_store %arg4[%c0_3, %c0_4], %3 {strides = array<i32>} : memref<64x64xf32, #tpu.memory_space<vmem>>, vector<64x64xf32>,
    %cst_5 = arith.constant dense<0.000000e+00> : vector<64xf32>
    %5 = vector.multi_reduction <add>, %3, %cst_5 [0] : vector<64x64xf32> to vector<64xf32>
    %6 = vector.shape_cast %5 : vector<64xf32> to vector<1x64xf32>
    %7 = vector.shape_cast %6 : vector<1x64xf32> to vector<1x64xf32>
    %8 = vector.broadcast %7 : vector<1x64xf32> to vector<8x64xf32>
    %c0_6 = arith.constant 0 : index
    %c0_7 = arith.constant 0 : index
    %9 = vector.load %arg5[%c0_6, %c0_7] : memref<8x64xf32, #tpu.memory_space<vmem>>, vector<8x64xf32>
    tpu.vector_store %arg5[%c0_6, %c0_7], %8 {strides = array<i32>} : memref<8x64xf32, #tpu.memory_space<vmem>>, vector<8x64xf32>,
    %10 = arith.mulf %3, %3 : vector<64x64xf32>
    %cst_8 = arith.constant dense<0.000000e+00> : vector<64xf32>
    %11 = vector.multi_reduction <add>, %10, %cst_8 [0] : vector<64x64xf32> to vector<64xf32>
    %12 = vector.shape_cast %11 : vector<64xf32> to vector<1x64xf32>
    %13 = vector.shape_cast %12 : vector<1x64xf32> to vector<1x64xf32>
    %14 = vector.broadcast %13 : vector<1x64xf32> to vector<8x64xf32>
    %c0_9 = arith.constant 0 : index
    %c0_10 = arith.constant 0 : index
    %15 = vector.load %arg6[%c0_9, %c0_10] : memref<8x64xf32, #tpu.memory_space<vmem>>, vector<8x64xf32>
    tpu.vector_store %arg6[%c0_9, %c0_10], %14 {strides = array<i32>} : memref<8x64xf32, #tpu.memory_space<vmem>>, vector<8x64xf32>,
    return
  }
  func.func @transform_0(%arg0: i32, %arg1: i32) -> (i32, i32) {
    %c0_i32 = arith.constant 0 : i32
    %c0_i32_0 = arith.constant 0 : i32
    return %arg0, %c0_i32 : i32, i32
  }
  func.func @transform_1(%arg0: i32, %arg1: i32) -> (i32, i32) {
    %c0_i32 = arith.constant 0 : i32
    %c0_i32_0 = arith.constant 0 : i32
    return %c0_i32, %arg1 : i32, i32
  }
  func.func @transform_2(%arg0: i32, %arg1: i32) -> (i32, i32) {
    %c0_i32 = arith.constant 0 : i32
    return %arg0, %arg1 : i32, i32
  }
  func.func @transform_3(%arg0: i32, %arg1: i32) -> (i32, i32) {
    %c0_i32 = arith.constant 0 : i32
    return %arg0, %arg1 : i32, i32
  }
  func.func @transform_4(%arg0: i32, %arg1: i32) -> (i32, i32) {
    %c0_i32 = arith.constant 0 : i32
    return %arg0, %arg1 : i32, i32
  }
}

module attributes {stable_mosaic.version = 11 : i64} {
  func.func @_mm_stats_kernel(%arg0: i32, %arg1: i32, %arg2: memref<64x64xf32, #tpu.memory_space<vmem>>, %arg3: memref<64x32xbf16, #tpu.memory_space<vmem>>, %arg4: memref<64x32xf32, #tpu.memory_space<vmem>>, %arg5: memref<8x32xf32, #tpu.memory_space<vmem>>, %arg6: memref<8x32xf32, #tpu.memory_space<vmem>>) attributes {dimension_semantics = [#tpu.dimension_semantics<parallel>, #tpu.dimension_semantics<parallel>], iteration_bounds = array<i64: 2, 1>, scalar_prefetch = 0 : i64, scratch_operands = 0 : i64, tpu.core_type = #tpu.core_type<tc>, window_params = [{transform_indices = @transform_0, window_bounds = array<i64: 64, 64>}, {transform_indices = @transform_1, window_bounds = array<i64: 64, 32>}, {transform_indices = @transform_2, window_bounds = array<i64: 64, 32>}, {transform_indices = @transform_3, window_bounds = array<i64: 8, 32>}, {transform_indices = @transform_4, window_bounds = array<i64: 8, 32>}]} {
    %c0 = arith.constant 0 : index
    %c0_0 = arith.constant 0 : index
    %0 = vector.load %arg2[%c0, %c0_0] : memref<64x64xf32, #tpu.memory_space<vmem>>, vector<64x64xf32>
    %1 = arith.truncf %0 : vector<64x64xf32> to vector<64x64xbf16>
    %c0_1 = arith.constant 0 : index
    %c0_2 = arith.constant 0 : index
    %2 = vector.load %arg3[%c0_1, %c0_2] : memref<64x32xbf16, #tpu.memory_space<vmem>>, vector<64x32xbf16>
    %cst = arith.constant dense<0.000000e+00> : vector<64x32xf32>
    %3 = tpu.matmul %1, %2, %cst {dimension_numbers = #tpu.dot_dimension_numbers<[1], [0], [0], [1], [0, 0, 1, 1], [], []>} : vector<64x64xbf16>, vector<64x32xbf16>, vector<64x32xf32> -> vector<64x32xf32>
    %c0_3 = arith.constant 0 : index
    %c0_4 = arith.constant 0 : index
    %4 = vector.load %arg4[%c0_3, %c0_4] : memref<64x32xf32, #tpu.memory_space<vmem>>, vector<64x32xf32>
    tpu.vector_store %arg4[%c0_3, %c0_4], %3 {strides = array<i32>} : memref<64x32xf32, #tpu.memory_space<vmem>>, vector<64x32xf32>,
    %cst_5 = arith.constant dense<0.000000e+00> : vector<32xf32>
    %5 = vector.multi_reduction <add>, %3, %cst_5 [0] : vector<64x32xf32> to vector<32xf32>
    %6 = vector.shape_cast %5 : vector<32xf32> to vector<1x32xf32>
    %7 = vector.shape_cast %6 : vector<1x32xf32> to vector<1x32xf32>
    %8 = vector.broadcast %7 : vector<1x32xf32> to vector<8x32xf32>
    %c0_6 = arith.constant 0 : index
    %c0_7 = arith.constant 0 : index
    %9 = vector.load %arg5[%c0_6, %c0_7] : memref<8x32xf32, #tpu.memory_space<vmem>>, vector<8x32xf32>
    tpu.vector_store %arg5[%c0_6, %c0_7], %8 {strides = array<i32>} : memref<8x32xf32, #tpu.memory_space<vmem>>, vector<8x32xf32>,
    %10 = arith.mulf %3, %3 : vector<64x32xf32>
    %cst_8 = arith.constant dense<0.000000e+00> : vector<32xf32>
    %11 = vector.multi_reduction <add>, %10, %cst_8 [0] : vector<64x32xf32> to vector<32xf32>
    %12 = vector.shape_cast %11 : vector<32xf32> to vector<1x32xf32>
    %13 = vector.shape_cast %12 : vector<1x32xf32> to vector<1x32xf32>
    %14 = vector.broadcast %13 : vector<1x32xf32> to vector<8x32xf32>
    %c0_9 = arith.constant 0 : index
    %c0_10 = arith.constant 0 : index
    %15 = vector.load %arg6[%c0_9, %c0_10] : memref<8x32xf32, #tpu.memory_space<vmem>>, vector<8x32xf32>
    tpu.vector_store %arg6[%c0_9, %c0_10], %14 {strides = array<i32>} : memref<8x32xf32, #tpu.memory_space<vmem>>, vector<8x32xf32>,
    return
  }
  func.func @transform_0(%arg0: i32, %arg1: i32) -> (i32, i32) {
    %c0_i32 = arith.constant 0 : i32
    %c0_i32_0 = arith.constant 0 : i32
    return %arg0, %c0_i32 : i32, i32
  }
  func.func @transform_1(%arg0: i32, %arg1: i32) -> (i32, i32) {
    %c0_i32 = arith.constant 0 : i32
    %c0_i32_0 = arith.constant 0 : i32
    return %c0_i32, %arg1 : i32, i32
  }
  func.func @transform_2(%arg0: i32, %arg1: i32) -> (i32, i32) {
    %c0_i32 = arith.constant 0 : i32
    return %arg0, %arg1 : i32, i32
  }
  func.func @transform_3(%arg0: i32, %arg1: i32) -> (i32, i32) {
    %c0_i32 = arith.constant 0 : i32
    return %arg0, %arg1 : i32, i32
  }
  func.func @transform_4(%arg0: i32, %arg1: i32) -> (i32, i32) {
    %c0_i32 = arith.constant 0 : i32
    return %arg0, %arg1 : i32, i32
  }
}

module attributes {stable_mosaic.version = 11 : i64} {
  func.func @_mm_bias_kernel(%arg0: i32, %arg1: i32, %arg2: memref<64x64xf32, #tpu.memory_space<vmem>>, %arg3: memref<64x3xbf16, #tpu.memory_space<vmem>>, %arg4: memref<1x3xf32, #tpu.memory_space<vmem>>, %arg5: memref<64x3xf32, #tpu.memory_space<vmem>>) attributes {dimension_semantics = [#tpu.dimension_semantics<parallel>, #tpu.dimension_semantics<parallel>], iteration_bounds = array<i64: 2, 1>, scalar_prefetch = 0 : i64, scratch_operands = 0 : i64, tpu.core_type = #tpu.core_type<tc>, window_params = [{transform_indices = @transform_0, window_bounds = array<i64: 64, 64>}, {transform_indices = @transform_1, window_bounds = array<i64: 64, 3>}, {transform_indices = @transform_2, window_bounds = array<i64: 1, 3>}, {transform_indices = @transform_3, window_bounds = array<i64: 64, 3>}]} {
    %c0 = arith.constant 0 : index
    %c0_0 = arith.constant 0 : index
    %0 = vector.load %arg2[%c0, %c0_0] : memref<64x64xf32, #tpu.memory_space<vmem>>, vector<64x64xf32>
    %1 = arith.truncf %0 : vector<64x64xf32> to vector<64x64xbf16>
    %c0_1 = arith.constant 0 : index
    %c0_2 = arith.constant 0 : index
    %2 = vector.load %arg3[%c0_1, %c0_2] : memref<64x3xbf16, #tpu.memory_space<vmem>>, vector<64x3xbf16>
    %cst = arith.constant dense<0.000000e+00> : vector<64x3xf32>
    %3 = tpu.matmul %1, %2, %cst {dimension_numbers = #tpu.dot_dimension_numbers<[1], [0], [0], [1], [0, 0, 1, 1], [], []>} : vector<64x64xbf16>, vector<64x3xbf16>, vector<64x3xf32> -> vector<64x3xf32>
    %c0_3 = arith.constant 0 : index
    %c0_4 = arith.constant 0 : index
    %4 = vector.load %arg4[%c0_3, %c0_4] : memref<1x3xf32, #tpu.memory_space<vmem>>, vector<1x3xf32>
    %5 = vector.broadcast %4 : vector<1x3xf32> to vector<64x3xf32>
    %6 = arith.addf %3, %5 : vector<64x3xf32>
    %c0_5 = arith.constant 0 : index
    %c0_6 = arith.constant 0 : index
    %7 = vector.load %arg5[%c0_5, %c0_6] : memref<64x3xf32, #tpu.memory_space<vmem>>, vector<64x3xf32>
    tpu.vector_store %arg5[%c0_5, %c0_6], %6 {strides = array<i32>} : memref<64x3xf32, #tpu.memory_space<vmem>>, vector<64x3xf32>,
    return
  }
  func.func @transform_0(%arg0: i32, %arg1: i32) -> (i32, i32) {
    %c0_i32 = arith.constant 0 : i32
    %c0_i32_0 = arith.constant 0 : i32
    return %arg0, %c0_i32 : i32, i32
  }
  func.func @transform_1(%arg0: i32, %arg1: i32) -> (i32, i32) {
    %c0_i32 = arith.constant 0 : i32
    %c0_i32_0 = arith.constant 0 : i32
    return %c0_i32, %arg1 : i32, i32
  }
  func.func @transform_2(%arg0: i32, %arg1: i32) -> (i32, i32) {
    %c0_i32 = arith.constant 0 : i32
    %c0_i32_0 = arith.constant 0 : i32
    return %c0_i32, %arg1 : i32, i32
  }
  func.func @transform_3(%arg0: i32, %arg1: i32) -> (i32, i32) {
    %c0_i32 = arith.constant 0 : i32
    return %arg0, %arg1 : i32, i32
  }
}

module attributes {stable_mosaic.version = 11 : i64} {
  func.func @_affine_relu_kernel(%arg0: i32, %arg1: memref<128x32xf32, #tpu.memory_space<vmem>>, %arg2: memref<1x32xf32, #tpu.memory_space<vmem>>, %arg3: memref<1x32xf32, #tpu.memory_space<vmem>>, %arg4: memref<128x32xf32, #tpu.memory_space<vmem>>) attributes {dimension_semantics = [#tpu.dimension_semantics<parallel>], iteration_bounds = array<i64: 1>, scalar_prefetch = 0 : i64, scratch_operands = 0 : i64, tpu.core_type = #tpu.core_type<tc>, window_params = [{transform_indices = @transform_0, window_bounds = array<i64: 128, 32>}, {pipeline_mode = #tpu.pipeline_mode<synchronous>, transform_indices = @transform_1, window_bounds = array<i64: 1, 32>}, {pipeline_mode = #tpu.pipeline_mode<synchronous>, transform_indices = @transform_2, window_bounds = array<i64: 1, 32>}, {transform_indices = @transform_3, window_bounds = array<i64: 128, 32>}]} {
    %c0 = arith.constant 0 : index
    %c0_0 = arith.constant 0 : index
    %0 = vector.load %arg1[%c0, %c0_0] : memref<128x32xf32, #tpu.memory_space<vmem>>, vector<128x32xf32>
    %c0_1 = arith.constant 0 : index
    %c0_2 = arith.constant 0 : index
    %1 = vector.load %arg2[%c0_1, %c0_2] : memref<1x32xf32, #tpu.memory_space<vmem>>, vector<1x32xf32>
    %2 = vector.broadcast %1 : vector<1x32xf32> to vector<128x32xf32>
    %3 = arith.mulf %0, %2 : vector<128x32xf32>
    %c0_3 = arith.constant 0 : index
    %c0_4 = arith.constant 0 : index
    %4 = vector.load %arg3[%c0_3, %c0_4] : memref<1x32xf32, #tpu.memory_space<vmem>>, vector<1x32xf32>
    %5 = vector.broadcast %4 : vector<1x32xf32> to vector<128x32xf32>
    %6 = arith.addf %3, %5 : vector<128x32xf32>
    %cst = arith.constant 0.000000e+00 : f32
    %7 = vector.broadcast %cst : f32 to vector<128x32xf32>
    %8 = arith.maximumf %6, %7 : vector<128x32xf32>
    %c0_5 = arith.constant 0 : index
    %c0_6 = arith.constant 0 : index
    %9 = vector.load %arg4[%c0_5, %c0_6] : memref<128x32xf32, #tpu.memory_space<vmem>>, vector<128x32xf32>
    tpu.vector_store %arg4[%c0_5, %c0_6], %8 {strides = array<i32>} : memref<128x32xf32, #tpu.memory_space<vmem>>, vector<128x32xf32>,
    return
  }
  func.func @transform_0(%arg0: i32) -> (i32, i32) {
    %c0_i32 = arith.constant 0 : i32
    %c0_i32_0 = arith.constant 0 : i32
    return %arg0, %c0_i32 : i32, i32
  }
  func.func @transform_1(%arg0: i32) -> (i32, i32) {
    %c0_i32 = arith.constant 0 : i32
    %c0_i32_0 = arith.constant 0 : i32
    %c0_i32_1 = arith.constant 0 : i32
    return %c0_i32, %c0_i32_0 : i32, i32
  }
  func.func @transform_2(%arg0: i32) -> (i32, i32) {
    %c0_i32 = arith.constant 0 : i32
    %c0_i32_0 = arith.constant 0 : i32
    %c0_i32_1 = arith.constant 0 : i32
    return %c0_i32, %c0_i32_0 : i32, i32
  }
  func.func @transform_3(%arg0: i32) -> (i32, i32) {
    %c0_i32 = arith.constant 0 : i32
    %c0_i32_0 = arith.constant 0 : i32
    return %arg0, %c0_i32 : i32, i32
  }
}

module attributes {stable_mosaic.version = 11 : i64} {
  func.func @_mm_stats_kernel(%arg0: i32, %arg1: i32, %arg2: memref<64x32xf32, #tpu.memory_space<vmem>>, %arg3: memref<32x32xbf16, #tpu.memory_space<vmem>>, %arg4: memref<64x32xf32, #tpu.memory_space<vmem>>, %arg5: memref<8x32xf32, #tpu.memory_space<vmem>>, %arg6: memref<8x32xf32, #tpu.memory_space<vmem>>) attributes {dimension_semantics = [#tpu.dimension_semantics<parallel>, #tpu.dimension_semantics<parallel>], iteration_bounds = array<i64: 2, 1>, scalar_prefetch = 0 : i64, scratch_operands = 0 : i64, tpu.core_type = #tpu.core_type<tc>, window_params = [{transform_indices = @transform_0, window_bounds = array<i64: 64, 32>}, {transform_indices = @transform_1, window_bounds = array<i64: 32, 32>}, {transform_indices = @transform_2, window_bounds = array<i64: 64, 32>}, {transform_indices = @transform_3, window_bounds = array<i64: 8, 32>}, {transform_indices = @transform_4, window_bounds = array<i64: 8, 32>}]} {
    %c0 = arith.constant 0 : index
    %c0_0 = arith.constant 0 : index
    %0 = vector.load %arg2[%c0, %c0_0] : memref<64x32xf32, #tpu.memory_space<vmem>>, vector<64x32xf32>
    %1 = arith.truncf %0 : vector<64x32xf32> to vector<64x32xbf16>
    %c0_1 = arith.constant 0 : index
    %c0_2 = arith.constant 0 : index
    %2 = vector.load %arg3[%c0_1, %c0_2] : memref<32x32xbf16, #tpu.memory_space<vmem>>, vector<32x32xbf16>
    %cst = arith.constant dense<0.000000e+00> : vector<64x32xf32>
    %3 = tpu.matmul %1, %2, %cst {dimension_numbers = #tpu.dot_dimension_numbers<[1], [0], [0], [1], [0, 0, 1, 1], [], []>} : vector<64x32xbf16>, vector<32x32xbf16>, vector<64x32xf32> -> vector<64x32xf32>
    %c0_3 = arith.constant 0 : index
    %c0_4 = arith.constant 0 : index
    %4 = vector.load %arg4[%c0_3, %c0_4] : memref<64x32xf32, #tpu.memory_space<vmem>>, vector<64x32xf32>
    tpu.vector_store %arg4[%c0_3, %c0_4], %3 {strides = array<i32>} : memref<64x32xf32, #tpu.memory_space<vmem>>, vector<64x32xf32>,
    %cst_5 = arith.constant dense<0.000000e+00> : vector<32xf32>
    %5 = vector.multi_reduction <add>, %3, %cst_5 [0] : vector<64x32xf32> to vector<32xf32>
    %6 = vector.shape_cast %5 : vector<32xf32> to vector<1x32xf32>
    %7 = vector.shape_cast %6 : vector<1x32xf32> to vector<1x32xf32>
    %8 = vector.broadcast %7 : vector<1x32xf32> to vector<8x32xf32>
    %c0_6 = arith.constant 0 : index
    %c0_7 = arith.constant 0 : index
    %9 = vector.load %arg5[%c0_6, %c0_7] : memref<8x32xf32, #tpu.memory_space<vmem>>, vector<8x32xf32>
    tpu.vector_store %arg5[%c0_6, %c0_7], %8 {strides = array<i32>} : memref<8x32xf32, #tpu.memory_space<vmem>>, vector<8x32xf32>,
    %10 = arith.mulf %3, %3 : vector<64x32xf32>
    %cst_8 = arith.constant dense<0.000000e+00> : vector<32xf32>
    %11 = vector.multi_reduction <add>, %10, %cst_8 [0] : vector<64x32xf32> to vector<32xf32>
    %12 = vector.shape_cast %11 : vector<32xf32> to vector<1x32xf32>
    %13 = vector.shape_cast %12 : vector<1x32xf32> to vector<1x32xf32>
    %14 = vector.broadcast %13 : vector<1x32xf32> to vector<8x32xf32>
    %c0_9 = arith.constant 0 : index
    %c0_10 = arith.constant 0 : index
    %15 = vector.load %arg6[%c0_9, %c0_10] : memref<8x32xf32, #tpu.memory_space<vmem>>, vector<8x32xf32>
    tpu.vector_store %arg6[%c0_9, %c0_10], %14 {strides = array<i32>} : memref<8x32xf32, #tpu.memory_space<vmem>>, vector<8x32xf32>,
    return
  }
  func.func @transform_0(%arg0: i32, %arg1: i32) -> (i32, i32) {
    %c0_i32 = arith.constant 0 : i32
    %c0_i32_0 = arith.constant 0 : i32
    return %arg0, %c0_i32 : i32, i32
  }
  func.func @transform_1(%arg0: i32, %arg1: i32) -> (i32, i32) {
    %c0_i32 = arith.constant 0 : i32
    %c0_i32_0 = arith.constant 0 : i32
    return %c0_i32, %arg1 : i32, i32
  }
  func.func @transform_2(%arg0: i32, %arg1: i32) -> (i32, i32) {
    %c0_i32 = arith.constant 0 : i32
    return %arg0, %arg1 : i32, i32
  }
  func.func @transform_3(%arg0: i32, %arg1: i32) -> (i32, i32) {
    %c0_i32 = arith.constant 0 : i32
    return %arg0, %arg1 : i32, i32
  }
  func.func @transform_4(%arg0: i32, %arg1: i32) -> (i32, i32) {
    %c0_i32 = arith.constant 0 : i32
    return %arg0, %arg1 : i32, i32
  }
}

module attributes {stable_mosaic.version = 11 : i64} {
  func.func @_mm_stats_kernel(%arg0: i32, %arg1: i32, %arg2: memref<64x864xf32, #tpu.memory_space<vmem>>, %arg3: memref<864x32xbf16, #tpu.memory_space<vmem>>, %arg4: memref<64x32xf32, #tpu.memory_space<vmem>>, %arg5: memref<8x32xf32, #tpu.memory_space<vmem>>, %arg6: memref<8x32xf32, #tpu.memory_space<vmem>>) attributes {dimension_semantics = [#tpu.dimension_semantics<parallel>, #tpu.dimension_semantics<parallel>], iteration_bounds = array<i64: 2, 1>, scalar_prefetch = 0 : i64, scratch_operands = 0 : i64, tpu.core_type = #tpu.core_type<tc>, window_params = [{transform_indices = @transform_0, window_bounds = array<i64: 64, 864>}, {transform_indices = @transform_1, window_bounds = array<i64: 864, 32>}, {transform_indices = @transform_2, window_bounds = array<i64: 64, 32>}, {transform_indices = @transform_3, window_bounds = array<i64: 8, 32>}, {transform_indices = @transform_4, window_bounds = array<i64: 8, 32>}]} {
    %c0 = arith.constant 0 : index
    %c0_0 = arith.constant 0 : index
    %0 = vector.load %arg2[%c0, %c0_0] : memref<64x864xf32, #tpu.memory_space<vmem>>, vector<64x864xf32>
    %1 = arith.truncf %0 : vector<64x864xf32> to vector<64x864xbf16>
    %c0_1 = arith.constant 0 : index
    %c0_2 = arith.constant 0 : index
    %2 = vector.load %arg3[%c0_1, %c0_2] : memref<864x32xbf16, #tpu.memory_space<vmem>>, vector<864x32xbf16>
    %cst = arith.constant dense<0.000000e+00> : vector<64x32xf32>
    %3 = tpu.matmul %1, %2, %cst {dimension_numbers = #tpu.dot_dimension_numbers<[1], [0], [0], [1], [0, 0, 1, 1], [], []>} : vector<64x864xbf16>, vector<864x32xbf16>, vector<64x32xf32> -> vector<64x32xf32>
    %c0_3 = arith.constant 0 : index
    %c0_4 = arith.constant 0 : index
    %4 = vector.load %arg4[%c0_3, %c0_4] : memref<64x32xf32, #tpu.memory_space<vmem>>, vector<64x32xf32>
    tpu.vector_store %arg4[%c0_3, %c0_4], %3 {strides = array<i32>} : memref<64x32xf32, #tpu.memory_space<vmem>>, vector<64x32xf32>,
    %cst_5 = arith.constant dense<0.000000e+00> : vector<32xf32>
    %5 = vector.multi_reduction <add>, %3, %cst_5 [0] : vector<64x32xf32> to vector<32xf32>
    %6 = vector.shape_cast %5 : vector<32xf32> to vector<1x32xf32>
    %7 = vector.shape_cast %6 : vector<1x32xf32> to vector<1x32xf32>
    %8 = vector.broadcast %7 : vector<1x32xf32> to vector<8x32xf32>
    %c0_6 = arith.constant 0 : index
    %c0_7 = arith.constant 0 : index
    %9 = vector.load %arg5[%c0_6, %c0_7] : memref<8x32xf32, #tpu.memory_space<vmem>>, vector<8x32xf32>
    tpu.vector_store %arg5[%c0_6, %c0_7], %8 {strides = array<i32>} : memref<8x32xf32, #tpu.memory_space<vmem>>, vector<8x32xf32>,
    %10 = arith.mulf %3, %3 : vector<64x32xf32>
    %cst_8 = arith.constant dense<0.000000e+00> : vector<32xf32>
    %11 = vector.multi_reduction <add>, %10, %cst_8 [0] : vector<64x32xf32> to vector<32xf32>
    %12 = vector.shape_cast %11 : vector<32xf32> to vector<1x32xf32>
    %13 = vector.shape_cast %12 : vector<1x32xf32> to vector<1x32xf32>
    %14 = vector.broadcast %13 : vector<1x32xf32> to vector<8x32xf32>
    %c0_9 = arith.constant 0 : index
    %c0_10 = arith.constant 0 : index
    %15 = vector.load %arg6[%c0_9, %c0_10] : memref<8x32xf32, #tpu.memory_space<vmem>>, vector<8x32xf32>
    tpu.vector_store %arg6[%c0_9, %c0_10], %14 {strides = array<i32>} : memref<8x32xf32, #tpu.memory_space<vmem>>, vector<8x32xf32>,
    return
  }
  func.func @transform_0(%arg0: i32, %arg1: i32) -> (i32, i32) {
    %c0_i32 = arith.constant 0 : i32
    %c0_i32_0 = arith.constant 0 : i32
    return %arg0, %c0_i32 : i32, i32
  }
  func.func @transform_1(%arg0: i32, %arg1: i32) -> (i32, i32) {
    %c0_i32 = arith.constant 0 : i32
    %c0_i32_0 = arith.constant 0 : i32
    return %c0_i32, %arg1 : i32, i32
  }
  func.func @transform_2(%arg0: i32, %arg1: i32) -> (i32, i32) {
    %c0_i32 = arith.constant 0 : i32
    return %arg0, %arg1 : i32, i32
  }
  func.func @transform_3(%arg0: i32, %arg1: i32) -> (i32, i32) {
    %c0_i32 = arith.constant 0 : i32
    return %arg0, %arg1 : i32, i32
  }
  func.func @transform_4(%arg0: i32, %arg1: i32) -> (i32, i32) {
    %c0_i32 = arith.constant 0 : i32
    return %arg0, %arg1 : i32, i32
  }
}

module attributes {stable_mosaic.version = 11 : i64} {
  func.func @_mm_stats_kernel(%arg0: i32, %arg1: i32, %arg2: memref<64x32xf32, #tpu.memory_space<vmem>>, %arg3: memref<32x32xbf16, #tpu.memory_space<vmem>>, %arg4: memref<64x32xf32, #tpu.memory_space<vmem>>, %arg5: memref<8x32xf32, #tpu.memory_space<vmem>>, %arg6: memref<8x32xf32, #tpu.memory_space<vmem>>) attributes {dimension_semantics = [#tpu.dimension_semantics<parallel>, #tpu.dimension_semantics<parallel>], iteration_bounds = array<i64: 2, 1>, scalar_prefetch = 0 : i64, scratch_operands = 0 : i64, tpu.core_type = #tpu.core_type<tc>, window_params = [{transform_indices = @transform_0, window_bounds = array<i64: 64, 32>}, {transform_indices = @transform_1, window_bounds = array<i64: 32, 32>}, {transform_indices = @transform_2, window_bounds = array<i64: 64, 32>}, {transform_indices = @transform_3, window_bounds = array<i64: 8, 32>}, {transform_indices = @transform_4, window_bounds = array<i64: 8, 32>}]} {
    %c0 = arith.constant 0 : index
    %c0_0 = arith.constant 0 : index
    %0 = vector.load %arg2[%c0, %c0_0] : memref<64x32xf32, #tpu.memory_space<vmem>>, vector<64x32xf32>
    %1 = arith.truncf %0 : vector<64x32xf32> to vector<64x32xbf16>
    %c0_1 = arith.constant 0 : index
    %c0_2 = arith.constant 0 : index
    %2 = vector.load %arg3[%c0_1, %c0_2] : memref<32x32xbf16, #tpu.memory_space<vmem>>, vector<32x32xbf16>
    %cst = arith.constant dense<0.000000e+00> : vector<64x32xf32>
    %3 = tpu.matmul %1, %2, %cst {dimension_numbers = #tpu.dot_dimension_numbers<[1], [0], [0], [1], [0, 0, 1, 1], [], []>} : vector<64x32xbf16>, vector<32x32xbf16>, vector<64x32xf32> -> vector<64x32xf32>
    %c0_3 = arith.constant 0 : index
    %c0_4 = arith.constant 0 : index
    %4 = vector.load %arg4[%c0_3, %c0_4] : memref<64x32xf32, #tpu.memory_space<vmem>>, vector<64x32xf32>
    tpu.vector_store %arg4[%c0_3, %c0_4], %3 {strides = array<i32>} : memref<64x32xf32, #tpu.memory_space<vmem>>, vector<64x32xf32>,
    %cst_5 = arith.constant dense<0.000000e+00> : vector<32xf32>
    %5 = vector.multi_reduction <add>, %3, %cst_5 [0] : vector<64x32xf32> to vector<32xf32>
    %6 = vector.shape_cast %5 : vector<32xf32> to vector<1x32xf32>
    %7 = vector.shape_cast %6 : vector<1x32xf32> to vector<1x32xf32>
    %8 = vector.broadcast %7 : vector<1x32xf32> to vector<8x32xf32>
    %c0_6 = arith.constant 0 : index
    %c0_7 = arith.constant 0 : index
    %9 = vector.load %arg5[%c0_6, %c0_7] : memref<8x32xf32, #tpu.memory_space<vmem>>, vector<8x32xf32>
    tpu.vector_store %arg5[%c0_6, %c0_7], %8 {strides = array<i32>} : memref<8x32xf32, #tpu.memory_space<vmem>>, vector<8x32xf32>,
    %10 = arith.mulf %3, %3 : vector<64x32xf32>
    %cst_8 = arith.constant dense<0.000000e+00> : vector<32xf32>
    %11 = vector.multi_reduction <add>, %10, %cst_8 [0] : vector<64x32xf32> to vector<32xf32>
    %12 = vector.shape_cast %11 : vector<32xf32> to vector<1x32xf32>
    %13 = vector.shape_cast %12 : vector<1x32xf32> to vector<1x32xf32>
    %14 = vector.broadcast %13 : vector<1x32xf32> to vector<8x32xf32>
    %c0_9 = arith.constant 0 : index
    %c0_10 = arith.constant 0 : index
    %15 = vector.load %arg6[%c0_9, %c0_10] : memref<8x32xf32, #tpu.memory_space<vmem>>, vector<8x32xf32>
    tpu.vector_store %arg6[%c0_9, %c0_10], %14 {strides = array<i32>} : memref<8x32xf32, #tpu.memory_space<vmem>>, vector<8x32xf32>,
    return
  }
  func.func @transform_0(%arg0: i32, %arg1: i32) -> (i32, i32) {
    %c0_i32 = arith.constant 0 : i32
    %c0_i32_0 = arith.constant 0 : i32
    return %arg0, %c0_i32 : i32, i32
  }
  func.func @transform_1(%arg0: i32, %arg1: i32) -> (i32, i32) {
    %c0_i32 = arith.constant 0 : i32
    %c0_i32_0 = arith.constant 0 : i32
    return %c0_i32, %arg1 : i32, i32
  }
  func.func @transform_2(%arg0: i32, %arg1: i32) -> (i32, i32) {
    %c0_i32 = arith.constant 0 : i32
    return %arg0, %arg1 : i32, i32
  }
  func.func @transform_3(%arg0: i32, %arg1: i32) -> (i32, i32) {
    %c0_i32 = arith.constant 0 : i32
    return %arg0, %arg1 : i32, i32
  }
  func.func @transform_4(%arg0: i32, %arg1: i32) -> (i32, i32) {
    %c0_i32 = arith.constant 0 : i32
    return %arg0, %arg1 : i32, i32
  }
}

module attributes {stable_mosaic.version = 11 : i64} {
  func.func @_mm_bias_kernel(%arg0: i32, %arg1: i32, %arg2: memref<64x32xf32, #tpu.memory_space<vmem>>, %arg3: memref<32x3xbf16, #tpu.memory_space<vmem>>, %arg4: memref<1x3xf32, #tpu.memory_space<vmem>>, %arg5: memref<64x3xf32, #tpu.memory_space<vmem>>) attributes {dimension_semantics = [#tpu.dimension_semantics<parallel>, #tpu.dimension_semantics<parallel>], iteration_bounds = array<i64: 2, 1>, scalar_prefetch = 0 : i64, scratch_operands = 0 : i64, tpu.core_type = #tpu.core_type<tc>, window_params = [{transform_indices = @transform_0, window_bounds = array<i64: 64, 32>}, {transform_indices = @transform_1, window_bounds = array<i64: 32, 3>}, {transform_indices = @transform_2, window_bounds = array<i64: 1, 3>}, {transform_indices = @transform_3, window_bounds = array<i64: 64, 3>}]} {
    %c0 = arith.constant 0 : index
    %c0_0 = arith.constant 0 : index
    %0 = vector.load %arg2[%c0, %c0_0] : memref<64x32xf32, #tpu.memory_space<vmem>>, vector<64x32xf32>
    %1 = arith.truncf %0 : vector<64x32xf32> to vector<64x32xbf16>
    %c0_1 = arith.constant 0 : index
    %c0_2 = arith.constant 0 : index
    %2 = vector.load %arg3[%c0_1, %c0_2] : memref<32x3xbf16, #tpu.memory_space<vmem>>, vector<32x3xbf16>
    %cst = arith.constant dense<0.000000e+00> : vector<64x3xf32>
    %3 = tpu.matmul %1, %2, %cst {dimension_numbers = #tpu.dot_dimension_numbers<[1], [0], [0], [1], [0, 0, 1, 1], [], []>} : vector<64x32xbf16>, vector<32x3xbf16>, vector<64x3xf32> -> vector<64x3xf32>
    %c0_3 = arith.constant 0 : index
    %c0_4 = arith.constant 0 : index
    %4 = vector.load %arg4[%c0_3, %c0_4] : memref<1x3xf32, #tpu.memory_space<vmem>>, vector<1x3xf32>
    %5 = vector.broadcast %4 : vector<1x3xf32> to vector<64x3xf32>
    %6 = arith.addf %3, %5 : vector<64x3xf32>
    %c0_5 = arith.constant 0 : index
    %c0_6 = arith.constant 0 : index
    %7 = vector.load %arg5[%c0_5, %c0_6] : memref<64x3xf32, #tpu.memory_space<vmem>>, vector<64x3xf32>
    tpu.vector_store %arg5[%c0_5, %c0_6], %6 {strides = array<i32>} : memref<64x3xf32, #tpu.memory_space<vmem>>, vector<64x3xf32>,
    return
  }
  func.func @transform_0(%arg0: i32, %arg1: i32) -> (i32, i32) {
    %c0_i32 = arith.constant 0 : i32
    %c0_i32_0 = arith.constant 0 : i32
    return %arg0, %c0_i32 : i32, i32
  }
  func.func @transform_1(%arg0: i32, %arg1: i32) -> (i32, i32) {
    %c0_i32 = arith.constant 0 : i32
    %c0_i32_0 = arith.constant 0 : i32
    return %c0_i32, %arg1 : i32, i32
  }
  func.func @transform_2(%arg0: i32, %arg1: i32) -> (i32, i32) {
    %c0_i32 = arith.constant 0 : i32
    %c0_i32_0 = arith.constant 0 : i32
    return %c0_i32, %arg1 : i32, i32
  }
  func.func @transform_3(%arg0: i32, %arg1: i32) -> (i32, i32) {
    %c0_i32 = arith.constant 0 : i32
    return %arg0, %arg1 : i32, i32
  }
}

module attributes {stable_mosaic.version = 11 : i64} {
  func.func @_affine_relu_kernel(%arg0: i32, %arg1: memref<128x32xf32, #tpu.memory_space<vmem>>, %arg2: memref<1x32xf32, #tpu.memory_space<vmem>>, %arg3: memref<1x32xf32, #tpu.memory_space<vmem>>, %arg4: memref<128x32xf32, #tpu.memory_space<vmem>>) attributes {dimension_semantics = [#tpu.dimension_semantics<parallel>], iteration_bounds = array<i64: 1>, scalar_prefetch = 0 : i64, scratch_operands = 0 : i64, tpu.core_type = #tpu.core_type<tc>, window_params = [{transform_indices = @transform_0, window_bounds = array<i64: 128, 32>}, {pipeline_mode = #tpu.pipeline_mode<synchronous>, transform_indices = @transform_1, window_bounds = array<i64: 1, 32>}, {pipeline_mode = #tpu.pipeline_mode<synchronous>, transform_indices = @transform_2, window_bounds = array<i64: 1, 32>}, {transform_indices = @transform_3, window_bounds = array<i64: 128, 32>}]} {
    %c0 = arith.constant 0 : index
    %c0_0 = arith.constant 0 : index
    %0 = vector.load %arg1[%c0, %c0_0] : memref<128x32xf32, #tpu.memory_space<vmem>>, vector<128x32xf32>
    %c0_1 = arith.constant 0 : index
    %c0_2 = arith.constant 0 : index
    %1 = vector.load %arg2[%c0_1, %c0_2] : memref<1x32xf32, #tpu.memory_space<vmem>>, vector<1x32xf32>
    %2 = vector.broadcast %1 : vector<1x32xf32> to vector<128x32xf32>
    %3 = arith.mulf %0, %2 : vector<128x32xf32>
    %c0_3 = arith.constant 0 : index
    %c0_4 = arith.constant 0 : index
    %4 = vector.load %arg3[%c0_3, %c0_4] : memref<1x32xf32, #tpu.memory_space<vmem>>, vector<1x32xf32>
    %5 = vector.broadcast %4 : vector<1x32xf32> to vector<128x32xf32>
    %6 = arith.addf %3, %5 : vector<128x32xf32>
    %cst = arith.constant 0.000000e+00 : f32
    %7 = vector.broadcast %cst : f32 to vector<128x32xf32>
    %8 = arith.maximumf %6, %7 : vector<128x32xf32>
    %c0_5 = arith.constant 0 : index
    %c0_6 = arith.constant 0 : index
    %9 = vector.load %arg4[%c0_5, %c0_6] : memref<128x32xf32, #tpu.memory_space<vmem>>, vector<128x32xf32>
    tpu.vector_store %arg4[%c0_5, %c0_6], %8 {strides = array<i32>} : memref<128x32xf32, #tpu.memory_space<vmem>>, vector<128x32xf32>,
    return
  }
  func.func @transform_0(%arg0: i32) -> (i32, i32) {
    %c0_i32 = arith.constant 0 : i32
    %c0_i32_0 = arith.constant 0 : i32
    return %arg0, %c0_i32 : i32, i32
  }
  func.func @transform_1(%arg0: i32) -> (i32, i32) {
    %c0_i32 = arith.constant 0 : i32
    %c0_i32_0 = arith.constant 0 : i32
    %c0_i32_1 = arith.constant 0 : i32
    return %c0_i32, %c0_i32_0 : i32, i32
  }
  func.func @transform_2(%arg0: i32) -> (i32, i32) {
    %c0_i32 = arith.constant 0 : i32
    %c0_i32_0 = arith.constant 0 : i32
    %c0_i32_1 = arith.constant 0 : i32
    return %c0_i32, %c0_i32_0 : i32, i32
  }
  func.func @transform_3(%arg0: i32) -> (i32, i32) {
    %c0_i32 = arith.constant 0 : i32
    %c0_i32_0 = arith.constant 0 : i32
    return %arg0, %c0_i32 : i32, i32
  }
}

module attributes {stable_mosaic.version = 11 : i64} {
  func.func @_mm_stats_kernel(%arg0: i32, %arg1: i32, %arg2: memref<64x128xf32, #tpu.memory_space<vmem>>, %arg3: memref<128x32xbf16, #tpu.memory_space<vmem>>, %arg4: memref<64x32xf32, #tpu.memory_space<vmem>>, %arg5: memref<8x32xf32, #tpu.memory_space<vmem>>, %arg6: memref<8x32xf32, #tpu.memory_space<vmem>>) attributes {dimension_semantics = [#tpu.dimension_semantics<parallel>, #tpu.dimension_semantics<parallel>], iteration_bounds = array<i64: 2, 1>, scalar_prefetch = 0 : i64, scratch_operands = 0 : i64, tpu.core_type = #tpu.core_type<tc>, window_params = [{transform_indices = @transform_0, window_bounds = array<i64: 64, 128>}, {transform_indices = @transform_1, window_bounds = array<i64: 128, 32>}, {transform_indices = @transform_2, window_bounds = array<i64: 64, 32>}, {transform_indices = @transform_3, window_bounds = array<i64: 8, 32>}, {transform_indices = @transform_4, window_bounds = array<i64: 8, 32>}]} {
    %c0 = arith.constant 0 : index
    %c0_0 = arith.constant 0 : index
    %0 = vector.load %arg2[%c0, %c0_0] : memref<64x128xf32, #tpu.memory_space<vmem>>, vector<64x128xf32>
    %1 = arith.truncf %0 : vector<64x128xf32> to vector<64x128xbf16>
    %c0_1 = arith.constant 0 : index
    %c0_2 = arith.constant 0 : index
    %2 = vector.load %arg3[%c0_1, %c0_2] : memref<128x32xbf16, #tpu.memory_space<vmem>>, vector<128x32xbf16>
    %cst = arith.constant dense<0.000000e+00> : vector<64x32xf32>
    %3 = tpu.matmul %1, %2, %cst {dimension_numbers = #tpu.dot_dimension_numbers<[1], [0], [0], [1], [0, 0, 1, 1], [], []>} : vector<64x128xbf16>, vector<128x32xbf16>, vector<64x32xf32> -> vector<64x32xf32>
    %c0_3 = arith.constant 0 : index
    %c0_4 = arith.constant 0 : index
    %4 = vector.load %arg4[%c0_3, %c0_4] : memref<64x32xf32, #tpu.memory_space<vmem>>, vector<64x32xf32>
    tpu.vector_store %arg4[%c0_3, %c0_4], %3 {strides = array<i32>} : memref<64x32xf32, #tpu.memory_space<vmem>>, vector<64x32xf32>,
    %cst_5 = arith.constant dense<0.000000e+00> : vector<32xf32>
    %5 = vector.multi_reduction <add>, %3, %cst_5 [0] : vector<64x32xf32> to vector<32xf32>
    %6 = vector.shape_cast %5 : vector<32xf32> to vector<1x32xf32>
    %7 = vector.shape_cast %6 : vector<1x32xf32> to vector<1x32xf32>
    %8 = vector.broadcast %7 : vector<1x32xf32> to vector<8x32xf32>
    %c0_6 = arith.constant 0 : index
    %c0_7 = arith.constant 0 : index
    %9 = vector.load %arg5[%c0_6, %c0_7] : memref<8x32xf32, #tpu.memory_space<vmem>>, vector<8x32xf32>
    tpu.vector_store %arg5[%c0_6, %c0_7], %8 {strides = array<i32>} : memref<8x32xf32, #tpu.memory_space<vmem>>, vector<8x32xf32>,
    %10 = arith.mulf %3, %3 : vector<64x32xf32>
    %cst_8 = arith.constant dense<0.000000e+00> : vector<32xf32>
    %11 = vector.multi_reduction <add>, %10, %cst_8 [0] : vector<64x32xf32> to vector<32xf32>
    %12 = vector.shape_cast %11 : vector<32xf32> to vector<1x32xf32>
    %13 = vector.shape_cast %12 : vector<1x32xf32> to vector<1x32xf32>
    %14 = vector.broadcast %13 : vector<1x32xf32> to vector<8x32xf32>
    %c0_9 = arith.constant 0 : index
    %c0_10 = arith.constant 0 : index
    %15 = vector.load %arg6[%c0_9, %c0_10] : memref<8x32xf32, #tpu.memory_space<vmem>>, vector<8x32xf32>
    tpu.vector_store %arg6[%c0_9, %c0_10], %14 {strides = array<i32>} : memref<8x32xf32, #tpu.memory_space<vmem>>, vector<8x32xf32>,
    return
  }
  func.func @transform_0(%arg0: i32, %arg1: i32) -> (i32, i32) {
    %c0_i32 = arith.constant 0 : i32
    %c0_i32_0 = arith.constant 0 : i32
    return %arg0, %c0_i32 : i32, i32
  }
  func.func @transform_1(%arg0: i32, %arg1: i32) -> (i32, i32) {
    %c0_i32 = arith.constant 0 : i32
    %c0_i32_0 = arith.constant 0 : i32
    return %c0_i32, %arg1 : i32, i32
  }
  func.func @transform_2(%arg0: i32, %arg1: i32) -> (i32, i32) {
    %c0_i32 = arith.constant 0 : i32
    return %arg0, %arg1 : i32, i32
  }
  func.func @transform_3(%arg0: i32, %arg1: i32) -> (i32, i32) {
    %c0_i32 = arith.constant 0 : i32
    return %arg0, %arg1 : i32, i32
  }
  func.func @transform_4(%arg0: i32, %arg1: i32) -> (i32, i32) {
    %c0_i32 = arith.constant 0 : i32
    return %arg0, %arg1 : i32, i32
  }
}

module attributes {stable_mosaic.version = 11 : i64} {
  func.func @_mm_stats_kernel(%arg0: i32, %arg1: i32, %arg2: memref<64x192xf32, #tpu.memory_space<vmem>>, %arg3: memref<192x512xbf16, #tpu.memory_space<vmem>>, %arg4: memref<64x512xf32, #tpu.memory_space<vmem>>, %arg5: memref<8x512xf32, #tpu.memory_space<vmem>>, %arg6: memref<8x512xf32, #tpu.memory_space<vmem>>) attributes {dimension_semantics = [#tpu.dimension_semantics<parallel>, #tpu.dimension_semantics<parallel>], iteration_bounds = array<i64: 2, 1>, scalar_prefetch = 0 : i64, scratch_operands = 0 : i64, tpu.core_type = #tpu.core_type<tc>, window_params = [{transform_indices = @transform_0, window_bounds = array<i64: 64, 192>}, {transform_indices = @transform_1, window_bounds = array<i64: 192, 512>}, {transform_indices = @transform_2, window_bounds = array<i64: 64, 512>}, {transform_indices = @transform_3, window_bounds = array<i64: 8, 512>}, {transform_indices = @transform_4, window_bounds = array<i64: 8, 512>}]} {
    %c0 = arith.constant 0 : index
    %c0_0 = arith.constant 0 : index
    %0 = vector.load %arg2[%c0, %c0_0] : memref<64x192xf32, #tpu.memory_space<vmem>>, vector<64x192xf32>
    %1 = arith.truncf %0 : vector<64x192xf32> to vector<64x192xbf16>
    %c0_1 = arith.constant 0 : index
    %c0_2 = arith.constant 0 : index
    %2 = vector.load %arg3[%c0_1, %c0_2] : memref<192x512xbf16, #tpu.memory_space<vmem>>, vector<192x512xbf16>
    %cst = arith.constant dense<0.000000e+00> : vector<64x512xf32>
    %3 = tpu.matmul %1, %2, %cst {dimension_numbers = #tpu.dot_dimension_numbers<[1], [0], [0], [1], [0, 0, 1, 1], [], []>} : vector<64x192xbf16>, vector<192x512xbf16>, vector<64x512xf32> -> vector<64x512xf32>
    %c0_3 = arith.constant 0 : index
    %c0_4 = arith.constant 0 : index
    %4 = vector.load %arg4[%c0_3, %c0_4] : memref<64x512xf32, #tpu.memory_space<vmem>>, vector<64x512xf32>
    tpu.vector_store %arg4[%c0_3, %c0_4], %3 {strides = array<i32>} : memref<64x512xf32, #tpu.memory_space<vmem>>, vector<64x512xf32>,
    %cst_5 = arith.constant dense<0.000000e+00> : vector<512xf32>
    %5 = vector.multi_reduction <add>, %3, %cst_5 [0] : vector<64x512xf32> to vector<512xf32>
    %6 = vector.shape_cast %5 : vector<512xf32> to vector<1x512xf32>
    %7 = vector.shape_cast %6 : vector<1x512xf32> to vector<1x512xf32>
    %8 = vector.broadcast %7 : vector<1x512xf32> to vector<8x512xf32>
    %c0_6 = arith.constant 0 : index
    %c0_7 = arith.constant 0 : index
    %9 = vector.load %arg5[%c0_6, %c0_7] : memref<8x512xf32, #tpu.memory_space<vmem>>, vector<8x512xf32>
    tpu.vector_store %arg5[%c0_6, %c0_7], %8 {strides = array<i32>} : memref<8x512xf32, #tpu.memory_space<vmem>>, vector<8x512xf32>,
    %10 = arith.mulf %3, %3 : vector<64x512xf32>
    %cst_8 = arith.constant dense<0.000000e+00> : vector<512xf32>
    %11 = vector.multi_reduction <add>, %10, %cst_8 [0] : vector<64x512xf32> to vector<512xf32>
    %12 = vector.shape_cast %11 : vector<512xf32> to vector<1x512xf32>
    %13 = vector.shape_cast %12 : vector<1x512xf32> to vector<1x512xf32>
    %14 = vector.broadcast %13 : vector<1x512xf32> to vector<8x512xf32>
    %c0_9 = arith.constant 0 : index
    %c0_10 = arith.constant 0 : index
    %15 = vector.load %arg6[%c0_9, %c0_10] : memref<8x512xf32, #tpu.memory_space<vmem>>, vector<8x512xf32>
    tpu.vector_store %arg6[%c0_9, %c0_10], %14 {strides = array<i32>} : memref<8x512xf32, #tpu.memory_space<vmem>>, vector<8x512xf32>,
    return
  }
  func.func @transform_0(%arg0: i32, %arg1: i32) -> (i32, i32) {
    %c0_i32 = arith.constant 0 : i32
    %c0_i32_0 = arith.constant 0 : i32
    return %arg0, %c0_i32 : i32, i32
  }
  func.func @transform_1(%arg0: i32, %arg1: i32) -> (i32, i32) {
    %c0_i32 = arith.constant 0 : i32
    %c0_i32_0 = arith.constant 0 : i32
    return %c0_i32, %arg1 : i32, i32
  }
  func.func @transform_2(%arg0: i32, %arg1: i32) -> (i32, i32) {
    %c0_i32 = arith.constant 0 : i32
    return %arg0, %arg1 : i32, i32
  }
  func.func @transform_3(%arg0: i32, %arg1: i32) -> (i32, i32) {
    %c0_i32 = arith.constant 0 : i32
    return %arg0, %arg1 : i32, i32
  }
  func.func @transform_4(%arg0: i32, %arg1: i32) -> (i32, i32) {
    %c0_i32 = arith.constant 0 : i32
    return %arg0, %arg1 : i32, i32
  }
}

module attributes {stable_mosaic.version = 11 : i64} {
  func.func @_affine_relu_kernel(%arg0: i32, %arg1: memref<128x512xf32, #tpu.memory_space<vmem>>, %arg2: memref<1x512xf32, #tpu.memory_space<vmem>>, %arg3: memref<1x512xf32, #tpu.memory_space<vmem>>, %arg4: memref<128x512xf32, #tpu.memory_space<vmem>>) attributes {dimension_semantics = [#tpu.dimension_semantics<parallel>], iteration_bounds = array<i64: 1>, scalar_prefetch = 0 : i64, scratch_operands = 0 : i64, tpu.core_type = #tpu.core_type<tc>, window_params = [{transform_indices = @transform_0, window_bounds = array<i64: 128, 512>}, {pipeline_mode = #tpu.pipeline_mode<synchronous>, transform_indices = @transform_1, window_bounds = array<i64: 1, 512>}, {pipeline_mode = #tpu.pipeline_mode<synchronous>, transform_indices = @transform_2, window_bounds = array<i64: 1, 512>}, {transform_indices = @transform_3, window_bounds = array<i64: 128, 512>}]} {
    %c0 = arith.constant 0 : index
    %c0_0 = arith.constant 0 : index
    %0 = vector.load %arg1[%c0, %c0_0] : memref<128x512xf32, #tpu.memory_space<vmem>>, vector<128x512xf32>
    %c0_1 = arith.constant 0 : index
    %c0_2 = arith.constant 0 : index
    %1 = vector.load %arg2[%c0_1, %c0_2] : memref<1x512xf32, #tpu.memory_space<vmem>>, vector<1x512xf32>
    %2 = vector.broadcast %1 : vector<1x512xf32> to vector<128x512xf32>
    %3 = arith.mulf %0, %2 : vector<128x512xf32>
    %c0_3 = arith.constant 0 : index
    %c0_4 = arith.constant 0 : index
    %4 = vector.load %arg3[%c0_3, %c0_4] : memref<1x512xf32, #tpu.memory_space<vmem>>, vector<1x512xf32>
    %5 = vector.broadcast %4 : vector<1x512xf32> to vector<128x512xf32>
    %6 = arith.addf %3, %5 : vector<128x512xf32>
    %cst = arith.constant 0.000000e+00 : f32
    %7 = vector.broadcast %cst : f32 to vector<128x512xf32>
    %8 = arith.maximumf %6, %7 : vector<128x512xf32>
    %c0_5 = arith.constant 0 : index
    %c0_6 = arith.constant 0 : index
    %9 = vector.load %arg4[%c0_5, %c0_6] : memref<128x512xf32, #tpu.memory_space<vmem>>, vector<128x512xf32>
    tpu.vector_store %arg4[%c0_5, %c0_6], %8 {strides = array<i32>} : memref<128x512xf32, #tpu.memory_space<vmem>>, vector<128x512xf32>,
    return
  }
  func.func @transform_0(%arg0: i32) -> (i32, i32) {
    %c0_i32 = arith.constant 0 : i32
    %c0_i32_0 = arith.constant 0 : i32
    return %arg0, %c0_i32 : i32, i32
  }
  func.func @transform_1(%arg0: i32) -> (i32, i32) {
    %c0_i32 = arith.constant 0 : i32
    %c0_i32_0 = arith.constant 0 : i32
    %c0_i32_1 = arith.constant 0 : i32
    return %c0_i32, %c0_i32_0 : i32, i32
  }
  func.func @transform_2(%arg0: i32) -> (i32, i32) {
    %c0_i32 = arith.constant 0 : i32
    %c0_i32_0 = arith.constant 0 : i32
    %c0_i32_1 = arith.constant 0 : i32
    return %c0_i32, %c0_i32_0 : i32, i32
  }
  func.func @transform_3(%arg0: i32) -> (i32, i32) {
    %c0_i32 = arith.constant 0 : i32
    %c0_i32_0 = arith.constant 0 : i32
    return %arg0, %c0_i32 : i32, i32
  }
}

module attributes {stable_mosaic.version = 11 : i64} {
  func.func @_mm_stats_kernel(%arg0: i32, %arg1: i32, %arg2: memref<128x512xf32, #tpu.memory_space<vmem>>, %arg3: memref<512x512xbf16, #tpu.memory_space<vmem>>, %arg4: memref<128x512xf32, #tpu.memory_space<vmem>>, %arg5: memref<8x512xf32, #tpu.memory_space<vmem>>, %arg6: memref<8x512xf32, #tpu.memory_space<vmem>>) attributes {dimension_semantics = [#tpu.dimension_semantics<parallel>, #tpu.dimension_semantics<parallel>], iteration_bounds = array<i64: 1, 2>, scalar_prefetch = 0 : i64, scratch_operands = 0 : i64, tpu.core_type = #tpu.core_type<tc>, window_params = [{transform_indices = @transform_0, window_bounds = array<i64: 128, 512>}, {transform_indices = @transform_1, window_bounds = array<i64: 512, 512>}, {transform_indices = @transform_2, window_bounds = array<i64: 128, 512>}, {transform_indices = @transform_3, window_bounds = array<i64: 8, 512>}, {transform_indices = @transform_4, window_bounds = array<i64: 8, 512>}]} {
    %c0 = arith.constant 0 : index
    %c0_0 = arith.constant 0 : index
    %0 = vector.load %arg2[%c0, %c0_0] : memref<128x512xf32, #tpu.memory_space<vmem>>, vector<128x512xf32>
    %1 = arith.truncf %0 : vector<128x512xf32> to vector<128x512xbf16>
    %c0_1 = arith.constant 0 : index
    %c0_2 = arith.constant 0 : index
    %2 = vector.load %arg3[%c0_1, %c0_2] : memref<512x512xbf16, #tpu.memory_space<vmem>>, vector<512x512xbf16>
    %cst = arith.constant dense<0.000000e+00> : vector<128x512xf32>
    %3 = tpu.matmul %1, %2, %cst {dimension_numbers = #tpu.dot_dimension_numbers<[1], [0], [0], [1], [0, 0, 1, 1], [], []>} : vector<128x512xbf16>, vector<512x512xbf16>, vector<128x512xf32> -> vector<128x512xf32>
    %c0_3 = arith.constant 0 : index
    %c0_4 = arith.constant 0 : index
    %4 = vector.load %arg4[%c0_3, %c0_4] : memref<128x512xf32, #tpu.memory_space<vmem>>, vector<128x512xf32>
    tpu.vector_store %arg4[%c0_3, %c0_4], %3 {strides = array<i32>} : memref<128x512xf32, #tpu.memory_space<vmem>>, vector<128x512xf32>,
    %cst_5 = arith.constant dense<0.000000e+00> : vector<512xf32>
    %5 = vector.multi_reduction <add>, %3, %cst_5 [0] : vector<128x512xf32> to vector<512xf32>
    %6 = vector.shape_cast %5 : vector<512xf32> to vector<1x512xf32>
    %7 = vector.shape_cast %6 : vector<1x512xf32> to vector<1x512xf32>
    %8 = vector.broadcast %7 : vector<1x512xf32> to vector<8x512xf32>
    %c0_6 = arith.constant 0 : index
    %c0_7 = arith.constant 0 : index
    %9 = vector.load %arg5[%c0_6, %c0_7] : memref<8x512xf32, #tpu.memory_space<vmem>>, vector<8x512xf32>
    tpu.vector_store %arg5[%c0_6, %c0_7], %8 {strides = array<i32>} : memref<8x512xf32, #tpu.memory_space<vmem>>, vector<8x512xf32>,
    %10 = arith.mulf %3, %3 : vector<128x512xf32>
    %cst_8 = arith.constant dense<0.000000e+00> : vector<512xf32>
    %11 = vector.multi_reduction <add>, %10, %cst_8 [0] : vector<128x512xf32> to vector<512xf32>
    %12 = vector.shape_cast %11 : vector<512xf32> to vector<1x512xf32>
    %13 = vector.shape_cast %12 : vector<1x512xf32> to vector<1x512xf32>
    %14 = vector.broadcast %13 : vector<1x512xf32> to vector<8x512xf32>
    %c0_9 = arith.constant 0 : index
    %c0_10 = arith.constant 0 : index
    %15 = vector.load %arg6[%c0_9, %c0_10] : memref<8x512xf32, #tpu.memory_space<vmem>>, vector<8x512xf32>
    tpu.vector_store %arg6[%c0_9, %c0_10], %14 {strides = array<i32>} : memref<8x512xf32, #tpu.memory_space<vmem>>, vector<8x512xf32>,
    return
  }
  func.func @transform_0(%arg0: i32, %arg1: i32) -> (i32, i32) {
    %c0_i32 = arith.constant 0 : i32
    %c0_i32_0 = arith.constant 0 : i32
    return %arg0, %c0_i32 : i32, i32
  }
  func.func @transform_1(%arg0: i32, %arg1: i32) -> (i32, i32) {
    %c0_i32 = arith.constant 0 : i32
    %c0_i32_0 = arith.constant 0 : i32
    return %c0_i32, %arg1 : i32, i32
  }
  func.func @transform_2(%arg0: i32, %arg1: i32) -> (i32, i32) {
    %c0_i32 = arith.constant 0 : i32
    return %arg0, %arg1 : i32, i32
  }
  func.func @transform_3(%arg0: i32, %arg1: i32) -> (i32, i32) {
    %c0_i32 = arith.constant 0 : i32
    return %arg0, %arg1 : i32, i32
  }
  func.func @transform_4(%arg0: i32, %arg1: i32) -> (i32, i32) {
    %c0_i32 = arith.constant 0 : i32
    return %arg0, %arg1 : i32, i32
  }
}

module attributes {stable_mosaic.version = 11 : i64} {
  func.func @_affine_relu_kernel(%arg0: i32, %arg1: memref<128x1024xf32, #tpu.memory_space<vmem>>, %arg2: memref<1x1024xf32, #tpu.memory_space<vmem>>, %arg3: memref<1x1024xf32, #tpu.memory_space<vmem>>, %arg4: memref<128x1024xf32, #tpu.memory_space<vmem>>) attributes {dimension_semantics = [#tpu.dimension_semantics<parallel>], iteration_bounds = array<i64: 1>, scalar_prefetch = 0 : i64, scratch_operands = 0 : i64, tpu.core_type = #tpu.core_type<tc>, window_params = [{transform_indices = @transform_0, window_bounds = array<i64: 128, 1024>}, {pipeline_mode = #tpu.pipeline_mode<synchronous>, transform_indices = @transform_1, window_bounds = array<i64: 1, 1024>}, {pipeline_mode = #tpu.pipeline_mode<synchronous>, transform_indices = @transform_2, window_bounds = array<i64: 1, 1024>}, {transform_indices = @transform_3, window_bounds = array<i64: 128, 1024>}]} {
    %c0 = arith.constant 0 : index
    %c0_0 = arith.constant 0 : index
    %0 = vector.load %arg1[%c0, %c0_0] : memref<128x1024xf32, #tpu.memory_space<vmem>>, vector<128x1024xf32>
    %c0_1 = arith.constant 0 : index
    %c0_2 = arith.constant 0 : index
    %1 = vector.load %arg2[%c0_1, %c0_2] : memref<1x1024xf32, #tpu.memory_space<vmem>>, vector<1x1024xf32>
    %2 = vector.broadcast %1 : vector<1x1024xf32> to vector<128x1024xf32>
    %3 = arith.mulf %0, %2 : vector<128x1024xf32>
    %c0_3 = arith.constant 0 : index
    %c0_4 = arith.constant 0 : index
    %4 = vector.load %arg3[%c0_3, %c0_4] : memref<1x1024xf32, #tpu.memory_space<vmem>>, vector<1x1024xf32>
    %5 = vector.broadcast %4 : vector<1x1024xf32> to vector<128x1024xf32>
    %6 = arith.addf %3, %5 : vector<128x1024xf32>
    %cst = arith.constant 0.000000e+00 : f32
    %7 = vector.broadcast %cst : f32 to vector<128x1024xf32>
    %8 = arith.maximumf %6, %7 : vector<128x1024xf32>
    %c0_5 = arith.constant 0 : index
    %c0_6 = arith.constant 0 : index
    %9 = vector.load %arg4[%c0_5, %c0_6] : memref<128x1024xf32, #tpu.memory_space<vmem>>, vector<128x1024xf32>
    tpu.vector_store %arg4[%c0_5, %c0_6], %8 {strides = array<i32>} : memref<128x1024xf32, #tpu.memory_space<vmem>>, vector<128x1024xf32>,
    return
  }
  func.func @transform_0(%arg0: i32) -> (i32, i32) {
    %c0_i32 = arith.constant 0 : i32
    %c0_i32_0 = arith.constant 0 : i32
    return %arg0, %c0_i32 : i32, i32
  }
  func.func @transform_1(%arg0: i32) -> (i32, i32) {
    %c0_i32 = arith.constant 0 : i32
    %c0_i32_0 = arith.constant 0 : i32
    %c0_i32_1 = arith.constant 0 : i32
    return %c0_i32, %c0_i32_0 : i32, i32
  }
  func.func @transform_2(%arg0: i32) -> (i32, i32) {
    %c0_i32 = arith.constant 0 : i32
    %c0_i32_0 = arith.constant 0 : i32
    %c0_i32_1 = arith.constant 0 : i32
    return %c0_i32, %c0_i32_0 : i32, i32
  }
  func.func @transform_3(%arg0: i32) -> (i32, i32) {
    %c0_i32 = arith.constant 0 : i32
    %c0_i32_0 = arith.constant 0 : i32
    return %arg0, %c0_i32 : i32, i32
  }
}

module attributes {stable_mosaic.version = 11 : i64} {
  func.func @_mm_stats_kernel(%arg0: i32, %arg1: i32, %arg2: memref<2x1024xf32, #tpu.memory_space<vmem>>, %arg3: memref<1024x512xbf16, #tpu.memory_space<vmem>>, %arg4: memref<2x512xf32, #tpu.memory_space<vmem>>, %arg5: memref<8x512xf32, #tpu.memory_space<vmem>>, %arg6: memref<8x512xf32, #tpu.memory_space<vmem>>) attributes {dimension_semantics = [#tpu.dimension_semantics<parallel>, #tpu.dimension_semantics<parallel>], iteration_bounds = array<i64: 1, 1>, scalar_prefetch = 0 : i64, scratch_operands = 0 : i64, tpu.core_type = #tpu.core_type<tc>, window_params = [{transform_indices = @transform_0, window_bounds = array<i64: 2, 1024>}, {transform_indices = @transform_1, window_bounds = array<i64: 1024, 512>}, {transform_indices = @transform_2, window_bounds = array<i64: 2, 512>}, {transform_indices = @transform_3, window_bounds = array<i64: 8, 512>}, {transform_indices = @transform_4, window_bounds = array<i64: 8, 512>}]} {
    %c0 = arith.constant 0 : index
    %c0_0 = arith.constant 0 : index
    %0 = vector.load %arg2[%c0, %c0_0] : memref<2x1024xf32, #tpu.memory_space<vmem>>, vector<2x1024xf32>
    %1 = arith.truncf %0 : vector<2x1024xf32> to vector<2x1024xbf16>
    %c0_1 = arith.constant 0 : index
    %c0_2 = arith.constant 0 : index
    %2 = vector.load %arg3[%c0_1, %c0_2] : memref<1024x512xbf16, #tpu.memory_space<vmem>>, vector<1024x512xbf16>
    %cst = arith.constant dense<0.000000e+00> : vector<2x512xf32>
    %3 = tpu.matmul %1, %2, %cst {dimension_numbers = #tpu.dot_dimension_numbers<[1], [0], [0], [1], [0, 0, 1, 1], [], []>} : vector<2x1024xbf16>, vector<1024x512xbf16>, vector<2x512xf32> -> vector<2x512xf32>
    %c0_3 = arith.constant 0 : index
    %c0_4 = arith.constant 0 : index
    %4 = vector.load %arg4[%c0_3, %c0_4] : memref<2x512xf32, #tpu.memory_space<vmem>>, vector<2x512xf32>
    tpu.vector_store %arg4[%c0_3, %c0_4], %3 {strides = array<i32>} : memref<2x512xf32, #tpu.memory_space<vmem>>, vector<2x512xf32>,
    %cst_5 = arith.constant dense<0.000000e+00> : vector<512xf32>
    %5 = vector.multi_reduction <add>, %3, %cst_5 [0] : vector<2x512xf32> to vector<512xf32>
    %6 = vector.shape_cast %5 : vector<512xf32> to vector<1x512xf32>
    %7 = vector.shape_cast %6 : vector<1x512xf32> to vector<1x512xf32>
    %8 = vector.broadcast %7 : vector<1x512xf32> to vector<8x512xf32>
    %c0_6 = arith.constant 0 : index
    %c0_7 = arith.constant 0 : index
    %9 = vector.load %arg5[%c0_6, %c0_7] : memref<8x512xf32, #tpu.memory_space<vmem>>, vector<8x512xf32>
    tpu.vector_store %arg5[%c0_6, %c0_7], %8 {strides = array<i32>} : memref<8x512xf32, #tpu.memory_space<vmem>>, vector<8x512xf32>,
    %10 = arith.mulf %3, %3 : vector<2x512xf32>
    %cst_8 = arith.constant dense<0.000000e+00> : vector<512xf32>
    %11 = vector.multi_reduction <add>, %10, %cst_8 [0] : vector<2x512xf32> to vector<512xf32>
    %12 = vector.shape_cast %11 : vector<512xf32> to vector<1x512xf32>
    %13 = vector.shape_cast %12 : vector<1x512xf32> to vector<1x512xf32>
    %14 = vector.broadcast %13 : vector<1x512xf32> to vector<8x512xf32>
    %c0_9 = arith.constant 0 : index
    %c0_10 = arith.constant 0 : index
    %15 = vector.load %arg6[%c0_9, %c0_10] : memref<8x512xf32, #tpu.memory_space<vmem>>, vector<8x512xf32>
    tpu.vector_store %arg6[%c0_9, %c0_10], %14 {strides = array<i32>} : memref<8x512xf32, #tpu.memory_space<vmem>>, vector<8x512xf32>,
    return
  }
  func.func @transform_0(%arg0: i32, %arg1: i32) -> (i32, i32) {
    %c0_i32 = arith.constant 0 : i32
    %c0_i32_0 = arith.constant 0 : i32
    return %arg0, %c0_i32 : i32, i32
  }
  func.func @transform_1(%arg0: i32, %arg1: i32) -> (i32, i32) {
    %c0_i32 = arith.constant 0 : i32
    %c0_i32_0 = arith.constant 0 : i32
    return %c0_i32, %arg1 : i32, i32
  }
  func.func @transform_2(%arg0: i32, %arg1: i32) -> (i32, i32) {
    %c0_i32 = arith.constant 0 : i32
    return %arg0, %arg1 : i32, i32
  }
  func.func @transform_3(%arg0: i32, %arg1: i32) -> (i32, i32) {
    %c0_i32 = arith.constant 0 : i32
    return %arg0, %arg1 : i32, i32
  }
  func.func @transform_4(%arg0: i32, %arg1: i32) -> (i32, i32) {
    %c0_i32 = arith.constant 0 : i32
    return %arg0, %arg1 : i32, i32
  }
}

module attributes {stable_mosaic.version = 11 : i64} {
  func.func @_affine_relu_kernel(%arg0: i32, %arg1: memref<2x512xf32, #tpu.memory_space<vmem>>, %arg2: memref<1x512xf32, #tpu.memory_space<vmem>>, %arg3: memref<1x512xf32, #tpu.memory_space<vmem>>, %arg4: memref<2x512xf32, #tpu.memory_space<vmem>>) attributes {dimension_semantics = [#tpu.dimension_semantics<parallel>], iteration_bounds = array<i64: 1>, scalar_prefetch = 0 : i64, scratch_operands = 0 : i64, tpu.core_type = #tpu.core_type<tc>, window_params = [{transform_indices = @transform_0, window_bounds = array<i64: 2, 512>}, {pipeline_mode = #tpu.pipeline_mode<synchronous>, transform_indices = @transform_1, window_bounds = array<i64: 1, 512>}, {pipeline_mode = #tpu.pipeline_mode<synchronous>, transform_indices = @transform_2, window_bounds = array<i64: 1, 512>}, {transform_indices = @transform_3, window_bounds = array<i64: 2, 512>}]} {
    %c0 = arith.constant 0 : index
    %c0_0 = arith.constant 0 : index
    %0 = vector.load %arg1[%c0, %c0_0] : memref<2x512xf32, #tpu.memory_space<vmem>>, vector<2x512xf32>
    %c0_1 = arith.constant 0 : index
    %c0_2 = arith.constant 0 : index
    %1 = vector.load %arg2[%c0_1, %c0_2] : memref<1x512xf32, #tpu.memory_space<vmem>>, vector<1x512xf32>
    %2 = vector.broadcast %1 : vector<1x512xf32> to vector<2x512xf32>
    %3 = arith.mulf %0, %2 : vector<2x512xf32>
    %c0_3 = arith.constant 0 : index
    %c0_4 = arith.constant 0 : index
    %4 = vector.load %arg3[%c0_3, %c0_4] : memref<1x512xf32, #tpu.memory_space<vmem>>, vector<1x512xf32>
    %5 = vector.broadcast %4 : vector<1x512xf32> to vector<2x512xf32>
    %6 = arith.addf %3, %5 : vector<2x512xf32>
    %cst = arith.constant 0.000000e+00 : f32
    %7 = vector.broadcast %cst : f32 to vector<2x512xf32>
    %8 = arith.maximumf %6, %7 : vector<2x512xf32>
    %c0_5 = arith.constant 0 : index
    %c0_6 = arith.constant 0 : index
    %9 = vector.load %arg4[%c0_5, %c0_6] : memref<2x512xf32, #tpu.memory_space<vmem>>, vector<2x512xf32>
    tpu.vector_store %arg4[%c0_5, %c0_6], %8 {strides = array<i32>} : memref<2x512xf32, #tpu.memory_space<vmem>>, vector<2x512xf32>,
    return
  }
  func.func @transform_0(%arg0: i32) -> (i32, i32) {
    %c0_i32 = arith.constant 0 : i32
    %c0_i32_0 = arith.constant 0 : i32
    return %arg0, %c0_i32 : i32, i32
  }
  func.func @transform_1(%arg0: i32) -> (i32, i32) {
    %c0_i32 = arith.constant 0 : i32
    %c0_i32_0 = arith.constant 0 : i32
    %c0_i32_1 = arith.constant 0 : i32
    return %c0_i32, %c0_i32_0 : i32, i32
  }
  func.func @transform_2(%arg0: i32) -> (i32, i32) {
    %c0_i32 = arith.constant 0 : i32
    %c0_i32_0 = arith.constant 0 : i32
    %c0_i32_1 = arith.constant 0 : i32
    return %c0_i32, %c0_i32_0 : i32, i32
  }
  func.func @transform_3(%arg0: i32) -> (i32, i32) {
    %c0_i32 = arith.constant 0 : i32
    %c0_i32_0 = arith.constant 0 : i32
    return %arg0, %c0_i32 : i32, i32
  }
}

module attributes {stable_mosaic.version = 11 : i64} {
  func.func @_mm_stats_kernel(%arg0: i32, %arg1: i32, %arg2: memref<2x512xf32, #tpu.memory_space<vmem>>, %arg3: memref<512x256xbf16, #tpu.memory_space<vmem>>, %arg4: memref<2x256xf32, #tpu.memory_space<vmem>>, %arg5: memref<8x256xf32, #tpu.memory_space<vmem>>, %arg6: memref<8x256xf32, #tpu.memory_space<vmem>>) attributes {dimension_semantics = [#tpu.dimension_semantics<parallel>, #tpu.dimension_semantics<parallel>], iteration_bounds = array<i64: 1, 1>, scalar_prefetch = 0 : i64, scratch_operands = 0 : i64, tpu.core_type = #tpu.core_type<tc>, window_params = [{transform_indices = @transform_0, window_bounds = array<i64: 2, 512>}, {transform_indices = @transform_1, window_bounds = array<i64: 512, 256>}, {transform_indices = @transform_2, window_bounds = array<i64: 2, 256>}, {transform_indices = @transform_3, window_bounds = array<i64: 8, 256>}, {transform_indices = @transform_4, window_bounds = array<i64: 8, 256>}]} {
    %c0 = arith.constant 0 : index
    %c0_0 = arith.constant 0 : index
    %0 = vector.load %arg2[%c0, %c0_0] : memref<2x512xf32, #tpu.memory_space<vmem>>, vector<2x512xf32>
    %1 = arith.truncf %0 : vector<2x512xf32> to vector<2x512xbf16>
    %c0_1 = arith.constant 0 : index
    %c0_2 = arith.constant 0 : index
    %2 = vector.load %arg3[%c0_1, %c0_2] : memref<512x256xbf16, #tpu.memory_space<vmem>>, vector<512x256xbf16>
    %cst = arith.constant dense<0.000000e+00> : vector<2x256xf32>
    %3 = tpu.matmul %1, %2, %cst {dimension_numbers = #tpu.dot_dimension_numbers<[1], [0], [0], [1], [0, 0, 1, 1], [], []>} : vector<2x512xbf16>, vector<512x256xbf16>, vector<2x256xf32> -> vector<2x256xf32>
    %c0_3 = arith.constant 0 : index
    %c0_4 = arith.constant 0 : index
    %4 = vector.load %arg4[%c0_3, %c0_4] : memref<2x256xf32, #tpu.memory_space<vmem>>, vector<2x256xf32>
    tpu.vector_store %arg4[%c0_3, %c0_4], %3 {strides = array<i32>} : memref<2x256xf32, #tpu.memory_space<vmem>>, vector<2x256xf32>,
    %cst_5 = arith.constant dense<0.000000e+00> : vector<256xf32>
    %5 = vector.multi_reduction <add>, %3, %cst_5 [0] : vector<2x256xf32> to vector<256xf32>
    %6 = vector.shape_cast %5 : vector<256xf32> to vector<1x256xf32>
    %7 = vector.shape_cast %6 : vector<1x256xf32> to vector<1x256xf32>
    %8 = vector.broadcast %7 : vector<1x256xf32> to vector<8x256xf32>
    %c0_6 = arith.constant 0 : index
    %c0_7 = arith.constant 0 : index
    %9 = vector.load %arg5[%c0_6, %c0_7] : memref<8x256xf32, #tpu.memory_space<vmem>>, vector<8x256xf32>
    tpu.vector_store %arg5[%c0_6, %c0_7], %8 {strides = array<i32>} : memref<8x256xf32, #tpu.memory_space<vmem>>, vector<8x256xf32>,
    %10 = arith.mulf %3, %3 : vector<2x256xf32>
    %cst_8 = arith.constant dense<0.000000e+00> : vector<256xf32>
    %11 = vector.multi_reduction <add>, %10, %cst_8 [0] : vector<2x256xf32> to vector<256xf32>
    %12 = vector.shape_cast %11 : vector<256xf32> to vector<1x256xf32>
    %13 = vector.shape_cast %12 : vector<1x256xf32> to vector<1x256xf32>
    %14 = vector.broadcast %13 : vector<1x256xf32> to vector<8x256xf32>
    %c0_9 = arith.constant 0 : index
    %c0_10 = arith.constant 0 : index
    %15 = vector.load %arg6[%c0_9, %c0_10] : memref<8x256xf32, #tpu.memory_space<vmem>>, vector<8x256xf32>
    tpu.vector_store %arg6[%c0_9, %c0_10], %14 {strides = array<i32>} : memref<8x256xf32, #tpu.memory_space<vmem>>, vector<8x256xf32>,
    return
  }
  func.func @transform_0(%arg0: i32, %arg1: i32) -> (i32, i32) {
    %c0_i32 = arith.constant 0 : i32
    %c0_i32_0 = arith.constant 0 : i32
    return %arg0, %c0_i32 : i32, i32
  }
  func.func @transform_1(%arg0: i32, %arg1: i32) -> (i32, i32) {
    %c0_i32 = arith.constant 0 : i32
    %c0_i32_0 = arith.constant 0 : i32
    return %c0_i32, %arg1 : i32, i32
  }
  func.func @transform_2(%arg0: i32, %arg1: i32) -> (i32, i32) {
    %c0_i32 = arith.constant 0 : i32
    return %arg0, %arg1 : i32, i32
  }
  func.func @transform_3(%arg0: i32, %arg1: i32) -> (i32, i32) {
    %c0_i32 = arith.constant 0 : i32
    return %arg0, %arg1 : i32, i32
  }
  func.func @transform_4(%arg0: i32, %arg1: i32) -> (i32, i32) {
    %c0_i32 = arith.constant 0 : i32
    return %arg0, %arg1 : i32, i32
  }
}

module attributes {stable_mosaic.version = 11 : i64} {
  func.func @_affine_relu_kernel(%arg0: i32, %arg1: memref<2x256xf32, #tpu.memory_space<vmem>>, %arg2: memref<1x256xf32, #tpu.memory_space<vmem>>, %arg3: memref<1x256xf32, #tpu.memory_space<vmem>>, %arg4: memref<2x256xf32, #tpu.memory_space<vmem>>) attributes {dimension_semantics = [#tpu.dimension_semantics<parallel>], iteration_bounds = array<i64: 1>, scalar_prefetch = 0 : i64, scratch_operands = 0 : i64, tpu.core_type = #tpu.core_type<tc>, window_params = [{transform_indices = @transform_0, window_bounds = array<i64: 2, 256>}, {pipeline_mode = #tpu.pipeline_mode<synchronous>, transform_indices = @transform_1, window_bounds = array<i64: 1, 256>}, {pipeline_mode = #tpu.pipeline_mode<synchronous>, transform_indices = @transform_2, window_bounds = array<i64: 1, 256>}, {transform_indices = @transform_3, window_bounds = array<i64: 2, 256>}]} {
    %c0 = arith.constant 0 : index
    %c0_0 = arith.constant 0 : index
    %0 = vector.load %arg1[%c0, %c0_0] : memref<2x256xf32, #tpu.memory_space<vmem>>, vector<2x256xf32>
    %c0_1 = arith.constant 0 : index
    %c0_2 = arith.constant 0 : index
    %1 = vector.load %arg2[%c0_1, %c0_2] : memref<1x256xf32, #tpu.memory_space<vmem>>, vector<1x256xf32>
    %2 = vector.broadcast %1 : vector<1x256xf32> to vector<2x256xf32>
    %3 = arith.mulf %0, %2 : vector<2x256xf32>
    %c0_3 = arith.constant 0 : index
    %c0_4 = arith.constant 0 : index
    %4 = vector.load %arg3[%c0_3, %c0_4] : memref<1x256xf32, #tpu.memory_space<vmem>>, vector<1x256xf32>
    %5 = vector.broadcast %4 : vector<1x256xf32> to vector<2x256xf32>
    %6 = arith.addf %3, %5 : vector<2x256xf32>
    %cst = arith.constant 0.000000e+00 : f32
    %7 = vector.broadcast %cst : f32 to vector<2x256xf32>
    %8 = arith.maximumf %6, %7 : vector<2x256xf32>
    %c0_5 = arith.constant 0 : index
    %c0_6 = arith.constant 0 : index
    %9 = vector.load %arg4[%c0_5, %c0_6] : memref<2x256xf32, #tpu.memory_space<vmem>>, vector<2x256xf32>
    tpu.vector_store %arg4[%c0_5, %c0_6], %8 {strides = array<i32>} : memref<2x256xf32, #tpu.memory_space<vmem>>, vector<2x256xf32>,
    return
  }
  func.func @transform_0(%arg0: i32) -> (i32, i32) {
    %c0_i32 = arith.constant 0 : i32
    %c0_i32_0 = arith.constant 0 : i32
    return %arg0, %c0_i32 : i32, i32
  }
  func.func @transform_1(%arg0: i32) -> (i32, i32) {
    %c0_i32 = arith.constant 0 : i32
    %c0_i32_0 = arith.constant 0 : i32
    %c0_i32_1 = arith.constant 0 : i32
    return %c0_i32, %c0_i32_0 : i32, i32
  }
  func.func @transform_2(%arg0: i32) -> (i32, i32) {
    %c0_i32 = arith.constant 0 : i32
    %c0_i32_0 = arith.constant 0 : i32
    %c0_i32_1 = arith.constant 0 : i32
    return %c0_i32, %c0_i32_0 : i32, i32
  }
  func.func @transform_3(%arg0: i32) -> (i32, i32) {
    %c0_i32 = arith.constant 0 : i32
    %c0_i32_0 = arith.constant 0 : i32
    return %arg0, %c0_i32 : i32, i32
  }
}

module attributes {stable_mosaic.version = 11 : i64} {
  func.func @_mm_bias_kernel(%arg0: i32, %arg1: i32, %arg2: memref<2x256xf32, #tpu.memory_space<vmem>>, %arg3: memref<256x10xbf16, #tpu.memory_space<vmem>>, %arg4: memref<1x10xf32, #tpu.memory_space<vmem>>, %arg5: memref<2x10xf32, #tpu.memory_space<vmem>>) attributes {dimension_semantics = [#tpu.dimension_semantics<parallel>, #tpu.dimension_semantics<parallel>], iteration_bounds = array<i64: 1, 1>, scalar_prefetch = 0 : i64, scratch_operands = 0 : i64, tpu.core_type = #tpu.core_type<tc>, window_params = [{transform_indices = @transform_0, window_bounds = array<i64: 2, 256>}, {transform_indices = @transform_1, window_bounds = array<i64: 256, 10>}, {transform_indices = @transform_2, window_bounds = array<i64: 1, 10>}, {transform_indices = @transform_3, window_bounds = array<i64: 2, 10>}]} {
    %c0 = arith.constant 0 : index
    %c0_0 = arith.constant 0 : index
    %0 = vector.load %arg2[%c0, %c0_0] : memref<2x256xf32, #tpu.memory_space<vmem>>, vector<2x256xf32>
    %1 = arith.truncf %0 : vector<2x256xf32> to vector<2x256xbf16>
    %c0_1 = arith.constant 0 : index
    %c0_2 = arith.constant 0 : index
    %2 = vector.load %arg3[%c0_1, %c0_2] : memref<256x10xbf16, #tpu.memory_space<vmem>>, vector<256x10xbf16>
    %cst = arith.constant dense<0.000000e+00> : vector<2x10xf32>
    %3 = tpu.matmul %1, %2, %cst {dimension_numbers = #tpu.dot_dimension_numbers<[1], [0], [0], [1], [0, 0, 1, 1], [], []>} : vector<2x256xbf16>, vector<256x10xbf16>, vector<2x10xf32> -> vector<2x10xf32>
    %c0_3 = arith.constant 0 : index
    %c0_4 = arith.constant 0 : index
    %4 = vector.load %arg4[%c0_3, %c0_4] : memref<1x10xf32, #tpu.memory_space<vmem>>, vector<1x10xf32>
    %5 = vector.broadcast %4 : vector<1x10xf32> to vector<2x10xf32>
    %6 = arith.addf %3, %5 : vector<2x10xf32>
    %c0_5 = arith.constant 0 : index
    %c0_6 = arith.constant 0 : index
    %7 = vector.load %arg5[%c0_5, %c0_6] : memref<2x10xf32, #tpu.memory_space<vmem>>, vector<2x10xf32>
    tpu.vector_store %arg5[%c0_5, %c0_6], %6 {strides = array<i32>} : memref<2x10xf32, #tpu.memory_space<vmem>>, vector<2x10xf32>,
    return
  }
  func.func @transform_0(%arg0: i32, %arg1: i32) -> (i32, i32) {
    %c0_i32 = arith.constant 0 : i32
    %c0_i32_0 = arith.constant 0 : i32
    return %arg0, %c0_i32 : i32, i32
  }
  func.func @transform_1(%arg0: i32, %arg1: i32) -> (i32, i32) {
    %c0_i32 = arith.constant 0 : i32
    %c0_i32_0 = arith.constant 0 : i32
    return %c0_i32, %arg1 : i32, i32
  }
  func.func @transform_2(%arg0: i32, %arg1: i32) -> (i32, i32) {
    %c0_i32 = arith.constant 0 : i32
    %c0_i32_0 = arith.constant 0 : i32
    return %c0_i32, %arg1 : i32, i32
  }
  func.func @transform_3(%arg0: i32, %arg1: i32) -> (i32, i32) {
    %c0_i32 = arith.constant 0 : i32
    return %arg0, %arg1 : i32, i32
  }
}

</mosaic_0001>

<bundles_post_ra>
// kernel: advection_core.34
= control target key start
LH: loop header
LB: loop body
LE: loop exit
PB: predicated region body
PF: predicated region fallthrough
CT: control target
= control target key end

     0   :  { %s755_s15 = smov 0   ;;  %s757_s16 = smov 0   ;;  %s838_s0 = inlined_call_operand.vmem [shape: f32[128,45], index: 0, kind: input, shape index: {}]   ;;  %s839_s1 = inlined_call_operand.vmem [shape: bf16[45,64], index: 1, kind: input, shape index: {}]   ;;  %s840_s2 = inlined_call_operand.vmem [shape: f32[128,64], index: 2, kind: output, shape index: {0}]   ;;  %s841_s3 = inlined_call_operand.vmem [shape: f32[16,64], index: 3, kind: output, shape index: {1}]   ;;  %s842_s4 = inlined_call_operand.vmem [shape: f32[16,64], index: 4, kind: output, shape index: {2}]  }
   0x1   :  { %s759_s17 = smov 0  }
   0x2 LB: > { %s27_s18 = sadd.s32 1, %s723_s16  ;;  %p634_p0 = scmp.ge.s32.totalorder %s727_s17, 1  ;;  %s727_s17 = sphi %s759_s17, %s15_s17   ;;  %s723_s16 = sphi %s757_s16, %s844_s16   ;;  %s719_s15 = sphi %s755_s15, %s843_s15  }
   0x3   : > { %p29_p1 = scmp.ge.s32.totalorder %s27_s18, 2  ;;  %p195_p2 = scmp.lt.s32.totalorder %s727_s17, 3 }
   0x5   : > { %s846_s18 = smov (%p29_p1, %s27_s18), 0  ;;  %p196_p3 = pnand %p634_p0, %p195_p2 }
   0x6   : > { %v702_v0 = vld [vmem:[%s839_s1] sm:$0xff] (!%p196_p3)   ;;  %vm324_vm0 = vcmask (!%p196_p3), 1045504   ;;  %v703_v1 = vld [vmem:[%s839_s1 + $0x8] sm:$0xff] (!%p196_p3)   ;;  %vm325_vm1 = vcmask (!%p196_p3), 1046528   ;;  %v704_v2 = vld [vmem:[%s839_s1 + $0x10] sm:$0x7f] (!%p196_p3)  }
   0x7   : > { %199 = sbr.rel (%p196_p3) target bundleno = 266 (0x10a), region = 28  ;;  %657 = vmatprep.subr.bf16.mxu0 (!%p196_p3), %v702_v0  ;;  %671 = vmatprep.subr.bf16.mxu1 (!%p196_p3), %v702_v0  ;;  %s635_s25 = sshll.u32 (!%p196_p3), %s719_s15, 3  ;;  %v729_v3 = vmov (!%p196_p3), 65535   ;;  %vm311_vm2 = vcmask (!%p196_p3), 367616   ;;  %vm396_vm3 = vcmask (!%p196_p3), 523264  }
   0x8   : > { %658 = vmatpush3.bf16.msra.mxu0 (!%p196_p3), %v702_v0  ;;  %674 = vmatpush3.bf16.msra.mxu1 (!%p196_p3), %v702_v0  ;;  %v326_v4 = vsel (!%p196_p3), %vm324_vm0, 4294967295, %v729_v3  ;;  %p243_p4 = scmp.lt.s32.totalorder (!%p196_p3), %s635_s25, 15  ;;  %p261_p5 = scmp.lt.s32.totalorder (!%p196_p3), %s719_s15, 1 }
   0x9   : > { %659 = vmatprep.subr.bf16.mxu0 (!%p196_p3), %v703_v1  ;;  %672 = vmatprep.subr.bf16.mxu1 (!%p196_p3), %v703_v1  ;;  %v327_v5 = vsel (!%p196_p3), %vm325_vm1, %v326_v4, 0 }
   0xa   : > { %v329_v6 = vand.u32 (!%p196_p3), %v704_v2, %v327_v5 }
   0xc   : > { %660 = vmatpush3.bf16.msra.mxu0 (!%p196_p3), %v703_v1  ;;  %675 = vmatpush3.bf16.msra.mxu1 (!%p196_p3), %v703_v1 }
   0xd   : > { %661 = vmatprep.subr.bf16.mxu0 (!%p196_p3), %v329_v6  ;;  %673 = vmatprep.subr.bf16.mxu1 (!%p196_p3), %v329_v6 }
   0xe   : > { %s848_s25 = smov (!%p243_p4, %s635_s25), 15  ;;  %s850_s15 = smov (!%p261_p5, %s719_s15), 1 }
   0xf   : > { %s636_s26 = sshll.u32 %s848_s25, 3  ;;  %s639_s7 = sshll.u32 %s850_s15, 3 }
  0x10   : > { %s246_s29 = scalar_lea.vmem %s838_s0, %s636_s26  ;;  %662 = vmatpush3.bf16.msra.mxu0 %v329_v6  ;;  %676 = vmatpush3.bf16.msra.mxu1 %v329_v6  ;;  %s259_s6 = scalar_lea.vmem %s840_s2, %s636_s26 }
  0x11   : > { %v276_v7 = vld [vmem:[%s246_s29] sm:$0xff]  ;;  %v277_v8 = vld [vmem:[%s246_s29 + $0x8] sm:$0xff]  ;;  %v278_v9 = vld [vmem:[%s246_s29 + $0x10] sm:$0xff]  ;;  %s267_s10 = scalar_lea.vmem %s841_s3, %s639_s7  ;;  %s274_s13 = scalar_lea.vmem %s842_s4, %s639_s7 }
  0x12   : > { %v284_v10 = vpack.c.bf16 %v277_v8, %v276_v7  ;;  %v279_v11 = vld [vmem:[%s246_s29 + $0x18] sm:$0xff]  ;;  %v280_v12 = vld [vmem:[%s246_s29 + $0x20] sm:$0xff]  ;;  %v281_v13 = vld [vmem:[%s246_s29 + $0x28] sm:$0xff] }
  0x13   : > { %v285_v14 = vpack.c.bf16 %v279_v11, %v278_v9  ;;  %v286_v15 = vpack.c.bf16 %v281_v13, %v280_v12  ;;  %v282_v16 = vld [vmem:[%s246_s29 + $0x30] sm:$0xff]  ;;  %v283_v17 = vld [vmem:[%s246_s29 + $0x38] sm:$0xff] }
  0x14   : > { %663 = vmatprep.mubr.msk.bf16.mxu0 %vm311_vm2, %v284_v10  ;;  %v287_v18 = vpack.c.bf16 %v283_v17, %v282_v16 }
  0x15   : > { %664 = vmatmul.mubr.msk.bf16.vlgmr.msra.gmra.mrb[0].mxu0 %vm311_vm2, %v285_v14  ;;  %667 = vmatprep.mubr.msk.bf16.mxu1 %vm311_vm2, %v286_v15 }
  0x16   : > { %668 = vmatmul.mubr.msk.bf16.vlgmr.msra.gmra.mrb[0].mxu1 %vm311_vm2, %v287_v18 }
  0xe8   : > { %v665_v19 = vpop.f32.mrb[0].mxu0 }
  0xe9   : > { %399 = vst.msk [vmem:[%s259_s6 + $0x10] sm:$0xff] %vm396_vm3, %v665_v19  ;;  %v365_v20 = vpop.f32.mrb[1].mxu0  ;;  %v669_v21 = vpop.f32.mrb[0].mxu1  ;;  %v429_v27 = vmul.f32 %v665_v19, %v665_v19  ;;  %v408_v32 = vsel %vm396_vm3, %v665_v19, 0.0 }
  0xea   : > { %397 = vst.msk [vmem:[%s259_s6] sm:$0xff] %vm396_vm3, %v365_v20  ;;  %v427_v22 = vmul.f32 %v365_v20, %v365_v20  ;;  %v666_v23 = vpop.f32.mrb[2].mxu0  ;;  %403 = vst.msk [vmem:[%s259_s6 + $0x30] sm:$0xff] %vm396_vm3, %v669_v21  ;;  %v381_v24 = vpop.f32.mrb[1].mxu1  ;;  %v405_v28 = vsel %vm396_vm3, %v365_v20, 0.0  ;;  %v433_v50 = vmul.f32 %v669_v21, %v669_v21  ;;  %v416_v54 = vsel %vm396_vm3, %v669_v21, 0.0 }
  0xeb   : > { %400 = vst.msk [vmem:[%s259_s6 + $0x18] sm:$0xff] %vm396_vm3, %v666_v23  ;;  %v368_v25 = vpop.f32.mrb[3].mxu0  ;;  %401 = vst.msk [vmem:[%s259_s6 + $0x20] sm:$0xff] %vm396_vm3, %v381_v24  ;;  %v670_v26 = vpop.f32.mrb[2].mxu1  ;;  %v430_v35 = vmul.f32 %v666_v23, %v666_v23  ;;  %v431_v37 = vmul.f32 %v381_v24, %v381_v24  ;;  %v438_v40 = vsel %vm396_vm3, %v429_v27, 0.0  ;;  %v410_v41 = vsel %vm396_vm3, %v666_v23, 0.0 }
  0xec   : > { %398 = vst.msk [vmem:[%s259_s6 + $0x8] sm:$0xff] %vm396_vm3, %v368_v25  ;;  %v406_v29 = vsel %vm396_vm3, %v368_v25, 0.0  ;;  %v428_v30 = vmul.f32 %v368_v25, %v368_v25  ;;  %404 = vst.msk [vmem:[%s259_s6 + $0x38] sm:$0xff] %vm396_vm3, %v670_v26  ;;  %v384_v31 = vpop.f32.mrb[3].mxu1  ;;  %v435_v34 = vsel %vm396_vm3, %v427_v22, 0.0  ;;  %v412_v42 = vsel %vm396_vm3, %v381_v24, 0.0 }
  0xed   : > { %v407_v33 = vadd.f32 %v406_v29, %v405_v28  ;;  %402 = vst.msk [vmem:[%s259_s6 + $0x28] sm:$0xff] %vm396_vm3, %v384_v31  ;;  %v440_v45 = vsel %vm396_vm3, %v430_v35, 0.0  ;;  %v442_v46 = vsel %vm396_vm3, %v431_v37, 0.0  ;;  %v432_v47 = vmul.f32 %v384_v31, %v384_v31 }
  0xee   : > { %v436_v36 = vsel %vm396_vm3, %v428_v30, 0.0  ;;  %v414_v51 = vsel %vm396_vm3, %v384_v31, 0.0  ;;  %v434_v55 = vmul.f32 %v670_v26, %v670_v26  ;;  %v446_v59 = vsel %vm396_vm3, %v433_v50, 0.0 }
  0xef   : > { %v409_v38 = vadd.f32 %v408_v32, %v407_v33  ;;  %v437_v39 = vadd.f32 %v436_v36, %v435_v34  ;;  %v444_v56 = vsel %vm396_vm3, %v432_v47, 0.0  ;;  %v418_v60 = vsel %vm396_vm3, %v670_v26, 0.0 }
  0xf0   : > { %v448_v63 = vsel %vm396_vm3, %v434_v55, 0.0 }
  0xf1   : > { %v439_v43 = vadd.f32 %v438_v40, %v437_v39  ;;  %v411_v44 = vadd.f32 %v410_v41, %v409_v38 }
  0xf3   : > { %v413_v48 = vadd.f32 %v412_v42, %v411_v44  ;;  %v441_v49 = vadd.f32 %v440_v45, %v439_v43 }
  0xf5   : > { %v443_v52 = vadd.f32 %v442_v46, %v441_v49  ;;  %v415_v53 = vadd.f32 %v414_v51, %v413_v48 }
  0xf7   : > { %v417_v57 = vadd.f32 %v416_v54, %v415_v53  ;;  %v445_v58 = vadd.f32 %v444_v56, %v443_v52 }
  0xf9   : > { %v419_v61 = vadd.f32 %v418_v60, %v417_v57  ;;  %v447_v62 = vadd.f32 %v446_v59, %v445_v58 }
  0xfb   : > { %v420_v0 = vrot.slane %v419_v61, 4  ;;  %v449_v1 = vadd.f32 %v448_v63, %v447_v62 }
  0xfd   : > { %v421_v2 = vadd.f32 %v420_v0, %v419_v61  ;;  %v450_v3 = vrot.slane %v449_v1, 4 }
  0xff   : > { %v422_v4 = vrot.slane %v421_v2, 2  ;;  %v451_v5 = vadd.f32 %v450_v3, %v449_v1 }
 0x101   : > { %v423_v6 = vadd.f32 %v422_v4, %v421_v2  ;;  %v452_v7 = vrot.slane %v451_v5, 2 }
 0x103   : > { %v424_v8 = vrot.slane %v423_v6, 1  ;;  %v453_v9 = vadd.f32 %v452_v7, %v451_v5 }
 0x105   : > { %v425_v10 = vadd.f32 %v424_v8, %v423_v6  ;;  %v454_v11 = vrot.slane %v453_v9, 1 }
 0x107   : > { %426 = vst.msk [vmem:[%s267_s10] sm:$0xff] %vm396_vm3, %v425_v10  ;;  %v455_v12 = vadd.f32 %v454_v11, %v453_v9 }
 0x109   : > { %456 = vst.msk [vmem:[%s274_s13] sm:$0xff] %vm396_vm3, %v455_v12 }
 0x10a PF: > { %s15_s17 = sadd.s32 1, %s727_s17   ;;  %s843_s15 = smov %s723_s16 }
 0x10b   : > { %p12_p6 = scmp.ge.s32.totalorder %s15_s17, 4   ;;  %s844_s16 = smov %s846_s18 }
 0x10d   :  { %14 = sbr.rel (!%p12_p6) target bundleno = 2 (0x2), region = 85 }

// kernel: advection_core.35
= control target key start
LH: loop header
LB: loop body
LE: loop exit
PB: predicated region body
PF: predicated region fallthrough
CT: control target
= control target key end

     0   :  { %vm92_vm0 = vcmask 523264   ;;  %s271_s0 = inlined_call_operand.vmem [shape: f32[128,64], index: 0, kind: input, shape index: {}]   ;;  %s272_s1 = inlined_call_operand.vmem [shape: f32[1,64], index: 1, kind: input, shape index: {}]   ;;  %s273_s2 = inlined_call_operand.vmem [shape: f32[1,64], index: 2, kind: input, shape index: {}]   ;;  %s274_s3 = inlined_call_operand.vmem [shape: f32[128,64], index: 3, kind: output, shape index: {}]  }
   0x1   :  { %v14_v0 = vld [vmem:[%s271_s0] sm:$0xff]  ;;  %v15_v4 = vld [vmem:[%s271_s0 + $0x8] sm:$0xff]  ;;  %v16_v5 = vld [vmem:[%s271_s0 + $0x10] sm:$0xff] }
   0x2   :  { %v113_v1 = vld [vmem:[%s272_s1] ss:$0 sm:$0xff]  ;;  %v17_v6 = vld [vmem:[%s271_s0 + $0x18] sm:$0xff]  ;;  %v19_v11 = vld [vmem:[%s271_s0 + $0x28] sm:$0xff] }
   0x3   :  { %v144_v2 = vld [vmem:[%s273_s2] ss:$0 sm:$0xff]  ;;  %v37_v3 = vmul.f32 %v113_v1, %v14_v0  ;;  %v38_v7 = vmul.f32 %v113_v1, %v15_v4  ;;  %v39_v8 = vmul.f32 %v113_v1, %v16_v5  ;;  %v40_v9 = vmul.f32 %v113_v1, %v17_v6  ;;  %v20_v12 = vld [vmem:[%s271_s0 + $0x30] sm:$0xff]  ;;  %v21_v17 = vld [vmem:[%s271_s0 + $0x38] sm:$0xff] }
   0x4   :  { %v18_v10 = vld [vmem:[%s271_s0 + $0x20] sm:$0xff]  ;;  %v42_v15 = vmul.f32 %v113_v1, %v19_v11  ;;  %v43_v16 = vmul.f32 %v113_v1, %v20_v12  ;;  %v44_v21 = vmul.f32 %v113_v1, %v21_v17  ;;  %v23_v27 = vld [vmem:[%s271_s0 + $0x48] sm:$0xff]  ;;  %v24_v28 = vld [vmem:[%s271_s0 + $0x50] sm:$0xff] }
   0x5   :  { %v60_v13 = vadd.f32 %v144_v2, %v37_v3  ;;  %v41_v14 = vmul.f32 %v113_v1, %v18_v10  ;;  %v61_v18 = vadd.f32 %v144_v2, %v38_v7  ;;  %v62_v19 = vadd.f32 %v144_v2, %v39_v8  ;;  %v22_v22 = vld [vmem:[%s271_s0 + $0x40] sm:$0xff]  ;;  %v25_v29 = vld [vmem:[%s271_s0 + $0x58] sm:$0xff]  ;;  %v27_v35 = vld [vmem:[%s271_s0 + $0x68] sm:$0xff] }
   0x6   :  { %v63_v20 = vadd.f32 %v144_v2, %v40_v9  ;;  %v65_v25 = vadd.f32 %v144_v2, %v42_v15  ;;  %v66_v26 = vadd.f32 %v144_v2, %v43_v16  ;;  %v67_v33 = vadd.f32 %v144_v2, %v44_v21  ;;  %v26_v34 = vld [vmem:[%s271_s0 + $0x60] sm:$0xff]  ;;  %v28_v36 = vld [vmem:[%s271_s0 + $0x70] sm:$0xff]  ;;  %v29_v41 = vld [vmem:[%s271_s0 + $0x78] sm:$0xff] }
   0x7   :  { %v76_v23 = vmax.f32 %v60_v13, 0.0  ;;  %v64_v24 = vadd.f32 %v144_v2, %v41_v14  ;;  %v77_v30 = vmax.f32 %v61_v18, 0.0  ;;  %v78_v31 = vmax.f32 %v62_v19, 0.0 }
   0x8   :  { %v79_v32 = vmax.f32 %v63_v20, 0.0  ;;  %v81_v38 = vmax.f32 %v65_v25, 0.0  ;;  %v82_v39 = vmax.f32 %v66_v26, 0.0  ;;  %v45_v40 = vmul.f32 %v113_v1, %v22_v22 }
   0x9   :  { %93 = vst.msk [vmem:[%s274_s3] sm:$0xff] %vm92_vm0, %v76_v23  ;;  %v80_v37 = vmax.f32 %v64_v24, 0.0  ;;  %94 = vst.msk [vmem:[%s274_s3 + $0x8] sm:$0xff] %vm92_vm0, %v77_v30  ;;  %v83_v42 = vmax.f32 %v67_v33, 0.0  ;;  %v46_v43 = vmul.f32 %v113_v1, %v23_v27  ;;  %v47_v44 = vmul.f32 %v113_v1, %v24_v28 }
   0xa   :  { %95 = vst.msk [vmem:[%s274_s3 + $0x10] sm:$0xff] %vm92_vm0, %v78_v31  ;;  %96 = vst.msk [vmem:[%s274_s3 + $0x18] sm:$0xff] %vm92_vm0, %v79_v32  ;;  %v48_v45 = vmul.f32 %v113_v1, %v25_v29  ;;  %v68_v46 = vadd.f32 %v144_v2, %v45_v40  ;;  %v49_v47 = vmul.f32 %v113_v1, %v26_v34 }
   0xb   :  { %97 = vst.msk [vmem:[%s274_s3 + $0x20] sm:$0xff] %vm92_vm0, %v80_v37  ;;  %98 = vst.msk [vmem:[%s274_s3 + $0x28] sm:$0xff] %vm92_vm0, %v81_v38  ;;  %v50_v48 = vmul.f32 %v113_v1, %v27_v35  ;;  %v51_v49 = vmul.f32 %v113_v1, %v28_v36  ;;  %v69_v50 = vadd.f32 %v144_v2, %v46_v43 }
   0xc   :  { %99 = vst.msk [vmem:[%s274_s3 + $0x30] sm:$0xff] %vm92_vm0, %v82_v39  ;;  %100 = vst.msk [vmem:[%s274_s3 + $0x38] sm:$0xff] %vm92_vm0, %v83_v42  ;;  %v70_v51 = vadd.f32 %v144_v2, %v47_v44  ;;  %v71_v52 = vadd.f32 %v144_v2, %v48_v45  ;;  %v52_v53 = vmul.f32 %v113_v1, %v29_v41  ;;  %v84_v54 = vmax.f32 %v68_v46, 0.0 }
   0xd   :  { %v72_v55 = vadd.f32 %v144_v2, %v49_v47  ;;  %v73_v56 = vadd.f32 %v144_v2, %v50_v48  ;;  %v74_v57 = vadd.f32 %v144_v2, %v51_v49  ;;  %v85_v58 = vmax.f32 %v69_v50, 0.0 }
   0xe   :  { %v86_v59 = vmax.f32 %v70_v51, 0.0  ;;  %v87_v60 = vmax.f32 %v71_v52, 0.0  ;;  %v75_v61 = vadd.f32 %v144_v2, %v52_v53  ;;  %101 = vst.msk [vmem:[%s274_s3 + $0x40] sm:$0xff] %vm92_vm0, %v84_v54 }
   0xf   :  { %v88_v62 = vmax.f32 %v72_v55, 0.0  ;;  %v89_v63 = vmax.f32 %v73_v56, 0.0  ;;  %v90_v0 = vmax.f32 %v74_v57, 0.0  ;;  %102 = vst.msk [vmem:[%s274_s3 + $0x48] sm:$0xff] %vm92_vm0, %v85_v58 }
  0x10   :  { %103 = vst.msk [vmem:[%s274_s3 + $0x50] sm:$0xff] %vm92_vm0, %v86_v59  ;;  %104 = vst.msk [vmem:[%s274_s3 + $0x58] sm:$0xff] %vm92_vm0, %v87_v60  ;;  %v91_v1 = vmax.f32 %v75_v61, 0.0 }
  0x11   :  { %105 = vst.msk [vmem:[%s274_s3 + $0x60] sm:$0xff] %vm92_vm0, %v88_v62  ;;  %106 = vst.msk [vmem:[%s274_s3 + $0x68] sm:$0xff] %vm92_vm0, %v89_v63 }
  0x12   :  { %107 = vst.msk [vmem:[%s274_s3 + $0x70] sm:$0xff] %vm92_vm0, %v90_v0  ;;  %108 = vst.msk [vmem:[%s274_s3 + $0x78] sm:$0xff] %vm92_vm0, %v91_v1 }

// kernel: advection_core.36
= control target key start
LH: loop header
LB: loop body
LE: loop exit
PB: predicated region body
PF: predicated region fallthrough
CT: control target
= control target key end

     0   :  { %s761_s15 = smov 0   ;;  %s763_s16 = smov 0   ;;  %s854_s0 = inlined_call_operand.vmem [shape: f32[128,64], index: 0, kind: input, shape index: {}]   ;;  %s855_s1 = inlined_call_operand.vmem [shape: bf16[64,64], index: 1, kind: input, shape index: {}]   ;;  %s856_s2 = inlined_call_operand.vmem [shape: f32[128,64], index: 2, kind: output, shape index: {0}]   ;;  %s857_s3 = inlined_call_operand.vmem [shape: f32[16,64], index: 3, kind: output, shape index: {1}]   ;;  %s858_s4 = inlined_call_operand.vmem [shape: f32[16,64], index: 4, kind: output, shape index: {2}]  }
   0x1   :  { %s765_s17 = smov 0  }
   0x2 LB: > { %s27_s18 = sadd.s32 1, %s730_s16  ;;  %p635_p0 = scmp.ge.s32.totalorder %s734_s17, 1  ;;  %s734_s17 = sphi %s765_s17, %s15_s17   ;;  %s730_s16 = sphi %s763_s16, %s860_s16   ;;  %s726_s15 = sphi %s761_s15, %s859_s15  }
   0x3   : > { %p29_p1 = scmp.ge.s32.totalorder %s27_s18, 2  ;;  %p195_p2 = scmp.lt.s32.totalorder %s734_s17, 3 }
   0x5   : > { %s862_s18 = smov (%p29_p1, %s27_s18), 0  ;;  %p196_p3 = pnand %p635_p0, %p195_p2 }
   0x6   : > { %v708_v0 = vld [vmem:[%s855_s1] sm:$0xff] (!%p196_p3)   ;;  %s636_s21 = sshll.u32 (!%p196_p3), %s726_s15, 3  ;;  %v709_v1 = vld [vmem:[%s855_s1 + $0x8] sm:$0xff] (!%p196_p3)   ;;  %v710_v2 = vld [vmem:[%s855_s1 + $0x10] sm:$0xff] (!%p196_p3)   ;;  %vm320_vm0 = vcmask (!%p196_p3), 523264   ;;  %p261_p5 = scmp.lt.s32.totalorder (!%p196_p3), %s726_s15, 1 }
   0x7   : > { %199 = sbr.rel (%p196_p3) target bundleno = 268 (0x10c), region = 28  ;;  %p243_p4 = scmp.lt.s32.totalorder (!%p196_p3), %s636_s21, 15  ;;  %660 = vmatprep.subr.bf16.mxu0 (!%p196_p3), %v708_v0  ;;  %676 = vmatprep.subr.bf16.mxu1 (!%p196_p3), %v708_v0  ;;  %v711_v5 = vld [vmem:[%s855_s1 + $0x18] sm:$0xff] (!%p196_p3)  }
   0x8   : > { %661 = vmatpush3.bf16.msra.mxu0 (!%p196_p3), %v708_v0  ;;  %680 = vmatpush3.bf16.msra.mxu1 (!%p196_p3), %v708_v0 }
   0x9   : > { %662 = vmatprep.subr.bf16.mxu0 (!%p196_p3), %v709_v1  ;;  %677 = vmatprep.subr.bf16.mxu1 (!%p196_p3), %v709_v1 }
   0xc   : > { %663 = vmatpush3.bf16.msra.mxu0 (!%p196_p3), %v709_v1  ;;  %681 = vmatpush3.bf16.msra.mxu1 (!%p196_p3), %v709_v1 }
   0xd   : > { %664 = vmatprep.subr.bf16.mxu0 (!%p196_p3), %v710_v2  ;;  %678 = vmatprep.subr.bf16.mxu1 (!%p196_p3), %v710_v2 }
   0xe   : > { %s864_s21 = smov (!%p243_p4, %s636_s21), 15  ;;  %s866_s15 = smov (!%p261_p5, %s726_s15), 1 }
   0xf   : > { %s637_s26 = sshll.u32 %s864_s21, 3  ;;  %s640_s9 = sshll.u32 %s866_s15, 3 }
  0x10   : > { %s246_s29 = scalar_lea.vmem %s854_s0, %s637_s26  ;;  %665 = vmatpush3.bf16.msra.mxu0 %v710_v2  ;;  %682 = vmatpush3.bf16.msra.mxu1 %v710_v2  ;;  %s259_s8 = scalar_lea.vmem %s856_s2, %s637_s26 }
  0x11   : > { %v276_v3 = vld [vmem:[%s246_s29] sm:$0xff]  ;;  %v277_v4 = vld [vmem:[%s246_s29 + $0x8] sm:$0xff]  ;;  %v278_v10 = vld [vmem:[%s246_s29 + $0x10] sm:$0xff]  ;;  %666 = vmatprep.subr.bf16.mxu0 %v711_v5  ;;  %679 = vmatprep.subr.bf16.mxu1 %v711_v5  ;;  %s267_s12 = scalar_lea.vmem %s857_s3, %s640_s9  ;;  %s274_s19 = scalar_lea.vmem %s858_s4, %s640_s9 }
  0x12   : > { %v284_v6 = vpack.c.bf16 %v277_v4, %v276_v3  ;;  %v280_v7 = vld [vmem:[%s246_s29 + $0x20] sm:$0xff]  ;;  %v281_v8 = vld [vmem:[%s246_s29 + $0x28] sm:$0xff]  ;;  %v279_v11 = vld [vmem:[%s246_s29 + $0x18] sm:$0xff] }
  0x13   : > { %v286_v9 = vpack.c.bf16 %v281_v8, %v280_v7  ;;  %v282_v12 = vld [vmem:[%s246_s29 + $0x30] sm:$0xff]  ;;  %v283_v13 = vld [vmem:[%s246_s29 + $0x38] sm:$0xff]  ;;  %v285_v14 = vpack.c.bf16 %v279_v11, %v278_v10 }
  0x14   : > { %668 = vmatprep.mubr.msk.bf16.mxu0 %vm320_vm0, %v284_v6  ;;  %v287_v15 = vpack.c.bf16 %v283_v13, %v282_v12  ;;  %667 = vmatpush3.bf16.msra.mxu0 %v711_v5 }
  0x15   : > { %672 = vmatprep.mubr.msk.bf16.mxu1 %vm320_vm0, %v286_v9  ;;  %683 = vmatpush3.bf16.msra.mxu1 %v711_v5 }
  0x17   : > { %669 = vmatmul.mubr.msk.bf16.vlgmr.msra.gmra.mrb[0].mxu0 %vm320_vm0, %v285_v14 }
  0x18   : > { %673 = vmatmul.mubr.msk.bf16.vlgmr.msra.gmra.mrb[0].mxu1 %vm320_vm0, %v287_v15 }
  0xea   : > { %v670_v16 = vpop.f32.mrb[0].mxu0 }
  0xeb   : > { %v674_v17 = vpop.f32.mrb[0].mxu1  ;;  %400 = vst.msk [vmem:[%s259_s8 + $0x10] sm:$0xff] %vm320_vm0, %v670_v16  ;;  %v367_v18 = vpop.f32.mrb[1].mxu0  ;;  %v430_v25 = vmul.f32 %v670_v16, %v670_v16  ;;  %v409_v29 = vsel %vm320_vm0, %v670_v16, 0.0 }
  0xec   : > { %404 = vst.msk [vmem:[%s259_s8 + $0x30] sm:$0xff] %vm320_vm0, %v674_v17  ;;  %v383_v19 = vpop.f32.mrb[1].mxu1  ;;  %398 = vst.msk [vmem:[%s259_s8] sm:$0xff] %vm320_vm0, %v367_v18  ;;  %v428_v20 = vmul.f32 %v367_v18, %v367_v18  ;;  %v671_v21 = vpop.f32.mrb[2].mxu0  ;;  %v406_v26 = vsel %vm320_vm0, %v367_v18, 0.0  ;;  %v434_v47 = vmul.f32 %v674_v17, %v674_v17  ;;  %v417_v51 = vsel %vm320_vm0, %v674_v17, 0.0 }
  0xed   : > { %402 = vst.msk [vmem:[%s259_s8 + $0x20] sm:$0xff] %vm320_vm0, %v383_v19  ;;  %v675_v22 = vpop.f32.mrb[2].mxu1  ;;  %401 = vst.msk [vmem:[%s259_s8 + $0x18] sm:$0xff] %vm320_vm0, %v671_v21  ;;  %v370_v23 = vpop.f32.mrb[3].mxu0  ;;  %v431_v32 = vmul.f32 %v671_v21, %v671_v21  ;;  %v432_v34 = vmul.f32 %v383_v19, %v383_v19  ;;  %v439_v37 = vsel %vm320_vm0, %v430_v25, 0.0  ;;  %v411_v38 = vsel %vm320_vm0, %v671_v21, 0.0 }
  0xee   : > { %405 = vst.msk [vmem:[%s259_s8 + $0x38] sm:$0xff] %vm320_vm0, %v675_v22  ;;  %v386_v24 = vpop.f32.mrb[3].mxu1  ;;  %399 = vst.msk [vmem:[%s259_s8 + $0x8] sm:$0xff] %vm320_vm0, %v370_v23  ;;  %v407_v27 = vsel %vm320_vm0, %v370_v23, 0.0  ;;  %v429_v28 = vmul.f32 %v370_v23, %v370_v23  ;;  %v436_v31 = vsel %vm320_vm0, %v428_v20, 0.0  ;;  %v413_v39 = vsel %vm320_vm0, %v383_v19, 0.0 }
  0xef   : > { %403 = vst.msk [vmem:[%s259_s8 + $0x28] sm:$0xff] %vm320_vm0, %v386_v24  ;;  %v408_v30 = vadd.f32 %v407_v27, %v406_v26  ;;  %v441_v42 = vsel %vm320_vm0, %v431_v32, 0.0  ;;  %v443_v43 = vsel %vm320_vm0, %v432_v34, 0.0  ;;  %v433_v44 = vmul.f32 %v386_v24, %v386_v24 }
  0xf0   : > { %v437_v33 = vsel %vm320_vm0, %v429_v28, 0.0  ;;  %v415_v48 = vsel %vm320_vm0, %v386_v24, 0.0  ;;  %v435_v52 = vmul.f32 %v675_v22, %v675_v22  ;;  %v447_v56 = vsel %vm320_vm0, %v434_v47, 0.0 }
  0xf1   : > { %v410_v35 = vadd.f32 %v409_v29, %v408_v30  ;;  %v438_v36 = vadd.f32 %v437_v33, %v436_v31  ;;  %v445_v53 = vsel %vm320_vm0, %v433_v44, 0.0  ;;  %v419_v57 = vsel %vm320_vm0, %v675_v22, 0.0 }
  0xf2   : > { %v449_v60 = vsel %vm320_vm0, %v435_v52, 0.0 }
  0xf3   : > { %v440_v40 = vadd.f32 %v439_v37, %v438_v36  ;;  %v412_v41 = vadd.f32 %v411_v38, %v410_v35 }
  0xf5   : > { %v414_v45 = vadd.f32 %v413_v39, %v412_v41  ;;  %v442_v46 = vadd.f32 %v441_v42, %v440_v40 }
  0xf7   : > { %v444_v49 = vadd.f32 %v443_v43, %v442_v46  ;;  %v416_v50 = vadd.f32 %v415_v48, %v414_v45 }
  0xf9   : > { %v418_v54 = vadd.f32 %v417_v51, %v416_v50  ;;  %v446_v55 = vadd.f32 %v445_v53, %v444_v49 }
  0xfb   : > { %v420_v58 = vadd.f32 %v419_v57, %v418_v54  ;;  %v448_v59 = vadd.f32 %v447_v56, %v446_v55 }
  0xfd   : > { %v421_v61 = vrot.slane %v420_v58, 4  ;;  %v450_v62 = vadd.f32 %v449_v60, %v448_v59 }
  0xff   : > { %v422_v63 = vadd.f32 %v421_v61, %v420_v58  ;;  %v451_v0 = vrot.slane %v450_v62, 4 }
 0x101   : > { %v423_v1 = vrot.slane %v422_v63, 2  ;;  %v452_v2 = vadd.f32 %v451_v0, %v450_v62 }
 0x103   : > { %v424_v3 = vadd.f32 %v423_v1, %v422_v63  ;;  %v453_v4 = vrot.slane %v452_v2, 2 }
 0x105   : > { %v425_v5 = vrot.slane %v424_v3, 1  ;;  %v454_v6 = vadd.f32 %v453_v4, %v452_v2 }
 0x107   : > { %v426_v7 = vadd.f32 %v425_v5, %v424_v3  ;;  %v455_v8 = vrot.slane %v454_v6, 1 }
 0x109   : > { %427 = vst.msk [vmem:[%s267_s12] sm:$0xff] %vm320_vm0, %v426_v7  ;;  %v456_v9 = vadd.f32 %v455_v8, %v454_v6 }
 0x10b   : > { %457 = vst.msk [vmem:[%s274_s19] sm:$0xff] %vm320_vm0, %v456_v9 }
 0x10c PF: > { %s15_s17 = sadd.s32 1, %s734_s17   ;;  %s859_s15 = smov %s730_s16 }
 0x10d   : > { %p12_p6 = scmp.ge.s32.totalorder %s15_s17, 4   ;;  %s860_s16 = smov %s862_s18 }
 0x10f   :  { %14 = sbr.rel (!%p12_p6) target bundleno = 2 (0x2), region = 85 }

// kernel: advection_core.41
= control target key start
LH: loop header
LB: loop body
LE: loop exit
PB: predicated region body
PF: predicated region fallthrough
CT: control target
= control target key end

     0   :  { %s762_s15 = smov 0   ;;  %s764_s16 = smov 0   ;;  %s855_s0 = inlined_call_operand.vmem [shape: f32[128,64], index: 0, kind: input, shape index: {}]   ;;  %s856_s1 = inlined_call_operand.vmem [shape: bf16[64,32], index: 1, kind: input, shape index: {}]   ;;  %s857_s2 = inlined_call_operand.vmem [shape: f32[128,32], index: 2, kind: output, shape index: {0}]   ;;  %s858_s3 = inlined_call_operand.vmem [shape: f32[16,32], index: 3, kind: output, shape index: {1}]   ;;  %s859_s4 = inlined_call_operand.vmem [shape: f32[16,32], index: 4, kind: output, shape index: {2}]  }
   0x1   :  { %s766_s17 = smov 0  }
   0x2 LB: > { %s27_s18 = sadd.s32 1, %s731_s16  ;;  %p636_p0 = scmp.ge.s32.totalorder %s735_s17, 1  ;;  %s735_s17 = sphi %s766_s17, %s15_s17   ;;  %s731_s16 = sphi %s764_s16, %s861_s16   ;;  %s727_s15 = sphi %s762_s15, %s860_s15  }
   0x3   : > { %p29_p1 = scmp.ge.s32.totalorder %s27_s18, 2  ;;  %p195_p2 = scmp.lt.s32.totalorder %s735_s17, 3 }
   0x5   : > { %s863_s18 = smov (%p29_p1, %s27_s18), 0  ;;  %p196_p3 = pnand %p636_p0, %p195_p2 }
   0x6   : > { %v709_v0 = vld [vmem:[%s856_s1] sm:$0xff] (!%p196_p3)   ;;  %s637_s21 = sshll.u32 (!%p196_p3), %s727_s15, 3  ;;  %v710_v1 = vld [vmem:[%s856_s1 + $0x8] sm:$0xff] (!%p196_p3)   ;;  %v711_v2 = vld [vmem:[%s856_s1 + $0x10] sm:$0xff] (!%p196_p3)   ;;  %vm320_vm0 = vcmask (!%p196_p3), 523264   ;;  %vm398_vm1 = vcmask (!%p196_p3), 261120  }
   0x7   : > { %199 = sbr.rel (%p196_p3) target bundleno = 268 (0x10c), region = 28  ;;  %p243_p4 = scmp.lt.s32.totalorder (!%p196_p3), %s637_s21, 15  ;;  %661 = vmatprep.subr.bf16.mxu0 (!%p196_p3), %v709_v0  ;;  %677 = vmatprep.subr.bf16.mxu1 (!%p196_p3), %v709_v0  ;;  %v712_v5 = vld [vmem:[%s856_s1 + $0x18] sm:$0xff] (!%p196_p3)  }
   0x8   : > { %662 = vmatpush3.bf16.msra.mxu0 (!%p196_p3), %v709_v0  ;;  %681 = vmatpush3.bf16.msra.mxu1 (!%p196_p3), %v709_v0  ;;  %p261_p5 = scmp.lt.s32.totalorder (!%p196_p3), %s727_s15, 1 }
   0x9   : > { %663 = vmatprep.subr.bf16.mxu0 (!%p196_p3), %v710_v1  ;;  %678 = vmatprep.subr.bf16.mxu1 (!%p196_p3), %v710_v1 }
   0xc   : > { %664 = vmatpush3.bf16.msra.mxu0 (!%p196_p3), %v710_v1  ;;  %682 = vmatpush3.bf16.msra.mxu1 (!%p196_p3), %v710_v1 }
   0xd   : > { %665 = vmatprep.subr.bf16.mxu0 (!%p196_p3), %v711_v2  ;;  %679 = vmatprep.subr.bf16.mxu1 (!%p196_p3), %v711_v2 }
   0xe   : > { %s865_s21 = smov (!%p243_p4, %s637_s21), 15  ;;  %s867_s15 = smov (!%p261_p5, %s727_s15), 1 }
   0xf   : > { %s638_s26 = sshll.u32 %s865_s21, 3  ;;  %s641_s9 = sshll.u32 %s867_s15, 3 }
  0x10   : > { %s246_s29 = scalar_lea.vmem %s855_s0, %s638_s26  ;;  %666 = vmatpush3.bf16.msra.mxu0 %v711_v2  ;;  %683 = vmatpush3.bf16.msra.mxu1 %v711_v2  ;;  %s259_s8 = scalar_lea.vmem %s857_s2, %s638_s26 }
  0x11   : > { %v276_v3 = vld [vmem:[%s246_s29] sm:$0xff]  ;;  %v277_v4 = vld [vmem:[%s246_s29 + $0x8] sm:$0xff]  ;;  %v278_v10 = vld [vmem:[%s246_s29 + $0x10] sm:$0xff]  ;;  %667 = vmatprep.subr.bf16.mxu0 %v712_v5  ;;  %680 = vmatprep.subr.bf16.mxu1 %v712_v5  ;;  %s267_s12 = scalar_lea.vmem %s858_s3, %s641_s9  ;;  %s274_s19 = scalar_lea.vmem %s859_s4, %s641_s9 }
  0x12   : > { %v284_v6 = vpack.c.bf16 %v277_v4, %v276_v3  ;;  %v280_v7 = vld [vmem:[%s246_s29 + $0x20] sm:$0xff]  ;;  %v281_v8 = vld [vmem:[%s246_s29 + $0x28] sm:$0xff]  ;;  %v279_v11 = vld [vmem:[%s246_s29 + $0x18] sm:$0xff] }
  0x13   : > { %v286_v9 = vpack.c.bf16 %v281_v8, %v280_v7  ;;  %v282_v12 = vld [vmem:[%s246_s29 + $0x30] sm:$0xff]  ;;  %v283_v13 = vld [vmem:[%s246_s29 + $0x38] sm:$0xff]  ;;  %v285_v14 = vpack.c.bf16 %v279_v11, %v278_v10 }
  0x14   : > { %669 = vmatprep.mubr.msk.bf16.mxu0 %vm320_vm0, %v284_v6  ;;  %v287_v15 = vpack.c.bf16 %v283_v13, %v282_v12  ;;  %668 = vmatpush3.bf16.msra.mxu0 %v712_v5 }
  0x15   : > { %673 = vmatprep.mubr.msk.bf16.mxu1 %vm320_vm0, %v286_v9  ;;  %684 = vmatpush3.bf16.msra.mxu1 %v712_v5 }
  0x17   : > { %670 = vmatmul.mubr.msk.bf16.vlgmr.msra.gmra.mrb[0].mxu0 %vm320_vm0, %v285_v14 }
  0x18   : > { %674 = vmatmul.mubr.msk.bf16.vlgmr.msra.gmra.mrb[0].mxu1 %vm320_vm0, %v287_v15 }
  0xea   : > { %v671_v16 = vpop.f32.mrb[0].mxu0 }
  0xeb   : > { %v675_v17 = vpop.f32.mrb[0].mxu1  ;;  %401 = vst.msk [vmem:[%s259_s8 + $0x10] sm:$0xff] %vm398_vm1, %v671_v16  ;;  %v367_v18 = vpop.f32.mrb[1].mxu0  ;;  %v431_v25 = vmul.f32 %v671_v16, %v671_v16  ;;  %v410_v29 = vsel %vm398_vm1, %v671_v16, 0.0 }
  0xec   : > { %405 = vst.msk [vmem:[%s259_s8 + $0x30] sm:$0xff] %vm398_vm1, %v675_v17  ;;  %v383_v19 = vpop.f32.mrb[1].mxu1  ;;  %399 = vst.msk [vmem:[%s259_s8] sm:$0xff] %vm398_vm1, %v367_v18  ;;  %v429_v20 = vmul.f32 %v367_v18, %v367_v18  ;;  %v672_v21 = vpop.f32.mrb[2].mxu0  ;;  %v407_v26 = vsel %vm398_vm1, %v367_v18, 0.0  ;;  %v435_v47 = vmul.f32 %v675_v17, %v675_v17  ;;  %v418_v51 = vsel %vm398_vm1, %v675_v17, 0.0 }
  0xed   : > { %403 = vst.msk [vmem:[%s259_s8 + $0x20] sm:$0xff] %vm398_vm1, %v383_v19  ;;  %v676_v22 = vpop.f32.mrb[2].mxu1  ;;  %402 = vst.msk [vmem:[%s259_s8 + $0x18] sm:$0xff] %vm398_vm1, %v672_v21  ;;  %v370_v23 = vpop.f32.mrb[3].mxu0  ;;  %v432_v32 = vmul.f32 %v672_v21, %v672_v21  ;;  %v433_v34 = vmul.f32 %v383_v19, %v383_v19  ;;  %v440_v37 = vsel %vm398_vm1, %v431_v25, 0.0  ;;  %v412_v38 = vsel %vm398_vm1, %v672_v21, 0.0 }
  0xee   : > { %406 = vst.msk [vmem:[%s259_s8 + $0x38] sm:$0xff] %vm398_vm1, %v676_v22  ;;  %v386_v24 = vpop.f32.mrb[3].mxu1  ;;  %400 = vst.msk [vmem:[%s259_s8 + $0x8] sm:$0xff] %vm398_vm1, %v370_v23  ;;  %v408_v27 = vsel %vm398_vm1, %v370_v23, 0.0  ;;  %v430_v28 = vmul.f32 %v370_v23, %v370_v23  ;;  %v437_v31 = vsel %vm398_vm1, %v429_v20, 0.0  ;;  %v414_v39 = vsel %vm398_vm1, %v383_v19, 0.0 }
  0xef   : > { %404 = vst.msk [vmem:[%s259_s8 + $0x28] sm:$0xff] %vm398_vm1, %v386_v24  ;;  %v409_v30 = vadd.f32 %v408_v27, %v407_v26  ;;  %v442_v42 = vsel %vm398_vm1, %v432_v32, 0.0  ;;  %v444_v43 = vsel %vm398_vm1, %v433_v34, 0.0  ;;  %v434_v44 = vmul.f32 %v386_v24, %v386_v24 }
  0xf0   : > { %v438_v33 = vsel %vm398_vm1, %v430_v28, 0.0  ;;  %v416_v48 = vsel %vm398_vm1, %v386_v24, 0.0  ;;  %v436_v52 = vmul.f32 %v676_v22, %v676_v22  ;;  %v448_v56 = vsel %vm398_vm1, %v435_v47, 0.0 }
  0xf1   : > { %v411_v35 = vadd.f32 %v410_v29, %v409_v30  ;;  %v439_v36 = vadd.f32 %v438_v33, %v437_v31  ;;  %v446_v53 = vsel %vm398_vm1, %v434_v44, 0.0  ;;  %v420_v57 = vsel %vm398_vm1, %v676_v22, 0.0 }
  0xf2   : > { %v450_v60 = vsel %vm398_vm1, %v436_v52, 0.0 }
  0xf3   : > { %v441_v40 = vadd.f32 %v440_v37, %v439_v36  ;;  %v413_v41 = vadd.f32 %v412_v38, %v411_v35 }
  0xf5   : > { %v415_v45 = vadd.f32 %v414_v39, %v413_v41  ;;  %v443_v46 = vadd.f32 %v442_v42, %v441_v40 }
  0xf7   : > { %v445_v49 = vadd.f32 %v444_v43, %v443_v46  ;;  %v417_v50 = vadd.f32 %v416_v48, %v415_v45 }
  0xf9   : > { %v419_v54 = vadd.f32 %v418_v51, %v417_v50  ;;  %v447_v55 = vadd.f32 %v446_v53, %v445_v49 }
  0xfb   : > { %v421_v58 = vadd.f32 %v420_v57, %v419_v54  ;;  %v449_v59 = vadd.f32 %v448_v56, %v447_v55 }
  0xfd   : > { %v422_v61 = vrot.slane %v421_v58, 4  ;;  %v451_v62 = vadd.f32 %v450_v60, %v449_v59 }
  0xff   : > { %v423_v63 = vadd.f32 %v422_v61, %v421_v58  ;;  %v452_v0 = vrot.slane %v451_v62, 4 }
 0x101   : > { %v424_v1 = vrot.slane %v423_v63, 2  ;;  %v453_v2 = vadd.f32 %v452_v0, %v451_v62 }
 0x103   : > { %v425_v3 = vadd.f32 %v424_v1, %v423_v63  ;;  %v454_v4 = vrot.slane %v453_v2, 2 }
 0x105   : > { %v426_v5 = vrot.slane %v425_v3, 1  ;;  %v455_v6 = vadd.f32 %v454_v4, %v453_v2 }
 0x107   : > { %v427_v7 = vadd.f32 %v426_v5, %v425_v3  ;;  %v456_v8 = vrot.slane %v455_v6, 1 }
 0x109   : > { %428 = vst.msk [vmem:[%s267_s12] sm:$0xff] %vm398_vm1, %v427_v7  ;;  %v457_v9 = vadd.f32 %v456_v8, %v455_v6 }
 0x10b   : > { %458 = vst.msk [vmem:[%s274_s19] sm:$0xff] %vm398_vm1, %v457_v9 }
 0x10c PF: > { %s15_s17 = sadd.s32 1, %s735_s17   ;;  %s860_s15 = smov %s731_s16 }
 0x10d   : > { %p12_p6 = scmp.ge.s32.totalorder %s15_s17, 4   ;;  %s861_s16 = smov %s863_s18 }
 0x10f   :  { %14 = sbr.rel (!%p12_p6) target bundleno = 2 (0x2), region = 85 }

// kernel: advection_core.40
= control target key start
LH: loop header
LB: loop body
LE: loop exit
PB: predicated region body
PF: predicated region fallthrough
CT: control target
= control target key end

     0   :  { %s592_s12 = smov 0   ;;  %s594_s13 = smov 0   ;;  %s659_s0 = inlined_call_operand.vmem [shape: f32[128,64], index: 0, kind: input, shape index: {}]   ;;  %s660_s1 = inlined_call_operand.vmem [shape: bf16[64,3], index: 1, kind: input, shape index: {}]   ;;  %s661_s2 = inlined_call_operand.vmem [shape: f32[1,3], index: 2, kind: input, shape index: {}]   ;;  %s662_s3 = inlined_call_operand.vmem [shape: f32[128,3], index: 3, kind: output, shape index: {}]  }
   0x1   :  { %s596_s14 = smov 0  }
   0x2 LB: > { %s25_s15 = sadd.s32 1, %s566_s13  ;;  %p472_p0 = scmp.ge.s32.totalorder %s570_s14, 1  ;;  %s570_s14 = sphi %s596_s14, %s13_s14   ;;  %s566_s13 = sphi %s594_s13, %s664_s13   ;;  %s562_s12 = sphi %s592_s12, %s663_s12  }
   0x3   : > { %p27_p1 = scmp.ge.s32.totalorder %s25_s15, 2  ;;  %p169_p2 = scmp.lt.s32.totalorder %s570_s14, 3 }
   0x5   : > { %s666_s15 = smov (%p27_p1, %s25_s15), 0  ;;  %p170_p3 = pnand %p472_p0, %p169_p2 }
   0x6   : > { %v544_v0 = vld [vmem:[%s660_s1] sm:$0xff] (!%p170_p3)   ;;  %s473_s18 = sshll.u32 (!%p170_p3), %s562_s12, 3  ;;  %v545_v1 = vld [vmem:[%s660_s1 + $0x8] sm:$0xff] (!%p170_p3)   ;;  %v546_v2 = vld [vmem:[%s660_s1 + $0x10] sm:$0xff] (!%p170_p3)   ;;  %vm277_vm0 = vcmask (!%p170_p3), 523264   ;;  %vm355_vm1 = vcmask (!%p170_p3), 23552  }
   0x7   : > { %173 = sbr.rel (%p170_p3) target bundleno = 242 (0xf2), region = 32  ;;  %p204_p4 = scmp.lt.s32.totalorder (!%p170_p3), %s473_s18, 15  ;;  %496 = vmatprep.subr.bf16.mxu0 (!%p170_p3), %v544_v0  ;;  %512 = vmatprep.subr.bf16.mxu1 (!%p170_p3), %v544_v0  ;;  %v547_v6 = vld [vmem:[%s660_s1 + $0x18] sm:$0xff] (!%p170_p3)   ;;  %v477_v16 = vld [vmem:[%s661_s2] ss:$0 sm:$0xff] (!%p170_p3) }
   0x8   : > { %497 = vmatpush3.bf16.msra.mxu0 (!%p170_p3), %v544_v0  ;;  %516 = vmatpush3.bf16.msra.mxu1 (!%p170_p3), %v544_v0 }
   0x9   : > { %498 = vmatprep.subr.bf16.mxu0 (!%p170_p3), %v545_v1  ;;  %513 = vmatprep.subr.bf16.mxu1 (!%p170_p3), %v545_v1 }
   0xc   : > { %499 = vmatpush3.bf16.msra.mxu0 (!%p170_p3), %v545_v1  ;;  %517 = vmatpush3.bf16.msra.mxu1 (!%p170_p3), %v545_v1 }
   0xd   : > { %500 = vmatprep.subr.bf16.mxu0 (!%p170_p3), %v546_v2  ;;  %514 = vmatprep.subr.bf16.mxu1 (!%p170_p3), %v546_v2 }
   0xe   : > { %s668_s18 = smov (!%p204_p4, %s473_s18), 15 }
   0xf   : > { %s474_s23 = sshll.u32 %s668_s18, 3 }
  0x10   : > { %s207_s26 = scalar_lea.vmem %s659_s0, %s474_s23  ;;  %501 = vmatpush3.bf16.msra.mxu0 %v546_v2  ;;  %518 = vmatpush3.bf16.msra.mxu1 %v546_v2  ;;  %s223_s6 = scalar_lea.vmem %s662_s3, %s474_s23 }
  0x11   : > { %v226_v3 = vld [vmem:[%s207_s26] sm:$0xff]  ;;  %v227_v4 = vld [vmem:[%s207_s26 + $0x8] sm:$0xff]  ;;  %v228_v10 = vld [vmem:[%s207_s26 + $0x10] sm:$0xff]  ;;  %502 = vmatprep.subr.bf16.mxu0 %v547_v6  ;;  %515 = vmatprep.subr.bf16.mxu1 %v547_v6 }
  0x12   : > { %v230_v5 = vld [vmem:[%s207_s26 + $0x20] sm:$0xff]  ;;  %v234_v7 = vpack.c.bf16 %v227_v4, %v226_v3  ;;  %v231_v8 = vld [vmem:[%s207_s26 + $0x28] sm:$0xff]  ;;  %v229_v11 = vld [vmem:[%s207_s26 + $0x18] sm:$0xff] }
  0x13   : > { %v236_v9 = vpack.c.bf16 %v231_v8, %v230_v5  ;;  %v232_v12 = vld [vmem:[%s207_s26 + $0x30] sm:$0xff]  ;;  %v233_v13 = vld [vmem:[%s207_s26 + $0x38] sm:$0xff]  ;;  %v235_v14 = vpack.c.bf16 %v229_v11, %v228_v10 }
  0x14   : > { %504 = vmatprep.mubr.msk.bf16.mxu0 %vm277_vm0, %v234_v7  ;;  %v237_v15 = vpack.c.bf16 %v233_v13, %v232_v12  ;;  %503 = vmatpush3.bf16.msra.mxu0 %v547_v6 }
  0x15   : > { %508 = vmatprep.mubr.msk.bf16.mxu1 %vm277_vm0, %v236_v9  ;;  %519 = vmatpush3.bf16.msra.mxu1 %v547_v6 }
  0x17   : > { %505 = vmatmul.mubr.msk.bf16.vlgmr.msra.gmra.mrb[0].mxu0 %vm277_vm0, %v235_v14 }
  0x18   : > { %509 = vmatmul.mubr.msk.bf16.vlgmr.msra.gmra.mrb[0].mxu1 %vm277_vm0, %v237_v15 }
  0xea   : > { %v506_v17 = vpop.f32.mrb[0].mxu0 }
  0xeb   : > { %v510_v18 = vpop.f32.mrb[0].mxu1  ;;  %v333_v19 = vadd.f32 %v506_v17, %v477_v16  ;;  %v324_v21 = vpop.f32.mrb[1].mxu0 }
  0xec   : > { %v349_v20 = vadd.f32 %v510_v18, %v477_v16  ;;  %v340_v22 = vpop.f32.mrb[1].mxu1  ;;  %v325_v23 = vadd.f32 %v477_v16, %v324_v21  ;;  %v507_v25 = vpop.f32.mrb[2].mxu0 }
  0xed   : > { %v341_v24 = vadd.f32 %v477_v16, %v340_v22  ;;  %v511_v26 = vpop.f32.mrb[2].mxu1  ;;  %358 = vst.msk [vmem:[%s223_s6 + $0x10] sm:$0xff] %vm355_vm1, %v333_v19  ;;  %v336_v27 = vadd.f32 %v507_v25, %v477_v16  ;;  %v327_v29 = vpop.f32.mrb[3].mxu0 }
  0xee   : > { %362 = vst.msk [vmem:[%s223_s6 + $0x30] sm:$0xff] %vm355_vm1, %v349_v20  ;;  %v352_v28 = vadd.f32 %v511_v26, %v477_v16  ;;  %v343_v30 = vpop.f32.mrb[3].mxu1  ;;  %356 = vst.msk [vmem:[%s223_s6] sm:$0xff] %vm355_vm1, %v325_v23  ;;  %v328_v31 = vadd.f32 %v477_v16, %v327_v29 }
  0xef   : > { %360 = vst.msk [vmem:[%s223_s6 + $0x20] sm:$0xff] %vm355_vm1, %v341_v24  ;;  %v344_v32 = vadd.f32 %v477_v16, %v343_v30  ;;  %359 = vst.msk [vmem:[%s223_s6 + $0x18] sm:$0xff] %vm355_vm1, %v336_v27 }
  0xf0   : > { %363 = vst.msk [vmem:[%s223_s6 + $0x38] sm:$0xff] %vm355_vm1, %v352_v28  ;;  %357 = vst.msk [vmem:[%s223_s6 + $0x8] sm:$0xff] %vm355_vm1, %v328_v31 }
  0xf1   : > { %361 = vst.msk [vmem:[%s223_s6 + $0x28] sm:$0xff] %vm355_vm1, %v344_v32 }
  0xf2 PF: > { %s13_s14 = sadd.s32 1, %s570_s14   ;;  %s663_s12 = smov %s566_s13 }
  0xf3   : > { %p10_p5 = scmp.ge.s32.totalorder %s13_s14, 4   ;;  %s664_s13 = smov %s666_s15 }
  0xf5   :  { %12 = sbr.rel (!%p10_p5) target bundleno = 2 (0x2), region = 68 }

// kernel: advection_core.42
= control target key start
LH: loop header
LB: loop body
LE: loop exit
PB: predicated region body
PF: predicated region fallthrough
CT: control target
= control target key end

     0   :  { %vm92_vm0 = vcmask 261120   ;;  %s271_s0 = inlined_call_operand.vmem [shape: f32[128,32], index: 0, kind: input, shape index: {}]   ;;  %s272_s1 = inlined_call_operand.vmem [shape: f32[1,32], index: 1, kind: input, shape index: {}]   ;;  %s273_s2 = inlined_call_operand.vmem [shape: f32[1,32], index: 2, kind: input, shape index: {}]   ;;  %s274_s3 = inlined_call_operand.vmem [shape: f32[128,32], index: 3, kind: output, shape index: {}]  }
   0x1   :  { %v14_v0 = vld [vmem:[%s271_s0] sm:$0xff]  ;;  %v15_v4 = vld [vmem:[%s271_s0 + $0x8] sm:$0xff]  ;;  %v16_v5 = vld [vmem:[%s271_s0 + $0x10] sm:$0xff] }
   0x2   :  { %v113_v1 = vld [vmem:[%s272_s1] ss:$0 sm:$0xff]  ;;  %v17_v6 = vld [vmem:[%s271_s0 + $0x18] sm:$0xff]  ;;  %v19_v11 = vld [vmem:[%s271_s0 + $0x28] sm:$0xff] }
   0x3   :  { %v144_v2 = vld [vmem:[%s273_s2] ss:$0 sm:$0xff]  ;;  %v37_v3 = vmul.f32 %v113_v1, %v14_v0  ;;  %v38_v7 = vmul.f32 %v113_v1, %v15_v4  ;;  %v39_v8 = vmul.f32 %v113_v1, %v16_v5  ;;  %v40_v9 = vmul.f32 %v113_v1, %v17_v6  ;;  %v20_v12 = vld [vmem:[%s271_s0 + $0x30] sm:$0xff]  ;;  %v21_v17 = vld [vmem:[%s271_s0 + $0x38] sm:$0xff] }
   0x4   :  { %v18_v10 = vld [vmem:[%s271_s0 + $0x20] sm:$0xff]  ;;  %v42_v15 = vmul.f32 %v113_v1, %v19_v11  ;;  %v43_v16 = vmul.f32 %v113_v1, %v20_v12  ;;  %v44_v21 = vmul.f32 %v113_v1, %v21_v17  ;;  %v23_v27 = vld [vmem:[%s271_s0 + $0x48] sm:$0xff]  ;;  %v24_v28 = vld [vmem:[%s271_s0 + $0x50] sm:$0xff] }
   0x5   :  { %v60_v13 = vadd.f32 %v144_v2, %v37_v3  ;;  %v41_v14 = vmul.f32 %v113_v1, %v18_v10  ;;  %v61_v18 = vadd.f32 %v144_v2, %v38_v7  ;;  %v62_v19 = vadd.f32 %v144_v2, %v39_v8  ;;  %v22_v22 = vld [vmem:[%s271_s0 + $0x40] sm:$0xff]  ;;  %v25_v29 = vld [vmem:[%s271_s0 + $0x58] sm:$0xff]  ;;  %v27_v35 = vld [vmem:[%s271_s0 + $0x68] sm:$0xff] }
   0x6   :  { %v63_v20 = vadd.f32 %v144_v2, %v40_v9  ;;  %v65_v25 = vadd.f32 %v144_v2, %v42_v15  ;;  %v66_v26 = vadd.f32 %v144_v2, %v43_v16  ;;  %v67_v33 = vadd.f32 %v144_v2, %v44_v21  ;;  %v26_v34 = vld [vmem:[%s271_s0 + $0x60] sm:$0xff]  ;;  %v28_v36 = vld [vmem:[%s271_s0 + $0x70] sm:$0xff]  ;;  %v29_v41 = vld [vmem:[%s271_s0 + $0x78] sm:$0xff] }
   0x7   :  { %v76_v23 = vmax.f32 %v60_v13, 0.0  ;;  %v64_v24 = vadd.f32 %v144_v2, %v41_v14  ;;  %v77_v30 = vmax.f32 %v61_v18, 0.0  ;;  %v78_v31 = vmax.f32 %v62_v19, 0.0 }
   0x8   :  { %v79_v32 = vmax.f32 %v63_v20, 0.0  ;;  %v81_v38 = vmax.f32 %v65_v25, 0.0  ;;  %v82_v39 = vmax.f32 %v66_v26, 0.0  ;;  %v45_v40 = vmul.f32 %v113_v1, %v22_v22 }
   0x9   :  { %93 = vst.msk [vmem:[%s274_s3] sm:$0xff] %vm92_vm0, %v76_v23  ;;  %v80_v37 = vmax.f32 %v64_v24, 0.0  ;;  %94 = vst.msk [vmem:[%s274_s3 + $0x8] sm:$0xff] %vm92_vm0, %v77_v30  ;;  %v83_v42 = vmax.f32 %v67_v33, 0.0  ;;  %v46_v43 = vmul.f32 %v113_v1, %v23_v27  ;;  %v47_v44 = vmul.f32 %v113_v1, %v24_v28 }
   0xa   :  { %95 = vst.msk [vmem:[%s274_s3 + $0x10] sm:$0xff] %vm92_vm0, %v78_v31  ;;  %96 = vst.msk [vmem:[%s274_s3 + $0x18] sm:$0xff] %vm92_vm0, %v79_v32  ;;  %v48_v45 = vmul.f32 %v113_v1, %v25_v29  ;;  %v68_v46 = vadd.f32 %v144_v2, %v45_v40  ;;  %v49_v47 = vmul.f32 %v113_v1, %v26_v34 }
   0xb   :  { %97 = vst.msk [vmem:[%s274_s3 + $0x20] sm:$0xff] %vm92_vm0, %v80_v37  ;;  %98 = vst.msk [vmem:[%s274_s3 + $0x28] sm:$0xff] %vm92_vm0, %v81_v38  ;;  %v50_v48 = vmul.f32 %v113_v1, %v27_v35  ;;  %v51_v49 = vmul.f32 %v113_v1, %v28_v36  ;;  %v69_v50 = vadd.f32 %v144_v2, %v46_v43 }
   0xc   :  { %99 = vst.msk [vmem:[%s274_s3 + $0x30] sm:$0xff] %vm92_vm0, %v82_v39  ;;  %100 = vst.msk [vmem:[%s274_s3 + $0x38] sm:$0xff] %vm92_vm0, %v83_v42  ;;  %v70_v51 = vadd.f32 %v144_v2, %v47_v44  ;;  %v71_v52 = vadd.f32 %v144_v2, %v48_v45  ;;  %v52_v53 = vmul.f32 %v113_v1, %v29_v41  ;;  %v84_v54 = vmax.f32 %v68_v46, 0.0 }
   0xd   :  { %v72_v55 = vadd.f32 %v144_v2, %v49_v47  ;;  %v73_v56 = vadd.f32 %v144_v2, %v50_v48  ;;  %v74_v57 = vadd.f32 %v144_v2, %v51_v49  ;;  %v85_v58 = vmax.f32 %v69_v50, 0.0 }
   0xe   :  { %v86_v59 = vmax.f32 %v70_v51, 0.0  ;;  %v87_v60 = vmax.f32 %v71_v52, 0.0  ;;  %v75_v61 = vadd.f32 %v144_v2, %v52_v53  ;;  %101 = vst.msk [vmem:[%s274_s3 + $0x40] sm:$0xff] %vm92_vm0, %v84_v54 }
   0xf   :  { %v88_v62 = vmax.f32 %v72_v55, 0.0  ;;  %v89_v63 = vmax.f32 %v73_v56, 0.0  ;;  %v90_v0 = vmax.f32 %v74_v57, 0.0  ;;  %102 = vst.msk [vmem:[%s274_s3 + $0x48] sm:$0xff] %vm92_vm0, %v85_v58 }
  0x10   :  { %103 = vst.msk [vmem:[%s274_s3 + $0x50] sm:$0xff] %vm92_vm0, %v86_v59  ;;  %104 = vst.msk [vmem:[%s274_s3 + $0x58] sm:$0xff] %vm92_vm0, %v87_v60  ;;  %v91_v1 = vmax.f32 %v75_v61, 0.0 }
  0x11   :  { %105 = vst.msk [vmem:[%s274_s3 + $0x60] sm:$0xff] %vm92_vm0, %v88_v62  ;;  %106 = vst.msk [vmem:[%s274_s3 + $0x68] sm:$0xff] %vm92_vm0, %v89_v63 }
  0x12   :  { %107 = vst.msk [vmem:[%s274_s3 + $0x70] sm:$0xff] %vm92_vm0, %v90_v0  ;;  %108 = vst.msk [vmem:[%s274_s3 + $0x78] sm:$0xff] %vm92_vm0, %v91_v1 }

// kernel: advection_core.43
= control target key start
LH: loop header
LB: loop body
LE: loop exit
PB: predicated region body
PF: predicated region fallthrough
CT: control target
= control target key end

     0   :  { %s731_s15 = smov 0   ;;  %s733_s16 = smov 0   ;;  %s811_s0 = inlined_call_operand.vmem [shape: f32[128,32], index: 0, kind: input, shape index: {}]   ;;  %s812_s1 = inlined_call_operand.vmem [shape: bf16[32,32], index: 1, kind: input, shape index: {}]   ;;  %s813_s2 = inlined_call_operand.vmem [shape: f32[128,32], index: 2, kind: output, shape index: {0}]   ;;  %s814_s3 = inlined_call_operand.vmem [shape: f32[16,32], index: 3, kind: output, shape index: {1}]   ;;  %s815_s4 = inlined_call_operand.vmem [shape: f32[16,32], index: 4, kind: output, shape index: {2}]  }
   0x1   :  { %s735_s17 = smov 0  }
   0x2 LB: > { %s27_s18 = sadd.s32 1, %s700_s16  ;;  %p619_p0 = scmp.ge.s32.totalorder %s704_s17, 1  ;;  %s704_s17 = sphi %s735_s17, %s15_s17   ;;  %s700_s16 = sphi %s733_s16, %s817_s16   ;;  %s696_s15 = sphi %s731_s15, %s816_s15  }
   0x3   : > { %p29_p1 = scmp.ge.s32.totalorder %s27_s18, 2  ;;  %p195_p2 = scmp.lt.s32.totalorder %s704_s17, 3 }
   0x5   : > { %s819_s18 = smov (%p29_p1, %s27_s18), 0  ;;  %p196_p3 = pnand %p619_p0, %p195_p2 }
   0x6   : > { %v680_v0 = vld [vmem:[%s812_s1] sm:$0xff] (!%p196_p3)   ;;  %s620_s21 = sshll.u32 (!%p196_p3), %s696_s15, 3  ;;  %v681_v1 = vld [vmem:[%s812_s1 + $0x8] sm:$0xff] (!%p196_p3)   ;;  %vm304_vm0 = vcmask (!%p196_p3), 261120   ;;  %p261_p5 = scmp.lt.s32.totalorder (!%p196_p3), %s696_s15, 1 }
   0x7   : > { %199 = sbr.rel (%p196_p3) target bundleno = 266 (0x10a), region = 28  ;;  %p243_p4 = scmp.lt.s32.totalorder (!%p196_p3), %s620_s21, 15  ;;  %640 = vmatprep.subr.bf16.mxu0 (!%p196_p3), %v680_v0  ;;  %652 = vmatprep.subr.bf16.mxu1 (!%p196_p3), %v680_v0 }
   0x8   : > { %641 = vmatpush3.bf16.msra.mxu0 (!%p196_p3), %v680_v0  ;;  %654 = vmatpush3.bf16.msra.mxu1 (!%p196_p3), %v680_v0 }
   0x9   : > { %642 = vmatprep.subr.bf16.mxu0 (!%p196_p3), %v681_v1  ;;  %653 = vmatprep.subr.bf16.mxu1 (!%p196_p3), %v681_v1 }
   0xc   : > { %643 = vmatpush3.bf16.msra.mxu0 (!%p196_p3), %v681_v1  ;;  %655 = vmatpush3.bf16.msra.mxu1 (!%p196_p3), %v681_v1 }
   0xe   : > { %s821_s21 = smov (!%p243_p4, %s620_s21), 15  ;;  %s823_s15 = smov (!%p261_p5, %s696_s15), 1 }
   0xf   : > { %s621_s24 = sshll.u32 %s821_s21, 3  ;;  %s624_s5 = sshll.u32 %s823_s15, 3 }
  0x10   : > { %s246_s27 = scalar_lea.vmem %s811_s0, %s621_s24  ;;  %s259_s30 = scalar_lea.vmem %s813_s2, %s621_s24 }
  0x11   : > { %v276_v2 = vld [vmem:[%s246_s27] sm:$0xff]  ;;  %v277_v3 = vld [vmem:[%s246_s27 + $0x8] sm:$0xff]  ;;  %v278_v4 = vld [vmem:[%s246_s27 + $0x10] sm:$0xff]  ;;  %s267_s8 = scalar_lea.vmem %s814_s3, %s624_s5  ;;  %s274_s11 = scalar_lea.vmem %s815_s4, %s624_s5 }
  0x12   : > { %v284_v5 = vpack.c.bf16 %v277_v3, %v276_v2  ;;  %v279_v6 = vld [vmem:[%s246_s27 + $0x18] sm:$0xff]  ;;  %v280_v7 = vld [vmem:[%s246_s27 + $0x20] sm:$0xff]  ;;  %v281_v8 = vld [vmem:[%s246_s27 + $0x28] sm:$0xff] }
  0x13   : > { %v285_v9 = vpack.c.bf16 %v279_v6, %v278_v4  ;;  %v286_v10 = vpack.c.bf16 %v281_v8, %v280_v7  ;;  %v282_v11 = vld [vmem:[%s246_s27 + $0x30] sm:$0xff]  ;;  %v283_v12 = vld [vmem:[%s246_s27 + $0x38] sm:$0xff] }
  0x14   : > { %644 = vmatprep.mubr.msk.bf16.mxu0 %vm304_vm0, %v284_v5  ;;  %v287_v13 = vpack.c.bf16 %v283_v12, %v282_v11 }
  0x15   : > { %645 = vmatmul.mubr.msk.bf16.vlgmr.msra.gmra.mrb[0].mxu0 %vm304_vm0, %v285_v9  ;;  %648 = vmatprep.mubr.msk.bf16.mxu1 %vm304_vm0, %v286_v10 }
  0x16   : > { %649 = vmatmul.mubr.msk.bf16.vlgmr.msra.gmra.mrb[0].mxu1 %vm304_vm0, %v287_v13 }
  0xe8   : > { %v646_v14 = vpop.f32.mrb[0].mxu0 }
  0xe9   : > { %384 = vst.msk [vmem:[%s259_s30 + $0x10] sm:$0xff] %vm304_vm0, %v646_v14  ;;  %v351_v15 = vpop.f32.mrb[1].mxu0  ;;  %v650_v16 = vpop.f32.mrb[0].mxu1  ;;  %v414_v22 = vmul.f32 %v646_v14, %v646_v14  ;;  %v393_v27 = vsel %vm304_vm0, %v646_v14, 0.0 }
  0xea   : > { %382 = vst.msk [vmem:[%s259_s30] sm:$0xff] %vm304_vm0, %v351_v15  ;;  %v412_v17 = vmul.f32 %v351_v15, %v351_v15  ;;  %v647_v18 = vpop.f32.mrb[2].mxu0  ;;  %388 = vst.msk [vmem:[%s259_s30 + $0x30] sm:$0xff] %vm304_vm0, %v650_v16  ;;  %v367_v19 = vpop.f32.mrb[1].mxu1  ;;  %v390_v23 = vsel %vm304_vm0, %v351_v15, 0.0  ;;  %v418_v45 = vmul.f32 %v650_v16, %v650_v16  ;;  %v401_v49 = vsel %vm304_vm0, %v650_v16, 0.0 }
  0xeb   : > { %385 = vst.msk [vmem:[%s259_s30 + $0x18] sm:$0xff] %vm304_vm0, %v647_v18  ;;  %v354_v20 = vpop.f32.mrb[3].mxu0  ;;  %386 = vst.msk [vmem:[%s259_s30 + $0x20] sm:$0xff] %vm304_vm0, %v367_v19  ;;  %v651_v21 = vpop.f32.mrb[2].mxu1  ;;  %v415_v30 = vmul.f32 %v647_v18, %v647_v18  ;;  %v416_v32 = vmul.f32 %v367_v19, %v367_v19  ;;  %v423_v35 = vsel %vm304_vm0, %v414_v22, 0.0  ;;  %v395_v36 = vsel %vm304_vm0, %v647_v18, 0.0 }
  0xec   : > { %383 = vst.msk [vmem:[%s259_s30 + $0x8] sm:$0xff] %vm304_vm0, %v354_v20  ;;  %v391_v24 = vsel %vm304_vm0, %v354_v20, 0.0  ;;  %v413_v25 = vmul.f32 %v354_v20, %v354_v20  ;;  %389 = vst.msk [vmem:[%s259_s30 + $0x38] sm:$0xff] %vm304_vm0, %v651_v21  ;;  %v370_v26 = vpop.f32.mrb[3].mxu1  ;;  %v420_v29 = vsel %vm304_vm0, %v412_v17, 0.0  ;;  %v397_v37 = vsel %vm304_vm0, %v367_v19, 0.0 }
  0xed   : > { %v392_v28 = vadd.f32 %v391_v24, %v390_v23  ;;  %387 = vst.msk [vmem:[%s259_s30 + $0x28] sm:$0xff] %vm304_vm0, %v370_v26  ;;  %v425_v40 = vsel %vm304_vm0, %v415_v30, 0.0  ;;  %v427_v41 = vsel %vm304_vm0, %v416_v32, 0.0  ;;  %v417_v42 = vmul.f32 %v370_v26, %v370_v26 }
  0xee   : > { %v421_v31 = vsel %vm304_vm0, %v413_v25, 0.0  ;;  %v399_v46 = vsel %vm304_vm0, %v370_v26, 0.0  ;;  %v419_v50 = vmul.f32 %v651_v21, %v651_v21  ;;  %v431_v54 = vsel %vm304_vm0, %v418_v45, 0.0 }
  0xef   : > { %v394_v33 = vadd.f32 %v393_v27, %v392_v28  ;;  %v422_v34 = vadd.f32 %v421_v31, %v420_v29  ;;  %v429_v51 = vsel %vm304_vm0, %v417_v42, 0.0  ;;  %v403_v55 = vsel %vm304_vm0, %v651_v21, 0.0 }
  0xf0   : > { %v433_v58 = vsel %vm304_vm0, %v419_v50, 0.0 }
  0xf1   : > { %v424_v38 = vadd.f32 %v423_v35, %v422_v34  ;;  %v396_v39 = vadd.f32 %v395_v36, %v394_v33 }
  0xf3   : > { %v398_v43 = vadd.f32 %v397_v37, %v396_v39  ;;  %v426_v44 = vadd.f32 %v425_v40, %v424_v38 }
  0xf5   : > { %v428_v47 = vadd.f32 %v427_v41, %v426_v44  ;;  %v400_v48 = vadd.f32 %v399_v46, %v398_v43 }
  0xf7   : > { %v402_v52 = vadd.f32 %v401_v49, %v400_v48  ;;  %v430_v53 = vadd.f32 %v429_v51, %v428_v47 }
  0xf9   : > { %v404_v56 = vadd.f32 %v403_v55, %v402_v52  ;;  %v432_v57 = vadd.f32 %v431_v54, %v430_v53 }
  0xfb   : > { %v405_v59 = vrot.slane %v404_v56, 4  ;;  %v434_v60 = vadd.f32 %v433_v58, %v432_v57 }
  0xfd   : > { %v406_v61 = vadd.f32 %v405_v59, %v404_v56  ;;  %v435_v62 = vrot.slane %v434_v60, 4 }
  0xff   : > { %v407_v63 = vrot.slane %v406_v61, 2  ;;  %v436_v0 = vadd.f32 %v435_v62, %v434_v60 }
 0x101   : > { %v408_v1 = vadd.f32 %v407_v63, %v406_v61  ;;  %v437_v2 = vrot.slane %v436_v0, 2 }
 0x103   : > { %v409_v3 = vrot.slane %v408_v1, 1  ;;  %v438_v4 = vadd.f32 %v437_v2, %v436_v0 }
 0x105   : > { %v410_v5 = vadd.f32 %v409_v3, %v408_v1  ;;  %v439_v6 = vrot.slane %v438_v4, 1 }
 0x107   : > { %411 = vst.msk [vmem:[%s267_s8] sm:$0xff] %vm304_vm0, %v410_v5  ;;  %v440_v7 = vadd.f32 %v439_v6, %v438_v4 }
 0x109   : > { %441 = vst.msk [vmem:[%s274_s11] sm:$0xff] %vm304_vm0, %v440_v7 }
 0x10a PF: > { %s15_s17 = sadd.s32 1, %s704_s17   ;;  %s816_s15 = smov %s700_s16 }
 0x10b   : > { %p12_p6 = scmp.ge.s32.totalorder %s15_s17, 4   ;;  %s817_s16 = smov %s819_s18 }
 0x10d   :  { %14 = sbr.rel (!%p12_p6) target bundleno = 2 (0x2), region = 85 }

// kernel: advection_core.47
= control target key start
LH: loop header
LB: loop body
LE: loop exit
PB: predicated region body
PF: predicated region fallthrough
CT: control target
= control target key end

     0   :  { %10 = vsyncpa [#allocation3], 0  ;;  %s1004_s0 = inlined_call_operand.vmem [shape: f32[128,32], index: 0, kind: input, shape index: {}]   ;;  %s1005_s1 = inlined_call_operand.vmem [shape: bf16[32,32], index: 1, kind: input, shape index: {}]   ;;  %s1006_s2 = inlined_call_operand.hbm [shape: f32[128,32], index: 2, kind: output, shape index: {0}]   ;;  %s1007_s3 = inlined_call_operand.vmem [shape: f32[16,32], index: 3, kind: output, shape index: {1}]   ;;  %s1008_s4 = inlined_call_operand.vmem [shape: f32[16,32], index: 4, kind: output, shape index: {2}]  }
   0x1   :  { %12 = vsyncpa [#allocation3 + $0x1], 0  ;;  %s830_s15 = smov 0   ;;  %s832_s16 = smov 0  }
   0x2   :  { %s834_s17 = smov 0   ;;  %s836_s18 = smov 0  }
   0x3   :  { %s838_s19 = smov 0   ;;  %s840_s20 = smov 0  }
   0x4 LB: > { %s618_s21 = sadd.s32 4294967295, %s800_s20   ;;  %s619_s22 = sadd.s32 4294967294, %s800_s20   ;;  %s800_s20 = sphi %s840_s20, %s18_s20   ;;  %s796_s19 = sphi %s838_s19, %s1015_s19   ;;  %s792_s18 = sphi %s836_s18, %s1014_s18   ;;  %s788_s17 = sphi %s834_s17, %s1013_s17   ;;  %s784_s16 = sphi %s832_s16, %s1012_s16   ;;  %s780_s15 = sphi %s830_s15, %s1011_s15  }
   0x5   : > { %s30_s23 = sadd.s32 1, %s796_s19  ;;  %s91_s24 = sadd.s32 1, %s788_s17 }
   0x6   : > { %p32_p0 = scmp.ge.s32.totalorder %s30_s23, 2  ;;  %p101_p1 = scmp.ne.s32.totalorder %s788_s17, %s784_s16 }
   0x7   : > { %p102_p2 = scmp.eq.s32.totalorder %s618_s21, 1  ;;  %p107_p3 = scmp.ne.s32.totalorder %s784_s16, %s780_s15 }
   0x8   : > { %s1017_s23 = smov (%p32_p0, %s30_s23), 0  ;;  %p108_p5 = scmp.eq.s32.totalorder %s619_s22, 1 }
   0x9   : > { %p870_p4 = por %p102_p2, %p101_p1  ;;  %s86_s26 = ssub.s32 %s796_s19, %s1017_s23 }
   0xa   : > { %p623_p6 = scmp.ge.s32.totalorder %s800_s20, 1  ;;  %p89_p7 = scmp.eq.s32.totalorder %s86_s26, 0 }
   0xb   : > { %p877_p8 = por %p108_p5, %p107_p3  ;;  %p198_p9 = scmp.lt.s32.totalorder %s800_s20, 3 }
   0xc   : > { %s883_s28 = scalar_select %p89_p7, %s788_s17, %s91_s24  }
   0xd   : > { %p199_p10 = pnand %p623_p6, %p198_p9 }
   0xe   : > { %v720_v0 = vld [vmem:[%s1005_s1] sm:$0xff] (!%p199_p10)   ;;  %s625_s5 = sshll.u32 (!%p199_p10), %s792_s18, 3  ;;  %v721_v1 = vld [vmem:[%s1005_s1 + $0x8] sm:$0xff] (!%p199_p10)   ;;  %vm296_vm0 = vcmask (!%p199_p10), 261120   ;;  %s221_s12 = sand.u32 (!%p199_p10), 1, %s784_s16  }
   0xf   : > { %202 = sbr.rel (%p199_p10) target bundleno = 286 (0x11e), region = 28  ;;  %p243_p11 = scmp.lt.s32.totalorder (!%p199_p10), %s625_s5, 15  ;;  %647 = vmatprep.subr.bf16.mxu0 (!%p199_p10), %v720_v0  ;;  %659 = vmatprep.subr.bf16.mxu1 (!%p199_p10), %v720_v0 }
  0x10   : > { %648 = vmatpush3.bf16.msra.mxu0 (!%p199_p10), %v720_v0  ;;  %661 = vmatpush3.bf16.msra.mxu1 (!%p199_p10), %v720_v0  ;;  %s624_s13 = sshll.u32 (!%p199_p10), %s221_s12, 6  ;;  %s640_s14 = sshll.u32 (!%p199_p10), %s792_s18, 10 }
  0x11   : > { %649 = vmatprep.subr.bf16.mxu0 (!%p199_p10), %v721_v1  ;;  %660 = vmatprep.subr.bf16.mxu1 (!%p199_p10), %v721_v1  ;;  %s223_s21 = scalar_lea.vmem (!%p199_p10), [#allocation2], %s624_s13  ;;  %s912_s29 = scalar_lea.hbm (!%p199_p10), %s1006_s2, %s640_s14 }
  0x12   : > { %s463_s22 = sshll.u32 (!%p199_p10), %s223_s21, 4  ;;  %s931_s30 = scalar_lea.sflag (!%p199_p10), [#allocation3], %s221_s12  ;;  %s914_s22 = int_to_ptr.vmem [resolvable:$true] %s463_s22 }
  0x13   : > { %s802_s6 = smov (!%p199_p10), [#allocation2]  }
  0x14   : > { %650 = vmatpush3.bf16.msra.mxu0 (!%p199_p10), %v721_v1  ;;  %662 = vmatpush3.bf16.msra.mxu1 (!%p199_p10), %v721_v1  ;;  %s726_s7 = sshll.u32 (!%p199_p10), %s802_s6, 4  ;;  %s727_s7 = int_to_ptr.vmem [resolvable:$false] %s726_s7 }
  0x15   : > { %p729_p1 = scmp.lt.s32.totalorder (!%p199_p10), %s914_s22, %s727_s7 }
  0x16   : > { %s1019_s5 = smov (!%p243_p11, %s625_s5), 15 }
  0x17   : > { %s626_s8 = sshll.u32 %s1019_s5, 3  ;;  %s722_s5 = scalar_lea.vmem %s914_s22, 1024 }
  0x18   : > { %s246_s11 = scalar_lea.vmem %s1004_s0, %s626_s8  ;;  %p723_p12 = scmp.ne.s32.totalorder %s914_s22, %s722_s5 }
  0x19   : > { %v268_v2 = vld [vmem:[%s246_s11] sm:$0xff]  ;;  %v269_v3 = vld [vmem:[%s246_s11 + $0x8] sm:$0xff]  ;;  %v270_v4 = vld [vmem:[%s246_s11 + $0x10] sm:$0xff]  ;;  %s728_s8 = scalar_lea.vmem %s727_s7, 2048 }
  0x1a   : > { %v276_v5 = vpack.c.bf16 %v269_v3, %v268_v2  ;;  %v271_v6 = vld [vmem:[%s246_s11 + $0x18] sm:$0xff]  ;;  %v272_v7 = vld [vmem:[%s246_s11 + $0x20] sm:$0xff]  ;;  %v273_v8 = vld [vmem:[%s246_s11 + $0x28] sm:$0xff]  ;;  %p724_p13 = pnand %p723_p12, %p870_p4  ;;  %p730_p2 = scmp.lt.s32.totalorder %s728_s8, %s722_s5 }
  0x1b   : > { %v277_v9 = vpack.c.bf16 %v271_v6, %v270_v4  ;;  %v278_v10 = vpack.c.bf16 %v273_v8, %v272_v7  ;;  %v274_v11 = vld [vmem:[%s246_s11 + $0x30] sm:$0xff]  ;;  %v275_v12 = vld [vmem:[%s246_s11 + $0x38] sm:$0xff] }
  0x1c   : > { %651 = vmatprep.mubr.msk.bf16.mxu0 %vm296_vm0, %v276_v5  ;;  %v279_v13 = vpack.c.bf16 %v275_v12, %v274_v11  ;;  %p725_p0 = pneg %p724_p13  ;;  %p731_p3 = por %p730_p2, %p729_p1 }
  0x1d   : > { %652 = vmatmul.mubr.msk.bf16.vlgmr.msra.gmra.mrb[0].mxu0 %vm296_vm0, %v277_v9  ;;  %655 = vmatprep.mubr.msk.bf16.mxu1 %vm296_vm0, %v278_v10 }
  0x1e   : > { %656 = vmatmul.mubr.msk.bf16.vlgmr.msra.gmra.mrb[0].mxu1 %vm296_vm0, %v279_v13  ;;  %p732_p5 = pnand %p731_p3, %p725_p0 }
  0xf0   : > { %v653_v14 = vpop.f32.mrb[0].mxu0 }
  0xf1   : > { %376 = vst.msk [vmem:[%s223_s21 + $0x10] sm:$0xff] %vm296_vm0, %v653_v14  ;;  %v343_v15 = vpop.f32.mrb[1].mxu0  ;;  %v904_v16 = vpop.f32.mrb[0].mxu1  ;;  %v406_v22 = vmul.f32 %v653_v14, %v653_v14  ;;  %v385_v27 = vsel %vm296_vm0, %v653_v14, 0.0 }
  0xf2   : > { %374 = vst.msk [vmem:[%s223_s21] sm:$0xff] %vm296_vm0, %v343_v15  ;;  %v404_v17 = vmul.f32 %v343_v15, %v343_v15  ;;  %v654_v18 = vpop.f32.mrb[2].mxu0  ;;  %380 = vst.msk [vmem:[%s223_s21 + $0x30] sm:$0xff] %vm296_vm0, %v904_v16  ;;  %v359_v19 = vpop.f32.mrb[1].mxu1  ;;  %v382_v23 = vsel %vm296_vm0, %v343_v15, 0.0 }
  0xf3   : > { %377 = vst.msk [vmem:[%s223_s21 + $0x18] sm:$0xff] %vm296_vm0, %v654_v18  ;;  %v346_v20 = vpop.f32.mrb[3].mxu0  ;;  %378 = vst.msk [vmem:[%s223_s21 + $0x20] sm:$0xff] %vm296_vm0, %v359_v19  ;;  %v918_v21 = vpop.f32.mrb[2].mxu1  ;;  %v407_v30 = vmul.f32 %v654_v18, %v654_v18  ;;  %v408_v32 = vmul.f32 %v359_v19, %v359_v19 }
  0xf4   : > { %375 = vst.msk [vmem:[%s223_s21 + $0x8] sm:$0xff] %vm296_vm0, %v346_v20  ;;  %v383_v24 = vsel %vm296_vm0, %v346_v20, 0.0  ;;  %v405_v25 = vmul.f32 %v346_v20, %v346_v20  ;;  %381 = vst.msk [vmem:[%s223_s21 + $0x38] sm:$0xff] %vm296_vm0, %v918_v21  ;;  %v362_v26 = vpop.f32.mrb[3].mxu1  ;;  %v412_v29 = vsel %vm296_vm0, %v404_v17, 0.0 }
  0xf5   : > { %v384_v28 = vadd.f32 %v383_v24, %v382_v23  ;;  %379 = vst.msk [vmem:[%s223_s21 + $0x28] sm:$0xff] %vm296_vm0, %v362_v26 }
  0xf6   : > { %v413_v31 = vsel %vm296_vm0, %v405_v25, 0.0 }
  0xf7   : > { %735 = shalt.err (!%p732_p5)
}
  0xf8   : > { %s736_s9 = scalar_lea.hbm %s912_s29, 1024  ;;  %s740_s12 = scalar_lea.hbm %s1006_s2, 2048 }
  0xf9   : > { %p737_p6 = scmp.ne.s32.totalorder %s912_s29, %s736_s9  ;;  %p741_p10 = scmp.lt.u32.totalorder %s912_s29, %s1006_s2 }
  0xfa   : > { %p742_p11 = scmp.lt.u32.totalorder %s740_s12, %s736_s9  ;;  %p744_p13 = scmp.lt.u32.totalorder %s736_s9, %s912_s29 }
  0xfb   : > { %p738_p7 = pnand %p737_p6, %p870_p4 }
  0xfc   : > { %p743_p12 = por %p742_p11, %p741_p10 }
  0xfd   : > { %p739_p9 = pneg %p738_p7 }
  0xfe   : > { %p745_p0 = por %p744_p13, %p743_p12 }
 0x100   : > { %p746_p1 = pnand %p745_p0, %p739_p9 }
 0x102   : > { %749 = shalt.err (!%p746_p1)
}
 0x103   : > { %s803_s21 = smov 128   ;;  %s804_s24 = smov 8   ;;  %v386_v33 = vadd.f32 %v385_v27, %v384_v28  ;;  %v414_v34 = vadd.f32 %v413_v31, %v412_v29  ;;  %v415_v35 = vsel %vm296_vm0, %v406_v22, 0.0  ;;  %v387_v36 = vsel %vm296_vm0, %v654_v18, 0.0 }
 0x104   : > { %663 = dma.vmem_to_hbm [thread:$0]  (%p870_p4), %s914_s22, 1024, %s912_s29, %s931_s30, %s803_s21, %s803_s21, %s804_s24   ;;  %v389_v37 = vsel %vm296_vm0, %v359_v19, 0.0  ;;  %v417_v40 = vsel %vm296_vm0, %v407_v30, 0.0  ;;  %v419_v41 = vsel %vm296_vm0, %v408_v32, 0.0  ;;  %v409_v42 = vmul.f32 %v362_v26, %v362_v26 }
 0x105   : > { %v416_v38 = vadd.f32 %v415_v35, %v414_v34  ;;  %v388_v39 = vadd.f32 %v387_v36, %v386_v33  ;;  %v410_v45 = vmul.f32 %v904_v16, %v904_v16  ;;  %v391_v46 = vsel %vm296_vm0, %v362_v26, 0.0  ;;  %p253_p4 = scmp.lt.s32.totalorder %s792_s18, 1 }
 0x106   : > { %v393_v49 = vsel %vm296_vm0, %v904_v16, 0.0  ;;  %v411_v50 = vmul.f32 %v918_v21, %v918_v21  ;;  %v421_v51 = vsel %vm296_vm0, %v409_v42, 0.0  ;;  %v395_v55 = vsel %vm296_vm0, %v918_v21, 0.0 }
 0x107   : > { %v390_v43 = vadd.f32 %v389_v37, %v388_v39  ;;  %v418_v44 = vadd.f32 %v417_v40, %v416_v38  ;;  %v423_v54 = vsel %vm296_vm0, %v410_v45, 0.0  ;;  %s1021_s18 = smov (!%p253_p4, %s792_s18), 1 }
 0x108   : > { %v425_v58 = vsel %vm296_vm0, %v411_v50, 0.0  ;;  %s627_s25 = sshll.u32 %s1021_s18, 3 }
 0x109   : > { %v420_v47 = vadd.f32 %v419_v41, %v418_v44  ;;  %v392_v48 = vadd.f32 %v391_v46, %v390_v43  ;;  %s259_s29 = scalar_lea.vmem %s1007_s3, %s627_s25  ;;  %s266_s6 = scalar_lea.vmem %s1008_s4, %s627_s25 }
 0x10b   : > { %v394_v52 = vadd.f32 %v393_v49, %v392_v48  ;;  %v422_v53 = vadd.f32 %v421_v51, %v420_v47 }
 0x10d   : > { %v396_v56 = vadd.f32 %v395_v55, %v394_v52  ;;  %v424_v57 = vadd.f32 %v423_v54, %v422_v53 }
 0x10f   : > { %v397_v59 = vrot.slane %v396_v56, 4  ;;  %v426_v60 = vadd.f32 %v425_v58, %v424_v57 }
 0x111   : > { %v398_v61 = vadd.f32 %v397_v59, %v396_v56  ;;  %v427_v62 = vrot.slane %v426_v60, 4 }
 0x113   : > { %v399_v63 = vrot.slane %v398_v61, 2  ;;  %v428_v0 = vadd.f32 %v427_v62, %v426_v60 }
 0x115   : > { %v400_v1 = vadd.f32 %v399_v63, %v398_v61  ;;  %v429_v2 = vrot.slane %v428_v0, 2 }
 0x117   : > { %v401_v3 = vrot.slane %v400_v1, 1  ;;  %v430_v4 = vadd.f32 %v429_v2, %v428_v0 }
 0x119   : > { %v402_v5 = vadd.f32 %v401_v3, %v400_v1  ;;  %v431_v6 = vrot.slane %v430_v4, 1 }
 0x11b   : > { %403 = vst.msk [vmem:[%s259_s29] sm:$0xff] %vm296_vm0, %v402_v5  ;;  %v432_v7 = vadd.f32 %v431_v6, %v430_v4 }
 0x11d   : > { %433 = vst.msk [vmem:[%s266_s6] sm:$0xff] %vm296_vm0, %v432_v7 }
 0x11e PF: > { %p669_p2 = scmp.ge.s32.totalorder %s800_s20, 2  ;;  %s484_s18 = sand.u32 1, %s780_s15  }
 0x11f   : > { %s485_s7 = scalar_lea.sflag [#allocation3], %s484_s18 }
 0x120   : > { %p666_p3 = pnand %p669_p2, %p877_p8 }
 0x122   : > { %775 = dma.done.wait (!%p666_p3), %s485_s7, 1024  }
 0x123   : > { %777 = vsyncadd (!%p666_p3), %s485_s7, 4294966272  ;;  %s18_s20 = sadd.s32 1, %s800_s20   ;;  %s1011_s15 = smov %s784_s16 }
 0x124   : > { %p15_p5 = scmp.ge.s32.totalorder %s18_s20, 4   ;;  %s1012_s16 = smov %s788_s17 }
 0x125   : > { %s1013_s17 = smov %s883_s28  ;;  %s1014_s18 = smov %s796_s19 }
 0x126   : > { %s1015_s19 = smov %s1017_s23  ;;  %17 = sbr.rel (!%p15_p5) target bundleno = 4 (0x4), region = 90 }
 0x12d   :  { %510 = vsyncpa [#allocation3], 1 }
 0x12e   :  { %512 = vsyncpa [#allocation3 + $0x1], 1 }

// kernel: advection_core.45
= control target key start
LH: loop header
LB: loop body
LE: loop exit
PB: predicated region body
PF: predicated region fallthrough
CT: control target
= control target key end

     0   :  { %s1651_s15 = smov 0   ;;  %s1653_s16 = smov 0   ;;  %s1974_s0 = inlined_call_operand.vmem [shape: f32[128,864], index: 0, kind: input, shape index: {}]   ;;  %s1975_s1 = inlined_call_operand.vmem [shape: bf16[864,32], index: 1, kind: input, shape index: {}]   ;;  %s1976_s2 = inlined_call_operand.vmem [shape: f32[128,32], index: 2, kind: output, shape index: {0}]   ;;  %s1977_s3 = inlined_call_operand.vmem [shape: f32[16,32], index: 3, kind: output, shape index: {1}]   ;;  %s1978_s4 = inlined_call_operand.vmem [shape: f32[16,32], index: 4, kind: output, shape index: {2}]  }
   0x1   :  { %s1655_s17 = smov 0  }
   0x2 LB: > { %s27_s18 = sadd.s32 1, %s1620_s16  ;;  %p1306_p0 = scmp.ge.s32.totalorder %s1624_s17, 1  ;;  %s1624_s17 = sphi %s1655_s17, %s15_s17   ;;  %s1620_s16 = sphi %s1653_s16, %s1980_s16   ;;  %s1616_s15 = sphi %s1651_s15, %s1979_s15  }
   0x3   : > { %p29_p1 = scmp.ge.s32.totalorder %s27_s18, 2  ;;  %p196_p2 = scmp.lt.s32.totalorder %s1624_s17, 3 }
   0x5   : > { %s1982_s18 = smov (%p29_p1, %s27_s18), 0  ;;  %p197_p3 = pnand %p1306_p0, %p196_p2 }
   0x6   : > { %v1548_v0 = vld [vmem:[%s1975_s1 + $0x40] sm:$0xff] (!%p197_p3)   ;;  %v1552_v4 = vld [vmem:[%s1975_s1 + $0x48] sm:$0xff] (!%p197_p3)   ;;  %v1556_v8 = vld [vmem:[%s1975_s1 + $0x50] sm:$0xff] (!%p197_p3)   ;;  %s1307_s27 = sshll.u32 (!%p197_p3), %s1616_s15, 3  ;;  %vm795_vm0 = vcmask (!%p197_p3), 785408   ;;  %vm1068_vm1 = vcmask (!%p197_p3), 261120  }
   0x7   : > { %200 = sbr.rel (%p197_p3) target bundleno = 335 (0x14f), region = 28  ;;  %v1549_v1 = vld [vmem:[%s1975_s1 + $0xc0] sm:$0xff] (!%p197_p3)   ;;  %1373 = vmatprep.subr.bf16.mxu0 (!%p197_p3), %v1548_v0  ;;  %v1553_v5 = vld [vmem:[%s1975_s1 + $0xc8] sm:$0xff] (!%p197_p3)   ;;  %v1557_v9 = vld [vmem:[%s1975_s1 + $0xd0] sm:$0xff] (!%p197_p3)   ;;  %p245_p4 = scmp.lt.s32.totalorder (!%p197_p3), %s1307_s27, 15 }
   0x8   : > { %v1550_v2 = vld [vmem:[%s1975_s1] sm:$0xff] (!%p197_p3)   ;;  %1413 = vmatprep.subr.bf16.mxu1 (!%p197_p3), %v1549_v1  ;;  %v1554_v6 = vld [vmem:[%s1975_s1 + $0x8] sm:$0xff] (!%p197_p3)   ;;  %v1558_v10 = vld [vmem:[%s1975_s1 + $0x10] sm:$0xff] (!%p197_p3)   ;;  %p264_p5 = scmp.lt.s32.totalorder (!%p197_p3), %s1616_s15, 1 }
   0x9   : > { %v1551_v3 = vld [vmem:[%s1975_s1 + $0x80] sm:$0xff] (!%p197_p3)   ;;  %1374 = vmatpush3.bf16.msra.mxu0 (!%p197_p3), %v1550_v2  ;;  %v1555_v7 = vld [vmem:[%s1975_s1 + $0x88] sm:$0xff] (!%p197_p3)   ;;  %v1559_v11 = vld [vmem:[%s1975_s1 + $0x90] sm:$0xff] (!%p197_p3)  }
   0xa   : > { %1414 = vmatpush3.bf16.msra.mxu1 (!%p197_p3), %v1551_v3  ;;  %1375 = vmatprep.subr.bf16.mxu0 (!%p197_p3), %v1552_v4  ;;  %v1560_v12 = vld [vmem:[%s1975_s1 + $0x58] sm:$0xff] (!%p197_p3)   ;;  %v1564_v16 = vld [vmem:[%s1975_s1 + $0x60] sm:$0xff] (!%p197_p3)   ;;  %v1568_v20 = vld [vmem:[%s1975_s1 + $0x68] sm:$0xff] (!%p197_p3)  }
   0xb   : > { %1415 = vmatprep.subr.bf16.mxu1 (!%p197_p3), %v1553_v5  ;;  %v1561_v13 = vld [vmem:[%s1975_s1 + $0xd8] sm:$0xff] (!%p197_p3)   ;;  %v1565_v17 = vld [vmem:[%s1975_s1 + $0xe0] sm:$0xff] (!%p197_p3)   ;;  %v1569_v21 = vld [vmem:[%s1975_s1 + $0xe8] sm:$0xff] (!%p197_p3)  }
   0xc   : > { %v1562_v14 = vld [vmem:[%s1975_s1 + $0x18] sm:$0xff] (!%p197_p3)   ;;  %v1566_v18 = vld [vmem:[%s1975_s1 + $0x20] sm:$0xff] (!%p197_p3)   ;;  %v1570_v22 = vld [vmem:[%s1975_s1 + $0x28] sm:$0xff] (!%p197_p3)  }
   0xd   : > { %1376 = vmatpush3.bf16.msra.mxu0 (!%p197_p3), %v1554_v6  ;;  %v1563_v15 = vld [vmem:[%s1975_s1 + $0x98] sm:$0xff] (!%p197_p3)   ;;  %v1567_v19 = vld [vmem:[%s1975_s1 + $0xa0] sm:$0xff] (!%p197_p3)   ;;  %v1571_v23 = vld [vmem:[%s1975_s1 + $0xa8] sm:$0xff] (!%p197_p3)  }
   0xe   : > { %1416 = vmatpush3.bf16.msra.mxu1 %v1555_v7  ;;  %1377 = vmatprep.subr.bf16.mxu0 %v1556_v8  ;;  %s1984_s27 = smov (!%p245_p4, %s1307_s27), 15  ;;  %v1572_v24 = vld [vmem:[%s1975_s1 + $0x70] sm:$0xff]   ;;  %v1576_v28 = vld [vmem:[%s1975_s1 + $0x78] sm:$0xff]   ;;  %v1580_v44 = vld [vmem:[%s1975_s1 + $0x140] sm:$0xff]   ;;  %s1986_s15 = smov (!%p264_p5, %s1616_s15), 1 }
   0xf   : > { %1417 = vmatprep.subr.bf16.mxu1 %v1557_v9  ;;  %v1573_v25 = vld [vmem:[%s1975_s1 + $0xf0] sm:$0xff]   ;;  %s1523_s29 = smul.u32 56, %s1984_s27  ;;  %v1577_v29 = vld [vmem:[%s1975_s1 + $0xf8] sm:$0xff]   ;;  %v1581_v45 = vld [vmem:[%s1975_s1 + $0x100] sm:$0xff]  }
  0x10   : > { %v1574_v26 = vld [vmem:[%s1975_s1 + $0x30] sm:$0xff]   ;;  %v1578_v30 = vld [vmem:[%s1975_s1 + $0x38] sm:$0xff]   ;;  %v1582_v46 = vld [vmem:[%s1975_s1 + $0x148] sm:$0xff]  }
  0x11   : > { %1378 = vmatpush3.bf16.msra.mxu0 %v1558_v10  ;;  %v1575_v27 = vld [vmem:[%s1975_s1 + $0xb0] sm:$0xff]   ;;  %s1768_s14 = scalar_lea.vmem %s1974_s0, %s1523_s29  ;;  %v1579_v31 = vld [vmem:[%s1975_s1 + $0xb8] sm:$0xff]   ;;  %v1583_v47 = vld [vmem:[%s1975_s1 + $0x108] sm:$0xff]  }
  0x12   : > { %1418 = vmatpush3.bf16.msra.mxu1 %v1559_v11  ;;  %1379 = vmatprep.subr.bf16.mxu0 %v1560_v12  ;;  %v280_v32 = vld [vmem:[%s1768_s14 + $0x8] sm:$0xff]  ;;  %v287_v33 = vld [vmem:[%s1768_s14 + $0x40] sm:$0xff]  ;;  %v282_v34 = vld [vmem:[%s1768_s14 + $0x18] sm:$0xff] }
  0x13   : > { %1419 = vmatprep.subr.bf16.mxu1 %v1561_v13  ;;  %v336_v35 = vpack.c.bf16 %v287_v33, %v280_v32  ;;  %v289_v36 = vld [vmem:[%s1768_s14 + $0x50] sm:$0xff]  ;;  %v279_v37 = vld [vmem:[%s1768_s14] sm:$0xff]  ;;  %v286_v38 = vld [vmem:[%s1768_s14 + $0x38] sm:$0xff] }
  0x14   : > { %v338_v39 = vpack.c.bf16 %v289_v36, %v282_v34  ;;  %v335_v40 = vpack.c.bf16 %v286_v38, %v279_v37  ;;  %v281_v41 = vld [vmem:[%s1768_s14 + $0x10] sm:$0xff]  ;;  %v288_v42 = vld [vmem:[%s1768_s14 + $0x48] sm:$0xff]  ;;  %v294_v48 = vld [vmem:[%s1768_s14 + $0x78] sm:$0xff] }
  0x15   : > { %1380 = vmatpush3.bf16.msra.mxu0 %v1562_v14  ;;  %840 = vmatprep.mubr.bf16.mxu0 %v336_v35  ;;  %v337_v43 = vpack.c.bf16 %v288_v42, %v281_v41  ;;  %v301_v49 = vld [vmem:[%s1768_s14 + $0xb0] sm:$0xff]  ;;  %v296_v50 = vld [vmem:[%s1768_s14 + $0x88] sm:$0xff]  ;;  %v303_v51 = vld [vmem:[%s1768_s14 + $0xc0] sm:$0xff] }
  0x16   : > { %1420 = vmatpush3.bf16.msra.mxu1 %v1563_v15  ;;  %1381 = vmatprep.subr.bf16.mxu0 %v1564_v16  ;;  %v343_v52 = vpack.c.bf16 %v301_v49, %v294_v48  ;;  %v345_v53 = vpack.c.bf16 %v303_v51, %v296_v50  ;;  %v293_v54 = vld [vmem:[%s1768_s14 + $0x70] sm:$0xff]  ;;  %v300_v55 = vld [vmem:[%s1768_s14 + $0xa8] sm:$0xff]  ;;  %v295_v56 = vld [vmem:[%s1768_s14 + $0x80] sm:$0xff] }
  0x17   : > { %1421 = vmatprep.subr.bf16.mxu1 %v1565_v17  ;;  %905 = vmatprep.mubr.bf16.mxu1 %v338_v39  ;;  %v342_v57 = vpack.c.bf16 %v300_v55, %v293_v54  ;;  %v302_v58 = vld [vmem:[%s1768_s14 + $0xb8] sm:$0xff]  ;;  %v1584_v60 = vld [vmem:[%s1975_s1 + $0x150] sm:$0xff]   ;;  %v1587_v63 = vld [vmem:[%s1975_s1 + $0x180] sm:$0xff]  }
  0x18   : > { %v344_v59 = vpack.c.bf16 %v302_v58, %v295_v56  ;;  %v1585_v61 = vld [vmem:[%s1975_s1 + $0x110] sm:$0xff]   ;;  %v1586_v62 = vld [vmem:[%s1975_s1 + $0x158] sm:$0xff]   ;;  %v308_v1 = vld [vmem:[%s1768_s14 + $0xe8] sm:$0xff] }
  0x19   : > { %1382 = vmatpush3.bf16.msra.mxu0 %v1566_v18  ;;  %v1588_v0 = vld [vmem:[%s1975_s1 + $0x118] sm:$0xff]   ;;  %v315_v2 = vld [vmem:[%s1768_s14 + $0x120] sm:$0xff]  ;;  %v317_v5 = vld [vmem:[%s1768_s14 + $0x130] sm:$0xff] }
  0x1a   : > { %1422 = vmatpush3.bf16.msra.mxu1 %v1567_v19  ;;  %1383 = vmatprep.subr.bf16.mxu0 %v1568_v20  ;;  %v350_v3 = vpack.c.bf16 %v315_v2, %v308_v1  ;;  %v310_v4 = vld [vmem:[%s1768_s14 + $0xf8] sm:$0xff]  ;;  %v307_v6 = vld [vmem:[%s1768_s14 + $0xe0] sm:$0xff]  ;;  %v309_v9 = vld [vmem:[%s1768_s14 + $0xf0] sm:$0xff] }
  0x1b   : > { %1423 = vmatprep.subr.bf16.mxu1 %v1569_v21  ;;  %v352_v7 = vpack.c.bf16 %v317_v5, %v310_v4  ;;  %v314_v8 = vld [vmem:[%s1768_s14 + $0x118] sm:$0xff]  ;;  %v316_v10 = vld [vmem:[%s1768_s14 + $0x128] sm:$0xff]  ;;  %v1589_v13 = vld [vmem:[%s1975_s1 + $0x160] sm:$0xff]  }
  0x1c   : > { %v349_v11 = vpack.c.bf16 %v314_v8, %v307_v6  ;;  %v351_v12 = vpack.c.bf16 %v316_v10, %v309_v9  ;;  %v1590_v14 = vld [vmem:[%s1975_s1 + $0x188] sm:$0xff]   ;;  %v1591_v15 = vld [vmem:[%s1975_s1 + $0x120] sm:$0xff]   ;;  %v1593_v17 = vld [vmem:[%s1975_s1 + $0x190] sm:$0xff]  }
  0x1d   : > { %1384 = vmatpush3.bf16.msra.mxu0 %v1570_v22  ;;  %v1592_v16 = vld [vmem:[%s1975_s1 + $0x168] sm:$0xff]   ;;  %v322_v19 = vld [vmem:[%s1768_s14 + $0x158] sm:$0xff]  ;;  %v329_v20 = vld [vmem:[%s1768_s14 + $0x190] sm:$0xff] }
  0x1e   : > { %1424 = vmatpush3.bf16.msra.mxu1 %v1571_v23  ;;  %1385 = vmatprep.subr.bf16.mxu0 %v1572_v24  ;;  %v1594_v18 = vld [vmem:[%s1975_s1 + $0x128] sm:$0xff]   ;;  %v357_v22 = vpack.c.bf16 %v329_v20, %v322_v19  ;;  %v331_v23 = vld [vmem:[%s1768_s14 + $0x1a0] sm:$0xff]  ;;  %v321_v24 = vld [vmem:[%s1768_s14 + $0x150] sm:$0xff] }
  0x1f   : > { %1425 = vmatprep.subr.bf16.mxu1 %v1573_v25  ;;  %v324_v21 = vld [vmem:[%s1768_s14 + $0x168] sm:$0xff]  ;;  %v1596_v32 = vld [vmem:[%s1975_s1 + $0x198] sm:$0xff]   ;;  %v1597_v33 = vld [vmem:[%s1975_s1 + $0x130] sm:$0xff]  }
  0x20   : > { %v328_v25 = vld [vmem:[%s1768_s14 + $0x188] sm:$0xff]  ;;  %v1598_v34 = vld [vmem:[%s1975_s1 + $0x178] sm:$0xff]   ;;  %v1599_v35 = vld [vmem:[%s1975_s1 + $0x1a0] sm:$0xff]  }
  0x21   : > { %1386 = vmatpush3.bf16.msra.mxu0 %v1574_v26  ;;  %v359_v26 = vpack.c.bf16 %v331_v23, %v324_v21  ;;  %v1600_v36 = vld [vmem:[%s1975_s1 + $0x138] sm:$0xff]   ;;  %v284_v37 = vld [vmem:[%s1768_s14 + $0x28] sm:$0xff]  ;;  %v291_v38 = vld [vmem:[%s1768_s14 + $0x60] sm:$0xff] }
  0x22   : > { %1426 = vmatpush3.bf16.msra.mxu1 %v1575_v27  ;;  %1387 = vmatprep.subr.bf16.mxu0 %v1576_v28  ;;  %v356_v27 = vpack.c.bf16 %v328_v25, %v321_v24  ;;  %v323_v28 = vld [vmem:[%s1768_s14 + $0x160] sm:$0xff]  ;;  %v340_v41 = vpack.c.bf16 %v291_v38, %v284_v37  ;;  %v306_v48 = vld [vmem:[%s1768_s14 + $0xd8] sm:$0xff]  ;;  %v305_v50 = vld [vmem:[%s1768_s14 + $0xd0] sm:$0xff] }
  0x23   : > { %1427 = vmatprep.subr.bf16.mxu1 %v1577_v29  ;;  %v330_v29 = vld [vmem:[%s1768_s14 + $0x198] sm:$0xff]  ;;  %v283_v39 = vld [vmem:[%s1768_s14 + $0x20] sm:$0xff]  ;;  %v304_v54 = vld [vmem:[%s1768_s14 + $0xc8] sm:$0xff] }
  0x24   : > { %v298_v49 = vld [vmem:[%s1768_s14 + $0x98] sm:$0xff]  ;;  %v313_v55 = vld [vmem:[%s1768_s14 + $0x110] sm:$0xff]  ;;  %v320_v56 = vld [vmem:[%s1768_s14 + $0x148] sm:$0xff] }
  0x25   : > { %1388 = vmatpush3.bf16.msra.mxu0 %v1578_v30  ;;  %v358_v30 = vpack.c.bf16 %v330_v29, %v323_v28  ;;  %v347_v51 = vpack.c.bf16 %v305_v50, %v298_v49  ;;  %v319_v58 = vld [vmem:[%s1768_s14 + $0x140] sm:$0xff]  ;;  %v318_v2 = vld [vmem:[%s1768_s14 + $0x138] sm:$0xff]  ;;  %v333_v4 = vld [vmem:[%s1768_s14 + $0x1b0] sm:$0xff] }
  0x26   : > { %1428 = vmatpush3.bf16.msra.mxu1 %v1579_v31  ;;  %1453 = vmatprep.subr.bf16.mxu0 %v1580_v44  ;;  %v1595_v31 = vld [vmem:[%s1975_s1 + $0x170] sm:$0xff]   ;;  %v311_v1 = vld [vmem:[%s1768_s14 + $0x100] sm:$0xff]  ;;  %v332_v8 = vld [vmem:[%s1768_s14 + $0x1a8] sm:$0xff] }
  0x27   : > { %1503 = vmatprep.subr.bf16.mxu1 %v1587_v63  ;;  %v285_v44 = vld [vmem:[%s1768_s14 + $0x30] sm:$0xff]  ;;  %v353_v5 = vpack.c.bf16 %v318_v2, %v311_v1 }
  0x28   : > { %841 = vmatmul.mubr.bf16.vlgmr.msra.gmra.mrb[0].mxu0 %v335_v40  ;;  %v290_v40 = vld [vmem:[%s1768_s14 + $0x58] sm:$0xff] }
  0x29   : > { %906 = vmatmul.mubr.bf16.vlgmr.msra.gmra.mrb[0].mxu1 %v337_v43  ;;  %1454 = vmatpush3.bf16.msra.mxu0 %v1581_v45  ;;  %v339_v42 = vpack.c.bf16 %v290_v40, %v283_v39  ;;  %v1601_v43 = vld [vmem:[%s1975_s1 + $0x1a8] sm:$0xff]  }
  0x2a   : > { %1455 = vmatprep.subr.bf16.mxu0 %v1582_v46  ;;  %848 = vmatprep.mubr.bf16.mxu0 %v343_v52  ;;  %v292_v45 = vld [vmem:[%s1768_s14 + $0x68] sm:$0xff]  ;;  %v299_v46 = vld [vmem:[%s1768_s14 + $0xa0] sm:$0xff] }
  0x2b   : > { %913 = vmatprep.mubr.bf16.mxu1 %v345_v53  ;;  %1504 = vmatpush3.bf16.msra.mxu1 %v1587_v63  ;;  %v348_v52 = vpack.c.bf16 %v306_v48, %v299_v46  ;;  %v297_v53 = vld [vmem:[%s1768_s14 + $0x90] sm:$0xff]  ;;  %v334_v63 = vld [vmem:[%s1768_s14 + $0x1b8] sm:$0xff] }
  0x2c   : > { %1505 = vmatprep.subr.bf16.mxu1 %v1590_v14 }
  0x2d   : > { %1456 = vmatpush3.bf16.msra.mxu0 %v1583_v47  ;;  %v341_v47 = vpack.c.bf16 %v292_v45, %v285_v44 }
  0x2e   : > { %1457 = vmatprep.subr.bf16.mxu0 %v1584_v60  ;;  %v346_v60 = vpack.c.bf16 %v304_v54, %v297_v53 }
  0x2f   : > { %1506 = vmatpush3.bf16.msra.mxu1 %v1590_v14 }
  0x30   : > { %849 = vmatmul.mubr.bf16.gmra.mrb[4].mxu0 %v342_v57  ;;  %1507 = vmatprep.subr.bf16.mxu1 %v1593_v17  ;;  %v312_v57 = vld [vmem:[%s1768_s14 + $0x108] sm:$0xff] }
  0x31   : > { %914 = vmatmul.mubr.bf16.gmra.mrb[4].mxu1 %v344_v59  ;;  %1458 = vmatpush3.bf16.msra.mxu0 %v1585_v61  ;;  %v355_v59 = vpack.c.bf16 %v320_v56, %v313_v55  ;;  %v354_v61 = vpack.c.bf16 %v319_v58, %v312_v57 }
  0x32   : > { %1459 = vmatprep.subr.bf16.mxu0 %v1586_v62  ;;  %856 = vmatprep.mubr.bf16.mxu0 %v350_v3  ;;  %v327_v62 = vld [vmem:[%s1768_s14 + $0x180] sm:$0xff]  ;;  %v326_v3 = vld [vmem:[%s1768_s14 + $0x178] sm:$0xff] }
  0x33   : > { %921 = vmatprep.mubr.bf16.mxu1 %v352_v7  ;;  %1508 = vmatpush3.bf16.msra.mxu1 %v1593_v17  ;;  %v361_v6 = vpack.c.bf16 %v333_v4, %v326_v3  ;;  %v325_v7 = vld [vmem:[%s1768_s14 + $0x170] sm:$0xff]  ;;  %s1310_s14 = sshll.u32 %s1984_s27, 3  ;;  %s1311_s27 = sshll.u32 %s1986_s15, 3 }
  0x34   : > { %1509 = vmatprep.subr.bf16.mxu1 %v1596_v32  ;;  %v360_v9 = vpack.c.bf16 %v332_v8, %v325_v7  ;;  %s1916_s30 = scalar_lea.vmem %s1976_s2, %s1310_s14  ;;  %s270_s7 = scalar_lea.vmem %s1977_s3, %s1311_s27 }
  0x35   : > { %1460 = vmatpush3.bf16.msra.mxu0 %v1588_v0  ;;  %v362_v0 = vpack.c.bf16 %v334_v63, %v327_v62  ;;  %s277_s10 = scalar_lea.vmem %s1978_s4, %s1311_s27 }
  0x36   : > { %1461 = vmatprep.subr.bf16.mxu0 %v1589_v13 }
  0x37   : > { %1510 = vmatpush3.bf16.msra.mxu1 %v1596_v32 }
  0x38   : > { %857 = vmatmul.mubr.bf16.gmra.mrb[8].mxu0 %v349_v11  ;;  %1511 = vmatprep.subr.bf16.mxu1 %v1599_v35 }
  0x39   : > { %922 = vmatmul.mubr.bf16.gmra.mrb[8].mxu1 %v351_v12  ;;  %1462 = vmatpush3.bf16.msra.mxu0 %v1591_v15 }
  0x3a   : > { %1463 = vmatprep.subr.bf16.mxu0 %v1592_v16  ;;  %864 = vmatprep.mubr.bf16.mxu0 %v357_v22 }
  0x3b   : > { %929 = vmatprep.mubr.bf16.mxu1 %v359_v26  ;;  %1512 = vmatpush3.bf16.msra.mxu1 %v1599_v35 }
  0x3c   : > { %1513 = vmatprep.subr.bf16.mxu1 %v1601_v43 }
  0x3d   : > { %1464 = vmatpush3.bf16.msra.mxu0 %v1594_v18 }
  0x3e   : > { %1465 = vmatprep.subr.bf16.mxu0 %v1595_v31 }
  0x3f   : > { %1514 = vmatpush3.bf16.msra.mxu1 %v1601_v43 }
  0x40   : > { %865 = vmatmul.mubr.bf16.gmra.mrb[12].mxu0 %v356_v27 }
  0x41   : > { %930 = vmatmul.mubr.bf16.gmra.mrb[12].mxu1 %v358_v30  ;;  %1466 = vmatpush3.bf16.msra.mxu0 %v1597_v33 }
  0x42   : > { %1467 = vmatprep.subr.bf16.mxu0 %v1598_v34  ;;  %970 = vmatprep.mubr.bf16.mxu0 %v340_v41 }
  0x43   : > { %1515 = vmatprep.mubr.msk.bf16.mxu1 %vm795_vm0, %v341_v47 }
  0x45   : > { %1468 = vmatpush3.bf16.msra.mxu0 %v1600_v36 }
  0x48   : > { %971 = vmatmul.mubr.bf16.vlgmr.msra.gmra.mrb[16].mxu0 %v339_v42 }
  0x49   : > { %978 = vmatprep.mubr.bf16.mxu0 %v347_v51  ;;  %1516 = vmatmul.mubr.msk.bf16.vlgmr.msra.gmra.mrb[16].mxu1 %vm795_vm0, %v348_v52 }
  0x4a   : > { %1519 = vmatprep.mubr.msk.bf16.mxu1 %vm795_vm0, %v355_v59 }
  0x50   : > { %979 = vmatmul.mubr.bf16.gmra.mrb[20].mxu0 %v346_v60 }
  0x51   : > { %986 = vmatprep.mubr.bf16.mxu0 %v354_v61  ;;  %1520 = vmatmul.mubr.msk.bf16.gmra.mrb[20].mxu1 %vm795_vm0, %v362_v0 }
  0x58   : > { %987 = vmatmul.mubr.bf16.gmra.mrb[24].mxu0 %v353_v5 }
  0x59   : > { %994 = vmatprep.mubr.bf16.mxu0 %v361_v6 }
  0x60   : > { %995 = vmatmul.mubr.bf16.gmra.mrb[28].mxu0 %v360_v9 }
  0xfb   : > { %v1389_v10 = vpop.f32.mrb[0].mxu0 }
  0xfc   : > { %v1429_v11 = vpop.f32.mrb[0].mxu1  ;;  %v1390_v12 = vpop.f32.mrb[1].mxu0 }
  0xfd   : > { %v1391_v13 = vadd.f32 %v1390_v12, %v1389_v10  ;;  %v1430_v14 = vpop.f32.mrb[1].mxu1  ;;  %v1392_v15 = vpop.f32.mrb[2].mxu0 }
  0xfe   : > { %v1431_v16 = vadd.f32 %v1430_v14, %v1429_v11  ;;  %v1432_v17 = vpop.f32.mrb[2].mxu1  ;;  %v1393_v18 = vpop.f32.mrb[3].mxu0 }
  0xff   : > { %v1394_v19 = vadd.f32 %v1393_v18, %v1392_v15  ;;  %v1433_v20 = vpop.f32.mrb[3].mxu1 }
 0x100   : > { %v908_v21 = vadd.f32 %v1431_v16, %v1391_v13  ;;  %v1434_v22 = vadd.f32 %v1433_v20, %v1432_v17 }
 0x102   : > { %v911_v23 = vadd.f32 %v1434_v22, %v1394_v19 }
 0x103   : > { %v1395_v24 = vpop.f32.mrb[4].mxu0 }
 0x104   : > { %v1435_v25 = vpop.f32.mrb[4].mxu1  ;;  %v1396_v26 = vpop.f32.mrb[5].mxu0 }
 0x105   : > { %v1397_v27 = vadd.f32 %v1396_v26, %v1395_v24  ;;  %v1436_v28 = vpop.f32.mrb[5].mxu1  ;;  %v1398_v29 = vpop.f32.mrb[6].mxu0 }
 0x106   : > { %v1437_v30 = vadd.f32 %v1436_v28, %v1435_v25  ;;  %v1438_v31 = vpop.f32.mrb[6].mxu1  ;;  %v1399_v32 = vpop.f32.mrb[7].mxu0 }
 0x107   : > { %v1400_v33 = vadd.f32 %v1399_v32, %v1398_v29  ;;  %v1439_v34 = vpop.f32.mrb[7].mxu1 }
 0x108   : > { %v916_v35 = vadd.f32 %v1437_v30, %v1397_v27  ;;  %v1440_v36 = vadd.f32 %v1439_v34, %v1438_v31 }
 0x10a   : > { %v1902_v37 = vadd.f32 %v1440_v36, %v1400_v33 }
 0x10b   : > { %v1401_v38 = vpop.f32.mrb[8].mxu0 }
 0x10c   : > { %v1441_v39 = vpop.f32.mrb[8].mxu1  ;;  %v1402_v40 = vpop.f32.mrb[9].mxu0 }
 0x10d   : > { %v1403_v41 = vadd.f32 %v1402_v40, %v1401_v38  ;;  %v1442_v42 = vpop.f32.mrb[9].mxu1  ;;  %v1404_v43 = vpop.f32.mrb[10].mxu0 }
 0x10e   : > { %v1443_v44 = vadd.f32 %v1442_v42, %v1441_v39  ;;  %v1444_v45 = vpop.f32.mrb[10].mxu1  ;;  %v1405_v46 = vpop.f32.mrb[11].mxu0 }
 0x10f   : > { %v1406_v47 = vadd.f32 %v1405_v46, %v1404_v43  ;;  %v1445_v48 = vpop.f32.mrb[11].mxu1 }
 0x110   : > { %v1904_v49 = vadd.f32 %v1443_v44, %v1403_v41  ;;  %v1446_v50 = vadd.f32 %v1445_v48, %v1444_v45 }
 0x112   : > { %v1906_v51 = vadd.f32 %v1446_v50, %v1406_v47 }
 0x113   : > { %v1407_v52 = vpop.f32.mrb[12].mxu0 }
 0x114   : > { %v1447_v53 = vpop.f32.mrb[12].mxu1  ;;  %v1408_v54 = vpop.f32.mrb[13].mxu0 }
 0x115   : > { %v1409_v55 = vadd.f32 %v1408_v54, %v1407_v52  ;;  %v1448_v56 = vpop.f32.mrb[13].mxu1  ;;  %v1410_v57 = vpop.f32.mrb[14].mxu0 }
 0x116   : > { %v1449_v58 = vadd.f32 %v1448_v56, %v1447_v53  ;;  %v1450_v59 = vpop.f32.mrb[14].mxu1  ;;  %v1411_v60 = vpop.f32.mrb[15].mxu0 }
 0x117   : > { %v1412_v61 = vadd.f32 %v1411_v60, %v1410_v57  ;;  %v1451_v62 = vpop.f32.mrb[15].mxu1 }
 0x118   : > { %v1908_v63 = vadd.f32 %v1449_v58, %v1409_v55  ;;  %v1452_v0 = vadd.f32 %v1451_v62, %v1450_v59 }
 0x11a   : > { %v1910_v1 = vadd.f32 %v1452_v0, %v1412_v61 }
 0x11b   : > { %v1469_v2 = vpop.f32.mrb[16].mxu0 }
 0x11c   : > { %v1470_v3 = vpop.f32.mrb[17].mxu0  ;;  %v1517_v8 = vpop.f32.mrb[16].mxu1 }
 0x11d   : > { %v1471_v4 = vadd.f32 %v1470_v3, %v1469_v2  ;;  %v1472_v5 = vpop.f32.mrb[18].mxu0  ;;  %v1037_v10 = vpop.f32.mrb[17].mxu1 }
 0x11e   : > { %v1473_v6 = vpop.f32.mrb[19].mxu0  ;;  %v1518_v12 = vpop.f32.mrb[18].mxu1 }
 0x11f   : > { %v1474_v7 = vadd.f32 %v1473_v6, %v1472_v5  ;;  %v973_v9 = vadd.f32 %v1471_v4, %v908_v21  ;;  %v1040_v14 = vpop.f32.mrb[19].mxu1 }
 0x121   : > { %v1038_v11 = vadd.f32 %v1037_v10, %v973_v9  ;;  %v976_v13 = vadd.f32 %v1474_v7, %v911_v23 }
 0x123   : > { %1069 = vst.msk [vmem:[%s1916_s30] sm:$0xff] %vm1068_vm1, %v1038_v11  ;;  %v1099_v15 = vmul.f32 %v1038_v11, %v1038_v11  ;;  %v1041_v16 = vadd.f32 %v1040_v14, %v976_v13  ;;  %v1475_v17 = vpop.f32.mrb[20].mxu0  ;;  %v1077_v19 = vsel %vm1068_vm1, %v1038_v11, 0.0 }
 0x124   : > { %v1476_v18 = vpop.f32.mrb[21].mxu0  ;;  %v1521_v30 = vpop.f32.mrb[20].mxu1 }
 0x125   : > { %1070 = vst.msk [vmem:[%s1916_s30 + $0x8] sm:$0xff] %vm1068_vm1, %v1041_v16  ;;  %v1078_v20 = vsel %vm1068_vm1, %v1041_v16, 0.0  ;;  %v1100_v21 = vmul.f32 %v1041_v16, %v1041_v16  ;;  %v1477_v22 = vadd.f32 %v1476_v18, %v1475_v17  ;;  %v1478_v24 = vpop.f32.mrb[22].mxu0  ;;  %v1107_v23 = vsel %vm1068_vm1, %v1099_v15, 0.0  ;;  %v1053_v32 = vpop.f32.mrb[21].mxu1 }
 0x126   : > { %v1079_v25 = vadd.f32 %v1078_v20, %v1077_v19  ;;  %v1479_v26 = vpop.f32.mrb[23].mxu0  ;;  %v1522_v36 = vpop.f32.mrb[22].mxu1 }
 0x127   : > { %v1108_v27 = vsel %vm1068_vm1, %v1100_v21, 0.0  ;;  %v981_v28 = vadd.f32 %v1477_v22, %v916_v35  ;;  %v1480_v29 = vadd.f32 %v1479_v26, %v1478_v24  ;;  %v1056_v38 = vpop.f32.mrb[23].mxu1 }
 0x128   : > { %v1109_v31 = vadd.f32 %v1108_v27, %v1107_v23 }
 0x129   : > { %v1046_v33 = vadd.f32 %v1517_v8, %v981_v28  ;;  %v984_v34 = vadd.f32 %v1480_v29, %v1902_v37 }
 0x12b   : > { %1071 = vst.msk [vmem:[%s1916_s30 + $0x10] sm:$0xff] %vm1068_vm1, %v1046_v33  ;;  %v1080_v39 = vsel %vm1068_vm1, %v1046_v33, 0.0  ;;  %v1101_v40 = vmul.f32 %v1046_v33, %v1046_v33  ;;  %v1049_v41 = vadd.f32 %v1518_v12, %v984_v34  ;;  %v1481_v42 = vpop.f32.mrb[24].mxu0 }
 0x12c   : > { %v1482_v43 = vpop.f32.mrb[25].mxu0  ;;  %v1081_v44 = vadd.f32 %v1080_v39, %v1079_v25 }
 0x12d   : > { %v1110_v35 = vsel %vm1068_vm1, %v1101_v40, 0.0  ;;  %1072 = vst.msk [vmem:[%s1916_s30 + $0x18] sm:$0xff] %vm1068_vm1, %v1049_v41  ;;  %v1102_v45 = vmul.f32 %v1049_v41, %v1049_v41  ;;  %v1483_v46 = vadd.f32 %v1482_v43, %v1481_v42  ;;  %v1484_v47 = vpop.f32.mrb[26].mxu0  ;;  %v1082_v37 = vsel %vm1068_vm1, %v1049_v41, 0.0 }
 0x12e   : > { %v1485_v48 = vpop.f32.mrb[27].mxu0  ;;  %v1083_v50 = vadd.f32 %v1082_v37, %v1081_v44  ;;  %v1111_v52 = vadd.f32 %v1110_v35, %v1109_v31 }
 0x12f   : > { %v1486_v53 = vadd.f32 %v1485_v48, %v1484_v47  ;;  %v989_v54 = vadd.f32 %v1483_v46, %v1904_v49  ;;  %v1112_v55 = vsel %vm1068_vm1, %v1102_v45, 0.0 }
 0x130   : > { %v1113_v56 = vadd.f32 %v1112_v55, %v1111_v52 }
 0x131   : > { %v1054_v57 = vadd.f32 %v1053_v32, %v989_v54  ;;  %v992_v58 = vadd.f32 %v1486_v53, %v1906_v51 }
 0x133   : > { %1073 = vst.msk [vmem:[%s1916_s30 + $0x20] sm:$0xff] %vm1068_vm1, %v1054_v57  ;;  %v1084_v59 = vsel %vm1068_vm1, %v1054_v57, 0.0  ;;  %v1103_v60 = vmul.f32 %v1054_v57, %v1054_v57  ;;  %v1057_v61 = vadd.f32 %v1056_v38, %v992_v58  ;;  %v1487_v62 = vpop.f32.mrb[28].mxu0 }
 0x134   : > { %v1085_v0 = vadd.f32 %v1084_v59, %v1083_v50  ;;  %v1488_v2 = vpop.f32.mrb[29].mxu0 }
 0x135   : > { %v1114_v3 = vsel %vm1068_vm1, %v1103_v60, 0.0  ;;  %1074 = vst.msk [vmem:[%s1916_s30 + $0x28] sm:$0xff] %vm1068_vm1, %v1057_v61  ;;  %v1086_v49 = vsel %vm1068_vm1, %v1057_v61, 0.0  ;;  %v1104_v4 = vmul.f32 %v1057_v61, %v1057_v61  ;;  %v1489_v5 = vadd.f32 %v1488_v2, %v1487_v62  ;;  %v1490_v6 = vpop.f32.mrb[30].mxu0 }
 0x136   : > { %v1115_v51 = vadd.f32 %v1114_v3, %v1113_v56  ;;  %v1087_v7 = vadd.f32 %v1086_v49, %v1085_v0  ;;  %v1491_v8 = vpop.f32.mrb[31].mxu0 }
 0x137   : > { %v1116_v9 = vsel %vm1068_vm1, %v1104_v4, 0.0  ;;  %v997_v10 = vadd.f32 %v1489_v5, %v1908_v63  ;;  %v1492_v11 = vadd.f32 %v1491_v8, %v1490_v6 }
 0x138   : > { %v1117_v12 = vadd.f32 %v1116_v9, %v1115_v51 }
 0x139   : > { %v1062_v13 = vadd.f32 %v1521_v30, %v997_v10  ;;  %v1000_v14 = vadd.f32 %v1492_v11, %v1910_v1 }
 0x13b   : > { %1075 = vst.msk [vmem:[%s1916_s30 + $0x30] sm:$0xff] %vm1068_vm1, %v1062_v13  ;;  %v1088_v15 = vsel %vm1068_vm1, %v1062_v13, 0.0  ;;  %v1105_v16 = vmul.f32 %v1062_v13, %v1062_v13  ;;  %v1065_v17 = vadd.f32 %v1522_v36, %v1000_v14 }
 0x13c   : > { %v1089_v18 = vadd.f32 %v1088_v15, %v1087_v7 }
 0x13d   : > { %v1118_v19 = vsel %vm1068_vm1, %v1105_v16, 0.0  ;;  %1076 = vst.msk [vmem:[%s1916_s30 + $0x38] sm:$0xff] %vm1068_vm1, %v1065_v17  ;;  %v1090_v20 = vsel %vm1068_vm1, %v1065_v17, 0.0  ;;  %v1106_v63 = vmul.f32 %v1065_v17, %v1065_v17 }
 0x13e   : > { %v1119_v21 = vadd.f32 %v1118_v19, %v1117_v12  ;;  %v1091_v22 = vadd.f32 %v1090_v20, %v1089_v18 }
 0x13f   : > { %v1120_v1 = vsel %vm1068_vm1, %v1106_v63, 0.0 }
 0x140   : > { %v1092_v24 = vrot.slane %v1091_v22, 4  ;;  %v1121_v25 = vadd.f32 %v1120_v1, %v1119_v21 }
 0x142   : > { %v1093_v26 = vadd.f32 %v1092_v24, %v1091_v22  ;;  %v1122_v23 = vrot.slane %v1121_v25, 4 }
 0x144   : > { %v1094_v27 = vrot.slane %v1093_v26, 2  ;;  %v1123_v28 = vadd.f32 %v1122_v23, %v1121_v25 }
 0x146   : > { %v1095_v29 = vadd.f32 %v1094_v27, %v1093_v26  ;;  %v1124_v30 = vrot.slane %v1123_v28, 2 }
 0x148   : > { %v1096_v31 = vrot.slane %v1095_v29, 1  ;;  %v1125_v32 = vadd.f32 %v1124_v30, %v1123_v28 }
 0x14a   : > { %v1097_v33 = vadd.f32 %v1096_v31, %v1095_v29  ;;  %v1126_v34 = vrot.slane %v1125_v32, 1 }
 0x14c   : > { %1098 = vst.msk [vmem:[%s270_s7] sm:$0xff] %vm1068_vm1, %v1097_v33  ;;  %v1127_v36 = vadd.f32 %v1126_v34, %v1125_v32 }
 0x14e   : > { %1128 = vst.msk [vmem:[%s277_s10] sm:$0xff] %vm1068_vm1, %v1127_v36 }
 0x14f PF: > { %s15_s17 = sadd.s32 1, %s1624_s17   ;;  %s1979_s15 = smov %s1620_s16 }
 0x150   : > { %p12_p6 = scmp.ge.s32.totalorder %s15_s17, 4   ;;  %s1980_s16 = smov %s1982_s18 }
 0x152   :  { %14 = sbr.rel (!%p12_p6) target bundleno = 2 (0x2), region = 85 }

// kernel: advection_core.49
= control target key start
LH: loop header
LB: loop body
LE: loop exit
PB: predicated region body
PF: predicated region fallthrough
CT: control target
= control target key end

     0   :  { %s562_s12 = smov 0   ;;  %s564_s13 = smov 0   ;;  %s612_s0 = inlined_call_operand.vmem [shape: f32[128,32], index: 0, kind: input, shape index: {}]   ;;  %s613_s1 = inlined_call_operand.vmem [shape: bf16[32,3], index: 1, kind: input, shape index: {}]   ;;  %s614_s2 = inlined_call_operand.vmem [shape: f32[1,3], index: 2, kind: input, shape index: {}]   ;;  %s615_s3 = inlined_call_operand.vmem [shape: f32[128,3], index: 3, kind: output, shape index: {}]  }
   0x1   :  { %s566_s14 = smov 0  }
   0x2 LB: > { %s25_s15 = sadd.s32 1, %s536_s13  ;;  %p456_p0 = scmp.ge.s32.totalorder %s540_s14, 1  ;;  %s540_s14 = sphi %s566_s14, %s13_s14   ;;  %s536_s13 = sphi %s564_s13, %s617_s13   ;;  %s532_s12 = sphi %s562_s12, %s616_s12  }
   0x3   : > { %p27_p1 = scmp.ge.s32.totalorder %s25_s15, 2  ;;  %p169_p2 = scmp.lt.s32.totalorder %s540_s14, 3 }
   0x5   : > { %s619_s15 = smov (%p27_p1, %s25_s15), 0  ;;  %p170_p3 = pnand %p456_p0, %p169_p2 }
   0x6   : > { %v516_v0 = vld [vmem:[%s613_s1] sm:$0xff] (!%p170_p3)   ;;  %s457_s18 = sshll.u32 (!%p170_p3), %s532_s12, 3  ;;  %v517_v1 = vld [vmem:[%s613_s1 + $0x8] sm:$0xff] (!%p170_p3)   ;;  %vm261_vm0 = vcmask (!%p170_p3), 261120   ;;  %vm339_vm1 = vcmask (!%p170_p3), 23552  }
   0x7   : > { %173 = sbr.rel (%p170_p3) target bundleno = 240 (0xf0), region = 32  ;;  %p204_p4 = scmp.lt.s32.totalorder (!%p170_p3), %s457_s18, 15  ;;  %476 = vmatprep.subr.bf16.mxu0 (!%p170_p3), %v516_v0  ;;  %488 = vmatprep.subr.bf16.mxu1 (!%p170_p3), %v516_v0  ;;  %v461_v14 = vld [vmem:[%s614_s2] ss:$0 sm:$0xff] (!%p170_p3) }
   0x8   : > { %477 = vmatpush3.bf16.msra.mxu0 (!%p170_p3), %v516_v0  ;;  %490 = vmatpush3.bf16.msra.mxu1 (!%p170_p3), %v516_v0 }
   0x9   : > { %478 = vmatprep.subr.bf16.mxu0 (!%p170_p3), %v517_v1  ;;  %489 = vmatprep.subr.bf16.mxu1 (!%p170_p3), %v517_v1 }
   0xc   : > { %479 = vmatpush3.bf16.msra.mxu0 (!%p170_p3), %v517_v1  ;;  %491 = vmatpush3.bf16.msra.mxu1 (!%p170_p3), %v517_v1 }
   0xe   : > { %s621_s18 = smov (!%p204_p4, %s457_s18), 15 }
   0xf   : > { %s458_s21 = sshll.u32 %s621_s18, 3 }
  0x10   : > { %s207_s24 = scalar_lea.vmem %s612_s0, %s458_s21  ;;  %s223_s29 = scalar_lea.vmem %s615_s3, %s458_s21 }
  0x11   : > { %v226_v2 = vld [vmem:[%s207_s24] sm:$0xff]  ;;  %v227_v3 = vld [vmem:[%s207_s24 + $0x8] sm:$0xff]  ;;  %v228_v7 = vld [vmem:[%s207_s24 + $0x10] sm:$0xff] }
  0x12   : > { %v230_v4 = vld [vmem:[%s207_s24 + $0x20] sm:$0xff]  ;;  %v234_v5 = vpack.c.bf16 %v227_v3, %v226_v2  ;;  %v231_v6 = vld [vmem:[%s207_s24 + $0x28] sm:$0xff]  ;;  %v229_v8 = vld [vmem:[%s207_s24 + $0x18] sm:$0xff] }
  0x13   : > { %v236_v9 = vpack.c.bf16 %v231_v6, %v230_v4  ;;  %v235_v10 = vpack.c.bf16 %v229_v8, %v228_v7  ;;  %v232_v11 = vld [vmem:[%s207_s24 + $0x30] sm:$0xff]  ;;  %v233_v12 = vld [vmem:[%s207_s24 + $0x38] sm:$0xff] }
  0x14   : > { %480 = vmatprep.mubr.msk.bf16.mxu0 %vm261_vm0, %v234_v5  ;;  %v237_v13 = vpack.c.bf16 %v233_v12, %v232_v11 }
  0x15   : > { %484 = vmatprep.mubr.msk.bf16.mxu1 %vm261_vm0, %v236_v9  ;;  %481 = vmatmul.mubr.msk.bf16.vlgmr.msra.gmra.mrb[0].mxu0 %vm261_vm0, %v235_v10 }
  0x16   : > { %485 = vmatmul.mubr.msk.bf16.vlgmr.msra.gmra.mrb[0].mxu1 %vm261_vm0, %v237_v13 }
  0xe8   : > { %v482_v15 = vpop.f32.mrb[0].mxu0 }
  0xe9   : > { %v317_v16 = vadd.f32 %v482_v15, %v461_v14  ;;  %v486_v17 = vpop.f32.mrb[0].mxu1  ;;  %v308_v18 = vpop.f32.mrb[1].mxu0 }
  0xea   : > { %v333_v19 = vadd.f32 %v486_v17, %v461_v14  ;;  %v309_v20 = vadd.f32 %v461_v14, %v308_v18  ;;  %v324_v21 = vpop.f32.mrb[1].mxu1  ;;  %v483_v22 = vpop.f32.mrb[2].mxu0 }
  0xeb   : > { %342 = vst.msk [vmem:[%s223_s29 + $0x10] sm:$0xff] %vm339_vm1, %v317_v16  ;;  %v325_v23 = vadd.f32 %v461_v14, %v324_v21  ;;  %v320_v24 = vadd.f32 %v483_v22, %v461_v14  ;;  %v487_v25 = vpop.f32.mrb[2].mxu1  ;;  %v311_v26 = vpop.f32.mrb[3].mxu0 }
  0xec   : > { %346 = vst.msk [vmem:[%s223_s29 + $0x30] sm:$0xff] %vm339_vm1, %v333_v19  ;;  %340 = vst.msk [vmem:[%s223_s29] sm:$0xff] %vm339_vm1, %v309_v20  ;;  %v336_v27 = vadd.f32 %v487_v25, %v461_v14  ;;  %v312_v28 = vadd.f32 %v461_v14, %v311_v26  ;;  %v327_v29 = vpop.f32.mrb[3].mxu1 }
  0xed   : > { %344 = vst.msk [vmem:[%s223_s29 + $0x20] sm:$0xff] %vm339_vm1, %v325_v23  ;;  %343 = vst.msk [vmem:[%s223_s29 + $0x18] sm:$0xff] %vm339_vm1, %v320_v24  ;;  %v328_v30 = vadd.f32 %v461_v14, %v327_v29 }
  0xee   : > { %347 = vst.msk [vmem:[%s223_s29 + $0x38] sm:$0xff] %vm339_vm1, %v336_v27  ;;  %341 = vst.msk [vmem:[%s223_s29 + $0x8] sm:$0xff] %vm339_vm1, %v312_v28 }
  0xef   : > { %345 = vst.msk [vmem:[%s223_s29 + $0x28] sm:$0xff] %vm339_vm1, %v328_v30 }
  0xf0 PF: > { %s13_s14 = sadd.s32 1, %s540_s14   ;;  %s616_s12 = smov %s536_s13 }
  0xf1   : > { %p10_p5 = scmp.ge.s32.totalorder %s13_s14, 4   ;;  %s617_s13 = smov %s619_s15 }
  0xf3   :  { %12 = sbr.rel (!%p10_p5) target bundleno = 2 (0x2), region = 68 }

// kernel: advection_core.48
= control target key start
LH: loop header
LB: loop body
LE: loop exit
PB: predicated region body
PF: predicated region fallthrough
CT: control target
= control target key end

     0   :  { %vm93_vm0 = vcmask 261120   ;;  %s278_s0 = inlined_call_operand.vmem [shape: f32[128,32], index: 0, kind: input, shape index: {}]   ;;  %s279_s1 = inlined_call_operand.vmem [shape: f32[1,32], index: 1, kind: input, shape index: {}]   ;;  %s280_s2 = inlined_call_operand.vmem [shape: f32[1,32], index: 2, kind: input, shape index: {}]   ;;  %s281_s3 = inlined_call_operand.hbm [shape: f32[128,32], index: 3, kind: output, shape index: {}]  }
   0x1   :  { %v15_v0 = vld [vmem:[%s278_s0] sm:$0xff]  ;;  %v16_v4 = vld [vmem:[%s278_s0 + $0x8] sm:$0xff]  ;;  %v17_v5 = vld [vmem:[%s278_s0 + $0x10] sm:$0xff] }
   0x2   :  { %v126_v1 = vld [vmem:[%s279_s1] ss:$0 sm:$0xff]  ;;  %v18_v6 = vld [vmem:[%s278_s0 + $0x18] sm:$0xff]  ;;  %v20_v11 = vld [vmem:[%s278_s0 + $0x28] sm:$0xff] }
   0x3   :  { %v187_v2 = vld [vmem:[%s280_s2] ss:$0 sm:$0xff]  ;;  %v38_v3 = vmul.f32 %v126_v1, %v15_v0  ;;  %v39_v7 = vmul.f32 %v126_v1, %v16_v4  ;;  %v40_v8 = vmul.f32 %v126_v1, %v17_v5  ;;  %v41_v9 = vmul.f32 %v126_v1, %v18_v6  ;;  %v21_v12 = vld [vmem:[%s278_s0 + $0x30] sm:$0xff]  ;;  %v22_v17 = vld [vmem:[%s278_s0 + $0x38] sm:$0xff] }
   0x4   :  { %v19_v10 = vld [vmem:[%s278_s0 + $0x20] sm:$0xff]  ;;  %v43_v15 = vmul.f32 %v126_v1, %v20_v11  ;;  %v44_v16 = vmul.f32 %v126_v1, %v21_v12  ;;  %v45_v21 = vmul.f32 %v126_v1, %v22_v17  ;;  %v24_v23 = vld [vmem:[%s278_s0 + $0x48] sm:$0xff]  ;;  %v25_v24 = vld [vmem:[%s278_s0 + $0x50] sm:$0xff] }
   0x5   :  { %v61_v13 = vadd.f32 %v187_v2, %v38_v3  ;;  %v42_v14 = vmul.f32 %v126_v1, %v19_v10  ;;  %v62_v18 = vadd.f32 %v187_v2, %v39_v7  ;;  %v63_v19 = vadd.f32 %v187_v2, %v40_v8  ;;  %v23_v22 = vld [vmem:[%s278_s0 + $0x40] sm:$0xff]  ;;  %v26_v29 = vld [vmem:[%s278_s0 + $0x58] sm:$0xff]  ;;  %v28_v31 = vld [vmem:[%s278_s0 + $0x68] sm:$0xff] }
   0x6   :  { %v64_v20 = vadd.f32 %v187_v2, %v41_v9  ;;  %v66_v27 = vadd.f32 %v187_v2, %v43_v15  ;;  %v67_v28 = vadd.f32 %v187_v2, %v44_v16  ;;  %v27_v30 = vld [vmem:[%s278_s0 + $0x60] sm:$0xff]  ;;  %v68_v35 = vadd.f32 %v187_v2, %v45_v21  ;;  %v29_v36 = vld [vmem:[%s278_s0 + $0x70] sm:$0xff] }
   0x7   :  { %v77_v25 = vmax.f32 %v61_v13, 0.0  ;;  %v65_v26 = vadd.f32 %v187_v2, %v42_v14  ;;  %v78_v32 = vmax.f32 %v62_v18, 0.0  ;;  %v79_v33 = vmax.f32 %v63_v19, 0.0 }
   0x8   :  { %v80_v34 = vmax.f32 %v64_v20, 0.0 }
   0x9   :  { %8 = vsyncpa [#allocation3], 0  ;;  %94 = vst.msk [vmem:[#allocation2] sm:$0xff] %vm93_vm0, %v77_v25  ;;  %v81_v37 = vmax.f32 %v65_v26, 0.0  ;;  %v82_v38 = vmax.f32 %v66_v27, 0.0  ;;  %v83_v39 = vmax.f32 %v67_v28, 0.0  ;;  %v46_v40 = vmul.f32 %v126_v1, %v23_v22 }
   0xa   :  { %v30_v41 = vld [vmem:[%s278_s0 + $0x78] sm:$0xff]  ;;  %95 = vst.msk [vmem:[#allocation2 + $0x8] sm:$0xff] %vm93_vm0, %v78_v32  ;;  %96 = vst.msk [vmem:[#allocation2 + $0x10] sm:$0xff] %vm93_vm0, %v79_v33  ;;  %v84_v42 = vmax.f32 %v68_v35, 0.0  ;;  %v47_v43 = vmul.f32 %v126_v1, %v24_v23  ;;  %v48_v44 = vmul.f32 %v126_v1, %v25_v24  ;;  %v49_v45 = vmul.f32 %v126_v1, %v26_v29  ;;  %s155_s0 = smov [#allocation2]  }
   0xb   :  { %97 = vst.msk [vmem:[#allocation2 + $0x18] sm:$0xff] %vm93_vm0, %v80_v34  ;;  %98 = vst.msk [vmem:[#allocation2 + $0x20] sm:$0xff] %vm93_vm0, %v81_v37  ;;  %v69_v46 = vadd.f32 %v187_v2, %v46_v40  ;;  %v50_v47 = vmul.f32 %v126_v1, %v27_v30  ;;  %v51_v48 = vmul.f32 %v126_v1, %v28_v31  ;;  %s115_s19 = sshll.u32 %s155_s0, 4  ;;  %s116_s19 = int_to_ptr.vmem [resolvable:$true] %s115_s19 }
   0xc   :  { %99 = vst.msk [vmem:[#allocation2 + $0x28] sm:$0xff] %vm93_vm0, %v82_v38  ;;  %100 = vst.msk [vmem:[#allocation2 + $0x30] sm:$0xff] %vm93_vm0, %v83_v39  ;;  %v52_v49 = vmul.f32 %v126_v1, %v29_v36  ;;  %v70_v50 = vadd.f32 %v187_v2, %v47_v43  ;;  %v71_v51 = vadd.f32 %v187_v2, %v48_v44  ;;  %s131_s20 = scalar_lea.vmem %s116_s19, 2048  ;;  %p136_p1 = scmp.lt.s32.totalorder %s116_s19, %s116_s19 }
   0xd   :  { %101 = vst.msk [vmem:[#allocation2 + $0x38] sm:$0xff] %vm93_vm0, %v84_v42  ;;  %v72_v52 = vadd.f32 %v187_v2, %v49_v45  ;;  %v53_v53 = vmul.f32 %v126_v1, %v30_v41  ;;  %v85_v54 = vmax.f32 %v69_v46, 0.0  ;;  %v73_v55 = vadd.f32 %v187_v2, %v50_v47  ;;  %p132_p0 = scmp.ne.s32.totalorder %s116_s19, %s131_s20  ;;  %p137_p2 = scmp.lt.s32.totalorder %s131_s20, %s131_s20 }
   0xe   :  { %v74_v56 = vadd.f32 %v187_v2, %v51_v48  ;;  %v75_v57 = vadd.f32 %v187_v2, %v52_v49  ;;  %v86_v58 = vmax.f32 %v70_v50, 0.0  ;;  %v87_v59 = vmax.f32 %v71_v51, 0.0 }
   0xf   :  { %v88_v60 = vmax.f32 %v72_v52, 0.0  ;;  %v76_v61 = vadd.f32 %v187_v2, %v53_v53  ;;  %102 = vst.msk [vmem:[#allocation2 + $0x40] sm:$0xff] %vm93_vm0, %v85_v54  ;;  %v89_v62 = vmax.f32 %v73_v55, 0.0  ;;  %p138_p3 = por %p137_p2, %p136_p1 }
  0x10   :  { %v90_v63 = vmax.f32 %v74_v56, 0.0  ;;  %v91_v0 = vmax.f32 %v75_v57, 0.0  ;;  %103 = vst.msk [vmem:[#allocation2 + $0x48] sm:$0xff] %vm93_vm0, %v86_v58  ;;  %104 = vst.msk [vmem:[#allocation2 + $0x50] sm:$0xff] %vm93_vm0, %v87_v59 }
  0x11   :  { %105 = vst.msk [vmem:[#allocation2 + $0x58] sm:$0xff] %vm93_vm0, %v88_v60  ;;  %v92_v1 = vmax.f32 %v76_v61, 0.0  ;;  %106 = vst.msk [vmem:[#allocation2 + $0x60] sm:$0xff] %vm93_vm0, %v89_v62  ;;  %p139_p4 = pnand %p138_p3, %p132_p0 }
  0x12   :  { %107 = vst.msk [vmem:[#allocation2 + $0x68] sm:$0xff] %vm93_vm0, %v90_v63  ;;  %108 = vst.msk [vmem:[#allocation2 + $0x70] sm:$0xff] %vm93_vm0, %v91_v0 }
  0x13   :  { %109 = vst.msk [vmem:[#allocation2 + $0x78] sm:$0xff] %vm93_vm0, %v92_v1 }
  0x14   :  { %142 = shalt.err (!%p139_p4)
}
  0x15   :  { %s143_s23 = scalar_lea.hbm %s281_s3, 2048 }
  0x16   :  { %p144_p5 = scmp.ne.s32.totalorder %s281_s3, %s143_s23  ;;  %p147_p6 = scmp.lt.u32.totalorder %s143_s23, %s281_s3 }
  0x18   :  { %p149_p7 = pnand %p147_p6, %p144_p5 }
  0x1a   :  { %152 = shalt.err (!%p149_p7)
}
  0x1b   :  { %s156_s26 = smov 128   ;;  %s157_s27 = smov 8  }
  0x1c   :  { %121 = dma.vmem_to_hbm [thread:$0]  %s116_s19, 2048, %s281_s3, [#allocation3], %s156_s26, %s156_s26, %s157_s27  }
  0x1d   :  { %153 = dma.done.wait [#allocation3], 2048  }
  0x1e   :  { %154 = vsyncadd [#allocation3], 4294965248 }
  0x1f   :  { %125 = vsyncpa [#allocation3], 1 }

// kernel: advection_core.50
= control target key start
LH: loop header
LB: loop body
LE: loop exit
PB: predicated region body
PF: predicated region fallthrough
CT: control target
= control target key end

     0   :  { %s805_s15 = smov 0   ;;  %s807_s16 = smov 0   ;;  %s916_s0 = inlined_call_operand.vmem [shape: f32[128,128], index: 0, kind: input, shape index: {}]   ;;  %s917_s1 = inlined_call_operand.vmem [shape: bf16[128,32], index: 1, kind: input, shape index: {}]   ;;  %s918_s2 = inlined_call_operand.vmem [shape: f32[128,32], index: 2, kind: output, shape index: {0}]   ;;  %s919_s3 = inlined_call_operand.vmem [shape: f32[16,32], index: 3, kind: output, shape index: {1}]   ;;  %s920_s4 = inlined_call_operand.vmem [shape: f32[16,32], index: 4, kind: output, shape index: {2}]  }
   0x1   :  { %s809_s17 = smov 0  }
   0x2 LB: > { %s27_s18 = sadd.s32 1, %s774_s16  ;;  %p655_p0 = scmp.ge.s32.totalorder %s778_s17, 1  ;;  %s778_s17 = sphi %s809_s17, %s15_s17   ;;  %s774_s16 = sphi %s807_s16, %s922_s16   ;;  %s770_s15 = sphi %s805_s15, %s921_s15  }
   0x3   : > { %p29_p1 = scmp.ge.s32.totalorder %s27_s18, 2  ;;  %p195_p2 = scmp.lt.s32.totalorder %s778_s17, 3 }
   0x5   : > { %s924_s18 = smov (%p29_p1, %s27_s18), 0  ;;  %p196_p3 = pnand %p655_p0, %p195_p2 }
   0x6   : > { %v748_v0 = vld [vmem:[%s917_s1] sm:$0xff] (!%p196_p3)   ;;  %s656_s21 = sshll.u32 (!%p196_p3), %s770_s15, 3  ;;  %v749_v1 = vld [vmem:[%s917_s1 + $0x8] sm:$0xff] (!%p196_p3)   ;;  %v750_v2 = vld [vmem:[%s917_s1 + $0x10] sm:$0xff] (!%p196_p3)   ;;  %vm417_vm0 = vcmask (!%p196_p3), 261120   ;;  %p261_p5 = scmp.lt.s32.totalorder (!%p196_p3), %s770_s15, 1 }
   0x7   : > { %199 = sbr.rel (%p196_p3) target bundleno = 284 (0x11c), region = 28  ;;  %p243_p4 = scmp.lt.s32.totalorder (!%p196_p3), %s656_s21, 15  ;;  %684 = vmatprep.subr.bf16.mxu0 (!%p196_p3), %v748_v0  ;;  %708 = vmatprep.subr.bf16.mxu1 (!%p196_p3), %v748_v0  ;;  %v751_v3 = vld [vmem:[%s917_s1 + $0x18] sm:$0xff] (!%p196_p3)   ;;  %v752_v10 = vld [vmem:[%s917_s1 + $0x20] sm:$0xff] (!%p196_p3)   ;;  %v753_v11 = vld [vmem:[%s917_s1 + $0x28] sm:$0xff] (!%p196_p3)  }
   0x8   : > { %685 = vmatpush3.bf16.msra.mxu0 (!%p196_p3), %v748_v0  ;;  %716 = vmatpush3.bf16.msra.mxu1 (!%p196_p3), %v748_v0  ;;  %v754_v12 = vld [vmem:[%s917_s1 + $0x30] sm:$0xff] (!%p196_p3)   ;;  %v755_v13 = vld [vmem:[%s917_s1 + $0x38] sm:$0xff] (!%p196_p3)  }
   0x9   : > { %686 = vmatprep.subr.bf16.mxu0 (!%p196_p3), %v749_v1  ;;  %709 = vmatprep.subr.bf16.mxu1 (!%p196_p3), %v749_v1 }
   0xc   : > { %687 = vmatpush3.bf16.msra.mxu0 (!%p196_p3), %v749_v1  ;;  %717 = vmatpush3.bf16.msra.mxu1 (!%p196_p3), %v749_v1 }
   0xd   : > { %688 = vmatprep.subr.bf16.mxu0 (!%p196_p3), %v750_v2  ;;  %710 = vmatprep.subr.bf16.mxu1 (!%p196_p3), %v750_v2 }
   0xe   : > { %s926_s21 = smov (!%p243_p4, %s656_s21), 15  ;;  %s928_s15 = smov (!%p261_p5, %s770_s15), 1 }
   0xf   : > { %s657_s26 = sshll.u32 %s926_s21, 3  ;;  %s660_s21 = sshll.u32 %s928_s15, 3 }
  0x10   : > { %s843_s29 = scalar_lea.vmem %s916_s0, %s657_s26  ;;  %689 = vmatpush3.bf16.msra.mxu0 %v750_v2  ;;  %718 = vmatpush3.bf16.msra.mxu1 %v750_v2  ;;  %s259_s20 = scalar_lea.vmem %s918_s2, %s657_s26 }
  0x11   : > { %v276_v4 = vld [vmem:[%s843_s29] sm:$0xff]  ;;  %v277_v5 = vld [vmem:[%s843_s29 + $0x8] sm:$0xff]  ;;  %690 = vmatprep.subr.bf16.mxu0 %v751_v3  ;;  %711 = vmatprep.subr.bf16.mxu1 %v751_v3  ;;  %v278_v14 = vld [vmem:[%s843_s29 + $0x10] sm:$0xff]  ;;  %s267_s24 = scalar_lea.vmem %s919_s3, %s660_s21  ;;  %s274_s27 = scalar_lea.vmem %s920_s4, %s660_s21 }
  0x12   : > { %v284_v6 = vpack.c.bf16 %v277_v5, %v276_v4  ;;  %v280_v7 = vld [vmem:[%s843_s29 + $0x20] sm:$0xff]  ;;  %v281_v8 = vld [vmem:[%s843_s29 + $0x28] sm:$0xff]  ;;  %v279_v15 = vld [vmem:[%s843_s29 + $0x18] sm:$0xff] }
  0x13   : > { %v286_v9 = vpack.c.bf16 %v281_v8, %v280_v7  ;;  %v282_v16 = vld [vmem:[%s843_s29 + $0x30] sm:$0xff]  ;;  %v283_v17 = vld [vmem:[%s843_s29 + $0x38] sm:$0xff]  ;;  %v285_v18 = vpack.c.bf16 %v279_v15, %v278_v14 }
  0x14   : > { %700 = vmatprep.mubr.bf16.mxu0 %v284_v6  ;;  %691 = vmatpush3.bf16.msra.mxu0 %v751_v3  ;;  %v287_v19 = vpack.c.bf16 %v283_v17, %v282_v16 }
  0x15   : > { %704 = vmatprep.mubr.bf16.mxu1 %v286_v9  ;;  %719 = vmatpush3.bf16.msra.mxu1 %v751_v3 }
  0x16   : > { %692 = vmatprep.subr.bf16.mxu0 %v752_v10  ;;  %712 = vmatprep.subr.bf16.mxu1 %v752_v10 }
  0x18   : > { %693 = vmatpush3.bf16.msra.mxu0 %v752_v10 }
  0x19   : > { %720 = vmatpush3.bf16.msra.mxu1 %v752_v10  ;;  %694 = vmatprep.subr.bf16.mxu0 %v753_v11 }
  0x1a   : > { %713 = vmatprep.subr.bf16.mxu1 %v753_v11 }
  0x1c   : > { %695 = vmatpush3.bf16.msra.mxu0 %v753_v11 }
  0x1d   : > { %721 = vmatpush3.bf16.msra.mxu1 %v753_v11  ;;  %696 = vmatprep.subr.bf16.mxu0 %v754_v12 }
  0x1e   : > { %714 = vmatprep.subr.bf16.mxu1 %v754_v12 }
  0x20   : > { %697 = vmatpush3.bf16.msra.mxu0 %v754_v12 }
  0x21   : > { %722 = vmatpush3.bf16.msra.mxu1 %v754_v12  ;;  %698 = vmatprep.subr.bf16.mxu0 %v755_v13 }
  0x22   : > { %715 = vmatprep.subr.bf16.mxu1 %v755_v13 }
  0x24   : > { %699 = vmatpush3.bf16.msra.mxu0 %v755_v13 }
  0x25   : > { %723 = vmatpush3.bf16.msra.mxu1 %v755_v13 }
  0x27   : > { %701 = vmatmul.mubr.bf16.vlgmr.msra.gmra.mrb[0].mxu0 %v285_v18 }
  0x28   : > { %705 = vmatmul.mubr.bf16.vlgmr.msra.gmra.mrb[0].mxu1 %v287_v19 }
  0xfa   : > { %v702_v20 = vpop.f32.mrb[0].mxu0 }
  0xfb   : > { %v706_v21 = vpop.f32.mrb[0].mxu1  ;;  %420 = vst.msk [vmem:[%s259_s20 + $0x10] sm:$0xff] %vm417_vm0, %v702_v20  ;;  %v386_v22 = vpop.f32.mrb[1].mxu0  ;;  %v450_v29 = vmul.f32 %v702_v20, %v702_v20  ;;  %v429_v33 = vsel %vm417_vm0, %v702_v20, 0.0 }
  0xfc   : > { %424 = vst.msk [vmem:[%s259_s20 + $0x30] sm:$0xff] %vm417_vm0, %v706_v21  ;;  %v402_v23 = vpop.f32.mrb[1].mxu1  ;;  %418 = vst.msk [vmem:[%s259_s20] sm:$0xff] %vm417_vm0, %v386_v22  ;;  %v448_v24 = vmul.f32 %v386_v22, %v386_v22  ;;  %v703_v25 = vpop.f32.mrb[2].mxu0  ;;  %v426_v30 = vsel %vm417_vm0, %v386_v22, 0.0  ;;  %v454_v51 = vmul.f32 %v706_v21, %v706_v21  ;;  %v437_v55 = vsel %vm417_vm0, %v706_v21, 0.0 }
  0xfd   : > { %422 = vst.msk [vmem:[%s259_s20 + $0x20] sm:$0xff] %vm417_vm0, %v402_v23  ;;  %v707_v26 = vpop.f32.mrb[2].mxu1  ;;  %421 = vst.msk [vmem:[%s259_s20 + $0x18] sm:$0xff] %vm417_vm0, %v703_v25  ;;  %v389_v27 = vpop.f32.mrb[3].mxu0  ;;  %v451_v36 = vmul.f32 %v703_v25, %v703_v25  ;;  %v452_v38 = vmul.f32 %v402_v23, %v402_v23  ;;  %v459_v41 = vsel %vm417_vm0, %v450_v29, 0.0  ;;  %v431_v42 = vsel %vm417_vm0, %v703_v25, 0.0 }
  0xfe   : > { %425 = vst.msk [vmem:[%s259_s20 + $0x38] sm:$0xff] %vm417_vm0, %v707_v26  ;;  %v405_v28 = vpop.f32.mrb[3].mxu1  ;;  %419 = vst.msk [vmem:[%s259_s20 + $0x8] sm:$0xff] %vm417_vm0, %v389_v27  ;;  %v427_v31 = vsel %vm417_vm0, %v389_v27, 0.0  ;;  %v449_v32 = vmul.f32 %v389_v27, %v389_v27  ;;  %v456_v35 = vsel %vm417_vm0, %v448_v24, 0.0  ;;  %v433_v43 = vsel %vm417_vm0, %v402_v23, 0.0 }
  0xff   : > { %423 = vst.msk [vmem:[%s259_s20 + $0x28] sm:$0xff] %vm417_vm0, %v405_v28  ;;  %v428_v34 = vadd.f32 %v427_v31, %v426_v30  ;;  %v461_v46 = vsel %vm417_vm0, %v451_v36, 0.0  ;;  %v463_v47 = vsel %vm417_vm0, %v452_v38, 0.0  ;;  %v453_v48 = vmul.f32 %v405_v28, %v405_v28 }
 0x100   : > { %v457_v37 = vsel %vm417_vm0, %v449_v32, 0.0  ;;  %v435_v52 = vsel %vm417_vm0, %v405_v28, 0.0  ;;  %v455_v56 = vmul.f32 %v707_v26, %v707_v26  ;;  %v467_v60 = vsel %vm417_vm0, %v454_v51, 0.0 }
 0x101   : > { %v430_v39 = vadd.f32 %v429_v33, %v428_v34  ;;  %v458_v40 = vadd.f32 %v457_v37, %v456_v35  ;;  %v465_v57 = vsel %vm417_vm0, %v453_v48, 0.0  ;;  %v439_v61 = vsel %vm417_vm0, %v707_v26, 0.0 }
 0x102   : > { %v469_v0 = vsel %vm417_vm0, %v455_v56, 0.0 }
 0x103   : > { %v460_v44 = vadd.f32 %v459_v41, %v458_v40  ;;  %v432_v45 = vadd.f32 %v431_v42, %v430_v39 }
 0x105   : > { %v434_v49 = vadd.f32 %v433_v43, %v432_v45  ;;  %v462_v50 = vadd.f32 %v461_v46, %v460_v44 }
 0x107   : > { %v464_v53 = vadd.f32 %v463_v47, %v462_v50  ;;  %v436_v54 = vadd.f32 %v435_v52, %v434_v49 }
 0x109   : > { %v438_v58 = vadd.f32 %v437_v55, %v436_v54  ;;  %v466_v59 = vadd.f32 %v465_v57, %v464_v53 }
 0x10b   : > { %v440_v62 = vadd.f32 %v439_v61, %v438_v58  ;;  %v468_v63 = vadd.f32 %v467_v60, %v466_v59 }
 0x10d   : > { %v441_v1 = vrot.slane %v440_v62, 4  ;;  %v470_v2 = vadd.f32 %v469_v0, %v468_v63 }
 0x10f   : > { %v442_v3 = vadd.f32 %v441_v1, %v440_v62  ;;  %v471_v4 = vrot.slane %v470_v2, 4 }
 0x111   : > { %v443_v5 = vrot.slane %v442_v3, 2  ;;  %v472_v6 = vadd.f32 %v471_v4, %v470_v2 }
 0x113   : > { %v444_v7 = vadd.f32 %v443_v5, %v442_v3  ;;  %v473_v8 = vrot.slane %v472_v6, 2 }
 0x115   : > { %v445_v9 = vrot.slane %v444_v7, 1  ;;  %v474_v10 = vadd.f32 %v473_v8, %v472_v6 }
 0x117   : > { %v446_v11 = vadd.f32 %v445_v9, %v444_v7  ;;  %v475_v12 = vrot.slane %v474_v10, 1 }
 0x119   : > { %447 = vst.msk [vmem:[%s267_s24] sm:$0xff] %vm417_vm0, %v446_v11  ;;  %v476_v13 = vadd.f32 %v475_v12, %v474_v10 }
 0x11b   : > { %477 = vst.msk [vmem:[%s274_s27] sm:$0xff] %vm417_vm0, %v476_v13 }
 0x11c PF: > { %s15_s17 = sadd.s32 1, %s778_s17   ;;  %s921_s15 = smov %s774_s16 }
 0x11d   : > { %p12_p6 = scmp.ge.s32.totalorder %s15_s17, 4   ;;  %s922_s16 = smov %s924_s18 }
 0x11f   :  { %14 = sbr.rel (!%p12_p6) target bundleno = 2 (0x2), region = 85 }

// kernel: mul.594
= control target key start
LH: loop header
LB: loop body
LE: loop exit
PB: predicated region body
PF: predicated region fallthrough
CT: control target
= control target key end

     0   :  { %s100_s0 = inlined_call_operand.vmem [shape: f32[1,512], index: 0, kind: input, shape index: {}]   ;;  %s101_s1 = inlined_call_operand.vmem [shape: f32[1,512], index: 1, kind: input, shape index: {}]   ;;  %s102_s2 = inlined_call_operand.vmem [shape: f32[1,512], index: 2, kind: output, shape index: {}]  }
   0x1   :  { %v3_v0 = vld [vmem:[%s100_s0] sm:$0x1]  ;;  %v40_v2 = vld [vmem:[%s100_s0 + $0x1] sm:$0x1]  ;;  %v43_v5 = vld [vmem:[%s100_s0 + $0x2] sm:$0x1] }
   0x2   :  { %v4_v1 = vld [vmem:[%s101_s1] sm:$0x1]  ;;  %v41_v4 = vld [vmem:[%s101_s1 + $0x1] sm:$0x1]  ;;  %v44_v6 = vld [vmem:[%s101_s1 + $0x2] sm:$0x1] }
   0x3   :  { %v7_v3 = vmul.f32 %v4_v1, %v3_v0  ;;  %v16_v7 = vmul.f32 %v41_v4, %v40_v2  ;;  %v26_v8 = vmul.f32 %v44_v6, %v43_v5  ;;  %v46_v9 = vld [vmem:[%s100_s0 + $0x3] sm:$0x1] }
   0x4   :  { %v47_v10 = vld [vmem:[%s101_s1 + $0x3] sm:$0x1] }
   0x5   :  { %9 = vst [vmem:[%s102_s2] sm:$0x1] %v7_v3  ;;  %v36_v11 = vmul.f32 %v47_v10, %v46_v9  ;;  %42 = vst [vmem:[%s102_s2 + $0x1] sm:$0x1] %v16_v7 }
   0x6   :  { %45 = vst [vmem:[%s102_s2 + $0x2] sm:$0x1] %v26_v8 }
   0x7   :  { %48 = vst [vmem:[%s102_s2 + $0x3] sm:$0x1] %v36_v11 }

// kernel: advection_core.59
= control target key start
LH: loop header
LB: loop body
LE: loop exit
PB: predicated region body
PF: predicated region fallthrough
CT: control target
= control target key end

     0   :  { %s1368_s15 = smov 0   ;;  %s1370_s16 = smov 0   ;;  %s1625_s0 = inlined_call_operand.vmem [shape: f32[128,192], index: 0, kind: input, shape index: {}]   ;;  %s1626_s1 = inlined_call_operand.vmem [shape: bf16[192,512], index: 1, kind: input, shape index: {}]   ;;  %s1627_s2 = inlined_call_operand.vmem [shape: f32[128,512], index: 2, kind: output, shape index: {0}]   ;;  %s1628_s3 = inlined_call_operand.vmem [shape: f32[16,512], index: 3, kind: output, shape index: {1}]   ;;  %s1629_s4 = inlined_call_operand.vmem [shape: f32[16,512], index: 4, kind: output, shape index: {2}]  }
   0x1   :  { %s1372_s17 = smov 0  }
   0x2 LB: > { %s27_s18 = sadd.s32 1, %s1337_s16  ;;  %p1150_p0 = scmp.ge.s32.totalorder %s1341_s17, 1  ;;  %s1341_s17 = sphi %s1372_s17, %s15_s17   ;;  %s1337_s16 = sphi %s1370_s16, %s1631_s16   ;;  %s1333_s15 = sphi %s1368_s15, %s1630_s15  }
   0x3   : > { %p29_p1 = scmp.ge.s32.totalorder %s27_s18, 2  ;;  %p198_p2 = scmp.lt.s32.totalorder %s1341_s17, 3 }
   0x5   : > { %s1633_s18 = smov (%p29_p1, %s27_s18), 0  ;;  %p199_p3 = pnand %p1150_p0, %p198_p2 }
   0x6   : > { %v1247_v0 = vld [vmem:[%s1626_s1 + $0x4] ss:$16 sps:$4 sm:$0xff] (!%p199_p3)   ;;  %v1249_v1 = vld [vmem:[%s1626_s1 + $0xc] ss:$16 sps:$4 sm:$0xff] (!%p199_p3)   ;;  %v1251_v2 = vld [vmem:[%s1626_s1] ss:$16 sps:$4 sm:$0xff] (!%p199_p3)  }
   0x7   : > { %202 = sbr.rel (%p199_p3) target bundleno = 314 (0x13a), region = 28  ;;  %624 = vmatprep.subr.bf16.mxu0 (!%p199_p3), %v1247_v0  ;;  %v1252_v3 = vld [vmem:[%s1626_s1 + $0x8] ss:$16 sps:$4 sm:$0xff] (!%p199_p3)   ;;  %697 = vmatprep.subr.bf16.mxu1 (!%p199_p3), %v1249_v1  ;;  %v1253_v4 = vld [vmem:[%s1626_s1 + $0x24] ss:$16 sps:$4 sm:$0xff] (!%p199_p3)   ;;  %s1151_s11 = sshll.u32 (!%p199_p3), %s1333_s15, 3 }
   0x8   : > { %625 = vmatpush1.bf16.msra.mxu0 (!%p199_p3), %v1251_v2  ;;  %698 = vmatpush1.bf16.msra.mxu1 (!%p199_p3), %v1252_v3  ;;  %v1255_v5 = vld [vmem:[%s1626_s1 + $0x2c] ss:$16 sps:$4 sm:$0xff] (!%p199_p3)   ;;  %v1257_v6 = vld [vmem:[%s1626_s1 + $0x20] ss:$16 sps:$4 sm:$0xff] (!%p199_p3)   ;;  %v1258_v7 = vld [vmem:[%s1626_s1 + $0x28] ss:$16 sps:$4 sm:$0xff] (!%p199_p3)  }
   0x9   : > { %626 = vmatprep.subr.bf16.mxu0 (!%p199_p3), %v1253_v4  ;;  %699 = vmatprep.subr.bf16.mxu1 (!%p199_p3), %v1255_v5  ;;  %v1259_v8 = vld [vmem:[%s1626_s1 + $0x44] ss:$16 sps:$4 sm:$0xff] (!%p199_p3)   ;;  %v1261_v9 = vld [vmem:[%s1626_s1 + $0x4c] ss:$16 sps:$4 sm:$0xff] (!%p199_p3)   ;;  %v1263_v10 = vld [vmem:[%s1626_s1 + $0x40] ss:$16 sps:$4 sm:$0xff] (!%p199_p3)  }
   0xa   : > { %v1264_v11 = vld [vmem:[%s1626_s1 + $0x48] ss:$16 sps:$4 sm:$0xff] (!%p199_p3)   ;;  %v1265_v12 = vld [vmem:[%s1626_s1 + $0x64] ss:$16 sps:$4 sm:$0xff] (!%p199_p3)   ;;  %v1267_v13 = vld [vmem:[%s1626_s1 + $0x6c] ss:$16 sps:$4 sm:$0xff] (!%p199_p3)  }
   0xb   : > { %v1269_v14 = vld [vmem:[%s1626_s1 + $0x60] ss:$16 sps:$4 sm:$0xff] (!%p199_p3)   ;;  %v1270_v15 = vld [vmem:[%s1626_s1 + $0x68] ss:$16 sps:$4 sm:$0xff] (!%p199_p3)   ;;  %v1271_v16 = vld [vmem:[%s1626_s1 + $0x84] ss:$16 sps:$4 sm:$0xff] (!%p199_p3)  }
   0xc   : > { %627 = vmatpush1.bf16.msra.mxu0 (!%p199_p3), %v1257_v6  ;;  %700 = vmatpush1.bf16.msra.mxu1 (!%p199_p3), %v1258_v7  ;;  %v1273_v17 = vld [vmem:[%s1626_s1 + $0x8c] ss:$16 sps:$4 sm:$0xff] (!%p199_p3)   ;;  %v1275_v18 = vld [vmem:[%s1626_s1 + $0x80] ss:$16 sps:$4 sm:$0xff] (!%p199_p3)   ;;  %v1276_v19 = vld [vmem:[%s1626_s1 + $0x88] ss:$16 sps:$4 sm:$0xff] (!%p199_p3)  }
   0xd   : > { %628 = vmatprep.subr.bf16.mxu0 (!%p199_p3), %v1259_v8  ;;  %701 = vmatprep.subr.bf16.mxu1 (!%p199_p3), %v1261_v9  ;;  %v1277_v20 = vld [vmem:[%s1626_s1 + $0xa4] ss:$16 sps:$4 sm:$0xff] (!%p199_p3)   ;;  %v1279_v21 = vld [vmem:[%s1626_s1 + $0xac] ss:$16 sps:$4 sm:$0xff] (!%p199_p3)   ;;  %p254_p4 = scmp.lt.s32.totalorder (!%p199_p3), %s1151_s11, 15  ;;  %vm611_vm0 = vcmask (!%p199_p3), 523264  }
   0xe   : > { %v1281_v22 = vld [vmem:[%s1626_s1 + $0xa0] ss:$16 sps:$4 sm:$0xff]   ;;  %v1282_v23 = vld [vmem:[%s1626_s1 + $0xa8] ss:$16 sps:$4 sm:$0xff]   ;;  %v1283_v24 = vld [vmem:[%s1626_s1 + $0xc4] ss:$16 sps:$4 sm:$0xff]  }
   0xf   : > { %v1285_v25 = vld [vmem:[%s1626_s1 + $0xcc] ss:$16 sps:$4 sm:$0xff]   ;;  %s1635_s11 = smov (!%p254_p4, %s1151_s11), 15  ;;  %v1287_v26 = vld [vmem:[%s1626_s1 + $0xc0] ss:$16 sps:$4 sm:$0xff]   ;;  %p279_p5 = scmp.lt.s32.totalorder %s1333_s15, 1 }
  0x10   : > { %629 = vmatpush1.bf16.msra.mxu0 %v1263_v10  ;;  %702 = vmatpush1.bf16.msra.mxu1 %v1264_v11  ;;  %v1288_v27 = vld [vmem:[%s1626_s1 + $0xc8] ss:$16 sps:$4 sm:$0xff]   ;;  %v1289_v28 = vld [vmem:[%s1626_s1 + $0xe4] ss:$16 sps:$4 sm:$0xff]   ;;  %v1291_v29 = vld [vmem:[%s1626_s1 + $0xec] ss:$16 sps:$4 sm:$0xff]  }
  0x11   : > { %630 = vmatprep.subr.bf16.mxu0 %v1265_v12  ;;  %703 = vmatprep.subr.bf16.mxu1 %v1267_v13  ;;  %s1219_s10 = sshll.u32 %s1635_s11, 4  ;;  %v1293_v30 = vld [vmem:[%s1626_s1 + $0xe0] ss:$16 sps:$4 sm:$0xff]   ;;  %v1294_v31 = vld [vmem:[%s1626_s1 + $0xe8] ss:$16 sps:$4 sm:$0xff]   ;;  %s1220_s9 = sshll.u32 %s1635_s11, 5 }
  0x12   : > { %v1295_v32 = vld [vmem:[%s1626_s1 + $0x104] ss:$16 sps:$4 sm:$0xff]   ;;  %v1297_v33 = vld [vmem:[%s1626_s1 + $0x10c] ss:$16 sps:$4 sm:$0xff]   ;;  %s1497_s26 = scalar_lea.vmem %s1625_s0, %s1219_s10  ;;  %v1299_v34 = vld [vmem:[%s1626_s1 + $0x100] ss:$16 sps:$4 sm:$0xff]   ;;  %s1569_s13 = scalar_lea.vmem %s1627_s2, %s1220_s9 }
  0x13   : > { %v1300_v35 = vld [vmem:[%s1626_s1 + $0x108] ss:$16 sps:$4 sm:$0xff]   ;;  %v1301_v38 = vld [vmem:[%s1626_s1 + $0x124] ss:$16 sps:$4 sm:$0xff]   ;;  %v1303_v39 = vld [vmem:[%s1626_s1 + $0x12c] ss:$16 sps:$4 sm:$0xff]  }
  0x14   : > { %631 = vmatpush1.bf16.msra.mxu0 %v1269_v14  ;;  %704 = vmatpush1.bf16.msra.mxu1 %v1270_v15  ;;  %v300_v36 = vld [vmem:[%s1497_s26 + $0x8] sm:$0xff]  ;;  %v302_v37 = vld [vmem:[%s1497_s26 + $0x18] sm:$0xff]  ;;  %v1305_v41 = vld [vmem:[%s1626_s1 + $0x120] ss:$16 sps:$4 sm:$0xff]   ;;  %s1637_s15 = smov (!%p279_p5, %s1333_s15), 1 }
  0x15   : > { %632 = vmatprep.subr.bf16.mxu0 %v1271_v16  ;;  %705 = vmatprep.subr.bf16.mxu1 %v1273_v17  ;;  %v316_v40 = vpack.c.bf16 %v302_v37, %v300_v36  ;;  %v1306_v42 = vld [vmem:[%s1626_s1 + $0x128] ss:$16 sps:$4 sm:$0xff]   ;;  %v1307_v43 = vld [vmem:[%s1626_s1 + $0x144] ss:$16 sps:$4 sm:$0xff]   ;;  %v1309_v44 = vld [vmem:[%s1626_s1 + $0x14c] ss:$16 sps:$4 sm:$0xff]  }
  0x16   : > { %v1311_v45 = vld [vmem:[%s1626_s1 + $0x140] ss:$16 sps:$4 sm:$0xff]   ;;  %v1312_v46 = vld [vmem:[%s1626_s1 + $0x148] ss:$16 sps:$4 sm:$0xff]   ;;  %v1313_v47 = vld [vmem:[%s1626_s1 + $0x164] ss:$16 sps:$4 sm:$0xff]  }
  0x17   : > { %1209 = vmatprep.mubr.msk.bf16.mxu0 %vm611_vm0, %v316_v40  ;;  %1213 = vmatprep.mubr.msk.bf16.mxu1 %vm611_vm0, %v316_v40  ;;  %v1315_v48 = vld [vmem:[%s1626_s1 + $0x16c] ss:$16 sps:$4 sm:$0xff]   ;;  %v1317_v49 = vld [vmem:[%s1626_s1 + $0x160] ss:$16 sps:$4 sm:$0xff]   ;;  %v1318_v50 = vld [vmem:[%s1626_s1 + $0x168] ss:$16 sps:$4 sm:$0xff]  }
  0x18   : > { %633 = vmatpush1.bf16.msra.mxu0 %v1275_v18  ;;  %706 = vmatpush1.bf16.msra.mxu1 %v1276_v19  ;;  %v299_v51 = vld [vmem:[%s1497_s26] sm:$0xff]  ;;  %v301_v52 = vld [vmem:[%s1497_s26 + $0x10] sm:$0xff]  ;;  %v304_v53 = vld [vmem:[%s1497_s26 + $0x28] sm:$0xff]  ;;  %s1221_s11 = sshll.u32 %s1637_s15, 5 }
  0x19   : > { %634 = vmatprep.subr.bf16.mxu0 %v1277_v20  ;;  %707 = vmatprep.subr.bf16.mxu1 %v1279_v21  ;;  %v306_v54 = vld [vmem:[%s1497_s26 + $0x38] sm:$0xff]  ;;  %v315_v55 = vpack.c.bf16 %v301_v52, %v299_v51  ;;  %v303_v57 = vld [vmem:[%s1497_s26 + $0x20] sm:$0xff]  ;;  %v305_v58 = vld [vmem:[%s1497_s26 + $0x30] sm:$0xff]  ;;  %s286_s19 = scalar_lea.vmem %s1628_s3, %s1221_s11  ;;  %s296_s21 = scalar_lea.vmem %s1629_s4, %s1221_s11 }
  0x1a   : > { %v318_v56 = vpack.c.bf16 %v306_v54, %v304_v53  ;;  %v308_v59 = vld [vmem:[%s1497_s26 + $0x48] sm:$0xff]  ;;  %v310_v60 = vld [vmem:[%s1497_s26 + $0x58] sm:$0xff]  ;;  %v317_v61 = vpack.c.bf16 %v305_v58, %v303_v57  ;;  %v307_v63 = vld [vmem:[%s1497_s26 + $0x40] sm:$0xff] }
  0x1b   : > { %v320_v62 = vpack.c.bf16 %v310_v60, %v308_v59  ;;  %v309_v0 = vld [vmem:[%s1497_s26 + $0x50] sm:$0xff]  ;;  %v312_v1 = vld [vmem:[%s1497_s26 + $0x68] sm:$0xff]  ;;  %v314_v2 = vld [vmem:[%s1497_s26 + $0x78] sm:$0xff] }
  0x1c   : > { %635 = vmatpush1.bf16.msra.mxu0 %v1281_v22  ;;  %708 = vmatpush1.bf16.msra.mxu1 %v1282_v23  ;;  %v319_v3 = vpack.c.bf16 %v309_v0, %v307_v63  ;;  %v322_v4 = vpack.c.bf16 %v314_v2, %v312_v1  ;;  %v311_v5 = vld [vmem:[%s1497_s26 + $0x60] sm:$0xff]  ;;  %v313_v6 = vld [vmem:[%s1497_s26 + $0x70] sm:$0xff] }
  0x1d   : > { %636 = vmatprep.subr.bf16.mxu0 %v1283_v24  ;;  %709 = vmatprep.subr.bf16.mxu1 %v1285_v25  ;;  %v321_v7 = vpack.c.bf16 %v313_v6, %v311_v5 }
  0x20   : > { %637 = vmatpush1.bf16.msra.mxu0 %v1287_v26  ;;  %710 = vmatpush1.bf16.msra.mxu1 %v1288_v27 }
  0x21   : > { %638 = vmatprep.subr.bf16.mxu0 %v1289_v28  ;;  %711 = vmatprep.subr.bf16.mxu1 %v1291_v29 }
  0x24   : > { %639 = vmatpush1.bf16.msra.mxu0 %v1293_v30  ;;  %712 = vmatpush1.bf16.msra.mxu1 %v1294_v31 }
  0x25   : > { %640 = vmatprep.subr.bf16.mxu0 %v1295_v32  ;;  %713 = vmatprep.subr.bf16.mxu1 %v1297_v33 }
  0x28   : > { %641 = vmatpush1.bf16.msra.mxu0 %v1299_v34  ;;  %714 = vmatpush1.bf16.msra.mxu1 %v1300_v35 }
  0x29   : > { %642 = vmatprep.subr.bf16.mxu0 %v1301_v38  ;;  %715 = vmatprep.subr.bf16.mxu1 %v1303_v39 }
  0x2c   : > { %643 = vmatpush1.bf16.msra.mxu0 %v1305_v41  ;;  %716 = vmatpush1.bf16.msra.mxu1 %v1306_v42 }
  0x2d   : > { %644 = vmatprep.subr.bf16.mxu0 %v1307_v43  ;;  %717 = vmatprep.subr.bf16.mxu1 %v1309_v44 }
  0x30   : > { %645 = vmatpush1.bf16.msra.mxu0 %v1311_v45  ;;  %718 = vmatpush1.bf16.msra.mxu1 %v1312_v46 }
  0x31   : > { %646 = vmatprep.subr.bf16.mxu0 %v1313_v47  ;;  %719 = vmatprep.subr.bf16.mxu1 %v1315_v48 }
  0x34   : > { %647 = vmatpush1.bf16.msra.mxu0 %v1317_v49  ;;  %720 = vmatpush1.bf16.msra.mxu1 %v1318_v50 }
  0x37   : > { %657 = vmatmul.mubr.bf16.vlgmr.msra.gmra.mrb[0].mxu0 %v315_v55  ;;  %730 = vmatmul.mubr.bf16.vlgmr.msra.gmra.mrb[0].mxu1 %v315_v55 }
  0x38   : > { %1210 = vmatprep.mubr.msk.bf16.mxu0 %vm611_vm0, %v318_v56  ;;  %1214 = vmatprep.mubr.msk.bf16.mxu1 %vm611_vm0, %v318_v56 }
  0x3f   : > { %667 = vmatmul.mubr.bf16.gmra.mrb[4].mxu0 %v317_v61  ;;  %740 = vmatmul.mubr.bf16.gmra.mrb[4].mxu1 %v317_v61 }
  0x40   : > { %1211 = vmatprep.mubr.msk.bf16.mxu0 %vm611_vm0, %v320_v62  ;;  %1215 = vmatprep.mubr.msk.bf16.mxu1 %vm611_vm0, %v320_v62 }
  0x47   : > { %677 = vmatmul.mubr.bf16.gmra.mrb[8].mxu0 %v319_v3  ;;  %750 = vmatmul.mubr.bf16.gmra.mrb[8].mxu1 %v319_v3 }
  0x48   : > { %1212 = vmatprep.mubr.msk.bf16.mxu0 %vm611_vm0, %v322_v4  ;;  %1216 = vmatprep.mubr.msk.bf16.mxu1 %vm611_vm0, %v322_v4 }
  0x4f   : > { %687 = vmatmul.mubr.bf16.gmra.mrb[12].mxu0 %v321_v7  ;;  %760 = vmatmul.mubr.bf16.gmra.mrb[12].mxu1 %v321_v7 }
 0x10a   : > { %v658_v8 = vpop.f32.mrb[0].mxu0  ;;  %v731_v9 = vpop.f32.mrb[0].mxu1 }
 0x10b   : > { %770 = vst [vmem:[%s1569_s13] sm:$0xff] %v658_v8  ;;  %772 = vst [vmem:[%s1569_s13 + $0x10] sm:$0xff] %v731_v9  ;;  %v660_v10 = vpop.f32.mrb[1].mxu0  ;;  %v733_v11 = vpop.f32.mrb[1].mxu1  ;;  %v858_v12 = vmul.f32 %v658_v8, %v658_v8  ;;  %v860_v13 = vmul.f32 %v731_v9, %v731_v9 }
 0x10c   : > { %771 = vst [vmem:[%s1569_s13 + $0x8] sm:$0xff] %v660_v10  ;;  %v859_v14 = vmul.f32 %v660_v10, %v660_v10  ;;  %773 = vst [vmem:[%s1569_s13 + $0x18] sm:$0xff] %v733_v11  ;;  %v861_v15 = vmul.f32 %v733_v11, %v733_v11  ;;  %v662_v16 = vpop.f32.mrb[2].mxu0  ;;  %v735_v17 = vpop.f32.mrb[2].mxu1 }
 0x10d   : > { %774 = vst [vmem:[%s1569_s13 + $0x20] sm:$0xff] %v662_v16  ;;  %v802_v18 = vadd.f32 %v662_v16, %v658_v8  ;;  %v862_v19 = vmul.f32 %v662_v16, %v662_v16  ;;  %776 = vst [vmem:[%s1569_s13 + $0x30] sm:$0xff] %v735_v17  ;;  %v828_v20 = vadd.f32 %v735_v17, %v731_v9  ;;  %v664_v22 = vpop.f32.mrb[3].mxu0  ;;  %v737_v23 = vpop.f32.mrb[3].mxu1 }
 0x10e   : > { %v864_v21 = vmul.f32 %v735_v17, %v735_v17  ;;  %775 = vst [vmem:[%s1569_s13 + $0x28] sm:$0xff] %v664_v22  ;;  %v815_v24 = vadd.f32 %v664_v22, %v660_v10  ;;  %v863_v25 = vmul.f32 %v664_v22, %v664_v22  ;;  %777 = vst [vmem:[%s1569_s13 + $0x38] sm:$0xff] %v737_v23 }
 0x10f   : > { %v841_v26 = vadd.f32 %v737_v23, %v733_v11  ;;  %v865_v27 = vmul.f32 %v737_v23, %v737_v23  ;;  %v890_v28 = vadd.f32 %v862_v19, %v858_v12 }
 0x110   : > { %v916_v29 = vadd.f32 %v864_v21, %v860_v13  ;;  %v903_v30 = vadd.f32 %v863_v25, %v859_v14 }
 0x111   : > { %v929_v31 = vadd.f32 %v865_v27, %v861_v15 }
 0x112   : > { %v668_v32 = vpop.f32.mrb[4].mxu0  ;;  %v741_v33 = vpop.f32.mrb[4].mxu1 }
 0x113   : > { %778 = vst [vmem:[%s1569_s13 + $0x40] sm:$0xff] %v668_v32  ;;  %v803_v34 = vadd.f32 %v802_v18, %v668_v32  ;;  %v866_v35 = vmul.f32 %v668_v32, %v668_v32  ;;  %780 = vst [vmem:[%s1569_s13 + $0x50] sm:$0xff] %v741_v33  ;;  %v829_v36 = vadd.f32 %v828_v20, %v741_v33  ;;  %v670_v38 = vpop.f32.mrb[5].mxu0  ;;  %v743_v39 = vpop.f32.mrb[5].mxu1 }
 0x114   : > { %v868_v37 = vmul.f32 %v741_v33, %v741_v33  ;;  %779 = vst [vmem:[%s1569_s13 + $0x48] sm:$0xff] %v670_v38  ;;  %v816_v40 = vadd.f32 %v815_v24, %v670_v38  ;;  %v867_v41 = vmul.f32 %v670_v38, %v670_v38  ;;  %781 = vst [vmem:[%s1569_s13 + $0x58] sm:$0xff] %v743_v39  ;;  %v672_v44 = vpop.f32.mrb[6].mxu0  ;;  %v745_v45 = vpop.f32.mrb[6].mxu1 }
 0x115   : > { %v842_v42 = vadd.f32 %v841_v26, %v743_v39  ;;  %v869_v43 = vmul.f32 %v743_v39, %v743_v39  ;;  %v891_v46 = vadd.f32 %v890_v28, %v866_v35  ;;  %782 = vst [vmem:[%s1569_s13 + $0x60] sm:$0xff] %v672_v44  ;;  %v804_v48 = vadd.f32 %v803_v34, %v672_v44  ;;  %v674_v50 = vpop.f32.mrb[7].mxu0  ;;  %v747_v51 = vpop.f32.mrb[7].mxu1 }
 0x116   : > { %v917_v47 = vadd.f32 %v916_v29, %v868_v37  ;;  %v870_v49 = vmul.f32 %v672_v44, %v672_v44  ;;  %784 = vst [vmem:[%s1569_s13 + $0x70] sm:$0xff] %v745_v45  ;;  %v904_v52 = vadd.f32 %v903_v30, %v867_v41  ;;  %v830_v54 = vadd.f32 %v829_v36, %v745_v45 }
 0x117   : > { %v930_v53 = vadd.f32 %v929_v31, %v869_v43  ;;  %v872_v55 = vmul.f32 %v745_v45, %v745_v45  ;;  %783 = vst [vmem:[%s1569_s13 + $0x68] sm:$0xff] %v674_v50  ;;  %785 = vst [vmem:[%s1569_s13 + $0x78] sm:$0xff] %v747_v51  ;;  %v817_v57 = vadd.f32 %v816_v40, %v674_v50 }
 0x118   : > { %v892_v56 = vadd.f32 %v891_v46, %v870_v49  ;;  %v871_v58 = vmul.f32 %v674_v50, %v674_v50  ;;  %v843_v59 = vadd.f32 %v842_v42, %v747_v51  ;;  %v873_v61 = vmul.f32 %v747_v51, %v747_v51 }
 0x119   : > { %v918_v60 = vadd.f32 %v917_v47, %v872_v55 }
 0x11a   : > { %v905_v62 = vadd.f32 %v904_v52, %v871_v58  ;;  %v931_v63 = vadd.f32 %v930_v53, %v873_v61  ;;  %v678_v0 = vpop.f32.mrb[8].mxu0  ;;  %v751_v1 = vpop.f32.mrb[8].mxu1 }
 0x11b   : > { %786 = vst [vmem:[%s1569_s13 + $0x80] sm:$0xff] %v678_v0  ;;  %v805_v2 = vadd.f32 %v804_v48, %v678_v0  ;;  %v874_v3 = vmul.f32 %v678_v0, %v678_v0  ;;  %788 = vst [vmem:[%s1569_s13 + $0x90] sm:$0xff] %v751_v1  ;;  %v831_v4 = vadd.f32 %v830_v54, %v751_v1  ;;  %v680_v6 = vpop.f32.mrb[9].mxu0  ;;  %v753_v7 = vpop.f32.mrb[9].mxu1 }
 0x11c   : > { %v876_v5 = vmul.f32 %v751_v1, %v751_v1  ;;  %787 = vst [vmem:[%s1569_s13 + $0x88] sm:$0xff] %v680_v6  ;;  %v818_v8 = vadd.f32 %v817_v57, %v680_v6  ;;  %v875_v9 = vmul.f32 %v680_v6, %v680_v6  ;;  %789 = vst [vmem:[%s1569_s13 + $0x98] sm:$0xff] %v753_v7  ;;  %v682_v12 = vpop.f32.mrb[10].mxu0  ;;  %v755_v13 = vpop.f32.mrb[10].mxu1 }
 0x11d   : > { %v844_v10 = vadd.f32 %v843_v59, %v753_v7  ;;  %v877_v11 = vmul.f32 %v753_v7, %v753_v7  ;;  %v893_v14 = vadd.f32 %v892_v56, %v874_v3  ;;  %790 = vst [vmem:[%s1569_s13 + $0xa0] sm:$0xff] %v682_v12  ;;  %v806_v16 = vadd.f32 %v805_v2, %v682_v12  ;;  %v684_v18 = vpop.f32.mrb[11].mxu0  ;;  %v757_v19 = vpop.f32.mrb[11].mxu1 }
 0x11e   : > { %v919_v15 = vadd.f32 %v918_v60, %v876_v5  ;;  %v878_v17 = vmul.f32 %v682_v12, %v682_v12  ;;  %792 = vst [vmem:[%s1569_s13 + $0xb0] sm:$0xff] %v755_v13  ;;  %v906_v20 = vadd.f32 %v905_v62, %v875_v9  ;;  %v832_v22 = vadd.f32 %v831_v4, %v755_v13 }
 0x11f   : > { %v932_v21 = vadd.f32 %v931_v63, %v877_v11  ;;  %v880_v23 = vmul.f32 %v755_v13, %v755_v13  ;;  %791 = vst [vmem:[%s1569_s13 + $0xa8] sm:$0xff] %v684_v18  ;;  %793 = vst [vmem:[%s1569_s13 + $0xb8] sm:$0xff] %v757_v19  ;;  %v819_v25 = vadd.f32 %v818_v8, %v684_v18 }
 0x120   : > { %v894_v24 = vadd.f32 %v893_v14, %v878_v17  ;;  %v879_v26 = vmul.f32 %v684_v18, %v684_v18  ;;  %v845_v27 = vadd.f32 %v844_v10, %v757_v19  ;;  %v881_v29 = vmul.f32 %v757_v19, %v757_v19 }
 0x121   : > { %v920_v28 = vadd.f32 %v919_v15, %v880_v23 }
 0x122   : > { %v907_v30 = vadd.f32 %v906_v20, %v879_v26  ;;  %v933_v31 = vadd.f32 %v932_v21, %v881_v29  ;;  %v688_v32 = vpop.f32.mrb[12].mxu0  ;;  %v761_v33 = vpop.f32.mrb[12].mxu1 }
 0x123   : > { %794 = vst [vmem:[%s1569_s13 + $0xc0] sm:$0xff] %v688_v32  ;;  %v807_v34 = vadd.f32 %v806_v16, %v688_v32  ;;  %v882_v35 = vmul.f32 %v688_v32, %v688_v32  ;;  %796 = vst [vmem:[%s1569_s13 + $0xd0] sm:$0xff] %v761_v33  ;;  %v833_v36 = vadd.f32 %v832_v22, %v761_v33  ;;  %v690_v38 = vpop.f32.mrb[13].mxu0  ;;  %v763_v39 = vpop.f32.mrb[13].mxu1 }
 0x124   : > { %v884_v37 = vmul.f32 %v761_v33, %v761_v33  ;;  %795 = vst [vmem:[%s1569_s13 + $0xc8] sm:$0xff] %v690_v38  ;;  %v820_v40 = vadd.f32 %v819_v25, %v690_v38  ;;  %v883_v41 = vmul.f32 %v690_v38, %v690_v38  ;;  %797 = vst [vmem:[%s1569_s13 + $0xd8] sm:$0xff] %v763_v39  ;;  %v692_v44 = vpop.f32.mrb[14].mxu0  ;;  %v765_v45 = vpop.f32.mrb[14].mxu1 }
 0x125   : > { %v846_v42 = vadd.f32 %v845_v27, %v763_v39  ;;  %v885_v43 = vmul.f32 %v763_v39, %v763_v39  ;;  %v895_v46 = vadd.f32 %v894_v24, %v882_v35  ;;  %798 = vst [vmem:[%s1569_s13 + $0xe0] sm:$0xff] %v692_v44  ;;  %v808_v48 = vadd.f32 %v807_v34, %v692_v44  ;;  %v694_v50 = vpop.f32.mrb[15].mxu0  ;;  %v767_v51 = vpop.f32.mrb[15].mxu1 }
 0x126   : > { %v921_v47 = vadd.f32 %v920_v28, %v884_v37  ;;  %v886_v49 = vmul.f32 %v692_v44, %v692_v44  ;;  %800 = vst [vmem:[%s1569_s13 + $0xf0] sm:$0xff] %v765_v45  ;;  %v908_v52 = vadd.f32 %v907_v30, %v883_v41  ;;  %v834_v54 = vadd.f32 %v833_v36, %v765_v45 }
 0x127   : > { %v934_v53 = vadd.f32 %v933_v31, %v885_v43  ;;  %v888_v55 = vmul.f32 %v765_v45, %v765_v45  ;;  %799 = vst [vmem:[%s1569_s13 + $0xe8] sm:$0xff] %v694_v50  ;;  %801 = vst [vmem:[%s1569_s13 + $0xf8] sm:$0xff] %v767_v51  ;;  %v809_v56 = vrot.slane %v808_v48, 4  ;;  %v821_v58 = vadd.f32 %v820_v40, %v694_v50 }
 0x128   : > { %v896_v57 = vadd.f32 %v895_v46, %v886_v49  ;;  %v887_v59 = vmul.f32 %v694_v50, %v694_v50  ;;  %v835_v60 = vrot.slane %v834_v54, 4  ;;  %v847_v62 = vadd.f32 %v846_v42, %v767_v51 }
 0x129   : > { %v922_v61 = vadd.f32 %v921_v47, %v888_v55  ;;  %v889_v63 = vmul.f32 %v767_v51, %v767_v51  ;;  %v810_v0 = vadd.f32 %v809_v56, %v808_v48  ;;  %v822_v2 = vrot.slane %v821_v58, 4 }
 0x12a   : > { %v897_v1 = vrot.slane %v896_v57, 4  ;;  %v909_v3 = vadd.f32 %v908_v52, %v887_v59  ;;  %v836_v4 = vadd.f32 %v835_v60, %v834_v54  ;;  %v848_v6 = vrot.slane %v847_v62, 4 }
 0x12b   : > { %v923_v5 = vrot.slane %v922_v61, 4  ;;  %v935_v7 = vadd.f32 %v934_v53, %v889_v63  ;;  %v811_v8 = vrot.slane %v810_v0, 2  ;;  %v823_v10 = vadd.f32 %v822_v2, %v821_v58 }
 0x12c   : > { %v898_v9 = vadd.f32 %v897_v1, %v896_v57  ;;  %v910_v11 = vrot.slane %v909_v3, 4  ;;  %v837_v12 = vrot.slane %v836_v4, 2  ;;  %v849_v14 = vadd.f32 %v848_v6, %v847_v62 }
 0x12d   : > { %v924_v13 = vadd.f32 %v923_v5, %v922_v61  ;;  %v936_v15 = vrot.slane %v935_v7, 4  ;;  %v812_v16 = vadd.f32 %v811_v8, %v810_v0  ;;  %v824_v18 = vrot.slane %v823_v10, 2 }
 0x12e   : > { %v899_v17 = vrot.slane %v898_v9, 2  ;;  %v911_v19 = vadd.f32 %v910_v11, %v909_v3  ;;  %v838_v20 = vadd.f32 %v837_v12, %v836_v4  ;;  %v850_v22 = vrot.slane %v849_v14, 2 }
 0x12f   : > { %v925_v21 = vrot.slane %v924_v13, 2  ;;  %v937_v23 = vadd.f32 %v936_v15, %v935_v7  ;;  %v813_v24 = vrot.slane %v812_v16, 1  ;;  %v825_v26 = vadd.f32 %v824_v18, %v823_v10 }
 0x130   : > { %v900_v25 = vadd.f32 %v899_v17, %v898_v9  ;;  %v912_v27 = vrot.slane %v911_v19, 2  ;;  %v839_v28 = vrot.slane %v838_v20, 1  ;;  %v851_v30 = vadd.f32 %v850_v22, %v849_v14 }
 0x131   : > { %v926_v29 = vadd.f32 %v925_v21, %v924_v13  ;;  %v938_v31 = vrot.slane %v937_v23, 2  ;;  %v814_v32 = vadd.f32 %v813_v24, %v812_v16  ;;  %v826_v34 = vrot.slane %v825_v26, 1 }
 0x132   : > { %v901_v33 = vrot.slane %v900_v25, 1  ;;  %v913_v35 = vadd.f32 %v912_v27, %v911_v19  ;;  %v840_v36 = vadd.f32 %v839_v28, %v838_v20  ;;  %v852_v38 = vrot.slane %v851_v30, 1 }
 0x133   : > { %v927_v37 = vrot.slane %v926_v29, 1  ;;  %v939_v39 = vadd.f32 %v938_v31, %v937_v23  ;;  %854 = vst [vmem:[%s286_s19] sm:$0xff] %v814_v32  ;;  %v827_v41 = vadd.f32 %v826_v34, %v825_v26 }
 0x134   : > { %v902_v40 = vadd.f32 %v901_v33, %v900_v25  ;;  %v914_v42 = vrot.slane %v913_v35, 1  ;;  %856 = vst [vmem:[%s286_s19 + $0x10] sm:$0xff] %v840_v36  ;;  %v853_v44 = vadd.f32 %v852_v38, %v851_v30 }
 0x135   : > { %v928_v43 = vadd.f32 %v927_v37, %v926_v29  ;;  %v940_v45 = vrot.slane %v939_v39, 1  ;;  %855 = vst [vmem:[%s286_s19 + $0x8] sm:$0xff] %v827_v41 }
 0x136   : > { %942 = vst [vmem:[%s296_s21] sm:$0xff] %v902_v40  ;;  %v915_v46 = vadd.f32 %v914_v42, %v913_v35  ;;  %857 = vst [vmem:[%s286_s19 + $0x18] sm:$0xff] %v853_v44 }
 0x137   : > { %944 = vst [vmem:[%s296_s21 + $0x10] sm:$0xff] %v928_v43  ;;  %v941_v47 = vadd.f32 %v940_v45, %v939_v39 }
 0x138   : > { %943 = vst [vmem:[%s296_s21 + $0x8] sm:$0xff] %v915_v46 }
 0x139   : > { %945 = vst [vmem:[%s296_s21 + $0x18] sm:$0xff] %v941_v47 }
 0x13a PF: > { %s15_s17 = sadd.s32 1, %s1341_s17   ;;  %s1630_s15 = smov %s1337_s16 }
 0x13b   : > { %p12_p6 = scmp.ge.s32.totalorder %s15_s17, 4   ;;  %s1631_s16 = smov %s1633_s18 }
 0x13d   :  { %14 = sbr.rel (!%p12_p6) target bundleno = 2 (0x2), region = 85 }

// kernel: advection_core.60
= control target key start
LH: loop header
LB: loop body
LE: loop exit
PB: predicated region body
PF: predicated region fallthrough
CT: control target
= control target key end

     0   :  { %v80_v0 = vlaneseq  ;;  %s936_s1 = inlined_call_operand.vmem [shape: f32[1,512], index: 1, kind: input, shape index: {}]   ;;  %s937_s2 = inlined_call_operand.vmem [shape: f32[1,512], index: 2, kind: input, shape index: {}]   ;;  %s938_s0 = inlined_call_operand.vmem [shape: f32[128,512], index: 0, kind: input, shape index: {}]   ;;  %s939_s3 = inlined_call_operand.vmem [shape: f32[128,512], index: 3, kind: output, shape index: {}]  }
   0x1   :  { %v78_v2 = vld [vmem:[%s936_s1] sm:$0xf]  ;;  %v15_v6 = vld [vmem:[%s938_s0 + $0x8] sm:$0xff]  ;;  %v16_v10 = vld [vmem:[%s938_s0 + $0x10] sm:$0xff] }
   0x2   :  { %v81_v1 = vshrl.u32 %v80_v0, 7  ;;  %v164_v3 = vld [vmem:[%s937_s2] sm:$0xf]  ;;  %v19_v12 = vld [vmem:[%s938_s0 + $0x28] sm:$0xff]  ;;  %v17_v17 = vld [vmem:[%s938_s0 + $0x18] sm:$0xff] }
   0x3   :  { %v14_v4 = vld [vmem:[%s938_s0] sm:$0xff]  ;;  %v20_v18 = vld [vmem:[%s938_s0 + $0x30] sm:$0xff]  ;;  %v21_v19 = vld [vmem:[%s938_s0 + $0x38] sm:$0xff] }
   0x4   :  { %v82_v5 = vsub.s32 0, %v81_v1  ;;  %v86_v7 = vsub.s32 1, %v81_v1  ;;  %v90_v8 = vsub.s32 2, %v81_v1  ;;  %v94_v9 = vsub.s32 3, %v81_v1  ;;  %v18_v11 = vld [vmem:[%s938_s0 + $0x20] sm:$0xff]  ;;  %v23_v37 = vld [vmem:[%s938_s0 + $0x48] sm:$0xff] }
   0x5   :  { %v22_v36 = vld [vmem:[%s938_s0 + $0x40] sm:$0xff]  ;;  %v24_v38 = vld [vmem:[%s938_s0 + $0x50] sm:$0xff]  ;;  %v25_v43 = vld [vmem:[%s938_s0 + $0x58] sm:$0xff] }
   0x6   :  { %v423_v13 = vrot.slane %v78_v2, %v82_v5  ;;  %v425_v14 = vrot.slane %v164_v3, %v82_v5  ;;  %v427_v15 = vrot.slane %v78_v2, %v86_v7  ;;  %v429_v16 = vrot.slane %v164_v3, %v86_v7  ;;  %v26_v44 = vld [vmem:[%s938_s0 + $0x60] sm:$0xff]  ;;  %v27_v45 = vld [vmem:[%s938_s0 + $0x68] sm:$0xff]  ;;  %v28_v50 = vld [vmem:[%s938_s0 + $0x70] sm:$0xff] }
   0x7   :  { %v440_v20 = vrot.slane %v78_v2, %v90_v8  ;;  %v442_v21 = vrot.slane %v164_v3, %v90_v8  ;;  %v444_v22 = vrot.slane %v78_v2, %v94_v9  ;;  %v446_v23 = vrot.slane %v164_v3, %v94_v9  ;;  %v29_v51 = vld [vmem:[%s938_s0 + $0x78] sm:$0xff]  ;;  %v31_v5 = vld [vmem:[%s938_s0 + $0x88] sm:$0xff] }
   0x8   :  { %v100_v24 = vmul.f32 %v423_v13, %v14_v4  ;;  %v101_v25 = vmul.f32 %v427_v15, %v15_v6  ;;  %v104_v26 = vmul.f32 %v423_v13, %v18_v11  ;;  %v105_v27 = vmul.f32 %v427_v15, %v19_v12  ;;  %v30_v4 = vld [vmem:[%s938_s0 + $0x80] sm:$0xff]  ;;  %v32_v6 = vld [vmem:[%s938_s0 + $0x90] sm:$0xff]  ;;  %v33_v11 = vld [vmem:[%s938_s0 + $0x98] sm:$0xff] }
   0x9   :  { %v102_v28 = vmul.f32 %v440_v20, %v16_v10  ;;  %v103_v29 = vmul.f32 %v444_v22, %v17_v17  ;;  %v106_v30 = vmul.f32 %v440_v20, %v20_v18  ;;  %v107_v31 = vmul.f32 %v444_v22, %v21_v19  ;;  %v34_v12 = vld [vmem:[%s938_s0 + $0xa0] sm:$0xff]  ;;  %v35_v17 = vld [vmem:[%s938_s0 + $0xa8] sm:$0xff] }
   0xa   :  { %v186_v32 = vadd.f32 %v425_v14, %v100_v24  ;;  %v187_v33 = vadd.f32 %v429_v16, %v101_v25  ;;  %v190_v34 = vadd.f32 %v425_v14, %v104_v26  ;;  %v191_v35 = vadd.f32 %v429_v16, %v105_v27  ;;  %v36_v26 = vld [vmem:[%s938_s0 + $0xb0] sm:$0xff]  ;;  %v37_v27 = vld [vmem:[%s938_s0 + $0xb8] sm:$0xff] }
   0xb   :  { %v188_v39 = vadd.f32 %v442_v21, %v102_v28  ;;  %v189_v40 = vadd.f32 %v446_v23, %v103_v29  ;;  %v192_v41 = vadd.f32 %v442_v21, %v106_v30  ;;  %v193_v42 = vadd.f32 %v446_v23, %v107_v31 }
   0xc   :  { %v250_v46 = vmax.f32 %v186_v32, 0.0  ;;  %v251_v47 = vmax.f32 %v187_v33, 0.0  ;;  %v254_v48 = vmax.f32 %v190_v34, 0.0  ;;  %v255_v49 = vmax.f32 %v191_v35, 0.0 }
   0xd   :  { %v252_v52 = vmax.f32 %v188_v39, 0.0  ;;  %v253_v53 = vmax.f32 %v189_v40, 0.0  ;;  %v256_v54 = vmax.f32 %v192_v41, 0.0  ;;  %v257_v55 = vmax.f32 %v193_v42, 0.0 }
   0xe   :  { %314 = vst [vmem:[%s939_s3] sm:$0xff] %v250_v46  ;;  %315 = vst [vmem:[%s939_s3 + $0x8] sm:$0xff] %v251_v47  ;;  %v108_v56 = vmul.f32 %v423_v13, %v22_v36  ;;  %v109_v57 = vmul.f32 %v427_v15, %v23_v37  ;;  %v110_v58 = vmul.f32 %v440_v20, %v24_v38  ;;  %v40_v46 = vld [vmem:[%s938_s0 + $0xd0] sm:$0xff] }
   0xf   :  { %318 = vst [vmem:[%s939_s3 + $0x20] sm:$0xff] %v254_v48  ;;  %319 = vst [vmem:[%s939_s3 + $0x28] sm:$0xff] %v255_v49  ;;  %v111_v59 = vmul.f32 %v444_v22, %v25_v43  ;;  %v112_v60 = vmul.f32 %v423_v13, %v26_v44  ;;  %v113_v61 = vmul.f32 %v427_v15, %v27_v45  ;;  %v38_v44 = vld [vmem:[%s938_s0 + $0xc0] sm:$0xff]  ;;  %v39_v45 = vld [vmem:[%s938_s0 + $0xc8] sm:$0xff] }
  0x10   :  { %316 = vst [vmem:[%s939_s3 + $0x10] sm:$0xff] %v252_v52  ;;  %317 = vst [vmem:[%s939_s3 + $0x18] sm:$0xff] %v253_v53  ;;  %v114_v62 = vmul.f32 %v440_v20, %v28_v50  ;;  %v115_v63 = vmul.f32 %v444_v22, %v29_v51  ;;  %v194_v0 = vadd.f32 %v425_v14, %v108_v56  ;;  %v41_v51 = vld [vmem:[%s938_s0 + $0xd8] sm:$0xff]  ;;  %v42_v52 = vld [vmem:[%s938_s0 + $0xe0] sm:$0xff] }
  0x11   :  { %320 = vst [vmem:[%s939_s3 + $0x30] sm:$0xff] %v256_v54  ;;  %321 = vst [vmem:[%s939_s3 + $0x38] sm:$0xff] %v257_v55  ;;  %v195_v1 = vadd.f32 %v429_v16, %v109_v57  ;;  %v196_v2 = vadd.f32 %v442_v21, %v110_v58  ;;  %v197_v3 = vadd.f32 %v446_v23, %v111_v59  ;;  %v43_v53 = vld [vmem:[%s938_s0 + $0xe8] sm:$0xff]  ;;  %v44_v58 = vld [vmem:[%s938_s0 + $0xf0] sm:$0xff] }
  0x12   :  { %v198_v7 = vadd.f32 %v425_v14, %v112_v60  ;;  %v199_v8 = vadd.f32 %v429_v16, %v113_v61  ;;  %v200_v9 = vadd.f32 %v442_v21, %v114_v62  ;;  %v201_v10 = vadd.f32 %v446_v23, %v115_v63  ;;  %v45_v59 = vld [vmem:[%s938_s0 + $0xf8] sm:$0xff] }
  0x13   :  { %v258_v18 = vmax.f32 %v194_v0, 0.0  ;;  %v259_v19 = vmax.f32 %v195_v1, 0.0  ;;  %v260_v24 = vmax.f32 %v196_v2, 0.0  ;;  %v261_v25 = vmax.f32 %v197_v3, 0.0 }
  0x14   :  { %v262_v28 = vmax.f32 %v198_v7, 0.0  ;;  %v263_v29 = vmax.f32 %v199_v8, 0.0  ;;  %v264_v30 = vmax.f32 %v200_v9, 0.0  ;;  %v265_v31 = vmax.f32 %v201_v10, 0.0 }
  0x15   :  { %322 = vst [vmem:[%s939_s3 + $0x40] sm:$0xff] %v258_v18  ;;  %323 = vst [vmem:[%s939_s3 + $0x48] sm:$0xff] %v259_v19  ;;  %v116_v32 = vmul.f32 %v423_v13, %v30_v4  ;;  %v117_v33 = vmul.f32 %v427_v15, %v31_v5  ;;  %v118_v34 = vmul.f32 %v440_v20, %v32_v6  ;;  %v48_v18 = vld [vmem:[%s938_s0 + $0x110] sm:$0xff] }
  0x16   :  { %324 = vst [vmem:[%s939_s3 + $0x50] sm:$0xff] %v260_v24  ;;  %325 = vst [vmem:[%s939_s3 + $0x58] sm:$0xff] %v261_v25  ;;  %v119_v35 = vmul.f32 %v444_v22, %v33_v11  ;;  %v120_v36 = vmul.f32 %v423_v13, %v34_v12  ;;  %v121_v37 = vmul.f32 %v427_v15, %v35_v17  ;;  %v46_v12 = vld [vmem:[%s938_s0 + $0x100] sm:$0xff]  ;;  %v47_v17 = vld [vmem:[%s938_s0 + $0x108] sm:$0xff] }
  0x17   :  { %326 = vst [vmem:[%s939_s3 + $0x60] sm:$0xff] %v262_v28  ;;  %327 = vst [vmem:[%s939_s3 + $0x68] sm:$0xff] %v263_v29  ;;  %v122_v38 = vmul.f32 %v440_v20, %v36_v26  ;;  %v123_v39 = vmul.f32 %v444_v22, %v37_v27  ;;  %v202_v40 = vadd.f32 %v425_v14, %v116_v32  ;;  %v49_v27 = vld [vmem:[%s938_s0 + $0x118] sm:$0xff]  ;;  %v50_v28 = vld [vmem:[%s938_s0 + $0x120] sm:$0xff] }
  0x18   :  { %328 = vst [vmem:[%s939_s3 + $0x70] sm:$0xff] %v264_v30  ;;  %329 = vst [vmem:[%s939_s3 + $0x78] sm:$0xff] %v265_v31  ;;  %v203_v41 = vadd.f32 %v429_v16, %v117_v33  ;;  %v204_v42 = vadd.f32 %v442_v21, %v118_v34  ;;  %v205_v43 = vadd.f32 %v446_v23, %v119_v35  ;;  %v51_v29 = vld [vmem:[%s938_s0 + $0x128] sm:$0xff]  ;;  %v52_v34 = vld [vmem:[%s938_s0 + $0x130] sm:$0xff] }
  0x19   :  { %v206_v47 = vadd.f32 %v425_v14, %v120_v36  ;;  %v207_v48 = vadd.f32 %v429_v16, %v121_v37  ;;  %v208_v49 = vadd.f32 %v442_v21, %v122_v38  ;;  %v209_v50 = vadd.f32 %v446_v23, %v123_v39  ;;  %v53_v35 = vld [vmem:[%s938_s0 + $0x138] sm:$0xff] }
  0x1a   :  { %v266_v54 = vmax.f32 %v202_v40, 0.0  ;;  %v267_v55 = vmax.f32 %v203_v41, 0.0  ;;  %v268_v56 = vmax.f32 %v204_v42, 0.0  ;;  %v269_v57 = vmax.f32 %v205_v43, 0.0 }
  0x1b   :  { %v270_v60 = vmax.f32 %v206_v47, 0.0  ;;  %v271_v61 = vmax.f32 %v207_v48, 0.0  ;;  %v272_v62 = vmax.f32 %v208_v49, 0.0  ;;  %v273_v63 = vmax.f32 %v209_v50, 0.0 }
  0x1c   :  { %330 = vst [vmem:[%s939_s3 + $0x80] sm:$0xff] %v266_v54  ;;  %331 = vst [vmem:[%s939_s3 + $0x88] sm:$0xff] %v267_v55  ;;  %v124_v0 = vmul.f32 %v423_v13, %v38_v44  ;;  %v125_v1 = vmul.f32 %v427_v15, %v39_v45  ;;  %v126_v2 = vmul.f32 %v440_v20, %v40_v46  ;;  %v56_v54 = vld [vmem:[%s938_s0 + $0x150] sm:$0xff] }
  0x1d   :  { %332 = vst [vmem:[%s939_s3 + $0x90] sm:$0xff] %v268_v56  ;;  %333 = vst [vmem:[%s939_s3 + $0x98] sm:$0xff] %v269_v57  ;;  %v127_v3 = vmul.f32 %v444_v22, %v41_v51  ;;  %v128_v4 = vmul.f32 %v423_v13, %v42_v52  ;;  %v129_v5 = vmul.f32 %v427_v15, %v43_v53  ;;  %v54_v52 = vld [vmem:[%s938_s0 + $0x140] sm:$0xff]  ;;  %v55_v53 = vld [vmem:[%s938_s0 + $0x148] sm:$0xff] }
  0x1e   :  { %334 = vst [vmem:[%s939_s3 + $0xa0] sm:$0xff] %v270_v60  ;;  %335 = vst [vmem:[%s939_s3 + $0xa8] sm:$0xff] %v271_v61  ;;  %v130_v6 = vmul.f32 %v440_v20, %v44_v58  ;;  %v131_v7 = vmul.f32 %v444_v22, %v45_v59  ;;  %v210_v8 = vadd.f32 %v425_v14, %v124_v0  ;;  %v57_v59 = vld [vmem:[%s938_s0 + $0x158] sm:$0xff]  ;;  %v58_v60 = vld [vmem:[%s938_s0 + $0x160] sm:$0xff] }
  0x1f   :  { %336 = vst [vmem:[%s939_s3 + $0xb0] sm:$0xff] %v272_v62  ;;  %337 = vst [vmem:[%s939_s3 + $0xb8] sm:$0xff] %v273_v63  ;;  %v211_v9 = vadd.f32 %v429_v16, %v125_v1  ;;  %v212_v10 = vadd.f32 %v442_v21, %v126_v2  ;;  %v213_v11 = vadd.f32 %v446_v23, %v127_v3  ;;  %v59_v61 = vld [vmem:[%s938_s0 + $0x168] sm:$0xff]  ;;  %v60_v2 = vld [vmem:[%s938_s0 + $0x170] sm:$0xff] }
  0x20   :  { %v214_v19 = vadd.f32 %v425_v14, %v128_v4  ;;  %v215_v24 = vadd.f32 %v429_v16, %v129_v5  ;;  %v216_v25 = vadd.f32 %v442_v21, %v130_v6  ;;  %v217_v26 = vadd.f32 %v446_v23, %v131_v7  ;;  %v61_v3 = vld [vmem:[%s938_s0 + $0x178] sm:$0xff] }
  0x21   :  { %v274_v30 = vmax.f32 %v210_v8, 0.0  ;;  %v275_v31 = vmax.f32 %v211_v9, 0.0  ;;  %v276_v32 = vmax.f32 %v212_v10, 0.0  ;;  %v277_v33 = vmax.f32 %v213_v11, 0.0 }
  0x22   :  { %v278_v36 = vmax.f32 %v214_v19, 0.0  ;;  %v279_v37 = vmax.f32 %v215_v24, 0.0  ;;  %v280_v38 = vmax.f32 %v216_v25, 0.0  ;;  %v281_v39 = vmax.f32 %v217_v26, 0.0 }
  0x23   :  { %338 = vst [vmem:[%s939_s3 + $0xc0] sm:$0xff] %v274_v30  ;;  %339 = vst [vmem:[%s939_s3 + $0xc8] sm:$0xff] %v275_v31  ;;  %v132_v40 = vmul.f32 %v423_v13, %v46_v12  ;;  %v133_v41 = vmul.f32 %v427_v15, %v47_v17  ;;  %v134_v42 = vmul.f32 %v440_v20, %v48_v18  ;;  %v64_v30 = vld [vmem:[%s938_s0 + $0x190] sm:$0xff] }
  0x24   :  { %340 = vst [vmem:[%s939_s3 + $0xd0] sm:$0xff] %v276_v32  ;;  %341 = vst [vmem:[%s939_s3 + $0xd8] sm:$0xff] %v277_v33  ;;  %v135_v43 = vmul.f32 %v444_v22, %v49_v27  ;;  %v136_v44 = vmul.f32 %v423_v13, %v50_v28  ;;  %v137_v45 = vmul.f32 %v427_v15, %v51_v29  ;;  %v62_v28 = vld [vmem:[%s938_s0 + $0x180] sm:$0xff]  ;;  %v63_v29 = vld [vmem:[%s938_s0 + $0x188] sm:$0xff] }
  0x25   :  { %342 = vst [vmem:[%s939_s3 + $0xe0] sm:$0xff] %v278_v36  ;;  %343 = vst [vmem:[%s939_s3 + $0xe8] sm:$0xff] %v279_v37  ;;  %v138_v46 = vmul.f32 %v440_v20, %v52_v34  ;;  %v139_v47 = vmul.f32 %v444_v22, %v53_v35  ;;  %v218_v48 = vadd.f32 %v425_v14, %v132_v40  ;;  %v65_v35 = vld [vmem:[%s938_s0 + $0x198] sm:$0xff]  ;;  %v66_v36 = vld [vmem:[%s938_s0 + $0x1a0] sm:$0xff] }
  0x26   :  { %344 = vst [vmem:[%s939_s3 + $0xf0] sm:$0xff] %v280_v38  ;;  %345 = vst [vmem:[%s939_s3 + $0xf8] sm:$0xff] %v281_v39  ;;  %v219_v49 = vadd.f32 %v429_v16, %v133_v41  ;;  %v220_v50 = vadd.f32 %v442_v21, %v134_v42  ;;  %v221_v51 = vadd.f32 %v446_v23, %v135_v43  ;;  %v67_v37 = vld [vmem:[%s938_s0 + $0x1a8] sm:$0xff]  ;;  %v68_v42 = vld [vmem:[%s938_s0 + $0x1b0] sm:$0xff] }
  0x27   :  { %v222_v55 = vadd.f32 %v425_v14, %v136_v44  ;;  %v223_v56 = vadd.f32 %v429_v16, %v137_v45  ;;  %v224_v57 = vadd.f32 %v442_v21, %v138_v46  ;;  %v225_v58 = vadd.f32 %v446_v23, %v139_v47  ;;  %v69_v43 = vld [vmem:[%s938_s0 + $0x1b8] sm:$0xff] }
  0x28   :  { %v282_v62 = vmax.f32 %v218_v48, 0.0  ;;  %v283_v63 = vmax.f32 %v219_v49, 0.0  ;;  %v284_v0 = vmax.f32 %v220_v50, 0.0  ;;  %v285_v1 = vmax.f32 %v221_v51, 0.0 }
  0x29   :  { %v286_v4 = vmax.f32 %v222_v55, 0.0  ;;  %v287_v5 = vmax.f32 %v223_v56, 0.0  ;;  %v288_v6 = vmax.f32 %v224_v57, 0.0  ;;  %v289_v7 = vmax.f32 %v225_v58, 0.0 }
  0x2a   :  { %346 = vst [vmem:[%s939_s3 + $0x100] sm:$0xff] %v282_v62  ;;  %347 = vst [vmem:[%s939_s3 + $0x108] sm:$0xff] %v283_v63  ;;  %v140_v8 = vmul.f32 %v423_v13, %v54_v52  ;;  %v141_v9 = vmul.f32 %v427_v15, %v55_v53  ;;  %v142_v10 = vmul.f32 %v440_v20, %v56_v54  ;;  %v72_v62 = vld [vmem:[%s938_s0 + $0x1d0] sm:$0xff] }
  0x2b   :  { %348 = vst [vmem:[%s939_s3 + $0x110] sm:$0xff] %v284_v0  ;;  %349 = vst [vmem:[%s939_s3 + $0x118] sm:$0xff] %v285_v1  ;;  %v143_v11 = vmul.f32 %v444_v22, %v57_v59  ;;  %v144_v12 = vmul.f32 %v423_v13, %v58_v60  ;;  %v145_v17 = vmul.f32 %v427_v15, %v59_v61  ;;  %v70_v60 = vld [vmem:[%s938_s0 + $0x1c0] sm:$0xff]  ;;  %v71_v61 = vld [vmem:[%s938_s0 + $0x1c8] sm:$0xff] }
  0x2c   :  { %350 = vst [vmem:[%s939_s3 + $0x120] sm:$0xff] %v286_v4  ;;  %351 = vst [vmem:[%s939_s3 + $0x128] sm:$0xff] %v287_v5  ;;  %v146_v18 = vmul.f32 %v440_v20, %v60_v2  ;;  %v147_v19 = vmul.f32 %v444_v22, %v61_v3  ;;  %v226_v24 = vadd.f32 %v425_v14, %v140_v8  ;;  %v73_v3 = vld [vmem:[%s938_s0 + $0x1d8] sm:$0xff]  ;;  %v74_v4 = vld [vmem:[%s938_s0 + $0x1e0] sm:$0xff] }
  0x2d   :  { %352 = vst [vmem:[%s939_s3 + $0x130] sm:$0xff] %v288_v6  ;;  %353 = vst [vmem:[%s939_s3 + $0x138] sm:$0xff] %v289_v7  ;;  %v227_v25 = vadd.f32 %v429_v16, %v141_v9  ;;  %v228_v26 = vadd.f32 %v442_v21, %v142_v10  ;;  %v229_v27 = vadd.f32 %v446_v23, %v143_v11  ;;  %v75_v5 = vld [vmem:[%s938_s0 + $0x1e8] sm:$0xff]  ;;  %v76_v10 = vld [vmem:[%s938_s0 + $0x1f0] sm:$0xff] }
  0x2e   :  { %v230_v31 = vadd.f32 %v425_v14, %v144_v12  ;;  %v231_v32 = vadd.f32 %v429_v16, %v145_v17  ;;  %v232_v33 = vadd.f32 %v442_v21, %v146_v18  ;;  %v233_v34 = vadd.f32 %v446_v23, %v147_v19  ;;  %v77_v11 = vld [vmem:[%s938_s0 + $0x1f8] sm:$0xff] }
  0x2f   :  { %v290_v38 = vmax.f32 %v226_v24, 0.0  ;;  %v291_v39 = vmax.f32 %v227_v25, 0.0  ;;  %v292_v40 = vmax.f32 %v228_v26, 0.0  ;;  %v293_v41 = vmax.f32 %v229_v27, 0.0 }
  0x30   :  { %v294_v44 = vmax.f32 %v230_v31, 0.0  ;;  %v295_v45 = vmax.f32 %v231_v32, 0.0  ;;  %v296_v46 = vmax.f32 %v232_v33, 0.0  ;;  %v297_v47 = vmax.f32 %v233_v34, 0.0 }
  0x31   :  { %354 = vst [vmem:[%s939_s3 + $0x140] sm:$0xff] %v290_v38  ;;  %355 = vst [vmem:[%s939_s3 + $0x148] sm:$0xff] %v291_v39  ;;  %v148_v48 = vmul.f32 %v423_v13, %v62_v28  ;;  %v149_v49 = vmul.f32 %v427_v15, %v63_v29  ;;  %v150_v50 = vmul.f32 %v440_v20, %v64_v30 }
  0x32   :  { %356 = vst [vmem:[%s939_s3 + $0x150] sm:$0xff] %v292_v40  ;;  %357 = vst [vmem:[%s939_s3 + $0x158] sm:$0xff] %v293_v41  ;;  %v151_v51 = vmul.f32 %v444_v22, %v65_v35  ;;  %v152_v52 = vmul.f32 %v423_v13, %v66_v36  ;;  %v153_v53 = vmul.f32 %v427_v15, %v67_v37 }
  0x33   :  { %358 = vst [vmem:[%s939_s3 + $0x160] sm:$0xff] %v294_v44  ;;  %359 = vst [vmem:[%s939_s3 + $0x168] sm:$0xff] %v295_v45  ;;  %v154_v54 = vmul.f32 %v440_v20, %v68_v42  ;;  %v155_v55 = vmul.f32 %v444_v22, %v69_v43  ;;  %v234_v56 = vadd.f32 %v425_v14, %v148_v48 }
  0x34   :  { %360 = vst [vmem:[%s939_s3 + $0x170] sm:$0xff] %v296_v46  ;;  %361 = vst [vmem:[%s939_s3 + $0x178] sm:$0xff] %v297_v47  ;;  %v235_v57 = vadd.f32 %v429_v16, %v149_v49  ;;  %v236_v58 = vadd.f32 %v442_v21, %v150_v50  ;;  %v237_v59 = vadd.f32 %v446_v23, %v151_v51 }
  0x35   :  { %v238_v63 = vadd.f32 %v425_v14, %v152_v52  ;;  %v239_v0 = vadd.f32 %v429_v16, %v153_v53  ;;  %v240_v1 = vadd.f32 %v442_v21, %v154_v54  ;;  %v241_v2 = vadd.f32 %v446_v23, %v155_v55 }
  0x36   :  { %v298_v6 = vmax.f32 %v234_v56, 0.0  ;;  %v299_v7 = vmax.f32 %v235_v57, 0.0  ;;  %v300_v8 = vmax.f32 %v236_v58, 0.0  ;;  %v301_v9 = vmax.f32 %v237_v59, 0.0 }
  0x37   :  { %v302_v12 = vmax.f32 %v238_v63, 0.0  ;;  %v303_v17 = vmax.f32 %v239_v0, 0.0  ;;  %v304_v18 = vmax.f32 %v240_v1, 0.0  ;;  %v305_v19 = vmax.f32 %v241_v2, 0.0 }
  0x38   :  { %362 = vst [vmem:[%s939_s3 + $0x180] sm:$0xff] %v298_v6  ;;  %363 = vst [vmem:[%s939_s3 + $0x188] sm:$0xff] %v299_v7  ;;  %v156_v24 = vmul.f32 %v423_v13, %v70_v60  ;;  %v157_v25 = vmul.f32 %v427_v15, %v71_v61  ;;  %v158_v26 = vmul.f32 %v440_v20, %v72_v62 }
  0x39   :  { %364 = vst [vmem:[%s939_s3 + $0x190] sm:$0xff] %v300_v8  ;;  %365 = vst [vmem:[%s939_s3 + $0x198] sm:$0xff] %v301_v9  ;;  %v159_v27 = vmul.f32 %v444_v22, %v73_v3  ;;  %v160_v28 = vmul.f32 %v423_v13, %v74_v4  ;;  %v161_v29 = vmul.f32 %v427_v15, %v75_v5 }
  0x3a   :  { %366 = vst [vmem:[%s939_s3 + $0x1a0] sm:$0xff] %v302_v12  ;;  %367 = vst [vmem:[%s939_s3 + $0x1a8] sm:$0xff] %v303_v17  ;;  %v162_v30 = vmul.f32 %v440_v20, %v76_v10  ;;  %v163_v31 = vmul.f32 %v444_v22, %v77_v11  ;;  %v242_v32 = vadd.f32 %v425_v14, %v156_v24 }
  0x3b   :  { %368 = vst [vmem:[%s939_s3 + $0x1b0] sm:$0xff] %v304_v18  ;;  %369 = vst [vmem:[%s939_s3 + $0x1b8] sm:$0xff] %v305_v19  ;;  %v243_v33 = vadd.f32 %v429_v16, %v157_v25  ;;  %v244_v34 = vadd.f32 %v442_v21, %v158_v26  ;;  %v245_v35 = vadd.f32 %v446_v23, %v159_v27 }
  0x3c   :  { %v246_v36 = vadd.f32 %v425_v14, %v160_v28  ;;  %v247_v37 = vadd.f32 %v429_v16, %v161_v29  ;;  %v248_v13 = vadd.f32 %v442_v21, %v162_v30  ;;  %v249_v15 = vadd.f32 %v446_v23, %v163_v31 }
  0x3d   :  { %v306_v38 = vmax.f32 %v242_v32, 0.0  ;;  %v307_v20 = vmax.f32 %v243_v33, 0.0  ;;  %v308_v39 = vmax.f32 %v244_v34, 0.0  ;;  %v309_v22 = vmax.f32 %v245_v35, 0.0 }
  0x3e   :  { %v310_v40 = vmax.f32 %v246_v36, 0.0  ;;  %v311_v41 = vmax.f32 %v247_v37, 0.0  ;;  %v312_v42 = vmax.f32 %v248_v13, 0.0  ;;  %v313_v43 = vmax.f32 %v249_v15, 0.0 }
  0x3f   :  { %370 = vst [vmem:[%s939_s3 + $0x1c0] sm:$0xff] %v306_v38  ;;  %371 = vst [vmem:[%s939_s3 + $0x1c8] sm:$0xff] %v307_v20 }
  0x40   :  { %372 = vst [vmem:[%s939_s3 + $0x1d0] sm:$0xff] %v308_v39  ;;  %373 = vst [vmem:[%s939_s3 + $0x1d8] sm:$0xff] %v309_v22 }
  0x41   :  { %374 = vst [vmem:[%s939_s3 + $0x1e0] sm:$0xff] %v310_v40  ;;  %375 = vst [vmem:[%s939_s3 + $0x1e8] sm:$0xff] %v311_v41 }
  0x42   :  { %376 = vst [vmem:[%s939_s3 + $0x1f0] sm:$0xff] %v312_v42  ;;  %377 = vst [vmem:[%s939_s3 + $0x1f8] sm:$0xff] %v313_v43 }

// kernel: advection_core.61
= control target key start
LH: loop header
LB: loop body
LE: loop exit
PB: predicated region body
PF: predicated region fallthrough
CT: control target
= control target key end

     0   :  { %s3025_s15 = smov 0   ;;  %s3027_s16 = smov 0   ;;  %s3899_s0 = inlined_call_operand.vmem [shape: f32[128,512], index: 0, kind: input, shape index: {}]   ;;  %s3900_s1 = inlined_call_operand.vmem [shape: bf16[512,1024], index: 1, kind: input, shape index: {}]   ;;  %s3901_s2 = inlined_call_operand.vmem [shape: f32[128,1024], index: 2, kind: output, shape index: {0}]   ;;  %s3902_s3 = inlined_call_operand.vmem [shape: f32[8,1024], index: 3, kind: output, shape index: {1}]   ;;  %s3903_s4 = inlined_call_operand.vmem [shape: f32[8,1024], index: 4, kind: output, shape index: {2}]  }
   0x1   :  { %s3029_s17 = smov 0   ;;  %s3031_s18 = smov 0  }
   0x2   :  { %s3033_s19 = smov 0  }
   0x3 LB: > { %s24_s20 = sadd.s32 1, %s2994_s18  ;;  %s2514_s21 = sadd.s32 4294967295, %s2998_s19   ;;  %s2998_s19 = sphi %s3033_s19, %s15_s19   ;;  %s2994_s18 = sphi %s3031_s18, %s3909_s18   ;;  %s2990_s17 = sphi %s3029_s17, %s3908_s17   ;;  %s2986_s16 = sphi %s3027_s16, %s3907_s16   ;;  %s2982_s15 = sphi %s3025_s15, %s3906_s15  }
   0x4   : > { %p25_p0 = scmp.ge.s32.totalorder %s24_s20, 2  ;;  %p67_p1 = scmp.ne.s32.totalorder %s2986_s16, %s2982_s15 }
   0x5   : > { %p68_p2 = scmp.eq.s32.totalorder %s2998_s19, 0  ;;  %p99_p4 = scmp.eq.s32.totalorder %s2514_s21, 1 }
   0x6   : > { %s3911_s20 = smov (%p25_p0, %s24_s20), 0  ;;  %s60_s23 = sadd.s32 1, %s2986_s16 }
   0x7   : > { %p69_p3 = por %p68_p2, %p67_p1  ;;  %s57_s22 = ssub.s32 %s2994_s18, %s3911_s20 }
   0x8   : > { %p58_p5 = scmp.eq.s32.totalorder %s57_s22, 0  ;;  %p3060_p6 = por %p99_p4, %p67_p1 }
   0x9   : > { %p2518_p7 = scmp.ge.s32.totalorder %s2998_s19, 2 }
   0xa   : > { %s3065_s25 = scalar_select %p58_p5, %s2986_s16, %s60_s23  }
   0xb   : > { %187 = sbr.rel (%p2518_p7) target bundleno = 86 (0x56), region = 20 }
  0x12   : > { %190 = sbr.rel (!%p69_p3) target bundleno = 86 (0x56), region = 24  ;;  %s192_s26 = sand.u32 (%p69_p3), 1, %s2986_s16  }
  0x13   : > { %s2662_s27 = sshll.u32 (%p69_p3), %s2994_s18, 4  ;;  %s2519_s28 = sshll.u32 (%p69_p3), %s192_s26, 10 }
  0x14   : > { %s3073_s5 = scalar_lea.vmem (%p69_p3), %s3900_s1, %s2662_s27  ;;  %s3078_s6 = scalar_lea.vmem (%p69_p3), [#allocation2], %s2519_s28 }
  0x15   : > { %v210_v0 = vld [vmem:[%s3073_s5] sm:$0xff] (%p69_p3)  ;;  %v212_v1 = vld [vmem:[%s3073_s5 + $0x8] sm:$0xff] (%p69_p3) }
  0x16   : > { %v214_v2 = vld [vmem:[%s3073_s5 + $0x20] sm:$0xff] (%p69_p3)  ;;  %211 = vst [vmem:[%s3078_s6] sm:$0xff] (%p69_p3), %v210_v0  ;;  %213 = vst [vmem:[%s3078_s6 + $0x8] sm:$0xff] (%p69_p3), %v212_v1  ;;  %v216_v3 = vld [vmem:[%s3073_s5 + $0x28] sm:$0xff] (%p69_p3) }
  0x17   : > { %215 = vst [vmem:[%s3078_s6 + $0x10] sm:$0xff] (%p69_p3), %v214_v2  ;;  %v218_v4 = vld [vmem:[%s3073_s5 + $0x40] sm:$0xff] (%p69_p3)  ;;  %v220_v5 = vld [vmem:[%s3073_s5 + $0x48] sm:$0xff] (%p69_p3)  ;;  %217 = vst [vmem:[%s3078_s6 + $0x18] sm:$0xff] (%p69_p3), %v216_v3 }
  0x18   : > { %219 = vst [vmem:[%s3078_s6 + $0x20] sm:$0xff] (%p69_p3), %v218_v4  ;;  %221 = vst [vmem:[%s3078_s6 + $0x28] sm:$0xff] (%p69_p3), %v220_v5  ;;  %v222_v6 = vld [vmem:[%s3073_s5 + $0x60] sm:$0xff] (%p69_p3)  ;;  %v224_v7 = vld [vmem:[%s3073_s5 + $0x68] sm:$0xff] (%p69_p3) }
  0x19   : > { %v226_v8 = vld [vmem:[%s3073_s5 + $0x80] sm:$0xff]  ;;  %223 = vst [vmem:[%s3078_s6 + $0x30] sm:$0xff] %v222_v6  ;;  %225 = vst [vmem:[%s3078_s6 + $0x38] sm:$0xff] %v224_v7  ;;  %v228_v9 = vld [vmem:[%s3073_s5 + $0x88] sm:$0xff] }
  0x1a   : > { %227 = vst [vmem:[%s3078_s6 + $0x40] sm:$0xff] %v226_v8  ;;  %v230_v10 = vld [vmem:[%s3073_s5 + $0xa0] sm:$0xff]  ;;  %v232_v11 = vld [vmem:[%s3073_s5 + $0xa8] sm:$0xff]  ;;  %229 = vst [vmem:[%s3078_s6 + $0x48] sm:$0xff] %v228_v9 }
  0x1b   : > { %231 = vst [vmem:[%s3078_s6 + $0x50] sm:$0xff] %v230_v10  ;;  %233 = vst [vmem:[%s3078_s6 + $0x58] sm:$0xff] %v232_v11  ;;  %v234_v12 = vld [vmem:[%s3073_s5 + $0xc0] sm:$0xff]  ;;  %v236_v13 = vld [vmem:[%s3073_s5 + $0xc8] sm:$0xff] }
  0x1c   : > { %v238_v14 = vld [vmem:[%s3073_s5 + $0xe0] sm:$0xff]  ;;  %235 = vst [vmem:[%s3078_s6 + $0x60] sm:$0xff] %v234_v12  ;;  %237 = vst [vmem:[%s3078_s6 + $0x68] sm:$0xff] %v236_v13  ;;  %v240_v15 = vld [vmem:[%s3073_s5 + $0xe8] sm:$0xff] }
  0x1d   : > { %239 = vst [vmem:[%s3078_s6 + $0x70] sm:$0xff] %v238_v14  ;;  %v242_v16 = vld [vmem:[%s3073_s5 + $0x100] sm:$0xff]  ;;  %v244_v17 = vld [vmem:[%s3073_s5 + $0x108] sm:$0xff]  ;;  %241 = vst [vmem:[%s3078_s6 + $0x78] sm:$0xff] %v240_v15 }
  0x1e   : > { %243 = vst [vmem:[%s3078_s6 + $0x80] sm:$0xff] %v242_v16  ;;  %245 = vst [vmem:[%s3078_s6 + $0x88] sm:$0xff] %v244_v17  ;;  %v246_v18 = vld [vmem:[%s3073_s5 + $0x120] sm:$0xff]  ;;  %v248_v19 = vld [vmem:[%s3073_s5 + $0x128] sm:$0xff] }
  0x1f   : > { %v250_v20 = vld [vmem:[%s3073_s5 + $0x140] sm:$0xff]  ;;  %247 = vst [vmem:[%s3078_s6 + $0x90] sm:$0xff] %v246_v18  ;;  %249 = vst [vmem:[%s3078_s6 + $0x98] sm:$0xff] %v248_v19  ;;  %v252_v21 = vld [vmem:[%s3073_s5 + $0x148] sm:$0xff] }
  0x20   : > { %251 = vst [vmem:[%s3078_s6 + $0xa0] sm:$0xff] %v250_v20  ;;  %v254_v22 = vld [vmem:[%s3073_s5 + $0x160] sm:$0xff]  ;;  %v256_v23 = vld [vmem:[%s3073_s5 + $0x168] sm:$0xff]  ;;  %253 = vst [vmem:[%s3078_s6 + $0xa8] sm:$0xff] %v252_v21 }
  0x21   : > { %255 = vst [vmem:[%s3078_s6 + $0xb0] sm:$0xff] %v254_v22  ;;  %257 = vst [vmem:[%s3078_s6 + $0xb8] sm:$0xff] %v256_v23  ;;  %v258_v24 = vld [vmem:[%s3073_s5 + $0x180] sm:$0xff]  ;;  %v260_v25 = vld [vmem:[%s3073_s5 + $0x188] sm:$0xff] }
  0x22   : > { %v262_v26 = vld [vmem:[%s3073_s5 + $0x1a0] sm:$0xff]  ;;  %259 = vst [vmem:[%s3078_s6 + $0xc0] sm:$0xff] %v258_v24  ;;  %261 = vst [vmem:[%s3078_s6 + $0xc8] sm:$0xff] %v260_v25  ;;  %v264_v27 = vld [vmem:[%s3073_s5 + $0x1a8] sm:$0xff] }
  0x23   : > { %263 = vst [vmem:[%s3078_s6 + $0xd0] sm:$0xff] %v262_v26  ;;  %v266_v28 = vld [vmem:[%s3073_s5 + $0x1c0] sm:$0xff]  ;;  %v268_v29 = vld [vmem:[%s3073_s5 + $0x1c8] sm:$0xff]  ;;  %265 = vst [vmem:[%s3078_s6 + $0xd8] sm:$0xff] %v264_v27 }
  0x24   : > { %267 = vst [vmem:[%s3078_s6 + $0xe0] sm:$0xff] %v266_v28  ;;  %269 = vst [vmem:[%s3078_s6 + $0xe8] sm:$0xff] %v268_v29  ;;  %v270_v30 = vld [vmem:[%s3073_s5 + $0x1e0] sm:$0xff]  ;;  %v272_v31 = vld [vmem:[%s3073_s5 + $0x1e8] sm:$0xff] }
  0x25   : > { %v274_v32 = vld [vmem:[%s3073_s5 + $0x200] sm:$0xff]  ;;  %271 = vst [vmem:[%s3078_s6 + $0xf0] sm:$0xff] %v270_v30  ;;  %273 = vst [vmem:[%s3078_s6 + $0xf8] sm:$0xff] %v272_v31  ;;  %v276_v33 = vld [vmem:[%s3073_s5 + $0x208] sm:$0xff] }
  0x26   : > { %275 = vst [vmem:[%s3078_s6 + $0x100] sm:$0xff] %v274_v32  ;;  %v278_v34 = vld [vmem:[%s3073_s5 + $0x220] sm:$0xff]  ;;  %v280_v35 = vld [vmem:[%s3073_s5 + $0x228] sm:$0xff]  ;;  %277 = vst [vmem:[%s3078_s6 + $0x108] sm:$0xff] %v276_v33 }
  0x27   : > { %279 = vst [vmem:[%s3078_s6 + $0x110] sm:$0xff] %v278_v34  ;;  %281 = vst [vmem:[%s3078_s6 + $0x118] sm:$0xff] %v280_v35  ;;  %v282_v36 = vld [vmem:[%s3073_s5 + $0x240] sm:$0xff]  ;;  %v284_v37 = vld [vmem:[%s3073_s5 + $0x248] sm:$0xff] }
  0x28   : > { %v286_v38 = vld [vmem:[%s3073_s5 + $0x260] sm:$0xff]  ;;  %283 = vst [vmem:[%s3078_s6 + $0x120] sm:$0xff] %v282_v36  ;;  %285 = vst [vmem:[%s3078_s6 + $0x128] sm:$0xff] %v284_v37  ;;  %v288_v39 = vld [vmem:[%s3073_s5 + $0x268] sm:$0xff] }
  0x29   : > { %287 = vst [vmem:[%s3078_s6 + $0x130] sm:$0xff] %v286_v38  ;;  %v290_v40 = vld [vmem:[%s3073_s5 + $0x280] sm:$0xff]  ;;  %v292_v41 = vld [vmem:[%s3073_s5 + $0x288] sm:$0xff]  ;;  %289 = vst [vmem:[%s3078_s6 + $0x138] sm:$0xff] %v288_v39 }
  0x2a   : > { %291 = vst [vmem:[%s3078_s6 + $0x140] sm:$0xff] %v290_v40  ;;  %293 = vst [vmem:[%s3078_s6 + $0x148] sm:$0xff] %v292_v41  ;;  %v294_v42 = vld [vmem:[%s3073_s5 + $0x2a0] sm:$0xff]  ;;  %v296_v43 = vld [vmem:[%s3073_s5 + $0x2a8] sm:$0xff] }
  0x2b   : > { %v298_v44 = vld [vmem:[%s3073_s5 + $0x2c0] sm:$0xff]  ;;  %295 = vst [vmem:[%s3078_s6 + $0x150] sm:$0xff] %v294_v42  ;;  %297 = vst [vmem:[%s3078_s6 + $0x158] sm:$0xff] %v296_v43  ;;  %v300_v45 = vld [vmem:[%s3073_s5 + $0x2c8] sm:$0xff] }
  0x2c   : > { %299 = vst [vmem:[%s3078_s6 + $0x160] sm:$0xff] %v298_v44  ;;  %v302_v46 = vld [vmem:[%s3073_s5 + $0x2e0] sm:$0xff]  ;;  %v304_v47 = vld [vmem:[%s3073_s5 + $0x2e8] sm:$0xff]  ;;  %301 = vst [vmem:[%s3078_s6 + $0x168] sm:$0xff] %v300_v45 }
  0x2d   : > { %303 = vst [vmem:[%s3078_s6 + $0x170] sm:$0xff] %v302_v46  ;;  %305 = vst [vmem:[%s3078_s6 + $0x178] sm:$0xff] %v304_v47  ;;  %v306_v48 = vld [vmem:[%s3073_s5 + $0x300] sm:$0xff]  ;;  %v308_v49 = vld [vmem:[%s3073_s5 + $0x308] sm:$0xff] }
  0x2e   : > { %v310_v50 = vld [vmem:[%s3073_s5 + $0x320] sm:$0xff]  ;;  %307 = vst [vmem:[%s3078_s6 + $0x180] sm:$0xff] %v306_v48  ;;  %309 = vst [vmem:[%s3078_s6 + $0x188] sm:$0xff] %v308_v49  ;;  %v312_v51 = vld [vmem:[%s3073_s5 + $0x328] sm:$0xff] }
  0x2f   : > { %311 = vst [vmem:[%s3078_s6 + $0x190] sm:$0xff] %v310_v50  ;;  %v314_v52 = vld [vmem:[%s3073_s5 + $0x340] sm:$0xff]  ;;  %v316_v53 = vld [vmem:[%s3073_s5 + $0x348] sm:$0xff]  ;;  %313 = vst [vmem:[%s3078_s6 + $0x198] sm:$0xff] %v312_v51 }
  0x30   : > { %315 = vst [vmem:[%s3078_s6 + $0x1a0] sm:$0xff] %v314_v52  ;;  %317 = vst [vmem:[%s3078_s6 + $0x1a8] sm:$0xff] %v316_v53  ;;  %v318_v54 = vld [vmem:[%s3073_s5 + $0x360] sm:$0xff]  ;;  %v320_v55 = vld [vmem:[%s3073_s5 + $0x368] sm:$0xff] }
  0x31   : > { %v322_v56 = vld [vmem:[%s3073_s5 + $0x380] sm:$0xff]  ;;  %319 = vst [vmem:[%s3078_s6 + $0x1b0] sm:$0xff] %v318_v54  ;;  %321 = vst [vmem:[%s3078_s6 + $0x1b8] sm:$0xff] %v320_v55  ;;  %v324_v57 = vld [vmem:[%s3073_s5 + $0x388] sm:$0xff] }
  0x32   : > { %323 = vst [vmem:[%s3078_s6 + $0x1c0] sm:$0xff] %v322_v56  ;;  %v326_v58 = vld [vmem:[%s3073_s5 + $0x3a0] sm:$0xff]  ;;  %v328_v59 = vld [vmem:[%s3073_s5 + $0x3a8] sm:$0xff]  ;;  %325 = vst [vmem:[%s3078_s6 + $0x1c8] sm:$0xff] %v324_v57 }
  0x33   : > { %327 = vst [vmem:[%s3078_s6 + $0x1d0] sm:$0xff] %v326_v58  ;;  %329 = vst [vmem:[%s3078_s6 + $0x1d8] sm:$0xff] %v328_v59  ;;  %v330_v60 = vld [vmem:[%s3073_s5 + $0x3c0] sm:$0xff]  ;;  %v332_v61 = vld [vmem:[%s3073_s5 + $0x3c8] sm:$0xff] }
  0x34   : > { %v334_v62 = vld [vmem:[%s3073_s5 + $0x3e0] sm:$0xff]  ;;  %331 = vst [vmem:[%s3078_s6 + $0x1e0] sm:$0xff] %v330_v60  ;;  %333 = vst [vmem:[%s3078_s6 + $0x1e8] sm:$0xff] %v332_v61  ;;  %v336_v63 = vld [vmem:[%s3073_s5 + $0x3e8] sm:$0xff] }
  0x35   : > { %335 = vst [vmem:[%s3078_s6 + $0x1f0] sm:$0xff] %v334_v62  ;;  %v338_v0 = vld [vmem:[%s3073_s5 + $0x400] sm:$0xff]  ;;  %v340_v1 = vld [vmem:[%s3073_s5 + $0x408] sm:$0xff]  ;;  %337 = vst [vmem:[%s3078_s6 + $0x1f8] sm:$0xff] %v336_v63 }
  0x36   : > { %339 = vst [vmem:[%s3078_s6 + $0x200] sm:$0xff] %v338_v0  ;;  %341 = vst [vmem:[%s3078_s6 + $0x208] sm:$0xff] %v340_v1  ;;  %v342_v2 = vld [vmem:[%s3073_s5 + $0x420] sm:$0xff]  ;;  %v344_v3 = vld [vmem:[%s3073_s5 + $0x428] sm:$0xff] }
  0x37   : > { %v346_v4 = vld [vmem:[%s3073_s5 + $0x440] sm:$0xff]  ;;  %343 = vst [vmem:[%s3078_s6 + $0x210] sm:$0xff] %v342_v2  ;;  %345 = vst [vmem:[%s3078_s6 + $0x218] sm:$0xff] %v344_v3  ;;  %v348_v5 = vld [vmem:[%s3073_s5 + $0x448] sm:$0xff] }
  0x38   : > { %347 = vst [vmem:[%s3078_s6 + $0x220] sm:$0xff] %v346_v4  ;;  %v350_v6 = vld [vmem:[%s3073_s5 + $0x460] sm:$0xff]  ;;  %v352_v7 = vld [vmem:[%s3073_s5 + $0x468] sm:$0xff]  ;;  %349 = vst [vmem:[%s3078_s6 + $0x228] sm:$0xff] %v348_v5 }
  0x39   : > { %351 = vst [vmem:[%s3078_s6 + $0x230] sm:$0xff] %v350_v6  ;;  %353 = vst [vmem:[%s3078_s6 + $0x238] sm:$0xff] %v352_v7  ;;  %v354_v8 = vld [vmem:[%s3073_s5 + $0x480] sm:$0xff]  ;;  %v356_v9 = vld [vmem:[%s3073_s5 + $0x488] sm:$0xff] }
  0x3a   : > { %v358_v10 = vld [vmem:[%s3073_s5 + $0x4a0] sm:$0xff]  ;;  %355 = vst [vmem:[%s3078_s6 + $0x240] sm:$0xff] %v354_v8  ;;  %357 = vst [vmem:[%s3078_s6 + $0x248] sm:$0xff] %v356_v9  ;;  %v360_v11 = vld [vmem:[%s3073_s5 + $0x4a8] sm:$0xff] }
  0x3b   : > { %359 = vst [vmem:[%s3078_s6 + $0x250] sm:$0xff] %v358_v10  ;;  %v362_v12 = vld [vmem:[%s3073_s5 + $0x4c0] sm:$0xff]  ;;  %v364_v13 = vld [vmem:[%s3073_s5 + $0x4c8] sm:$0xff]  ;;  %361 = vst [vmem:[%s3078_s6 + $0x258] sm:$0xff] %v360_v11 }
  0x3c   : > { %363 = vst [vmem:[%s3078_s6 + $0x260] sm:$0xff] %v362_v12  ;;  %365 = vst [vmem:[%s3078_s6 + $0x268] sm:$0xff] %v364_v13  ;;  %v366_v14 = vld [vmem:[%s3073_s5 + $0x4e0] sm:$0xff]  ;;  %v368_v15 = vld [vmem:[%s3073_s5 + $0x4e8] sm:$0xff] }
  0x3d   : > { %v370_v16 = vld [vmem:[%s3073_s5 + $0x500] sm:$0xff]  ;;  %367 = vst [vmem:[%s3078_s6 + $0x270] sm:$0xff] %v366_v14  ;;  %369 = vst [vmem:[%s3078_s6 + $0x278] sm:$0xff] %v368_v15  ;;  %v372_v17 = vld [vmem:[%s3073_s5 + $0x508] sm:$0xff] }
  0x3e   : > { %371 = vst [vmem:[%s3078_s6 + $0x280] sm:$0xff] %v370_v16  ;;  %v374_v18 = vld [vmem:[%s3073_s5 + $0x520] sm:$0xff]  ;;  %v376_v19 = vld [vmem:[%s3073_s5 + $0x528] sm:$0xff]  ;;  %373 = vst [vmem:[%s3078_s6 + $0x288] sm:$0xff] %v372_v17 }
  0x3f   : > { %375 = vst [vmem:[%s3078_s6 + $0x290] sm:$0xff] %v374_v18  ;;  %377 = vst [vmem:[%s3078_s6 + $0x298] sm:$0xff] %v376_v19  ;;  %v378_v20 = vld [vmem:[%s3073_s5 + $0x540] sm:$0xff]  ;;  %v380_v21 = vld [vmem:[%s3073_s5 + $0x548] sm:$0xff] }
  0x40   : > { %v382_v22 = vld [vmem:[%s3073_s5 + $0x560] sm:$0xff]  ;;  %379 = vst [vmem:[%s3078_s6 + $0x2a0] sm:$0xff] %v378_v20  ;;  %381 = vst [vmem:[%s3078_s6 + $0x2a8] sm:$0xff] %v380_v21  ;;  %v384_v23 = vld [vmem:[%s3073_s5 + $0x568] sm:$0xff] }
  0x41   : > { %383 = vst [vmem:[%s3078_s6 + $0x2b0] sm:$0xff] %v382_v22  ;;  %v386_v24 = vld [vmem:[%s3073_s5 + $0x580] sm:$0xff]  ;;  %v388_v25 = vld [vmem:[%s3073_s5 + $0x588] sm:$0xff]  ;;  %385 = vst [vmem:[%s3078_s6 + $0x2b8] sm:$0xff] %v384_v23 }
  0x42   : > { %387 = vst [vmem:[%s3078_s6 + $0x2c0] sm:$0xff] %v386_v24  ;;  %389 = vst [vmem:[%s3078_s6 + $0x2c8] sm:$0xff] %v388_v25  ;;  %v390_v26 = vld [vmem:[%s3073_s5 + $0x5a0] sm:$0xff]  ;;  %v392_v27 = vld [vmem:[%s3073_s5 + $0x5a8] sm:$0xff] }
  0x43   : > { %v394_v28 = vld [vmem:[%s3073_s5 + $0x5c0] sm:$0xff]  ;;  %391 = vst [vmem:[%s3078_s6 + $0x2d0] sm:$0xff] %v390_v26  ;;  %393 = vst [vmem:[%s3078_s6 + $0x2d8] sm:$0xff] %v392_v27  ;;  %v396_v29 = vld [vmem:[%s3073_s5 + $0x5c8] sm:$0xff] }
  0x44   : > { %395 = vst [vmem:[%s3078_s6 + $0x2e0] sm:$0xff] %v394_v28  ;;  %v398_v30 = vld [vmem:[%s3073_s5 + $0x5e0] sm:$0xff]  ;;  %v400_v31 = vld [vmem:[%s3073_s5 + $0x5e8] sm:$0xff]  ;;  %397 = vst [vmem:[%s3078_s6 + $0x2e8] sm:$0xff] %v396_v29 }
  0x45   : > { %399 = vst [vmem:[%s3078_s6 + $0x2f0] sm:$0xff] %v398_v30  ;;  %401 = vst [vmem:[%s3078_s6 + $0x2f8] sm:$0xff] %v400_v31  ;;  %v402_v32 = vld [vmem:[%s3073_s5 + $0x600] sm:$0xff]  ;;  %v404_v33 = vld [vmem:[%s3073_s5 + $0x608] sm:$0xff] }
  0x46   : > { %v406_v34 = vld [vmem:[%s3073_s5 + $0x620] sm:$0xff]  ;;  %403 = vst [vmem:[%s3078_s6 + $0x300] sm:$0xff] %v402_v32  ;;  %405 = vst [vmem:[%s3078_s6 + $0x308] sm:$0xff] %v404_v33  ;;  %v408_v35 = vld [vmem:[%s3073_s5 + $0x628] sm:$0xff] }
  0x47   : > { %407 = vst [vmem:[%s3078_s6 + $0x310] sm:$0xff] %v406_v34  ;;  %v410_v36 = vld [vmem:[%s3073_s5 + $0x640] sm:$0xff]  ;;  %v412_v37 = vld [vmem:[%s3073_s5 + $0x648] sm:$0xff]  ;;  %409 = vst [vmem:[%s3078_s6 + $0x318] sm:$0xff] %v408_v35 }
  0x48   : > { %411 = vst [vmem:[%s3078_s6 + $0x320] sm:$0xff] %v410_v36  ;;  %413 = vst [vmem:[%s3078_s6 + $0x328] sm:$0xff] %v412_v37  ;;  %v414_v38 = vld [vmem:[%s3073_s5 + $0x660] sm:$0xff]  ;;  %v416_v39 = vld [vmem:[%s3073_s5 + $0x668] sm:$0xff] }
  0x49   : > { %v418_v40 = vld [vmem:[%s3073_s5 + $0x680] sm:$0xff]  ;;  %415 = vst [vmem:[%s3078_s6 + $0x330] sm:$0xff] %v414_v38  ;;  %417 = vst [vmem:[%s3078_s6 + $0x338] sm:$0xff] %v416_v39  ;;  %v420_v41 = vld [vmem:[%s3073_s5 + $0x688] sm:$0xff] }
  0x4a   : > { %419 = vst [vmem:[%s3078_s6 + $0x340] sm:$0xff] %v418_v40  ;;  %v422_v42 = vld [vmem:[%s3073_s5 + $0x6a0] sm:$0xff]  ;;  %v424_v43 = vld [vmem:[%s3073_s5 + $0x6a8] sm:$0xff]  ;;  %421 = vst [vmem:[%s3078_s6 + $0x348] sm:$0xff] %v420_v41 }
  0x4b   : > { %423 = vst [vmem:[%s3078_s6 + $0x350] sm:$0xff] %v422_v42  ;;  %425 = vst [vmem:[%s3078_s6 + $0x358] sm:$0xff] %v424_v43  ;;  %v426_v44 = vld [vmem:[%s3073_s5 + $0x6c0] sm:$0xff]  ;;  %v428_v45 = vld [vmem:[%s3073_s5 + $0x6c8] sm:$0xff] }
  0x4c   : > { %v430_v46 = vld [vmem:[%s3073_s5 + $0x6e0] sm:$0xff]  ;;  %427 = vst [vmem:[%s3078_s6 + $0x360] sm:$0xff] %v426_v44  ;;  %429 = vst [vmem:[%s3078_s6 + $0x368] sm:$0xff] %v428_v45  ;;  %v432_v47 = vld [vmem:[%s3073_s5 + $0x6e8] sm:$0xff] }
  0x4d   : > { %431 = vst [vmem:[%s3078_s6 + $0x370] sm:$0xff] %v430_v46  ;;  %v434_v48 = vld [vmem:[%s3073_s5 + $0x700] sm:$0xff]  ;;  %v436_v49 = vld [vmem:[%s3073_s5 + $0x708] sm:$0xff]  ;;  %433 = vst [vmem:[%s3078_s6 + $0x378] sm:$0xff] %v432_v47 }
  0x4e   : > { %435 = vst [vmem:[%s3078_s6 + $0x380] sm:$0xff] %v434_v48  ;;  %437 = vst [vmem:[%s3078_s6 + $0x388] sm:$0xff] %v436_v49  ;;  %v438_v50 = vld [vmem:[%s3073_s5 + $0x720] sm:$0xff]  ;;  %v440_v51 = vld [vmem:[%s3073_s5 + $0x728] sm:$0xff] }
  0x4f   : > { %v442_v52 = vld [vmem:[%s3073_s5 + $0x740] sm:$0xff]  ;;  %439 = vst [vmem:[%s3078_s6 + $0x390] sm:$0xff] %v438_v50  ;;  %441 = vst [vmem:[%s3078_s6 + $0x398] sm:$0xff] %v440_v51  ;;  %v444_v53 = vld [vmem:[%s3073_s5 + $0x748] sm:$0xff] }
  0x50   : > { %443 = vst [vmem:[%s3078_s6 + $0x3a0] sm:$0xff] %v442_v52  ;;  %v446_v54 = vld [vmem:[%s3073_s5 + $0x760] sm:$0xff]  ;;  %v448_v55 = vld [vmem:[%s3073_s5 + $0x768] sm:$0xff]  ;;  %445 = vst [vmem:[%s3078_s6 + $0x3a8] sm:$0xff] %v444_v53 }
  0x51   : > { %447 = vst [vmem:[%s3078_s6 + $0x3b0] sm:$0xff] %v446_v54  ;;  %449 = vst [vmem:[%s3078_s6 + $0x3b8] sm:$0xff] %v448_v55  ;;  %v450_v56 = vld [vmem:[%s3073_s5 + $0x780] sm:$0xff]  ;;  %v452_v57 = vld [vmem:[%s3073_s5 + $0x788] sm:$0xff] }
  0x52   : > { %v454_v58 = vld [vmem:[%s3073_s5 + $0x7a0] sm:$0xff]  ;;  %451 = vst [vmem:[%s3078_s6 + $0x3c0] sm:$0xff] %v450_v56  ;;  %453 = vst [vmem:[%s3078_s6 + $0x3c8] sm:$0xff] %v452_v57  ;;  %v456_v59 = vld [vmem:[%s3073_s5 + $0x7a8] sm:$0xff] }
  0x53   : > { %455 = vst [vmem:[%s3078_s6 + $0x3d0] sm:$0xff] %v454_v58  ;;  %v458_v60 = vld [vmem:[%s3073_s5 + $0x7c0] sm:$0xff]  ;;  %v460_v61 = vld [vmem:[%s3073_s5 + $0x7c8] sm:$0xff]  ;;  %457 = vst [vmem:[%s3078_s6 + $0x3d8] sm:$0xff] %v456_v59 }
  0x54   : > { %459 = vst [vmem:[%s3078_s6 + $0x3e0] sm:$0xff] %v458_v60  ;;  %461 = vst [vmem:[%s3078_s6 + $0x3e8] sm:$0xff] %v460_v61  ;;  %v462_v62 = vld [vmem:[%s3073_s5 + $0x7e0] sm:$0xff]  ;;  %v464_v63 = vld [vmem:[%s3073_s5 + $0x7e8] sm:$0xff] }
  0x55   : > { %463 = vst [vmem:[%s3078_s6 + $0x3f0] sm:$0xff] %v462_v62  ;;  %465 = vst [vmem:[%s3078_s6 + $0x3f8] sm:$0xff] %v464_v63 }
  0x56 PF: > { %p2522_p8 = scmp.ge.s32.totalorder %s2998_s19, 1  ;;  %p470_p9 = scmp.lt.s32.totalorder %s2998_s19, 3 }
  0x58   : > { %p471_p10 = pnand %p2522_p8, %p470_p9 }
  0x59   : > { %s477_s7 = sand.u32 (!%p471_p10), 1, %s2982_s15   ;;  %v556_v0 = vld [vmem:[%s3899_s0 + $0x8] sm:$0xff] (!%p471_p10)  ;;  %s2525_s15 = sshll.u32 (!%p471_p10), %s2990_s17, 2 }
  0x5a   : > { %474 = sbr.rel (%p471_p10) target bundleno = 533 (0x215), region = 47  ;;  %v560_v1 = vld [vmem:[%s3899_s0 + $0x28] sm:$0xff] (!%p471_p10)  ;;  %s2523_s12 = sshll.u32 (!%p471_p10), %s477_s7, 10 }
  0x5b   : > { %v620_v2 = vpack.c.bf16 (!%p471_p10), %v560_v1, %v556_v0  ;;  %s3344_s13 = scalar_lea.vmem (!%p471_p10), [#allocation2], %s2523_s12  ;;  %v555_v1 = vld [vmem:[%s3899_s0] sm:$0xff] (!%p471_p10)  ;;  %s2524_s30 = sshll.u32 (!%p471_p10), %s477_s7, 9 }
  0x5c   : > { %v2768_v3 = vld [vmem:[%s3344_s13 + $0x4] ss:$16 sps:$4 sm:$0xff] (!%p471_p10)   ;;  %v2770_v4 = vld [vmem:[%s3344_s13 + $0xc] ss:$16 sps:$4 sm:$0xff] (!%p471_p10)   ;;  %v2772_v5 = vld [vmem:[%s3344_s13] ss:$16 sps:$4 sm:$0xff] (!%p471_p10)  }
  0x5d   : > { %1451 = vmatprep.mubr.bf16.mxu0 (!%p471_p10), %v620_v2  ;;  %1677 = vmatprep.mubr.bf16.mxu1 (!%p471_p10), %v620_v2  ;;  %v2773_v6 = vld [vmem:[%s3344_s13 + $0x8] ss:$16 sps:$4 sm:$0xff] (!%p471_p10)   ;;  %v2774_v7 = vld [vmem:[%s3344_s13 + $0x24] ss:$16 sps:$4 sm:$0xff] (!%p471_p10)   ;;  %v2776_v8 = vld [vmem:[%s3344_s13 + $0x2c] ss:$16 sps:$4 sm:$0xff] (!%p471_p10)  }
  0x5e   : > { %1419 = vmatprep.subr.bf16.mxu0 (!%p471_p10), %v2768_v3  ;;  %1645 = vmatprep.subr.bf16.mxu1 (!%p471_p10), %v2770_v4  ;;  %v2778_v9 = vld [vmem:[%s3344_s13 + $0x20] ss:$16 sps:$4 sm:$0xff] (!%p471_p10)   ;;  %v2779_v10 = vld [vmem:[%s3344_s13 + $0x28] ss:$16 sps:$4 sm:$0xff] (!%p471_p10)   ;;  %v2780_v11 = vld [vmem:[%s3344_s13 + $0x44] ss:$16 sps:$4 sm:$0xff] (!%p471_p10)  }
  0x5f   : > { %1420 = vmatpush1.bf16.msra.mxu0 (!%p471_p10), %v2772_v5  ;;  %1646 = vmatpush1.bf16.msra.mxu1 (!%p471_p10), %v2773_v6  ;;  %v2782_v12 = vld [vmem:[%s3344_s13 + $0x4c] ss:$16 sps:$4 sm:$0xff] (!%p471_p10)   ;;  %v2784_v13 = vld [vmem:[%s3344_s13 + $0x40] ss:$16 sps:$4 sm:$0xff] (!%p471_p10)   ;;  %v2785_v14 = vld [vmem:[%s3344_s13 + $0x48] ss:$16 sps:$4 sm:$0xff] (!%p471_p10)  }
  0x60   : > { %1421 = vmatprep.subr.bf16.mxu0 (!%p471_p10), %v2774_v7  ;;  %1647 = vmatprep.subr.bf16.mxu1 (!%p471_p10), %v2776_v8  ;;  %v2786_v15 = vld [vmem:[%s3344_s13 + $0x64] ss:$16 sps:$4 sm:$0xff] (!%p471_p10)   ;;  %v2788_v16 = vld [vmem:[%s3344_s13 + $0x6c] ss:$16 sps:$4 sm:$0xff] (!%p471_p10)   ;;  %v2790_v17 = vld [vmem:[%s3344_s13 + $0x60] ss:$16 sps:$4 sm:$0xff] (!%p471_p10)  }
  0x61   : > { %v2791_v18 = vld [vmem:[%s3344_s13 + $0x68] ss:$16 sps:$4 sm:$0xff]   ;;  %v2792_v19 = vld [vmem:[%s3344_s13 + $0x84] ss:$16 sps:$4 sm:$0xff]   ;;  %v2794_v20 = vld [vmem:[%s3344_s13 + $0x8c] ss:$16 sps:$4 sm:$0xff]  }
  0x62   : > { %v2796_v21 = vld [vmem:[%s3344_s13 + $0x80] ss:$16 sps:$4 sm:$0xff]   ;;  %v2797_v22 = vld [vmem:[%s3344_s13 + $0x88] ss:$16 sps:$4 sm:$0xff]   ;;  %v2798_v23 = vld [vmem:[%s3344_s13 + $0xa4] ss:$16 sps:$4 sm:$0xff]  }
  0x63   : > { %1422 = vmatpush1.bf16.msra.mxu0 %v2778_v9  ;;  %1648 = vmatpush1.bf16.msra.mxu1 %v2779_v10  ;;  %v2800_v24 = vld [vmem:[%s3344_s13 + $0xac] ss:$16 sps:$4 sm:$0xff]   ;;  %v2802_v25 = vld [vmem:[%s3344_s13 + $0xa0] ss:$16 sps:$4 sm:$0xff]   ;;  %v2803_v26 = vld [vmem:[%s3344_s13 + $0xa8] ss:$16 sps:$4 sm:$0xff]  }
  0x64   : > { %1423 = vmatprep.subr.bf16.mxu0 %v2780_v11  ;;  %1649 = vmatprep.subr.bf16.mxu1 %v2782_v12  ;;  %v2804_v27 = vld [vmem:[%s3344_s13 + $0xc4] ss:$16 sps:$4 sm:$0xff]   ;;  %v2806_v28 = vld [vmem:[%s3344_s13 + $0xcc] ss:$16 sps:$4 sm:$0xff]   ;;  %v2808_v29 = vld [vmem:[%s3344_s13 + $0xc0] ss:$16 sps:$4 sm:$0xff]  }
  0x65   : > { %v2809_v30 = vld [vmem:[%s3344_s13 + $0xc8] ss:$16 sps:$4 sm:$0xff]   ;;  %v2810_v31 = vld [vmem:[%s3344_s13 + $0xe4] ss:$16 sps:$4 sm:$0xff]   ;;  %v2812_v32 = vld [vmem:[%s3344_s13 + $0xec] ss:$16 sps:$4 sm:$0xff]  }
  0x66   : > { %v2814_v33 = vld [vmem:[%s3344_s13 + $0xe0] ss:$16 sps:$4 sm:$0xff]   ;;  %v2815_v34 = vld [vmem:[%s3344_s13 + $0xe8] ss:$16 sps:$4 sm:$0xff]   ;;  %v2816_v35 = vld [vmem:[%s3344_s13 + $0x104] ss:$16 sps:$4 sm:$0xff]  }
  0x67   : > { %1424 = vmatpush1.bf16.msra.mxu0 %v2784_v13  ;;  %1650 = vmatpush1.bf16.msra.mxu1 %v2785_v14  ;;  %v2818_v36 = vld [vmem:[%s3344_s13 + $0x10c] ss:$16 sps:$4 sm:$0xff]   ;;  %v2820_v37 = vld [vmem:[%s3344_s13 + $0x100] ss:$16 sps:$4 sm:$0xff]   ;;  %v2821_v38 = vld [vmem:[%s3344_s13 + $0x108] ss:$16 sps:$4 sm:$0xff]  }
  0x68   : > { %1425 = vmatprep.subr.bf16.mxu0 %v2786_v15  ;;  %1651 = vmatprep.subr.bf16.mxu1 %v2788_v16  ;;  %v2822_v39 = vld [vmem:[%s3344_s13 + $0x124] ss:$16 sps:$4 sm:$0xff]   ;;  %v2824_v40 = vld [vmem:[%s3344_s13 + $0x12c] ss:$16 sps:$4 sm:$0xff]   ;;  %v2826_v41 = vld [vmem:[%s3344_s13 + $0x120] ss:$16 sps:$4 sm:$0xff]  }
  0x69   : > { %v2827_v42 = vld [vmem:[%s3344_s13 + $0x128] ss:$16 sps:$4 sm:$0xff]   ;;  %v2828_v43 = vld [vmem:[%s3344_s13 + $0x144] ss:$16 sps:$4 sm:$0xff]   ;;  %v2830_v44 = vld [vmem:[%s3344_s13 + $0x14c] ss:$16 sps:$4 sm:$0xff]  }
  0x6a   : > { %v2832_v45 = vld [vmem:[%s3344_s13 + $0x140] ss:$16 sps:$4 sm:$0xff]   ;;  %v2833_v46 = vld [vmem:[%s3344_s13 + $0x148] ss:$16 sps:$4 sm:$0xff]   ;;  %v2834_v47 = vld [vmem:[%s3344_s13 + $0x164] ss:$16 sps:$4 sm:$0xff]  }
  0x6b   : > { %1426 = vmatpush1.bf16.msra.mxu0 %v2790_v17  ;;  %1652 = vmatpush1.bf16.msra.mxu1 %v2791_v18  ;;  %v2836_v48 = vld [vmem:[%s3344_s13 + $0x16c] ss:$16 sps:$4 sm:$0xff]   ;;  %v2838_v49 = vld [vmem:[%s3344_s13 + $0x160] ss:$16 sps:$4 sm:$0xff]   ;;  %v2839_v50 = vld [vmem:[%s3344_s13 + $0x168] ss:$16 sps:$4 sm:$0xff]  }
  0x6c   : > { %1427 = vmatprep.subr.bf16.mxu0 %v2792_v19  ;;  %1653 = vmatprep.subr.bf16.mxu1 %v2794_v20  ;;  %v2840_v51 = vld [vmem:[%s3344_s13 + $0x184] ss:$16 sps:$4 sm:$0xff]   ;;  %v2842_v52 = vld [vmem:[%s3344_s13 + $0x18c] ss:$16 sps:$4 sm:$0xff]   ;;  %v2844_v53 = vld [vmem:[%s3344_s13 + $0x180] ss:$16 sps:$4 sm:$0xff]  }
  0x6d   : > { %v2845_v54 = vld [vmem:[%s3344_s13 + $0x188] ss:$16 sps:$4 sm:$0xff]   ;;  %v2846_v55 = vld [vmem:[%s3344_s13 + $0x1a4] ss:$16 sps:$4 sm:$0xff]   ;;  %v2848_v56 = vld [vmem:[%s3344_s13 + $0x1ac] ss:$16 sps:$4 sm:$0xff]  }
  0x6e   : > { %v2850_v57 = vld [vmem:[%s3344_s13 + $0x1a0] ss:$16 sps:$4 sm:$0xff]   ;;  %v2851_v58 = vld [vmem:[%s3344_s13 + $0x1a8] ss:$16 sps:$4 sm:$0xff]   ;;  %v2852_v59 = vld [vmem:[%s3344_s13 + $0x1c4] ss:$16 sps:$4 sm:$0xff]  }
  0x6f   : > { %1428 = vmatpush1.bf16.msra.mxu0 %v2796_v21  ;;  %1654 = vmatpush1.bf16.msra.mxu1 %v2797_v22  ;;  %v2854_v60 = vld [vmem:[%s3344_s13 + $0x1cc] ss:$16 sps:$4 sm:$0xff]   ;;  %v2856_v61 = vld [vmem:[%s3344_s13 + $0x1c0] ss:$16 sps:$4 sm:$0xff]   ;;  %v2857_v62 = vld [vmem:[%s3344_s13 + $0x1c8] ss:$16 sps:$4 sm:$0xff]  }
  0x70   : > { %1429 = vmatprep.subr.bf16.mxu0 %v2798_v23  ;;  %1655 = vmatprep.subr.bf16.mxu1 %v2800_v24  ;;  %v2858_v63 = vld [vmem:[%s3344_s13 + $0x1e4] ss:$16 sps:$4 sm:$0xff]   ;;  %v2860_v0 = vld [vmem:[%s3344_s13 + $0x1ec] ss:$16 sps:$4 sm:$0xff]   ;;  %v2862_v3 = vld [vmem:[%s3344_s13 + $0x1e0] ss:$16 sps:$4 sm:$0xff]  }
  0x71   : > { %v559_v2 = vld [vmem:[%s3899_s0 + $0x20] sm:$0xff]  ;;  %v2863_v4 = vld [vmem:[%s3344_s13 + $0x1e8] ss:$16 sps:$4 sm:$0xff]   ;;  %v2869_v6 = vld [vmem:[%s3344_s13 + $0x20c] ss:$16 sps:$4 sm:$0xff]   ;;  %s3662_s5 = scalar_lea.vmem [#allocation3], %s2524_s30 }
  0x72   : > { %v2866_v5 = vld [vmem:[%s3344_s13 + $0x204] ss:$16 sps:$4 sm:$0xff]   ;;  %v564_v7 = vld [vmem:[%s3899_s0 + $0x48] sm:$0xff]  ;;  %v619_v8 = vpack.c.bf16 %v559_v2, %v555_v1  ;;  %v2864_v9 = vld [vmem:[%s3344_s13 + $0x200] ss:$16 sps:$4 sm:$0xff]   ;;  %p3727_p11 = scmp.lt.s32.totalorder %s2525_s15, 7 }
  0x73   : > { %1430 = vmatpush1.bf16.msra.mxu0 %v2802_v25  ;;  %1656 = vmatpush1.bf16.msra.mxu1 %v2803_v26  ;;  %v568_v10 = vld [vmem:[%s3899_s0 + $0x68] sm:$0xff]  ;;  %v2872_v12 = vld [vmem:[%s3344_s13 + $0x224] ss:$16 sps:$4 sm:$0xff]   ;;  %v2870_v16 = vld [vmem:[%s3344_s13 + $0x220] ss:$16 sps:$4 sm:$0xff]   ;;  %s2663_s21 = sshll.u32 (%p3060_p6), %s2990_s17, 5 }
  0x74   : > { %1431 = vmatprep.subr.bf16.mxu0 %v2804_v27  ;;  %1657 = vmatprep.subr.bf16.mxu1 %v2806_v28  ;;  %v2867_v11 = vld [vmem:[%s3344_s13 + $0x208] ss:$16 sps:$4 sm:$0xff]   ;;  %v2875_v13 = vld [vmem:[%s3344_s13 + $0x22c] ss:$16 sps:$4 sm:$0xff]   ;;  %v624_v14 = vpack.c.bf16 %v568_v10, %v564_v7  ;;  %v563_v15 = vld [vmem:[%s3899_s0 + $0x40] sm:$0xff]  ;;  %s3913_s15 = smov (!%p3727_p11, %s2525_s15), 7  ;;  %s3757_s26 = scalar_lea.vmem (%p3060_p6), %s3901_s2, %s2663_s21 }
  0x75   : > { %v567_v17 = vld [vmem:[%s3899_s0 + $0x60] sm:$0xff]  ;;  %v2873_v18 = vld [vmem:[%s3344_s13 + $0x228] ss:$16 sps:$4 sm:$0xff]   ;;  %v2881_v20 = vld [vmem:[%s3344_s13 + $0x24c] ss:$16 sps:$4 sm:$0xff]   ;;  %s2526_s6 = sshll.u32 %s3913_s15, 3 }
  0x76   : > { %v2878_v19 = vld [vmem:[%s3344_s13 + $0x244] ss:$16 sps:$4 sm:$0xff]   ;;  %v623_v21 = vpack.c.bf16 %v567_v17, %v563_v15  ;;  %v572_v22 = vld [vmem:[%s3899_s0 + $0x88] sm:$0xff]  ;;  %v2876_v24 = vld [vmem:[%s3344_s13 + $0x240] ss:$16 sps:$4 sm:$0xff]   ;;  %s543_s10 = scalar_lea.vmem %s3902_s3, %s2526_s6  ;;  %s553_s14 = scalar_lea.vmem %s3903_s4, %s2526_s6 }
  0x77   : > { %1432 = vmatpush1.bf16.msra.mxu0 %v2808_v29  ;;  %1658 = vmatpush1.bf16.msra.mxu1 %v2809_v30  ;;  %v576_v23 = vld [vmem:[%s3899_s0 + $0xa8] sm:$0xff]  ;;  %v2884_v26 = vld [vmem:[%s3344_s13 + $0x264] ss:$16 sps:$4 sm:$0xff]   ;;  %v2882_v28 = vld [vmem:[%s3344_s13 + $0x260] ss:$16 sps:$4 sm:$0xff]  }
  0x78   : > { %1433 = vmatprep.subr.bf16.mxu0 %v2810_v31  ;;  %1659 = vmatprep.subr.bf16.mxu1 %v2812_v32  ;;  %v2879_v25 = vld [vmem:[%s3344_s13 + $0x248] ss:$16 sps:$4 sm:$0xff]   ;;  %v2887_v27 = vld [vmem:[%s3344_s13 + $0x26c] ss:$16 sps:$4 sm:$0xff]   ;;  %v628_v29 = vpack.c.bf16 %v576_v23, %v572_v22  ;;  %v571_v31 = vld [vmem:[%s3899_s0 + $0x80] sm:$0xff] }
  0x79   : > { %v2885_v30 = vld [vmem:[%s3344_s13 + $0x268] ss:$16 sps:$4 sm:$0xff]   ;;  %v575_v32 = vld [vmem:[%s3899_s0 + $0xa0] sm:$0xff] }
  0x7a   : > { %v600_v1 = vld [vmem:[%s3899_s0 + $0x168] sm:$0xff]  ;;  %v2912_v2 = vld [vmem:[%s3344_s13 + $0x300] ss:$16 sps:$4 sm:$0xff]  }
  0x7b   : > { %1434 = vmatpush1.bf16.msra.mxu0 %v2814_v33  ;;  %1660 = vmatpush1.bf16.msra.mxu1 %v2815_v34  ;;  %v2890_v33 = vld [vmem:[%s3344_s13 + $0x284] ss:$16 sps:$4 sm:$0xff]   ;;  %v2893_v34 = vld [vmem:[%s3344_s13 + $0x28c] ss:$16 sps:$4 sm:$0xff]   ;;  %v2918_v7 = vld [vmem:[%s3344_s13 + $0x320] ss:$16 sps:$4 sm:$0xff]  }
  0x7c   : > { %1435 = vmatprep.subr.bf16.mxu0 %v2816_v35  ;;  %1661 = vmatprep.subr.bf16.mxu1 %v2818_v36  ;;  %v627_v35 = vpack.c.bf16 %v575_v32, %v571_v31  ;;  %v580_v36 = vld [vmem:[%s3899_s0 + $0xc8] sm:$0xff]  ;;  %v599_v10 = vld [vmem:[%s3899_s0 + $0x160] sm:$0xff] }
  0x7d   : > { %v608_v15 = vld [vmem:[%s3899_s0 + $0x1a8] sm:$0xff]  ;;  %v603_v23 = vld [vmem:[%s3899_s0 + $0x180] sm:$0xff] }
  0x7e   : > { %v2927_v17 = vld [vmem:[%s3344_s13 + $0x348] ss:$16 sps:$4 sm:$0xff]   ;;  %v2944_v32 = vld [vmem:[%s3344_s13 + $0x3a4] ss:$16 sps:$4 sm:$0xff]  }
  0x7f   : > { %1436 = vmatpush1.bf16.msra.mxu0 %v2820_v37  ;;  %1662 = vmatpush1.bf16.msra.mxu1 %v2821_v38  ;;  %v584_v37 = vld [vmem:[%s3899_s0 + $0xe8] sm:$0xff]  ;;  %v2888_v38 = vld [vmem:[%s3344_s13 + $0x280] ss:$16 sps:$4 sm:$0xff]  }
  0x80   : > { %1437 = vmatprep.subr.bf16.mxu0 %v2822_v39  ;;  %1663 = vmatprep.subr.bf16.mxu1 %v2824_v40  ;;  %v2891_v39 = vld [vmem:[%s3344_s13 + $0x288] ss:$16 sps:$4 sm:$0xff]   ;;  %v2896_v40 = vld [vmem:[%s3344_s13 + $0x2a4] ss:$16 sps:$4 sm:$0xff]  }
  0x81   : > { %v2933_v22 = vld [vmem:[%s3344_s13 + $0x368] ss:$16 sps:$4 sm:$0xff]  }
  0x82   : > { %v2939_v31 = vld [vmem:[%s3344_s13 + $0x388] ss:$16 sps:$4 sm:$0xff]  }
  0x83   : > { %1438 = vmatpush1.bf16.msra.mxu0 %v2826_v41  ;;  %1664 = vmatpush1.bf16.msra.mxu1 %v2827_v42  ;;  %v2899_v41 = vld [vmem:[%s3344_s13 + $0x2ac] ss:$16 sps:$4 sm:$0xff]   ;;  %v2894_v42 = vld [vmem:[%s3344_s13 + $0x2a0] ss:$16 sps:$4 sm:$0xff]  }
  0x84   : > { %1439 = vmatprep.subr.bf16.mxu0 %v2828_v43  ;;  %1665 = vmatprep.subr.bf16.mxu1 %v2830_v44  ;;  %v632_v43 = vpack.c.bf16 %v584_v37, %v580_v36  ;;  %v2897_v44 = vld [vmem:[%s3344_s13 + $0x2a8] ss:$16 sps:$4 sm:$0xff]   ;;  %v611_v37 = vld [vmem:[%s3899_s0 + $0x1c0] sm:$0xff] }
  0x85   : > { %v2945_v36 = vld [vmem:[%s3344_s13 + $0x3a8] ss:$16 sps:$4 sm:$0xff]  }
  0x87   : > { %1440 = vmatpush1.bf16.msra.mxu0 %v2832_v45  ;;  %1666 = vmatpush1.bf16.msra.mxu1 %v2833_v46  ;;  %v579_v45 = vld [vmem:[%s3899_s0 + $0xc0] sm:$0xff] }
  0x88   : > { %1441 = vmatprep.subr.bf16.mxu0 %v2834_v47  ;;  %1667 = vmatprep.subr.bf16.mxu1 %v2836_v48  ;;  %v583_v46 = vld [vmem:[%s3899_s0 + $0xe0] sm:$0xff]  ;;  %v2905_v48 = vld [vmem:[%s3344_s13 + $0x2cc] ss:$16 sps:$4 sm:$0xff]  }
  0x89   : > { %v2902_v47 = vld [vmem:[%s3344_s13 + $0x2c4] ss:$16 sps:$4 sm:$0xff]  }
  0x8b   : > { %1442 = vmatpush1.bf16.msra.mxu0 %v2838_v49  ;;  %1668 = vmatpush1.bf16.msra.mxu1 %v2839_v50  ;;  %v2900_v49 = vld [vmem:[%s3344_s13 + $0x2c0] ss:$16 sps:$4 sm:$0xff]   ;;  %v631_v50 = vpack.c.bf16 %v583_v46, %v579_v45  ;;  %v2951_v45 = vld [vmem:[%s3344_s13 + $0x3c8] ss:$16 sps:$4 sm:$0xff]   ;;  %v2956_v46 = vld [vmem:[%s3344_s13 + $0x3e4] ss:$16 sps:$4 sm:$0xff]  }
  0x8c   : > { %1443 = vmatprep.subr.bf16.mxu0 %v2840_v51  ;;  %1669 = vmatprep.subr.bf16.mxu1 %v2842_v52  ;;  %v588_v51 = vld [vmem:[%s3899_s0 + $0x108] sm:$0xff] }
  0x8d   : > { %v592_v52 = vld [vmem:[%s3899_s0 + $0x128] sm:$0xff] }
  0x8f   : > { %1444 = vmatpush1.bf16.msra.mxu0 %v2844_v53  ;;  %1670 = vmatpush1.bf16.msra.mxu1 %v2845_v54  ;;  %v2903_v53 = vld [vmem:[%s3344_s13 + $0x2c8] ss:$16 sps:$4 sm:$0xff]   ;;  %v2908_v54 = vld [vmem:[%s3344_s13 + $0x2e4] ss:$16 sps:$4 sm:$0xff]  }
  0x90   : > { %1445 = vmatprep.subr.bf16.mxu0 %v2846_v55  ;;  %1671 = vmatprep.subr.bf16.mxu1 %v2848_v56  ;;  %v2911_v55 = vld [vmem:[%s3344_s13 + $0x2ec] ss:$16 sps:$4 sm:$0xff]   ;;  %v636_v56 = vpack.c.bf16 %v592_v52, %v588_v51  ;;  %v557_v51 = vld [vmem:[%s3899_s0 + $0x10] sm:$0xff] }
  0x91   : > { %v561_v52 = vld [vmem:[%s3899_s0 + $0x30] sm:$0xff] }
  0x93   : > { %1446 = vmatpush1.bf16.msra.mxu0 %v2850_v57  ;;  %1672 = vmatpush1.bf16.msra.mxu1 %v2851_v58  ;;  %v2906_v57 = vld [vmem:[%s3344_s13 + $0x2e0] ss:$16 sps:$4 sm:$0xff]   ;;  %v2909_v58 = vld [vmem:[%s3344_s13 + $0x2e8] ss:$16 sps:$4 sm:$0xff]  }
  0x94   : > { %1447 = vmatprep.subr.bf16.mxu0 %v2852_v59  ;;  %1673 = vmatprep.subr.bf16.mxu1 %v2854_v60  ;;  %v587_v59 = vld [vmem:[%s3899_s0 + $0x100] sm:$0xff] }
  0x95   : > { %v591_v60 = vld [vmem:[%s3899_s0 + $0x120] sm:$0xff] }
  0x97   : > { %1448 = vmatpush1.bf16.msra.mxu0 %v2856_v61  ;;  %1674 = vmatpush1.bf16.msra.mxu1 %v2857_v62  ;;  %v2914_v61 = vld [vmem:[%s3344_s13 + $0x304] ss:$16 sps:$4 sm:$0xff]   ;;  %v2917_v62 = vld [vmem:[%s3344_s13 + $0x30c] ss:$16 sps:$4 sm:$0xff]  }
  0x98   : > { %1449 = vmatprep.subr.bf16.mxu0 %v2858_v63  ;;  %1675 = vmatprep.subr.bf16.mxu1 %v2860_v0  ;;  %v635_v63 = vpack.c.bf16 %v591_v60, %v587_v59  ;;  %v596_v0 = vld [vmem:[%s3899_s0 + $0x148] sm:$0xff]  ;;  %v574_v59 = vld [vmem:[%s3899_s0 + $0x98] sm:$0xff] }
  0x99   : > { %v578_v60 = vld [vmem:[%s3899_s0 + $0xb8] sm:$0xff] }
  0x9b   : > { %1450 = vmatpush1.bf16.msra.mxu0 %v2862_v3  ;;  %1676 = vmatpush1.bf16.msra.mxu1 %v2863_v4  ;;  %v2915_v3 = vld [vmem:[%s3344_s13 + $0x308] ss:$16 sps:$4 sm:$0xff]   ;;  %v2920_v4 = vld [vmem:[%s3344_s13 + $0x324] ss:$16 sps:$4 sm:$0xff]  }
  0x9c   : > { %1532 = vmatprep.subr.bf16.mxu0 %v2866_v5  ;;  %1758 = vmatprep.subr.bf16.mxu1 %v2869_v6  ;;  %v2923_v5 = vld [vmem:[%s3344_s13 + $0x32c] ss:$16 sps:$4 sm:$0xff]   ;;  %v640_v6 = vpack.c.bf16 %v600_v1, %v596_v0  ;;  %v577_v0 = vld [vmem:[%s3899_s0 + $0xb0] sm:$0xff] }
  0x9d   : > { %v582_v1 = vld [vmem:[%s3899_s0 + $0xd8] sm:$0xff] }
  0x9e   : > { %1452 = vmatmul.mubr.bf16.vlgmr.msra.gmra.mrb[0].mxu0 %v619_v8  ;;  %1678 = vmatmul.mubr.bf16.vlgmr.msra.gmra.mrb[0].mxu1 %v619_v8  ;;  %v2921_v8 = vld [vmem:[%s3344_s13 + $0x328] ss:$16 sps:$4 sm:$0xff]  }
  0x9f   : > { %1533 = vmatpush1.bf16.msra.mxu0 %v2864_v9  ;;  %1759 = vmatpush1.bf16.msra.mxu1 %v2867_v11  ;;  %v595_v9 = vld [vmem:[%s3899_s0 + $0x140] sm:$0xff] }
  0xa0   : > { %1534 = vmatprep.subr.bf16.mxu0 %v2872_v12  ;;  %1760 = vmatprep.subr.bf16.mxu1 %v2875_v13  ;;  %v2926_v11 = vld [vmem:[%s3344_s13 + $0x344] ss:$16 sps:$4 sm:$0xff]   ;;  %v2929_v12 = vld [vmem:[%s3344_s13 + $0x34c] ss:$16 sps:$4 sm:$0xff]   ;;  %v639_v13 = vpack.c.bf16 %v599_v10, %v595_v9 }
  0xa1   : > { %1461 = vmatprep.mubr.bf16.mxu0 %v624_v14  ;;  %1687 = vmatprep.mubr.bf16.mxu1 %v624_v14  ;;  %v604_v14 = vld [vmem:[%s3899_s0 + $0x188] sm:$0xff] }
  0xa3   : > { %1535 = vmatpush1.bf16.msra.mxu0 %v2870_v16  ;;  %1761 = vmatpush1.bf16.msra.mxu1 %v2873_v18  ;;  %v2924_v16 = vld [vmem:[%s3344_s13 + $0x340] ss:$16 sps:$4 sm:$0xff]   ;;  %v2932_v18 = vld [vmem:[%s3344_s13 + $0x364] ss:$16 sps:$4 sm:$0xff]  }
  0xa4   : > { %1536 = vmatprep.subr.bf16.mxu0 %v2878_v19  ;;  %1762 = vmatprep.subr.bf16.mxu1 %v2881_v20  ;;  %v2935_v19 = vld [vmem:[%s3344_s13 + $0x36c] ss:$16 sps:$4 sm:$0xff]   ;;  %v644_v20 = vpack.c.bf16 %v608_v15, %v604_v14 }
  0xa5   : > { %v602_v14 = vld [vmem:[%s3899_s0 + $0x178] sm:$0xff] }
  0xa6   : > { %1462 = vmatmul.mubr.bf16.gmra.mrb[4].mxu0 %v623_v21  ;;  %1688 = vmatmul.mubr.bf16.gmra.mrb[4].mxu1 %v623_v21  ;;  %v2930_v21 = vld [vmem:[%s3344_s13 + $0x360] ss:$16 sps:$4 sm:$0xff]  }
  0xa7   : > { %1537 = vmatpush1.bf16.msra.mxu0 %v2876_v24  ;;  %1763 = vmatpush1.bf16.msra.mxu1 %v2879_v25  ;;  %v607_v24 = vld [vmem:[%s3899_s0 + $0x1a0] sm:$0xff] }
  0xa8   : > { %1538 = vmatprep.subr.bf16.mxu0 %v2884_v26  ;;  %1764 = vmatprep.subr.bf16.mxu1 %v2887_v27  ;;  %v2938_v25 = vld [vmem:[%s3344_s13 + $0x384] ss:$16 sps:$4 sm:$0xff]   ;;  %v2941_v26 = vld [vmem:[%s3344_s13 + $0x38c] ss:$16 sps:$4 sm:$0xff]   ;;  %v643_v27 = vpack.c.bf16 %v607_v24, %v603_v23 }
  0xa9   : > { %1471 = vmatprep.mubr.bf16.mxu0 %v628_v29  ;;  %1697 = vmatprep.mubr.bf16.mxu1 %v628_v29  ;;  %v616_v29 = vld [vmem:[%s3899_s0 + $0x1e8] sm:$0xff]  ;;  %v605_v23 = vld [vmem:[%s3899_s0 + $0x190] sm:$0xff] }
  0xaa   : > { %v609_v24 = vld [vmem:[%s3899_s0 + $0x1b0] sm:$0xff] }
  0xab   : > { %1539 = vmatpush1.bf16.msra.mxu0 %v2882_v28  ;;  %1765 = vmatpush1.bf16.msra.mxu1 %v2885_v30  ;;  %v612_v28 = vld [vmem:[%s3899_s0 + $0x1c8] sm:$0xff]  ;;  %v2936_v30 = vld [vmem:[%s3344_s13 + $0x380] ss:$16 sps:$4 sm:$0xff]  }
  0xac   : > { %1540 = vmatprep.subr.bf16.mxu0 %v2890_v33  ;;  %1766 = vmatprep.subr.bf16.mxu1 %v2893_v34  ;;  %v2947_v33 = vld [vmem:[%s3344_s13 + $0x3ac] ss:$16 sps:$4 sm:$0xff]   ;;  %v648_v34 = vpack.c.bf16 %v616_v29, %v612_v28  ;;  %v613_v29 = vld [vmem:[%s3899_s0 + $0x1d0] sm:$0xff] }
  0xae   : > { %1472 = vmatmul.mubr.bf16.gmra.mrb[8].mxu0 %v627_v35  ;;  %1698 = vmatmul.mubr.bf16.gmra.mrb[8].mxu1 %v627_v35  ;;  %v2942_v35 = vld [vmem:[%s3344_s13 + $0x3a0] ss:$16 sps:$4 sm:$0xff]  }
  0xaf   : > { %1541 = vmatpush1.bf16.msra.mxu0 %v2888_v38  ;;  %1767 = vmatpush1.bf16.msra.mxu1 %v2891_v39  ;;  %v615_v38 = vld [vmem:[%s3899_s0 + $0x1e0] sm:$0xff] }
  0xb0   : > { %1542 = vmatprep.subr.bf16.mxu0 %v2896_v40  ;;  %1768 = vmatprep.subr.bf16.mxu1 %v2899_v41  ;;  %v2950_v39 = vld [vmem:[%s3344_s13 + $0x3c4] ss:$16 sps:$4 sm:$0xff]   ;;  %v2953_v40 = vld [vmem:[%s3344_s13 + $0x3cc] ss:$16 sps:$4 sm:$0xff]   ;;  %v647_v41 = vpack.c.bf16 %v615_v38, %v611_v37 }
  0xb1   : > { %1481 = vmatprep.mubr.bf16.mxu0 %v632_v43  ;;  %1707 = vmatprep.mubr.bf16.mxu1 %v632_v43  ;;  %v562_v43 = vld [vmem:[%s3899_s0 + $0x38] sm:$0xff] }
  0xb3   : > { %1543 = vmatpush1.bf16.msra.mxu0 %v2894_v42  ;;  %1769 = vmatpush1.bf16.msra.mxu1 %v2897_v44  ;;  %v558_v42 = vld [vmem:[%s3899_s0 + $0x18] sm:$0xff]  ;;  %v2948_v44 = vld [vmem:[%s3344_s13 + $0x3c0] ss:$16 sps:$4 sm:$0xff]  }
  0xb4   : > { %1544 = vmatprep.subr.bf16.mxu0 %v2902_v47  ;;  %1770 = vmatprep.subr.bf16.mxu1 %v2905_v48  ;;  %v2959_v47 = vld [vmem:[%s3344_s13 + $0x3ec] ss:$16 sps:$4 sm:$0xff]   ;;  %v622_v48 = vpack.c.bf16 %v562_v43, %v558_v42 }
  0xb6   : > { %1482 = vmatmul.mubr.bf16.gmra.mrb[12].mxu0 %v631_v50  ;;  %1708 = vmatmul.mubr.bf16.gmra.mrb[12].mxu1 %v631_v50  ;;  %v2957_v50 = vld [vmem:[%s3344_s13 + $0x3e8] ss:$16 sps:$4 sm:$0xff]  }
  0xb7   : > { %1545 = vmatpush1.bf16.msra.mxu0 %v2900_v49  ;;  %1771 = vmatpush1.bf16.msra.mxu1 %v2903_v53  ;;  %v2954_v49 = vld [vmem:[%s3344_s13 + $0x3e0] ss:$16 sps:$4 sm:$0xff]   ;;  %v566_v53 = vld [vmem:[%s3899_s0 + $0x58] sm:$0xff] }
  0xb8   : > { %1546 = vmatprep.subr.bf16.mxu0 %v2908_v54  ;;  %1772 = vmatprep.subr.bf16.mxu1 %v2911_v55  ;;  %v570_v54 = vld [vmem:[%s3899_s0 + $0x78] sm:$0xff]  ;;  %v621_v55 = vpack.c.bf16 %v561_v52, %v557_v51 }
  0xb9   : > { %1491 = vmatprep.mubr.bf16.mxu0 %v636_v56  ;;  %1717 = vmatprep.mubr.bf16.mxu1 %v636_v56  ;;  %v626_v56 = vpack.c.bf16 %v570_v54, %v566_v53 }
  0xbb   : > { %1547 = vmatpush1.bf16.msra.mxu0 %v2906_v57  ;;  %1773 = vmatpush1.bf16.msra.mxu1 %v2909_v58  ;;  %v565_v57 = vld [vmem:[%s3899_s0 + $0x50] sm:$0xff] }
  0xbc   : > { %1548 = vmatprep.subr.bf16.mxu0 %v2914_v61  ;;  %1774 = vmatprep.subr.bf16.mxu1 %v2917_v62  ;;  %v569_v58 = vld [vmem:[%s3899_s0 + $0x70] sm:$0xff]  ;;  %v630_v62 = vpack.c.bf16 %v578_v60, %v574_v59 }
  0xbd   : > { %v625_v61 = vpack.c.bf16 %v569_v58, %v565_v57 }
  0xbe   : > { %1492 = vmatmul.mubr.bf16.gmra.mrb[16].mxu0 %v635_v63  ;;  %1718 = vmatmul.mubr.bf16.gmra.mrb[16].mxu1 %v635_v63  ;;  %v573_v63 = vld [vmem:[%s3899_s0 + $0x90] sm:$0xff] }
  0xbf   : > { %1549 = vmatpush1.bf16.msra.mxu0 %v2912_v2  ;;  %1775 = vmatpush1.bf16.msra.mxu1 %v2915_v3  ;;  %v586_v2 = vld [vmem:[%s3899_s0 + $0xf8] sm:$0xff]  ;;  %v629_v3 = vpack.c.bf16 %v577_v0, %v573_v63 }
  0xc0   : > { %1550 = vmatprep.subr.bf16.mxu0 %v2920_v4  ;;  %1776 = vmatprep.subr.bf16.mxu1 %v2923_v5  ;;  %v634_v4 = vpack.c.bf16 %v586_v2, %v582_v1  ;;  %v581_v5 = vld [vmem:[%s3899_s0 + $0xd0] sm:$0xff] }
  0xc1   : > { %1501 = vmatprep.mubr.bf16.mxu0 %v640_v6  ;;  %1727 = vmatprep.mubr.bf16.mxu1 %v640_v6  ;;  %v585_v6 = vld [vmem:[%s3899_s0 + $0xf0] sm:$0xff] }
  0xc2   : > { %v633_v9 = vpack.c.bf16 %v585_v6, %v581_v5 }
  0xc3   : > { %1551 = vmatpush1.bf16.msra.mxu0 %v2918_v7  ;;  %1777 = vmatpush1.bf16.msra.mxu1 %v2921_v8  ;;  %v590_v7 = vld [vmem:[%s3899_s0 + $0x118] sm:$0xff] }
  0xc4   : > { %1552 = vmatprep.subr.bf16.mxu0 %v2926_v11  ;;  %1778 = vmatprep.subr.bf16.mxu1 %v2929_v12  ;;  %v594_v8 = vld [vmem:[%s3899_s0 + $0x138] sm:$0xff]  ;;  %v589_v11 = vld [vmem:[%s3899_s0 + $0x110] sm:$0xff] }
  0xc5   : > { %v638_v10 = vpack.c.bf16 %v594_v8, %v590_v7  ;;  %v593_v12 = vld [vmem:[%s3899_s0 + $0x130] sm:$0xff] }
  0xc6   : > { %1502 = vmatmul.mubr.bf16.gmra.mrb[20].mxu0 %v639_v13  ;;  %1728 = vmatmul.mubr.bf16.gmra.mrb[20].mxu1 %v639_v13  ;;  %v598_v13 = vld [vmem:[%s3899_s0 + $0x158] sm:$0xff]  ;;  %v637_v15 = vpack.c.bf16 %v593_v12, %v589_v11 }
  0xc7   : > { %1553 = vmatpush1.bf16.msra.mxu0 %v2924_v16  ;;  %1779 = vmatpush1.bf16.msra.mxu1 %v2927_v17  ;;  %v642_v16 = vpack.c.bf16 %v602_v14, %v598_v13  ;;  %v597_v17 = vld [vmem:[%s3899_s0 + $0x150] sm:$0xff] }
  0xc8   : > { %1554 = vmatprep.subr.bf16.mxu0 %v2932_v18  ;;  %1780 = vmatprep.subr.bf16.mxu1 %v2935_v19  ;;  %v601_v18 = vld [vmem:[%s3899_s0 + $0x170] sm:$0xff]  ;;  %v606_v19 = vld [vmem:[%s3899_s0 + $0x198] sm:$0xff] }
  0xc9   : > { %1511 = vmatprep.mubr.bf16.mxu0 %v644_v20  ;;  %1737 = vmatprep.mubr.bf16.mxu1 %v644_v20  ;;  %v610_v20 = vld [vmem:[%s3899_s0 + $0x1b8] sm:$0xff] }
  0xcb   : > { %1555 = vmatpush1.bf16.msra.mxu0 %v2930_v21  ;;  %1781 = vmatpush1.bf16.msra.mxu1 %v2933_v22  ;;  %v641_v21 = vpack.c.bf16 %v601_v18, %v597_v17  ;;  %v646_v22 = vpack.c.bf16 %v610_v20, %v606_v19 }
  0xcc   : > { %1556 = vmatprep.subr.bf16.mxu0 %v2938_v25  ;;  %1782 = vmatprep.subr.bf16.mxu1 %v2941_v26  ;;  %v614_v25 = vld [vmem:[%s3899_s0 + $0x1d8] sm:$0xff] }
  0xcd   : > { %v618_v26 = vld [vmem:[%s3899_s0 + $0x1f8] sm:$0xff] }
  0xce   : > { %1512 = vmatmul.mubr.bf16.gmra.mrb[24].mxu0 %v643_v27  ;;  %1738 = vmatmul.mubr.bf16.gmra.mrb[24].mxu1 %v643_v27  ;;  %v645_v27 = vpack.c.bf16 %v609_v24, %v605_v23  ;;  %v650_v28 = vpack.c.bf16 %v618_v26, %v614_v25 }
  0xcf   : > { %1557 = vmatpush1.bf16.msra.mxu0 %v2936_v30  ;;  %1783 = vmatpush1.bf16.msra.mxu1 %v2939_v31  ;;  %v617_v30 = vld [vmem:[%s3899_s0 + $0x1f0] sm:$0xff] }
  0xd0   : > { %1558 = vmatprep.subr.bf16.mxu0 %v2944_v32  ;;  %1784 = vmatprep.subr.bf16.mxu1 %v2947_v33  ;;  %v649_v31 = vpack.c.bf16 %v617_v30, %v613_v29 }
  0xd1   : > { %1521 = vmatprep.mubr.bf16.mxu0 %v648_v34  ;;  %1747 = vmatprep.mubr.bf16.mxu1 %v648_v34 }
  0xd3   : > { %1559 = vmatpush1.bf16.msra.mxu0 %v2942_v35  ;;  %1785 = vmatpush1.bf16.msra.mxu1 %v2945_v36 }
  0xd4   : > { %1560 = vmatprep.subr.bf16.mxu0 %v2950_v39  ;;  %1786 = vmatprep.subr.bf16.mxu1 %v2953_v40 }
  0xd6   : > { %1522 = vmatmul.mubr.bf16.gmra.mrb[28].mxu0 %v647_v41  ;;  %1748 = vmatmul.mubr.bf16.gmra.mrb[28].mxu1 %v647_v41 }
  0xd7   : > { %1561 = vmatpush1.bf16.msra.mxu0 %v2948_v44  ;;  %1787 = vmatpush1.bf16.msra.mxu1 %v2951_v45 }
  0xd8   : > { %1562 = vmatprep.subr.bf16.mxu0 %v2956_v46  ;;  %1788 = vmatprep.subr.bf16.mxu1 %v2959_v47 }
  0xd9   : > { %1564 = vmatprep.mubr.bf16.mxu0 %v622_v48  ;;  %1790 = vmatprep.mubr.bf16.mxu1 %v622_v48 }
  0xdb   : > { %1563 = vmatpush1.bf16.msra.mxu0 %v2954_v49  ;;  %1789 = vmatpush1.bf16.msra.mxu1 %v2957_v50 }
  0xde   : > { %1565 = vmatmul.mubr.bf16.vlgmr.msra.gmra.mrb[0].mxu0 %v621_v55  ;;  %1791 = vmatmul.mubr.bf16.vlgmr.msra.gmra.mrb[0].mxu1 %v621_v55 }
  0xdf   : > { %1574 = vmatprep.mubr.bf16.mxu0 %v626_v56  ;;  %1800 = vmatprep.mubr.bf16.mxu1 %v626_v56 }
  0xe6   : > { %1575 = vmatmul.mubr.bf16.gmra.mrb[4].mxu0 %v625_v61  ;;  %1801 = vmatmul.mubr.bf16.gmra.mrb[4].mxu1 %v625_v61 }
  0xe7   : > { %1584 = vmatprep.mubr.bf16.mxu0 %v630_v62  ;;  %1810 = vmatprep.mubr.bf16.mxu1 %v630_v62 }
  0xee   : > { %1585 = vmatmul.mubr.bf16.gmra.mrb[8].mxu0 %v629_v3  ;;  %1811 = vmatmul.mubr.bf16.gmra.mrb[8].mxu1 %v629_v3 }
  0xef   : > { %1594 = vmatprep.mubr.bf16.mxu0 %v634_v4  ;;  %1820 = vmatprep.mubr.bf16.mxu1 %v634_v4 }
  0xf6   : > { %1595 = vmatmul.mubr.bf16.gmra.mrb[12].mxu0 %v633_v9  ;;  %1821 = vmatmul.mubr.bf16.gmra.mrb[12].mxu1 %v633_v9 }
  0xf7   : > { %1604 = vmatprep.mubr.bf16.mxu0 %v638_v10  ;;  %1830 = vmatprep.mubr.bf16.mxu1 %v638_v10 }
  0xfe   : > { %1605 = vmatmul.mubr.bf16.gmra.mrb[16].mxu0 %v637_v15  ;;  %1831 = vmatmul.mubr.bf16.gmra.mrb[16].mxu1 %v637_v15 }
  0xff   : > { %1614 = vmatprep.mubr.bf16.mxu0 %v642_v16  ;;  %1840 = vmatprep.mubr.bf16.mxu1 %v642_v16 }
 0x106   : > { %1615 = vmatmul.mubr.bf16.gmra.mrb[20].mxu0 %v641_v21  ;;  %1841 = vmatmul.mubr.bf16.gmra.mrb[20].mxu1 %v641_v21 }
 0x107   : > { %1624 = vmatprep.mubr.bf16.mxu0 %v646_v22  ;;  %1850 = vmatprep.mubr.bf16.mxu1 %v646_v22 }
 0x10e   : > { %1625 = vmatmul.mubr.bf16.gmra.mrb[24].mxu0 %v645_v27  ;;  %1851 = vmatmul.mubr.bf16.gmra.mrb[24].mxu1 %v645_v27 }
 0x10f   : > { %1634 = vmatprep.mubr.bf16.mxu0 %v650_v28  ;;  %1860 = vmatprep.mubr.bf16.mxu1 %v650_v28 }
 0x116   : > { %1635 = vmatmul.mubr.bf16.gmra.mrb[28].mxu0 %v649_v31  ;;  %1861 = vmatmul.mubr.bf16.gmra.mrb[28].mxu1 %v649_v31 }
 0x1b1   : > { %v1566_v32 = vpop.f32.mrb[0].mxu0  ;;  %v1792_v33 = vpop.f32.mrb[0].mxu1 }
 0x1b2   : > { %1871 = vst [vmem:[%s3662_s5] sm:$0xff] %v1566_v32  ;;  %1873 = vst [vmem:[%s3662_s5 + $0x10] sm:$0xff] %v1792_v33  ;;  %v1568_v34 = vpop.f32.mrb[1].mxu0  ;;  %v1794_v35 = vpop.f32.mrb[1].mxu1  ;;  %v2023_v36 = vmul.f32 %v1566_v32, %v1566_v32  ;;  %v2025_v37 = vmul.f32 %v1792_v33, %v1792_v33 }
 0x1b3   : > { %1872 = vst [vmem:[%s3662_s5 + $0x8] sm:$0xff] %v1568_v34  ;;  %v2024_v38 = vmul.f32 %v1568_v34, %v1568_v34  ;;  %1874 = vst [vmem:[%s3662_s5 + $0x18] sm:$0xff] %v1794_v35  ;;  %v2026_v39 = vmul.f32 %v1794_v35, %v1794_v35  ;;  %v1570_v40 = vpop.f32.mrb[2].mxu0  ;;  %v1796_v41 = vpop.f32.mrb[2].mxu1 }
 0x1b4   : > { %1875 = vst [vmem:[%s3662_s5 + $0x20] sm:$0xff] %v1570_v40  ;;  %v1935_v42 = vadd.f32 %v1570_v40, %v1566_v32  ;;  %v2027_v43 = vmul.f32 %v1570_v40, %v1570_v40  ;;  %1877 = vst [vmem:[%s3662_s5 + $0x30] sm:$0xff] %v1796_v41  ;;  %v1977_v44 = vadd.f32 %v1796_v41, %v1792_v33  ;;  %v1572_v46 = vpop.f32.mrb[3].mxu0  ;;  %v1798_v47 = vpop.f32.mrb[3].mxu1 }
 0x1b5   : > { %v2029_v45 = vmul.f32 %v1796_v41, %v1796_v41  ;;  %1876 = vst [vmem:[%s3662_s5 + $0x28] sm:$0xff] %v1572_v46  ;;  %v1956_v48 = vadd.f32 %v1572_v46, %v1568_v34  ;;  %v2028_v49 = vmul.f32 %v1572_v46, %v1572_v46  ;;  %1878 = vst [vmem:[%s3662_s5 + $0x38] sm:$0xff] %v1798_v47 }
 0x1b6   : > { %v1998_v50 = vadd.f32 %v1798_v47, %v1794_v35  ;;  %v2030_v51 = vmul.f32 %v1798_v47, %v1798_v47  ;;  %v2087_v52 = vadd.f32 %v2027_v43, %v2023_v36 }
 0x1b7   : > { %v2129_v53 = vadd.f32 %v2029_v45, %v2025_v37  ;;  %v2108_v54 = vadd.f32 %v2028_v49, %v2024_v38 }
 0x1b8   : > { %v2150_v55 = vadd.f32 %v2030_v51, %v2026_v39 }
 0x1b9   : > { %v1576_v56 = vpop.f32.mrb[4].mxu0  ;;  %v1802_v57 = vpop.f32.mrb[4].mxu1 }
 0x1ba   : > { %1879 = vst [vmem:[%s3662_s5 + $0x40] sm:$0xff] %v1576_v56  ;;  %v1936_v58 = vadd.f32 %v1935_v42, %v1576_v56  ;;  %v2031_v59 = vmul.f32 %v1576_v56, %v1576_v56  ;;  %1881 = vst [vmem:[%s3662_s5 + $0x50] sm:$0xff] %v1802_v57  ;;  %v1978_v60 = vadd.f32 %v1977_v44, %v1802_v57  ;;  %v1578_v62 = vpop.f32.mrb[5].mxu0  ;;  %v1804_v63 = vpop.f32.mrb[5].mxu1 }
 0x1bb   : > { %v2033_v61 = vmul.f32 %v1802_v57, %v1802_v57  ;;  %1880 = vst [vmem:[%s3662_s5 + $0x48] sm:$0xff] %v1578_v62  ;;  %v1957_v0 = vadd.f32 %v1956_v48, %v1578_v62  ;;  %v2032_v1 = vmul.f32 %v1578_v62, %v1578_v62  ;;  %1882 = vst [vmem:[%s3662_s5 + $0x58] sm:$0xff] %v1804_v63  ;;  %v1580_v4 = vpop.f32.mrb[6].mxu0  ;;  %v1806_v5 = vpop.f32.mrb[6].mxu1 }
 0x1bc   : > { %v1999_v2 = vadd.f32 %v1998_v50, %v1804_v63  ;;  %v2034_v3 = vmul.f32 %v1804_v63, %v1804_v63  ;;  %v2088_v6 = vadd.f32 %v2087_v52, %v2031_v59  ;;  %1883 = vst [vmem:[%s3662_s5 + $0x60] sm:$0xff] %v1580_v4  ;;  %v1937_v8 = vadd.f32 %v1936_v58, %v1580_v4  ;;  %v1582_v10 = vpop.f32.mrb[7].mxu0  ;;  %v1808_v11 = vpop.f32.mrb[7].mxu1 }
 0x1bd   : > { %v2130_v7 = vadd.f32 %v2129_v53, %v2033_v61  ;;  %v2035_v9 = vmul.f32 %v1580_v4, %v1580_v4  ;;  %1885 = vst [vmem:[%s3662_s5 + $0x70] sm:$0xff] %v1806_v5  ;;  %v2109_v12 = vadd.f32 %v2108_v54, %v2032_v1  ;;  %v1979_v14 = vadd.f32 %v1978_v60, %v1806_v5 }
 0x1be   : > { %v2151_v13 = vadd.f32 %v2150_v55, %v2034_v3  ;;  %v2037_v15 = vmul.f32 %v1806_v5, %v1806_v5  ;;  %1884 = vst [vmem:[%s3662_s5 + $0x68] sm:$0xff] %v1582_v10  ;;  %1886 = vst [vmem:[%s3662_s5 + $0x78] sm:$0xff] %v1808_v11  ;;  %v1958_v17 = vadd.f32 %v1957_v0, %v1582_v10 }
 0x1bf   : > { %v2089_v16 = vadd.f32 %v2088_v6, %v2035_v9  ;;  %v2036_v18 = vmul.f32 %v1582_v10, %v1582_v10  ;;  %v2000_v19 = vadd.f32 %v1999_v2, %v1808_v11  ;;  %v2038_v21 = vmul.f32 %v1808_v11, %v1808_v11 }
 0x1c0   : > { %v2131_v20 = vadd.f32 %v2130_v7, %v2037_v15 }
 0x1c1   : > { %v2110_v22 = vadd.f32 %v2109_v12, %v2036_v18  ;;  %v2152_v23 = vadd.f32 %v2151_v13, %v2038_v21  ;;  %v1586_v24 = vpop.f32.mrb[8].mxu0  ;;  %v1812_v25 = vpop.f32.mrb[8].mxu1 }
 0x1c2   : > { %1887 = vst [vmem:[%s3662_s5 + $0x80] sm:$0xff] %v1586_v24  ;;  %v1938_v26 = vadd.f32 %v1937_v8, %v1586_v24  ;;  %v2039_v27 = vmul.f32 %v1586_v24, %v1586_v24  ;;  %1889 = vst [vmem:[%s3662_s5 + $0x90] sm:$0xff] %v1812_v25  ;;  %v1980_v28 = vadd.f32 %v1979_v14, %v1812_v25  ;;  %v1588_v30 = vpop.f32.mrb[9].mxu0  ;;  %v1814_v31 = vpop.f32.mrb[9].mxu1 }
 0x1c3   : > { %v2041_v29 = vmul.f32 %v1812_v25, %v1812_v25  ;;  %1888 = vst [vmem:[%s3662_s5 + $0x88] sm:$0xff] %v1588_v30  ;;  %v1959_v32 = vadd.f32 %v1958_v17, %v1588_v30  ;;  %v2040_v33 = vmul.f32 %v1588_v30, %v1588_v30  ;;  %1890 = vst [vmem:[%s3662_s5 + $0x98] sm:$0xff] %v1814_v31  ;;  %v1590_v36 = vpop.f32.mrb[10].mxu0  ;;  %v1816_v37 = vpop.f32.mrb[10].mxu1 }
 0x1c4   : > { %v2001_v34 = vadd.f32 %v2000_v19, %v1814_v31  ;;  %v2042_v35 = vmul.f32 %v1814_v31, %v1814_v31  ;;  %v2090_v38 = vadd.f32 %v2089_v16, %v2039_v27  ;;  %1891 = vst [vmem:[%s3662_s5 + $0xa0] sm:$0xff] %v1590_v36  ;;  %v1939_v40 = vadd.f32 %v1938_v26, %v1590_v36  ;;  %v1592_v42 = vpop.f32.mrb[11].mxu0  ;;  %v1818_v43 = vpop.f32.mrb[11].mxu1 }
 0x1c5   : > { %v2132_v39 = vadd.f32 %v2131_v20, %v2041_v29  ;;  %v2043_v41 = vmul.f32 %v1590_v36, %v1590_v36  ;;  %1893 = vst [vmem:[%s3662_s5 + $0xb0] sm:$0xff] %v1816_v37  ;;  %v2111_v44 = vadd.f32 %v2110_v22, %v2040_v33  ;;  %v1981_v46 = vadd.f32 %v1980_v28, %v1816_v37 }
 0x1c6   : > { %v2153_v45 = vadd.f32 %v2152_v23, %v2042_v35  ;;  %v2045_v47 = vmul.f32 %v1816_v37, %v1816_v37  ;;  %1892 = vst [vmem:[%s3662_s5 + $0xa8] sm:$0xff] %v1592_v42  ;;  %1894 = vst [vmem:[%s3662_s5 + $0xb8] sm:$0xff] %v1818_v43  ;;  %v1960_v49 = vadd.f32 %v1959_v32, %v1592_v42 }
 0x1c7   : > { %v2091_v48 = vadd.f32 %v2090_v38, %v2043_v41  ;;  %v2044_v50 = vmul.f32 %v1592_v42, %v1592_v42  ;;  %v2002_v51 = vadd.f32 %v2001_v34, %v1818_v43  ;;  %v2046_v53 = vmul.f32 %v1818_v43, %v1818_v43 }
 0x1c8   : > { %v2133_v52 = vadd.f32 %v2132_v39, %v2045_v47 }
 0x1c9   : > { %v2112_v54 = vadd.f32 %v2111_v44, %v2044_v50  ;;  %v2154_v55 = vadd.f32 %v2153_v45, %v2046_v53  ;;  %v1596_v56 = vpop.f32.mrb[12].mxu0  ;;  %v1822_v57 = vpop.f32.mrb[12].mxu1 }
 0x1ca   : > { %1895 = vst [vmem:[%s3662_s5 + $0xc0] sm:$0xff] %v1596_v56  ;;  %v1940_v58 = vadd.f32 %v1939_v40, %v1596_v56  ;;  %v2047_v59 = vmul.f32 %v1596_v56, %v1596_v56  ;;  %1897 = vst [vmem:[%s3662_s5 + $0xd0] sm:$0xff] %v1822_v57  ;;  %v1982_v60 = vadd.f32 %v1981_v46, %v1822_v57  ;;  %v1598_v62 = vpop.f32.mrb[13].mxu0  ;;  %v1824_v63 = vpop.f32.mrb[13].mxu1 }
 0x1cb   : > { %v2049_v61 = vmul.f32 %v1822_v57, %v1822_v57  ;;  %1896 = vst [vmem:[%s3662_s5 + $0xc8] sm:$0xff] %v1598_v62  ;;  %v1961_v0 = vadd.f32 %v1960_v49, %v1598_v62  ;;  %v2048_v1 = vmul.f32 %v1598_v62, %v1598_v62  ;;  %1898 = vst [vmem:[%s3662_s5 + $0xd8] sm:$0xff] %v1824_v63  ;;  %v1600_v4 = vpop.f32.mrb[14].mxu0  ;;  %v1826_v5 = vpop.f32.mrb[14].mxu1 }
 0x1cc   : > { %v2003_v2 = vadd.f32 %v2002_v51, %v1824_v63  ;;  %v2050_v3 = vmul.f32 %v1824_v63, %v1824_v63  ;;  %v2092_v6 = vadd.f32 %v2091_v48, %v2047_v59  ;;  %1899 = vst [vmem:[%s3662_s5 + $0xe0] sm:$0xff] %v1600_v4  ;;  %v1941_v8 = vadd.f32 %v1940_v58, %v1600_v4  ;;  %v1602_v10 = vpop.f32.mrb[15].mxu0  ;;  %v1828_v11 = vpop.f32.mrb[15].mxu1 }
 0x1cd   : > { %v2134_v7 = vadd.f32 %v2133_v52, %v2049_v61  ;;  %v2051_v9 = vmul.f32 %v1600_v4, %v1600_v4  ;;  %1901 = vst [vmem:[%s3662_s5 + $0xf0] sm:$0xff] %v1826_v5  ;;  %v2113_v12 = vadd.f32 %v2112_v54, %v2048_v1  ;;  %v1983_v14 = vadd.f32 %v1982_v60, %v1826_v5 }
 0x1ce   : > { %v2155_v13 = vadd.f32 %v2154_v55, %v2050_v3  ;;  %v2053_v15 = vmul.f32 %v1826_v5, %v1826_v5  ;;  %1900 = vst [vmem:[%s3662_s5 + $0xe8] sm:$0xff] %v1602_v10  ;;  %1902 = vst [vmem:[%s3662_s5 + $0xf8] sm:$0xff] %v1828_v11  ;;  %v1962_v17 = vadd.f32 %v1961_v0, %v1602_v10 }
 0x1cf   : > { %v2093_v16 = vadd.f32 %v2092_v6, %v2051_v9  ;;  %v2052_v18 = vmul.f32 %v1602_v10, %v1602_v10  ;;  %v2004_v19 = vadd.f32 %v2003_v2, %v1828_v11  ;;  %v2054_v21 = vmul.f32 %v1828_v11, %v1828_v11 }
 0x1d0   : > { %v2135_v20 = vadd.f32 %v2134_v7, %v2053_v15 }
 0x1d1   : > { %v2114_v22 = vadd.f32 %v2113_v12, %v2052_v18  ;;  %v2156_v23 = vadd.f32 %v2155_v13, %v2054_v21  ;;  %v1606_v24 = vpop.f32.mrb[16].mxu0  ;;  %v1832_v25 = vpop.f32.mrb[16].mxu1 }
 0x1d2   : > { %1903 = vst [vmem:[%s3662_s5 + $0x100] sm:$0xff] %v1606_v24  ;;  %v1942_v26 = vadd.f32 %v1941_v8, %v1606_v24  ;;  %v2055_v27 = vmul.f32 %v1606_v24, %v1606_v24  ;;  %1905 = vst [vmem:[%s3662_s5 + $0x110] sm:$0xff] %v1832_v25  ;;  %v1984_v28 = vadd.f32 %v1983_v14, %v1832_v25  ;;  %v1608_v30 = vpop.f32.mrb[17].mxu0  ;;  %v1834_v31 = vpop.f32.mrb[17].mxu1 }
 0x1d3   : > { %v2057_v29 = vmul.f32 %v1832_v25, %v1832_v25  ;;  %1904 = vst [vmem:[%s3662_s5 + $0x108] sm:$0xff] %v1608_v30  ;;  %v1963_v32 = vadd.f32 %v1962_v17, %v1608_v30  ;;  %v2056_v33 = vmul.f32 %v1608_v30, %v1608_v30  ;;  %1906 = vst [vmem:[%s3662_s5 + $0x118] sm:$0xff] %v1834_v31  ;;  %v1610_v36 = vpop.f32.mrb[18].mxu0  ;;  %v1836_v37 = vpop.f32.mrb[18].mxu1 }
 0x1d4   : > { %v2005_v34 = vadd.f32 %v2004_v19, %v1834_v31  ;;  %v2058_v35 = vmul.f32 %v1834_v31, %v1834_v31  ;;  %v2094_v38 = vadd.f32 %v2093_v16, %v2055_v27  ;;  %1907 = vst [vmem:[%s3662_s5 + $0x120] sm:$0xff] %v1610_v36  ;;  %v1943_v40 = vadd.f32 %v1942_v26, %v1610_v36  ;;  %v1612_v42 = vpop.f32.mrb[19].mxu0  ;;  %v1838_v43 = vpop.f32.mrb[19].mxu1 }
 0x1d5   : > { %v2136_v39 = vadd.f32 %v2135_v20, %v2057_v29  ;;  %v2059_v41 = vmul.f32 %v1610_v36, %v1610_v36  ;;  %1909 = vst [vmem:[%s3662_s5 + $0x130] sm:$0xff] %v1836_v37  ;;  %v2115_v44 = vadd.f32 %v2114_v22, %v2056_v33  ;;  %v1985_v46 = vadd.f32 %v1984_v28, %v1836_v37 }
 0x1d6   : > { %v2157_v45 = vadd.f32 %v2156_v23, %v2058_v35  ;;  %v2061_v47 = vmul.f32 %v1836_v37, %v1836_v37  ;;  %1908 = vst [vmem:[%s3662_s5 + $0x128] sm:$0xff] %v1612_v42  ;;  %1910 = vst [vmem:[%s3662_s5 + $0x138] sm:$0xff] %v1838_v43  ;;  %v1964_v49 = vadd.f32 %v1963_v32, %v1612_v42 }
 0x1d7   : > { %v2095_v48 = vadd.f32 %v2094_v38, %v2059_v41  ;;  %v2060_v50 = vmul.f32 %v1612_v42, %v1612_v42  ;;  %v2006_v51 = vadd.f32 %v2005_v34, %v1838_v43  ;;  %v2062_v53 = vmul.f32 %v1838_v43, %v1838_v43 }
 0x1d8   : > { %v2137_v52 = vadd.f32 %v2136_v39, %v2061_v47 }
 0x1d9   : > { %v2116_v54 = vadd.f32 %v2115_v44, %v2060_v50  ;;  %v2158_v55 = vadd.f32 %v2157_v45, %v2062_v53  ;;  %v1616_v56 = vpop.f32.mrb[20].mxu0  ;;  %v1842_v57 = vpop.f32.mrb[20].mxu1 }
 0x1da   : > { %1911 = vst [vmem:[%s3662_s5 + $0x140] sm:$0xff] %v1616_v56  ;;  %v1944_v58 = vadd.f32 %v1943_v40, %v1616_v56  ;;  %v2063_v59 = vmul.f32 %v1616_v56, %v1616_v56  ;;  %1913 = vst [vmem:[%s3662_s5 + $0x150] sm:$0xff] %v1842_v57  ;;  %v1986_v60 = vadd.f32 %v1985_v46, %v1842_v57  ;;  %v1618_v62 = vpop.f32.mrb[21].mxu0  ;;  %v1844_v63 = vpop.f32.mrb[21].mxu1 }
 0x1db   : > { %v2065_v61 = vmul.f32 %v1842_v57, %v1842_v57  ;;  %1912 = vst [vmem:[%s3662_s5 + $0x148] sm:$0xff] %v1618_v62  ;;  %v1965_v0 = vadd.f32 %v1964_v49, %v1618_v62  ;;  %v2064_v1 = vmul.f32 %v1618_v62, %v1618_v62  ;;  %1914 = vst [vmem:[%s3662_s5 + $0x158] sm:$0xff] %v1844_v63  ;;  %v1620_v4 = vpop.f32.mrb[22].mxu0  ;;  %v1846_v5 = vpop.f32.mrb[22].mxu1 }
 0x1dc   : > { %v2007_v2 = vadd.f32 %v2006_v51, %v1844_v63  ;;  %v2066_v3 = vmul.f32 %v1844_v63, %v1844_v63  ;;  %v2096_v6 = vadd.f32 %v2095_v48, %v2063_v59  ;;  %1915 = vst [vmem:[%s3662_s5 + $0x160] sm:$0xff] %v1620_v4  ;;  %v1945_v8 = vadd.f32 %v1944_v58, %v1620_v4  ;;  %v1622_v10 = vpop.f32.mrb[23].mxu0  ;;  %v1848_v11 = vpop.f32.mrb[23].mxu1 }
 0x1dd   : > { %v2138_v7 = vadd.f32 %v2137_v52, %v2065_v61  ;;  %v2067_v9 = vmul.f32 %v1620_v4, %v1620_v4  ;;  %1917 = vst [vmem:[%s3662_s5 + $0x170] sm:$0xff] %v1846_v5  ;;  %v2117_v12 = vadd.f32 %v2116_v54, %v2064_v1  ;;  %v1987_v14 = vadd.f32 %v1986_v60, %v1846_v5 }
 0x1de   : > { %v2159_v13 = vadd.f32 %v2158_v55, %v2066_v3  ;;  %v2069_v15 = vmul.f32 %v1846_v5, %v1846_v5  ;;  %1916 = vst [vmem:[%s3662_s5 + $0x168] sm:$0xff] %v1622_v10  ;;  %1918 = vst [vmem:[%s3662_s5 + $0x178] sm:$0xff] %v1848_v11  ;;  %v1966_v17 = vadd.f32 %v1965_v0, %v1622_v10 }
 0x1df   : > { %v2097_v16 = vadd.f32 %v2096_v6, %v2067_v9  ;;  %v2068_v18 = vmul.f32 %v1622_v10, %v1622_v10  ;;  %v2008_v19 = vadd.f32 %v2007_v2, %v1848_v11  ;;  %v2070_v21 = vmul.f32 %v1848_v11, %v1848_v11 }
 0x1e0   : > { %v2139_v20 = vadd.f32 %v2138_v7, %v2069_v15 }
 0x1e1   : > { %v2118_v22 = vadd.f32 %v2117_v12, %v2068_v18  ;;  %v2160_v23 = vadd.f32 %v2159_v13, %v2070_v21  ;;  %v1626_v24 = vpop.f32.mrb[24].mxu0  ;;  %v1852_v25 = vpop.f32.mrb[24].mxu1 }
 0x1e2   : > { %1919 = vst [vmem:[%s3662_s5 + $0x180] sm:$0xff] %v1626_v24  ;;  %v1946_v26 = vadd.f32 %v1945_v8, %v1626_v24  ;;  %v2071_v27 = vmul.f32 %v1626_v24, %v1626_v24  ;;  %1921 = vst [vmem:[%s3662_s5 + $0x190] sm:$0xff] %v1852_v25  ;;  %v1988_v28 = vadd.f32 %v1987_v14, %v1852_v25  ;;  %v1628_v30 = vpop.f32.mrb[25].mxu0  ;;  %v1854_v31 = vpop.f32.mrb[25].mxu1 }
 0x1e3   : > { %v2073_v29 = vmul.f32 %v1852_v25, %v1852_v25  ;;  %1920 = vst [vmem:[%s3662_s5 + $0x188] sm:$0xff] %v1628_v30  ;;  %v1967_v32 = vadd.f32 %v1966_v17, %v1628_v30  ;;  %v2072_v33 = vmul.f32 %v1628_v30, %v1628_v30  ;;  %1922 = vst [vmem:[%s3662_s5 + $0x198] sm:$0xff] %v1854_v31  ;;  %v1630_v36 = vpop.f32.mrb[26].mxu0  ;;  %v1856_v37 = vpop.f32.mrb[26].mxu1 }
 0x1e4   : > { %v2009_v34 = vadd.f32 %v2008_v19, %v1854_v31  ;;  %v2074_v35 = vmul.f32 %v1854_v31, %v1854_v31  ;;  %v2098_v38 = vadd.f32 %v2097_v16, %v2071_v27  ;;  %1923 = vst [vmem:[%s3662_s5 + $0x1a0] sm:$0xff] %v1630_v36  ;;  %v1947_v40 = vadd.f32 %v1946_v26, %v1630_v36  ;;  %v1632_v42 = vpop.f32.mrb[27].mxu0  ;;  %v1858_v43 = vpop.f32.mrb[27].mxu1 }
 0x1e5   : > { %v2140_v39 = vadd.f32 %v2139_v20, %v2073_v29  ;;  %v2075_v41 = vmul.f32 %v1630_v36, %v1630_v36  ;;  %1925 = vst [vmem:[%s3662_s5 + $0x1b0] sm:$0xff] %v1856_v37  ;;  %v2119_v44 = vadd.f32 %v2118_v22, %v2072_v33  ;;  %v1989_v46 = vadd.f32 %v1988_v28, %v1856_v37 }
 0x1e6   : > { %v2161_v45 = vadd.f32 %v2160_v23, %v2074_v35  ;;  %v2077_v47 = vmul.f32 %v1856_v37, %v1856_v37  ;;  %1924 = vst [vmem:[%s3662_s5 + $0x1a8] sm:$0xff] %v1632_v42  ;;  %1926 = vst [vmem:[%s3662_s5 + $0x1b8] sm:$0xff] %v1858_v43  ;;  %v1968_v49 = vadd.f32 %v1967_v32, %v1632_v42 }
 0x1e7   : > { %v2099_v48 = vadd.f32 %v2098_v38, %v2075_v41  ;;  %v2076_v50 = vmul.f32 %v1632_v42, %v1632_v42  ;;  %v2010_v51 = vadd.f32 %v2009_v34, %v1858_v43  ;;  %v2078_v53 = vmul.f32 %v1858_v43, %v1858_v43 }
 0x1e8   : > { %v2141_v52 = vadd.f32 %v2140_v39, %v2077_v47 }
 0x1e9   : > { %v2120_v54 = vadd.f32 %v2119_v44, %v2076_v50  ;;  %v2162_v55 = vadd.f32 %v2161_v45, %v2078_v53  ;;  %v1636_v56 = vpop.f32.mrb[28].mxu0  ;;  %v1862_v57 = vpop.f32.mrb[28].mxu1 }
 0x1ea   : > { %1927 = vst [vmem:[%s3662_s5 + $0x1c0] sm:$0xff] %v1636_v56  ;;  %v1948_v58 = vadd.f32 %v1947_v40, %v1636_v56  ;;  %v2079_v59 = vmul.f32 %v1636_v56, %v1636_v56  ;;  %1929 = vst [vmem:[%s3662_s5 + $0x1d0] sm:$0xff] %v1862_v57  ;;  %v1990_v60 = vadd.f32 %v1989_v46, %v1862_v57  ;;  %v1638_v62 = vpop.f32.mrb[29].mxu0  ;;  %v1864_v63 = vpop.f32.mrb[29].mxu1 }
 0x1eb   : > { %v2081_v61 = vmul.f32 %v1862_v57, %v1862_v57  ;;  %1928 = vst [vmem:[%s3662_s5 + $0x1c8] sm:$0xff] %v1638_v62  ;;  %v1969_v0 = vadd.f32 %v1968_v49, %v1638_v62  ;;  %v2080_v1 = vmul.f32 %v1638_v62, %v1638_v62  ;;  %1930 = vst [vmem:[%s3662_s5 + $0x1d8] sm:$0xff] %v1864_v63  ;;  %v1640_v4 = vpop.f32.mrb[30].mxu0  ;;  %v1866_v5 = vpop.f32.mrb[30].mxu1 }
 0x1ec   : > { %v2011_v2 = vadd.f32 %v2010_v51, %v1864_v63  ;;  %v2082_v3 = vmul.f32 %v1864_v63, %v1864_v63  ;;  %v2100_v6 = vadd.f32 %v2099_v48, %v2079_v59  ;;  %1931 = vst [vmem:[%s3662_s5 + $0x1e0] sm:$0xff] %v1640_v4  ;;  %v1949_v8 = vadd.f32 %v1948_v58, %v1640_v4  ;;  %v1642_v10 = vpop.f32.mrb[31].mxu0  ;;  %v1868_v11 = vpop.f32.mrb[31].mxu1 }
 0x1ed   : > { %v2142_v7 = vadd.f32 %v2141_v52, %v2081_v61  ;;  %v2083_v9 = vmul.f32 %v1640_v4, %v1640_v4  ;;  %1933 = vst [vmem:[%s3662_s5 + $0x1f0] sm:$0xff] %v1866_v5  ;;  %v2121_v12 = vadd.f32 %v2120_v54, %v2080_v1  ;;  %v1991_v14 = vadd.f32 %v1990_v60, %v1866_v5 }
 0x1ee   : > { %v2163_v13 = vadd.f32 %v2162_v55, %v2082_v3  ;;  %v2085_v15 = vmul.f32 %v1866_v5, %v1866_v5  ;;  %1932 = vst [vmem:[%s3662_s5 + $0x1e8] sm:$0xff] %v1642_v10  ;;  %1934 = vst [vmem:[%s3662_s5 + $0x1f8] sm:$0xff] %v1868_v11  ;;  %v1950_v16 = vrot.slane %v1949_v8, 4  ;;  %v1970_v18 = vadd.f32 %v1969_v0, %v1642_v10 }
 0x1ef   : > { %v2101_v17 = vadd.f32 %v2100_v6, %v2083_v9  ;;  %v2084_v19 = vmul.f32 %v1642_v10, %v1642_v10  ;;  %v1992_v20 = vrot.slane %v1991_v14, 4  ;;  %v2012_v22 = vadd.f32 %v2011_v2, %v1868_v11  ;;  %v2220_v9 = vld [vmem:[%s3662_s5 + $0x8] sm:$0xff] (%p3060_p6)  ;;  %v2222_v10 = vld [vmem:[%s3662_s5 + $0x10] sm:$0xff] (%p3060_p6) }
 0x1f0   : > { %v2143_v21 = vadd.f32 %v2142_v7, %v2085_v15  ;;  %v2086_v23 = vmul.f32 %v1868_v11, %v1868_v11  ;;  %v1951_v24 = vadd.f32 %v1950_v16, %v1949_v8  ;;  %v1971_v26 = vrot.slane %v1970_v18, 4  ;;  %v2218_v8 = vld [vmem:[%s3662_s5] sm:$0xff] (%p3060_p6)  ;;  %v2224_v11 = vld [vmem:[%s3662_s5 + $0x18] sm:$0xff] (%p3060_p6)  ;;  %2221 = vst [vmem:[%s3757_s26 + $0x8] sm:$0xff] (%p3060_p6), %v2220_v9  ;;  %2223 = vst [vmem:[%s3757_s26 + $0x10] sm:$0xff] (%p3060_p6), %v2222_v10 }
 0x1f1   : > { %v2102_v25 = vrot.slane %v2101_v17, 4  ;;  %v2122_v27 = vadd.f32 %v2121_v12, %v2084_v19  ;;  %v1993_v28 = vadd.f32 %v1992_v20, %v1991_v14  ;;  %v2013_v30 = vrot.slane %v2012_v22, 4  ;;  %v2226_v12 = vld [vmem:[%s3662_s5 + $0x20] sm:$0xff] (%p3060_p6)  ;;  %2219 = vst [vmem:[%s3757_s26] sm:$0xff] (%p3060_p6), %v2218_v8  ;;  %2225 = vst [vmem:[%s3757_s26 + $0x18] sm:$0xff] (%p3060_p6), %v2224_v11  ;;  %v2230_v14 = vld [vmem:[%s3662_s5 + $0x30] sm:$0xff] (%p3060_p6) }
 0x1f2   : > { %v2144_v29 = vrot.slane %v2143_v21, 4  ;;  %v2164_v31 = vadd.f32 %v2163_v13, %v2086_v23  ;;  %v1952_v32 = vrot.slane %v1951_v24, 2  ;;  %v1972_v34 = vadd.f32 %v1971_v26, %v1970_v18  ;;  %v2228_v13 = vld [vmem:[%s3662_s5 + $0x28] sm:$0xff] (%p3060_p6)  ;;  %2227 = vst [vmem:[%s3757_s26 + $0x40] sm:$0xff] (%p3060_p6), %v2226_v12  ;;  %v2232_v15 = vld [vmem:[%s3662_s5 + $0x38] sm:$0xff] (%p3060_p6)  ;;  %v2234_v16 = vld [vmem:[%s3662_s5 + $0x40] sm:$0xff] (%p3060_p6) }
 0x1f3   : > { %v2103_v33 = vadd.f32 %v2102_v25, %v2101_v17  ;;  %v2123_v35 = vrot.slane %v2122_v27, 4  ;;  %v1994_v36 = vrot.slane %v1993_v28, 2  ;;  %v2014_v38 = vadd.f32 %v2013_v30, %v2012_v22  ;;  %2229 = vst [vmem:[%s3757_s26 + $0x48] sm:$0xff] (%p3060_p6), %v2228_v13  ;;  %2231 = vst [vmem:[%s3757_s26 + $0x50] sm:$0xff] (%p3060_p6), %v2230_v14  ;;  %v2236_v17 = vld [vmem:[%s3662_s5 + $0x48] sm:$0xff] (%p3060_p6)  ;;  %v2238_v18 = vld [vmem:[%s3662_s5 + $0x50] sm:$0xff] (%p3060_p6) }
 0x1f4   : > { %v2145_v37 = vadd.f32 %v2144_v29, %v2143_v21  ;;  %v2165_v39 = vrot.slane %v2164_v31, 4  ;;  %v1953_v40 = vadd.f32 %v1952_v32, %v1951_v24  ;;  %v1973_v42 = vrot.slane %v1972_v34, 2  ;;  %2233 = vst [vmem:[%s3757_s26 + $0x58] sm:$0xff] (%p3060_p6), %v2232_v15  ;;  %2235 = vst [vmem:[%s3757_s26 + $0x80] sm:$0xff] (%p3060_p6), %v2234_v16  ;;  %v2240_v19 = vld [vmem:[%s3662_s5 + $0x58] sm:$0xff] (%p3060_p6)  ;;  %v2242_v20 = vld [vmem:[%s3662_s5 + $0x60] sm:$0xff] (%p3060_p6) }
 0x1f5   : > { %v2104_v41 = vrot.slane %v2103_v33, 2  ;;  %v2124_v43 = vadd.f32 %v2123_v35, %v2122_v27  ;;  %v1995_v44 = vadd.f32 %v1994_v36, %v1993_v28  ;;  %v2015_v46 = vrot.slane %v2014_v38, 2  ;;  %2237 = vst [vmem:[%s3757_s26 + $0x88] sm:$0xff] (%p3060_p6), %v2236_v17  ;;  %2239 = vst [vmem:[%s3757_s26 + $0x90] sm:$0xff] (%p3060_p6), %v2238_v18  ;;  %v2244_v21 = vld [vmem:[%s3662_s5 + $0x68] sm:$0xff] (%p3060_p6)  ;;  %v2246_v22 = vld [vmem:[%s3662_s5 + $0x70] sm:$0xff] (%p3060_p6) }
 0x1f6   : > { %v2146_v45 = vrot.slane %v2145_v37, 2  ;;  %v2166_v47 = vadd.f32 %v2165_v39, %v2164_v31  ;;  %v1954_v48 = vrot.slane %v1953_v40, 1  ;;  %v1974_v50 = vadd.f32 %v1973_v42, %v1972_v34  ;;  %2241 = vst [vmem:[%s3757_s26 + $0x98] sm:$0xff] (%p3060_p6), %v2240_v19  ;;  %2243 = vst [vmem:[%s3757_s26 + $0xc0] sm:$0xff] (%p3060_p6), %v2242_v20  ;;  %v2248_v23 = vld [vmem:[%s3662_s5 + $0x78] sm:$0xff] (%p3060_p6)  ;;  %v2250_v24 = vld [vmem:[%s3662_s5 + $0x80] sm:$0xff] (%p3060_p6) }
 0x1f7   : > { %v2105_v49 = vadd.f32 %v2104_v41, %v2103_v33  ;;  %v2125_v51 = vrot.slane %v2124_v43, 2  ;;  %v1996_v52 = vrot.slane %v1995_v44, 1  ;;  %v2016_v54 = vadd.f32 %v2015_v46, %v2014_v38  ;;  %2245 = vst [vmem:[%s3757_s26 + $0xc8] sm:$0xff] (%p3060_p6), %v2244_v21  ;;  %2247 = vst [vmem:[%s3757_s26 + $0xd0] sm:$0xff] (%p3060_p6), %v2246_v22  ;;  %v2252_v25 = vld [vmem:[%s3662_s5 + $0x88] sm:$0xff] (%p3060_p6)  ;;  %v2254_v26 = vld [vmem:[%s3662_s5 + $0x90] sm:$0xff] (%p3060_p6) }
 0x1f8   : > { %v2147_v53 = vadd.f32 %v2146_v45, %v2145_v37  ;;  %v2167_v55 = vrot.slane %v2166_v47, 2  ;;  %v1955_v56 = vadd.f32 %v1954_v48, %v1953_v40  ;;  %v1975_v58 = vrot.slane %v1974_v50, 1  ;;  %2249 = vst [vmem:[%s3757_s26 + $0xd8] sm:$0xff] (%p3060_p6), %v2248_v23  ;;  %2251 = vst [vmem:[%s3757_s26 + $0x100] sm:$0xff] (%p3060_p6), %v2250_v24  ;;  %v2256_v27 = vld [vmem:[%s3662_s5 + $0x98] sm:$0xff] (%p3060_p6)  ;;  %v2258_v28 = vld [vmem:[%s3662_s5 + $0xa0] sm:$0xff] (%p3060_p6) }
 0x1f9   : > { %v2106_v57 = vrot.slane %v2105_v49, 1  ;;  %v2126_v59 = vadd.f32 %v2125_v51, %v2124_v43  ;;  %v2017_v61 = vrot.slane %v2016_v54, 1  ;;  %v1997_v2 = vadd.f32 %v1996_v52, %v1995_v44  ;;  %2253 = vst [vmem:[%s3757_s26 + $0x108] sm:$0xff] (%p3060_p6), %v2252_v25  ;;  %2255 = vst [vmem:[%s3757_s26 + $0x110] sm:$0xff] (%p3060_p6), %v2254_v26  ;;  %v2260_v29 = vld [vmem:[%s3662_s5 + $0xa8] sm:$0xff] (%p3060_p6)  ;;  %v2262_v30 = vld [vmem:[%s3662_s5 + $0xb0] sm:$0xff] (%p3060_p6) }
 0x1fa   : > { %v2148_v60 = vrot.slane %v2147_v53, 1  ;;  %v2168_v62 = vadd.f32 %v2167_v55, %v2166_v47  ;;  %2019 = vst [vmem:[%s543_s10] sm:$0xff] %v1955_v56  ;;  %v1976_v0 = vadd.f32 %v1975_v58, %v1974_v50  ;;  %2199 = sbr.rel (!%p3060_p6) target bundleno = 533 (0x215), region = 55  ;;  %2257 = vst [vmem:[%s3757_s26 + $0x118] sm:$0xff] (%p3060_p6), %v2256_v27  ;;  %v2264_v31 = vld [vmem:[%s3662_s5 + $0xb8] sm:$0xff] (%p3060_p6)  ;;  %v2266_v32 = vld [vmem:[%s3662_s5 + $0xc0] sm:$0xff] (%p3060_p6) }
 0x1fb   : > { %v2107_v63 = vadd.f32 %v2106_v57, %v2105_v49  ;;  %v2127_v1 = vrot.slane %v2126_v59, 1  ;;  %v2018_v5 = vadd.f32 %v2017_v61, %v2016_v54  ;;  %2021 = vst [vmem:[%s543_s10 + $0x10] sm:$0xff] %v1997_v2  ;;  %2259 = vst [vmem:[%s3757_s26 + $0x140] sm:$0xff] (%p3060_p6), %v2258_v28  ;;  %v2268_v33 = vld [vmem:[%s3662_s5 + $0xc8] sm:$0xff] (%p3060_p6)  ;;  %v2270_v34 = vld [vmem:[%s3662_s5 + $0xd0] sm:$0xff] (%p3060_p6) }
 0x1fc   : > { %v2169_v3 = vrot.slane %v2168_v62, 1  ;;  %2020 = vst [vmem:[%s543_s10 + $0x8] sm:$0xff] %v1976_v0  ;;  %v2149_v6 = vadd.f32 %v2148_v60, %v2147_v53  ;;  %2261 = vst [vmem:[%s3757_s26 + $0x148] sm:$0xff] (%p3060_p6), %v2260_v29  ;;  %v2272_v35 = vld [vmem:[%s3662_s5 + $0xd8] sm:$0xff] (%p3060_p6)  ;;  %v2274_v36 = vld [vmem:[%s3662_s5 + $0xe0] sm:$0xff] (%p3060_p6) }
 0x1fd   : > { %2171 = vst [vmem:[%s553_s14] sm:$0xff] %v2107_v63  ;;  %v2128_v4 = vadd.f32 %v2127_v1, %v2126_v59  ;;  %2022 = vst [vmem:[%s543_s10 + $0x18] sm:$0xff] %v2018_v5  ;;  %v2276_v37 = vld [vmem:[%s3662_s5 + $0xe8] sm:$0xff] (%p3060_p6)  ;;  %v2278_v38 = vld [vmem:[%s3662_s5 + $0xf0] sm:$0xff] (%p3060_p6) }
 0x1fe   : > { %v2170_v7 = vadd.f32 %v2169_v3, %v2168_v62  ;;  %2173 = vst [vmem:[%s553_s14 + $0x10] sm:$0xff] %v2149_v6  ;;  %2263 = vst [vmem:[%s3757_s26 + $0x150] sm:$0xff] (%p3060_p6), %v2262_v30  ;;  %v2280_v39 = vld [vmem:[%s3662_s5 + $0xf8] sm:$0xff] (%p3060_p6)  ;;  %v2282_v40 = vld [vmem:[%s3662_s5 + $0x100] sm:$0xff] (%p3060_p6) }
 0x1ff   : > { %2172 = vst [vmem:[%s553_s14 + $0x8] sm:$0xff] %v2128_v4  ;;  %2265 = vst [vmem:[%s3757_s26 + $0x158] sm:$0xff] (%p3060_p6), %v2264_v31  ;;  %v2284_v41 = vld [vmem:[%s3662_s5 + $0x108] sm:$0xff] (%p3060_p6)  ;;  %v2286_v42 = vld [vmem:[%s3662_s5 + $0x110] sm:$0xff] (%p3060_p6) }
 0x200   : > { %2174 = vst [vmem:[%s553_s14 + $0x18] sm:$0xff] %v2170_v7  ;;  %2267 = vst [vmem:[%s3757_s26 + $0x180] sm:$0xff] (%p3060_p6), %v2266_v32  ;;  %v2288_v43 = vld [vmem:[%s3662_s5 + $0x118] sm:$0xff] (%p3060_p6)  ;;  %v2290_v44 = vld [vmem:[%s3662_s5 + $0x120] sm:$0xff] (%p3060_p6) }
 0x201   : > { %2269 = vst [vmem:[%s3757_s26 + $0x188] sm:$0xff] %v2268_v33  ;;  %2271 = vst [vmem:[%s3757_s26 + $0x190] sm:$0xff] %v2270_v34  ;;  %v2292_v45 = vld [vmem:[%s3662_s5 + $0x128] sm:$0xff]  ;;  %v2294_v46 = vld [vmem:[%s3662_s5 + $0x130] sm:$0xff] }
 0x202   : > { %2273 = vst [vmem:[%s3757_s26 + $0x198] sm:$0xff] %v2272_v35  ;;  %2275 = vst [vmem:[%s3757_s26 + $0x1c0] sm:$0xff] %v2274_v36  ;;  %v2296_v47 = vld [vmem:[%s3662_s5 + $0x138] sm:$0xff]  ;;  %v2298_v48 = vld [vmem:[%s3662_s5 + $0x140] sm:$0xff] }
 0x203   : > { %2277 = vst [vmem:[%s3757_s26 + $0x1c8] sm:$0xff] %v2276_v37  ;;  %2279 = vst [vmem:[%s3757_s26 + $0x1d0] sm:$0xff] %v2278_v38  ;;  %v2300_v49 = vld [vmem:[%s3662_s5 + $0x148] sm:$0xff]  ;;  %v2302_v50 = vld [vmem:[%s3662_s5 + $0x150] sm:$0xff] }
 0x204   : > { %2281 = vst [vmem:[%s3757_s26 + $0x1d8] sm:$0xff] %v2280_v39  ;;  %2283 = vst [vmem:[%s3757_s26 + $0x200] sm:$0xff] %v2282_v40  ;;  %v2304_v51 = vld [vmem:[%s3662_s5 + $0x158] sm:$0xff]  ;;  %v2306_v52 = vld [vmem:[%s3662_s5 + $0x160] sm:$0xff] }
 0x205   : > { %2285 = vst [vmem:[%s3757_s26 + $0x208] sm:$0xff] %v2284_v41  ;;  %2287 = vst [vmem:[%s3757_s26 + $0x210] sm:$0xff] %v2286_v42  ;;  %v2308_v53 = vld [vmem:[%s3662_s5 + $0x168] sm:$0xff]  ;;  %v2310_v54 = vld [vmem:[%s3662_s5 + $0x170] sm:$0xff] }
 0x206   : > { %2289 = vst [vmem:[%s3757_s26 + $0x218] sm:$0xff] %v2288_v43  ;;  %2291 = vst [vmem:[%s3757_s26 + $0x240] sm:$0xff] %v2290_v44  ;;  %v2312_v55 = vld [vmem:[%s3662_s5 + $0x178] sm:$0xff]  ;;  %v2314_v56 = vld [vmem:[%s3662_s5 + $0x180] sm:$0xff] }
 0x207   : > { %2293 = vst [vmem:[%s3757_s26 + $0x248] sm:$0xff] %v2292_v45  ;;  %2295 = vst [vmem:[%s3757_s26 + $0x250] sm:$0xff] %v2294_v46  ;;  %v2316_v57 = vld [vmem:[%s3662_s5 + $0x188] sm:$0xff]  ;;  %v2318_v58 = vld [vmem:[%s3662_s5 + $0x190] sm:$0xff] }
 0x208   : > { %2297 = vst [vmem:[%s3757_s26 + $0x258] sm:$0xff] %v2296_v47  ;;  %2299 = vst [vmem:[%s3757_s26 + $0x280] sm:$0xff] %v2298_v48  ;;  %v2320_v59 = vld [vmem:[%s3662_s5 + $0x198] sm:$0xff]  ;;  %v2322_v60 = vld [vmem:[%s3662_s5 + $0x1a0] sm:$0xff] }
 0x209   : > { %2301 = vst [vmem:[%s3757_s26 + $0x288] sm:$0xff] %v2300_v49  ;;  %2303 = vst [vmem:[%s3757_s26 + $0x290] sm:$0xff] %v2302_v50  ;;  %v2324_v61 = vld [vmem:[%s3662_s5 + $0x1a8] sm:$0xff]  ;;  %v2326_v62 = vld [vmem:[%s3662_s5 + $0x1b0] sm:$0xff] }
 0x20a   : > { %2305 = vst [vmem:[%s3757_s26 + $0x298] sm:$0xff] %v2304_v51  ;;  %2307 = vst [vmem:[%s3757_s26 + $0x2c0] sm:$0xff] %v2306_v52  ;;  %v2328_v63 = vld [vmem:[%s3662_s5 + $0x1b8] sm:$0xff]  ;;  %v2330_v0 = vld [vmem:[%s3662_s5 + $0x1c0] sm:$0xff] }
 0x20b   : > { %2309 = vst [vmem:[%s3757_s26 + $0x2c8] sm:$0xff] %v2308_v53  ;;  %2311 = vst [vmem:[%s3757_s26 + $0x2d0] sm:$0xff] %v2310_v54  ;;  %v2332_v1 = vld [vmem:[%s3662_s5 + $0x1c8] sm:$0xff]  ;;  %v2334_v2 = vld [vmem:[%s3662_s5 + $0x1d0] sm:$0xff] }
 0x20c   : > { %2313 = vst [vmem:[%s3757_s26 + $0x2d8] sm:$0xff] %v2312_v55  ;;  %2315 = vst [vmem:[%s3757_s26 + $0x300] sm:$0xff] %v2314_v56  ;;  %v2336_v3 = vld [vmem:[%s3662_s5 + $0x1d8] sm:$0xff]  ;;  %v2338_v4 = vld [vmem:[%s3662_s5 + $0x1e0] sm:$0xff] }
 0x20d   : > { %2317 = vst [vmem:[%s3757_s26 + $0x308] sm:$0xff] %v2316_v57  ;;  %2319 = vst [vmem:[%s3757_s26 + $0x310] sm:$0xff] %v2318_v58  ;;  %v2340_v5 = vld [vmem:[%s3662_s5 + $0x1e8] sm:$0xff]  ;;  %v2342_v6 = vld [vmem:[%s3662_s5 + $0x1f0] sm:$0xff] }
 0x20e   : > { %2321 = vst [vmem:[%s3757_s26 + $0x318] sm:$0xff] %v2320_v59  ;;  %2323 = vst [vmem:[%s3757_s26 + $0x340] sm:$0xff] %v2322_v60  ;;  %v2344_v7 = vld [vmem:[%s3662_s5 + $0x1f8] sm:$0xff] }
 0x20f   : > { %2325 = vst [vmem:[%s3757_s26 + $0x348] sm:$0xff] %v2324_v61  ;;  %2327 = vst [vmem:[%s3757_s26 + $0x350] sm:$0xff] %v2326_v62 }
 0x210   : > { %2329 = vst [vmem:[%s3757_s26 + $0x358] sm:$0xff] %v2328_v63  ;;  %2331 = vst [vmem:[%s3757_s26 + $0x380] sm:$0xff] %v2330_v0 }
 0x211   : > { %2333 = vst [vmem:[%s3757_s26 + $0x388] sm:$0xff] %v2332_v1  ;;  %2335 = vst [vmem:[%s3757_s26 + $0x390] sm:$0xff] %v2334_v2 }
 0x212   : > { %2337 = vst [vmem:[%s3757_s26 + $0x398] sm:$0xff] %v2336_v3  ;;  %2339 = vst [vmem:[%s3757_s26 + $0x3c0] sm:$0xff] %v2338_v4 }
 0x213   : > { %2341 = vst [vmem:[%s3757_s26 + $0x3c8] sm:$0xff] %v2340_v5  ;;  %2343 = vst [vmem:[%s3757_s26 + $0x3d0] sm:$0xff] %v2342_v6 }
 0x214   : > { %2345 = vst [vmem:[%s3757_s26 + $0x3d8] sm:$0xff] %v2344_v7 }
 0x215 PF: > { %s15_s19 = sadd.s32 1, %s2998_s19   ;;  %s3906_s15 = smov %s2986_s16 }
 0x216   : > { %p12_p12 = scmp.ge.s32.totalorder %s15_s19, 4   ;;  %s3907_s16 = smov %s3065_s25 }
 0x217   : > { %s3908_s17 = smov %s2994_s18  ;;  %s3909_s18 = smov %s3911_s20 }
 0x218   :  { %14 = sbr.rel (!%p12_p12) target bundleno = 3 (0x3), region = 136 }

// kernel: advection_core.62
= control target key start
LH: loop header
LB: loop body
LE: loop exit
PB: predicated region body
PF: predicated region fallthrough
CT: control target
= control target key end

     0   :  { %v144_v0 = vlaneseq  ;;  %s1824_s1 = inlined_call_operand.vmem [shape: f32[1,1024], index: 1, kind: input, shape index: {}]   ;;  %s1825_s2 = inlined_call_operand.vmem [shape: f32[1,1024], index: 2, kind: input, shape index: {}]   ;;  %s1826_s0 = inlined_call_operand.vmem [shape: f32[128,1024], index: 0, kind: input, shape index: {}]   ;;  %s1827_s3 = inlined_call_operand.vmem [shape: f32[128,1024], index: 3, kind: output, shape index: {}]  }
   0x1   :  { %v142_v2 = vld [vmem:[%s1824_s1] sm:$0xff]  ;;  %v15_v9 = vld [vmem:[%s1826_s0 + $0x8] sm:$0xff]  ;;  %v16_v18 = vld [vmem:[%s1826_s0 + $0x10] sm:$0xff] }
   0x2   :  { %v145_v1 = vshrl.u32 %v144_v0, 7  ;;  %v312_v3 = vld [vmem:[%s1825_s2] sm:$0xff]  ;;  %v17_v19 = vld [vmem:[%s1826_s0 + $0x18] sm:$0xff]  ;;  %v19_v29 = vld [vmem:[%s1826_s0 + $0x28] sm:$0xff] }
   0x3   :  { %v14_v8 = vld [vmem:[%s1826_s0] sm:$0xff]  ;;  %v20_v34 = vld [vmem:[%s1826_s0 + $0x30] sm:$0xff]  ;;  %v21_v48 = vld [vmem:[%s1826_s0 + $0x38] sm:$0xff] }
   0x4   :  { %v146_v4 = vsub.s32 0, %v145_v1  ;;  %v150_v5 = vsub.s32 1, %v145_v1  ;;  %v154_v6 = vsub.s32 2, %v145_v1  ;;  %v158_v7 = vsub.s32 3, %v145_v1  ;;  %v18_v24 = vld [vmem:[%s1826_s0 + $0x20] sm:$0xff]  ;;  %v23_v49 = vld [vmem:[%s1826_s0 + $0x48] sm:$0xff] }
   0x5   :  { %v162_v10 = vsub.s32 4, %v145_v1  ;;  %v166_v11 = vsub.s32 5, %v145_v1  ;;  %v170_v12 = vsub.s32 6, %v145_v1  ;;  %v174_v13 = vsub.s32 7, %v145_v1  ;;  %v22_v43 = vld [vmem:[%s1826_s0 + $0x40] sm:$0xff]  ;;  %v24_v50 = vld [vmem:[%s1826_s0 + $0x50] sm:$0xff] }
   0x6   :  { %v774_v14 = vrot.slane %v142_v2, %v146_v4  ;;  %v776_v15 = vrot.slane %v312_v3, %v146_v4  ;;  %v778_v16 = vrot.slane %v142_v2, %v150_v5  ;;  %v780_v17 = vrot.slane %v312_v3, %v150_v5  ;;  %v25_v55 = vld [vmem:[%s1826_s0 + $0x58] sm:$0xff]  ;;  %v26_v56 = vld [vmem:[%s1826_s0 + $0x60] sm:$0xff]  ;;  %v27_v61 = vld [vmem:[%s1826_s0 + $0x68] sm:$0xff] }
   0x7   :  { %v788_v20 = vrot.slane %v142_v2, %v154_v6  ;;  %v790_v21 = vrot.slane %v312_v3, %v154_v6  ;;  %v792_v22 = vrot.slane %v142_v2, %v158_v7  ;;  %v794_v23 = vrot.slane %v312_v3, %v158_v7 }
   0x8   :  { %v184_v25 = vmul.f32 %v774_v14, %v14_v8  ;;  %v185_v26 = vmul.f32 %v778_v16, %v15_v9  ;;  %v801_v27 = vrot.slane %v142_v2, %v162_v10  ;;  %v803_v28 = vrot.slane %v312_v3, %v162_v10 }
   0x9   :  { %v186_v30 = vmul.f32 %v788_v20, %v16_v18  ;;  %v187_v31 = vmul.f32 %v792_v22, %v17_v19  ;;  %v810_v32 = vrot.slane %v142_v2, %v166_v11  ;;  %v812_v33 = vrot.slane %v312_v3, %v166_v11  ;;  %v29_v11 = vld [vmem:[%s1826_s0 + $0x78] sm:$0xff] }
   0xa   :  { %v354_v35 = vadd.f32 %v776_v15, %v184_v25  ;;  %v355_v36 = vadd.f32 %v780_v17, %v185_v26  ;;  %v188_v37 = vmul.f32 %v801_v27, %v18_v24  ;;  %v820_v38 = vrot.slane %v142_v2, %v170_v12  ;;  %v30_v24 = vld [vmem:[%s1826_s0 + $0x80] sm:$0xff]  ;;  %v31_v25 = vld [vmem:[%s1826_s0 + $0x88] sm:$0xff]  ;;  %v32_v26 = vld [vmem:[%s1826_s0 + $0x90] sm:$0xff] }
   0xb   :  { %v356_v39 = vadd.f32 %v790_v21, %v186_v30  ;;  %v357_v40 = vadd.f32 %v794_v23, %v187_v31  ;;  %v189_v41 = vmul.f32 %v810_v32, %v19_v29  ;;  %v825_v42 = vrot.slane %v312_v3, %v170_v12 }
   0xc   :  { %v482_v44 = vmax.f32 %v354_v35, 0.0  ;;  %v483_v45 = vmax.f32 %v355_v36, 0.0  ;;  %v358_v46 = vadd.f32 %v803_v28, %v188_v37  ;;  %v190_v47 = vmul.f32 %v820_v38, %v20_v34  ;;  %v33_v35 = vld [vmem:[%s1826_s0 + $0x98] sm:$0xff]  ;;  %v34_v36 = vld [vmem:[%s1826_s0 + $0xa0] sm:$0xff] }
   0xd   :  { %v484_v51 = vmax.f32 %v356_v39, 0.0  ;;  %v485_v52 = vmax.f32 %v357_v40, 0.0  ;;  %v359_v53 = vadd.f32 %v812_v33, %v189_v41  ;;  %v842_v54 = vrot.slane %v142_v2, %v174_v13  ;;  %v28_v2 = vld [vmem:[%s1826_s0 + $0x70] sm:$0xff] }
   0xe   :  { %610 = vst [vmem:[%s1827_s3] sm:$0xff] %v482_v44  ;;  %611 = vst [vmem:[%s1827_s3 + $0x8] sm:$0xff] %v483_v45  ;;  %v486_v57 = vmax.f32 %v358_v46, 0.0  ;;  %v360_v58 = vadd.f32 %v825_v42, %v190_v47  ;;  %v857_v59 = vrot.slane %v312_v3, %v174_v13  ;;  %v192_v60 = vmul.f32 %v774_v14, %v22_v43  ;;  %v35_v43 = vld [vmem:[%s1826_s0 + $0xa8] sm:$0xff] }
   0xf   :  { %612 = vst [vmem:[%s1827_s3 + $0x10] sm:$0xff] %v484_v51  ;;  %613 = vst [vmem:[%s1827_s3 + $0x18] sm:$0xff] %v485_v52  ;;  %v487_v62 = vmax.f32 %v359_v53, 0.0  ;;  %v191_v63 = vmul.f32 %v842_v54, %v21_v48  ;;  %v193_v0 = vmul.f32 %v778_v16, %v23_v49  ;;  %v194_v1 = vmul.f32 %v788_v20, %v24_v50  ;;  %v36_v48 = vld [vmem:[%s1826_s0 + $0xb0] sm:$0xff] }
  0x10   :  { %614 = vst [vmem:[%s1827_s3 + $0x20] sm:$0xff] %v486_v57  ;;  %v488_v3 = vmax.f32 %v360_v58, 0.0  ;;  %v362_v4 = vadd.f32 %v776_v15, %v192_v60  ;;  %v195_v5 = vmul.f32 %v792_v22, %v25_v55  ;;  %v196_v6 = vmul.f32 %v801_v27, %v26_v56  ;;  %v37_v58 = vld [vmem:[%s1826_s0 + $0xb8] sm:$0xff] }
  0x11   :  { %615 = vst [vmem:[%s1827_s3 + $0x28] sm:$0xff] %v487_v62  ;;  %v361_v7 = vadd.f32 %v857_v59, %v191_v63  ;;  %v363_v8 = vadd.f32 %v780_v17, %v193_v0  ;;  %v364_v9 = vadd.f32 %v790_v21, %v194_v1  ;;  %v197_v10 = vmul.f32 %v810_v32, %v27_v61  ;;  %v38_v0 = vld [vmem:[%s1826_s0 + $0xc0] sm:$0xff]  ;;  %v39_v1 = vld [vmem:[%s1826_s0 + $0xc8] sm:$0xff] }
  0x12   :  { %616 = vst [vmem:[%s1827_s3 + $0x30] sm:$0xff] %v488_v3  ;;  %v490_v12 = vmax.f32 %v362_v4, 0.0  ;;  %v365_v13 = vadd.f32 %v794_v23, %v195_v5  ;;  %v366_v18 = vadd.f32 %v803_v28, %v196_v6  ;;  %v198_v19 = vmul.f32 %v820_v38, %v28_v2  ;;  %v40_v2 = vld [vmem:[%s1826_s0 + $0xd0] sm:$0xff] }
  0x13   :  { %v489_v29 = vmax.f32 %v361_v7, 0.0  ;;  %v491_v30 = vmax.f32 %v363_v8, 0.0  ;;  %v492_v31 = vmax.f32 %v364_v9, 0.0  ;;  %v367_v34 = vadd.f32 %v812_v33, %v197_v10  ;;  %v41_v7 = vld [vmem:[%s1826_s0 + $0xd8] sm:$0xff]  ;;  %v42_v8 = vld [vmem:[%s1826_s0 + $0xe0] sm:$0xff] }
  0x14   :  { %618 = vst [vmem:[%s1827_s3 + $0x40] sm:$0xff] %v490_v12  ;;  %v493_v37 = vmax.f32 %v365_v13, 0.0  ;;  %v494_v39 = vmax.f32 %v366_v18, 0.0  ;;  %v368_v40 = vadd.f32 %v825_v42, %v198_v19  ;;  %v199_v41 = vmul.f32 %v842_v54, %v29_v11  ;;  %v43_v13 = vld [vmem:[%s1826_s0 + $0xe8] sm:$0xff] }
  0x15   :  { %617 = vst [vmem:[%s1827_s3 + $0x38] sm:$0xff] %v489_v29  ;;  %619 = vst [vmem:[%s1827_s3 + $0x48] sm:$0xff] %v491_v30  ;;  %v495_v44 = vmax.f32 %v367_v34, 0.0  ;;  %v200_v45 = vmul.f32 %v774_v14, %v30_v24  ;;  %v201_v46 = vmul.f32 %v778_v16, %v31_v25  ;;  %v202_v47 = vmul.f32 %v788_v20, %v32_v26  ;;  %v44_v26 = vld [vmem:[%s1826_s0 + $0xf0] sm:$0xff] }
  0x16   :  { %620 = vst [vmem:[%s1827_s3 + $0x50] sm:$0xff] %v492_v31  ;;  %621 = vst [vmem:[%s1827_s3 + $0x58] sm:$0xff] %v493_v37  ;;  %v496_v49 = vmax.f32 %v368_v40, 0.0  ;;  %v369_v50 = vadd.f32 %v857_v59, %v199_v41  ;;  %v203_v51 = vmul.f32 %v792_v22, %v33_v35  ;;  %v204_v52 = vmul.f32 %v801_v27, %v34_v36  ;;  %v45_v40 = vld [vmem:[%s1826_s0 + $0xf8] sm:$0xff] }
  0x17   :  { %622 = vst [vmem:[%s1827_s3 + $0x60] sm:$0xff] %v494_v39  ;;  %623 = vst [vmem:[%s1827_s3 + $0x68] sm:$0xff] %v495_v44  ;;  %v370_v53 = vadd.f32 %v776_v15, %v200_v45  ;;  %v371_v55 = vadd.f32 %v780_v17, %v201_v46  ;;  %v372_v56 = vadd.f32 %v790_v21, %v202_v47  ;;  %v46_v46 = vld [vmem:[%s1826_s0 + $0x100] sm:$0xff]  ;;  %v47_v47 = vld [vmem:[%s1826_s0 + $0x108] sm:$0xff] }
  0x18   :  { %v205_v57 = vmul.f32 %v810_v32, %v35_v43  ;;  %624 = vst [vmem:[%s1827_s3 + $0x70] sm:$0xff] %v496_v49  ;;  %v497_v60 = vmax.f32 %v369_v50, 0.0  ;;  %v373_v61 = vadd.f32 %v794_v23, %v203_v51  ;;  %v374_v62 = vadd.f32 %v803_v28, %v204_v52 }
  0x19   :  { %v206_v63 = vmul.f32 %v820_v38, %v36_v48  ;;  %v498_v3 = vmax.f32 %v370_v53, 0.0  ;;  %v499_v4 = vmax.f32 %v371_v55, 0.0  ;;  %v500_v5 = vmax.f32 %v372_v56, 0.0  ;;  %v48_v48 = vld [vmem:[%s1826_s0 + $0x110] sm:$0xff]  ;;  %v49_v53 = vld [vmem:[%s1826_s0 + $0x118] sm:$0xff]  ;;  %v50_v55 = vld [vmem:[%s1826_s0 + $0x120] sm:$0xff] }
  0x1a   :  { %v375_v6 = vadd.f32 %v812_v33, %v205_v57  ;;  %625 = vst [vmem:[%s1827_s3 + $0x78] sm:$0xff] %v497_v60  ;;  %v501_v9 = vmax.f32 %v373_v61, 0.0  ;;  %v502_v10 = vmax.f32 %v374_v62, 0.0  ;;  %v207_v12 = vmul.f32 %v842_v54, %v37_v58  ;;  %v51_v61 = vld [vmem:[%s1826_s0 + $0x128] sm:$0xff] }
  0x1b   :  { %v376_v11 = vadd.f32 %v825_v42, %v206_v63  ;;  %626 = vst [vmem:[%s1827_s3 + $0x80] sm:$0xff] %v498_v3  ;;  %627 = vst [vmem:[%s1827_s3 + $0x88] sm:$0xff] %v499_v4  ;;  %v208_v19 = vmul.f32 %v774_v14, %v38_v0  ;;  %v209_v24 = vmul.f32 %v778_v16, %v39_v1 }
  0x1c   :  { %628 = vst [vmem:[%s1827_s3 + $0x90] sm:$0xff] %v500_v5  ;;  %v503_v18 = vmax.f32 %v375_v6, 0.0  ;;  %v210_v25 = vmul.f32 %v788_v20, %v40_v2  ;;  %629 = vst [vmem:[%s1827_s3 + $0x98] sm:$0xff] %v501_v9  ;;  %v377_v30 = vadd.f32 %v857_v59, %v207_v12  ;;  %v211_v31 = vmul.f32 %v792_v22, %v41_v7  ;;  %v52_v2 = vld [vmem:[%s1826_s0 + $0x130] sm:$0xff] }
  0x1d   :  { %630 = vst [vmem:[%s1827_s3 + $0xa0] sm:$0xff] %v502_v10  ;;  %v504_v29 = vmax.f32 %v376_v11, 0.0  ;;  %v212_v34 = vmul.f32 %v801_v27, %v42_v8  ;;  %v378_v35 = vadd.f32 %v776_v15, %v208_v19  ;;  %v379_v36 = vadd.f32 %v780_v17, %v209_v24  ;;  %v53_v11 = vld [vmem:[%s1826_s0 + $0x138] sm:$0xff]  ;;  %v54_v24 = vld [vmem:[%s1826_s0 + $0x140] sm:$0xff] }
  0x1e   :  { %631 = vst [vmem:[%s1827_s3 + $0xa8] sm:$0xff] %v503_v18  ;;  %v380_v37 = vadd.f32 %v790_v21, %v210_v25  ;;  %v213_v39 = vmul.f32 %v810_v32, %v43_v13  ;;  %v505_v41 = vmax.f32 %v377_v30, 0.0  ;;  %v381_v43 = vadd.f32 %v794_v23, %v211_v31  ;;  %v55_v25 = vld [vmem:[%s1826_s0 + $0x148] sm:$0xff] }
  0x1f   :  { %632 = vst [vmem:[%s1827_s3 + $0xb0] sm:$0xff] %v504_v29  ;;  %v382_v44 = vadd.f32 %v803_v28, %v212_v34  ;;  %v214_v45 = vmul.f32 %v820_v38, %v44_v26  ;;  %v506_v49 = vmax.f32 %v378_v35, 0.0  ;;  %v507_v50 = vmax.f32 %v379_v36, 0.0  ;;  %v56_v26 = vld [vmem:[%s1826_s0 + $0x150] sm:$0xff]  ;;  %v57_v35 = vld [vmem:[%s1826_s0 + $0x158] sm:$0xff]  ;;  %v58_v36 = vld [vmem:[%s1826_s0 + $0x160] sm:$0xff] }
  0x20   :  { %v508_v51 = vmax.f32 %v380_v37, 0.0  ;;  %v383_v52 = vadd.f32 %v812_v33, %v213_v39  ;;  %633 = vst [vmem:[%s1827_s3 + $0xb8] sm:$0xff] %v505_v41  ;;  %v509_v56 = vmax.f32 %v381_v43, 0.0  ;;  %v215_v60 = vmul.f32 %v842_v54, %v45_v40  ;;  %v59_v43 = vld [vmem:[%s1826_s0 + $0x168] sm:$0xff] }
  0x21   :  { %v510_v57 = vmax.f32 %v382_v44, 0.0  ;;  %v384_v58 = vadd.f32 %v825_v42, %v214_v45  ;;  %634 = vst [vmem:[%s1827_s3 + $0xc0] sm:$0xff] %v506_v49  ;;  %635 = vst [vmem:[%s1827_s3 + $0xc8] sm:$0xff] %v507_v50  ;;  %v216_v63 = vmul.f32 %v774_v14, %v46_v46  ;;  %v217_v0 = vmul.f32 %v778_v16, %v47_v47 }
  0x22   :  { %636 = vst [vmem:[%s1827_s3 + $0xd0] sm:$0xff] %v508_v51  ;;  %v511_v62 = vmax.f32 %v383_v52, 0.0  ;;  %v218_v1 = vmul.f32 %v788_v20, %v48_v48  ;;  %637 = vst [vmem:[%s1827_s3 + $0xd8] sm:$0xff] %v509_v56  ;;  %v385_v4 = vadd.f32 %v857_v59, %v215_v60  ;;  %v219_v5 = vmul.f32 %v792_v22, %v49_v53  ;;  %v60_v48 = vld [vmem:[%s1826_s0 + $0x170] sm:$0xff] }
  0x23   :  { %638 = vst [vmem:[%s1827_s3 + $0xe0] sm:$0xff] %v510_v57  ;;  %v512_v3 = vmax.f32 %v384_v58, 0.0  ;;  %v220_v6 = vmul.f32 %v801_v27, %v50_v55  ;;  %v386_v7 = vadd.f32 %v776_v15, %v216_v63  ;;  %v387_v8 = vadd.f32 %v780_v17, %v217_v0  ;;  %v61_v58 = vld [vmem:[%s1826_s0 + $0x178] sm:$0xff]  ;;  %v62_v0 = vld [vmem:[%s1826_s0 + $0x180] sm:$0xff] }
  0x24   :  { %639 = vst [vmem:[%s1827_s3 + $0xe8] sm:$0xff] %v511_v62  ;;  %v388_v9 = vadd.f32 %v790_v21, %v218_v1  ;;  %v221_v10 = vmul.f32 %v810_v32, %v51_v61  ;;  %v513_v12 = vmax.f32 %v385_v4, 0.0  ;;  %v389_v13 = vadd.f32 %v794_v23, %v219_v5  ;;  %v63_v1 = vld [vmem:[%s1826_s0 + $0x188] sm:$0xff] }
  0x25   :  { %640 = vst [vmem:[%s1827_s3 + $0xf0] sm:$0xff] %v512_v3  ;;  %v390_v18 = vadd.f32 %v803_v28, %v220_v6  ;;  %v222_v19 = vmul.f32 %v820_v38, %v52_v2  ;;  %v514_v29 = vmax.f32 %v386_v7, 0.0  ;;  %v515_v30 = vmax.f32 %v387_v8, 0.0  ;;  %v64_v2 = vld [vmem:[%s1826_s0 + $0x190] sm:$0xff]  ;;  %v65_v7 = vld [vmem:[%s1826_s0 + $0x198] sm:$0xff]  ;;  %v66_v8 = vld [vmem:[%s1826_s0 + $0x1a0] sm:$0xff] }
  0x26   :  { %v516_v31 = vmax.f32 %v388_v9, 0.0  ;;  %v391_v34 = vadd.f32 %v812_v33, %v221_v10  ;;  %641 = vst [vmem:[%s1827_s3 + $0xf8] sm:$0xff] %v513_v12  ;;  %v517_v37 = vmax.f32 %v389_v13, 0.0  ;;  %v223_v41 = vmul.f32 %v842_v54, %v53_v11  ;;  %v67_v13 = vld [vmem:[%s1826_s0 + $0x1a8] sm:$0xff] }
  0x27   :  { %v518_v39 = vmax.f32 %v390_v18, 0.0  ;;  %v392_v40 = vadd.f32 %v825_v42, %v222_v19  ;;  %642 = vst [vmem:[%s1827_s3 + $0x100] sm:$0xff] %v514_v29  ;;  %643 = vst [vmem:[%s1827_s3 + $0x108] sm:$0xff] %v515_v30  ;;  %v224_v45 = vmul.f32 %v774_v14, %v54_v24  ;;  %v225_v46 = vmul.f32 %v778_v16, %v55_v25 }
  0x28   :  { %644 = vst [vmem:[%s1827_s3 + $0x110] sm:$0xff] %v516_v31  ;;  %v519_v44 = vmax.f32 %v391_v34, 0.0  ;;  %v226_v47 = vmul.f32 %v788_v20, %v56_v26  ;;  %645 = vst [vmem:[%s1827_s3 + $0x118] sm:$0xff] %v517_v37  ;;  %v393_v50 = vadd.f32 %v857_v59, %v223_v41  ;;  %v227_v51 = vmul.f32 %v792_v22, %v57_v35  ;;  %v68_v26 = vld [vmem:[%s1826_s0 + $0x1b0] sm:$0xff] }
  0x29   :  { %646 = vst [vmem:[%s1827_s3 + $0x120] sm:$0xff] %v518_v39  ;;  %v520_v49 = vmax.f32 %v392_v40, 0.0  ;;  %v228_v52 = vmul.f32 %v801_v27, %v58_v36  ;;  %v394_v53 = vadd.f32 %v776_v15, %v224_v45  ;;  %v395_v55 = vadd.f32 %v780_v17, %v225_v46  ;;  %v69_v40 = vld [vmem:[%s1826_s0 + $0x1b8] sm:$0xff]  ;;  %v70_v46 = vld [vmem:[%s1826_s0 + $0x1c0] sm:$0xff] }
  0x2a   :  { %647 = vst [vmem:[%s1827_s3 + $0x128] sm:$0xff] %v519_v44  ;;  %v396_v56 = vadd.f32 %v790_v21, %v226_v47  ;;  %v229_v57 = vmul.f32 %v810_v32, %v59_v43  ;;  %v521_v60 = vmax.f32 %v393_v50, 0.0  ;;  %v397_v61 = vadd.f32 %v794_v23, %v227_v51  ;;  %v71_v47 = vld [vmem:[%s1826_s0 + $0x1c8] sm:$0xff] }
  0x2b   :  { %648 = vst [vmem:[%s1827_s3 + $0x130] sm:$0xff] %v520_v49  ;;  %v398_v62 = vadd.f32 %v803_v28, %v228_v52  ;;  %v230_v63 = vmul.f32 %v820_v38, %v60_v48  ;;  %v522_v3 = vmax.f32 %v394_v53, 0.0  ;;  %v523_v4 = vmax.f32 %v395_v55, 0.0  ;;  %v72_v48 = vld [vmem:[%s1826_s0 + $0x1d0] sm:$0xff]  ;;  %v73_v53 = vld [vmem:[%s1826_s0 + $0x1d8] sm:$0xff]  ;;  %v74_v55 = vld [vmem:[%s1826_s0 + $0x1e0] sm:$0xff] }
  0x2c   :  { %v524_v5 = vmax.f32 %v396_v56, 0.0  ;;  %v399_v6 = vadd.f32 %v812_v33, %v229_v57  ;;  %649 = vst [vmem:[%s1827_s3 + $0x138] sm:$0xff] %v521_v60  ;;  %v525_v9 = vmax.f32 %v397_v61, 0.0  ;;  %v231_v12 = vmul.f32 %v842_v54, %v61_v58  ;;  %v75_v61 = vld [vmem:[%s1826_s0 + $0x1e8] sm:$0xff] }
  0x2d   :  { %v526_v10 = vmax.f32 %v398_v62, 0.0  ;;  %v400_v11 = vadd.f32 %v825_v42, %v230_v63  ;;  %650 = vst [vmem:[%s1827_s3 + $0x140] sm:$0xff] %v522_v3  ;;  %651 = vst [vmem:[%s1827_s3 + $0x148] sm:$0xff] %v523_v4  ;;  %v232_v19 = vmul.f32 %v774_v14, %v62_v0  ;;  %v233_v24 = vmul.f32 %v778_v16, %v63_v1 }
  0x2e   :  { %652 = vst [vmem:[%s1827_s3 + $0x150] sm:$0xff] %v524_v5  ;;  %v527_v18 = vmax.f32 %v399_v6, 0.0  ;;  %v234_v25 = vmul.f32 %v788_v20, %v64_v2  ;;  %653 = vst [vmem:[%s1827_s3 + $0x158] sm:$0xff] %v525_v9  ;;  %v401_v30 = vadd.f32 %v857_v59, %v231_v12  ;;  %v235_v31 = vmul.f32 %v792_v22, %v65_v7  ;;  %v76_v2 = vld [vmem:[%s1826_s0 + $0x1f0] sm:$0xff] }
  0x2f   :  { %654 = vst [vmem:[%s1827_s3 + $0x160] sm:$0xff] %v526_v10  ;;  %v528_v29 = vmax.f32 %v400_v11, 0.0  ;;  %v236_v34 = vmul.f32 %v801_v27, %v66_v8  ;;  %v402_v35 = vadd.f32 %v776_v15, %v232_v19  ;;  %v403_v36 = vadd.f32 %v780_v17, %v233_v24  ;;  %v77_v11 = vld [vmem:[%s1826_s0 + $0x1f8] sm:$0xff]  ;;  %v78_v24 = vld [vmem:[%s1826_s0 + $0x200] sm:$0xff] }
  0x30   :  { %655 = vst [vmem:[%s1827_s3 + $0x168] sm:$0xff] %v527_v18  ;;  %v404_v37 = vadd.f32 %v790_v21, %v234_v25  ;;  %v237_v39 = vmul.f32 %v810_v32, %v67_v13  ;;  %v529_v41 = vmax.f32 %v401_v30, 0.0  ;;  %v405_v43 = vadd.f32 %v794_v23, %v235_v31  ;;  %v79_v25 = vld [vmem:[%s1826_s0 + $0x208] sm:$0xff] }
  0x31   :  { %656 = vst [vmem:[%s1827_s3 + $0x170] sm:$0xff] %v528_v29  ;;  %v406_v44 = vadd.f32 %v803_v28, %v236_v34  ;;  %v238_v45 = vmul.f32 %v820_v38, %v68_v26  ;;  %v530_v49 = vmax.f32 %v402_v35, 0.0  ;;  %v531_v50 = vmax.f32 %v403_v36, 0.0  ;;  %v80_v26 = vld [vmem:[%s1826_s0 + $0x210] sm:$0xff]  ;;  %v81_v35 = vld [vmem:[%s1826_s0 + $0x218] sm:$0xff]  ;;  %v82_v36 = vld [vmem:[%s1826_s0 + $0x220] sm:$0xff] }
  0x32   :  { %v532_v51 = vmax.f32 %v404_v37, 0.0  ;;  %v407_v52 = vadd.f32 %v812_v33, %v237_v39  ;;  %657 = vst [vmem:[%s1827_s3 + $0x178] sm:$0xff] %v529_v41  ;;  %v533_v56 = vmax.f32 %v405_v43, 0.0  ;;  %v239_v60 = vmul.f32 %v842_v54, %v69_v40  ;;  %v83_v43 = vld [vmem:[%s1826_s0 + $0x228] sm:$0xff] }
  0x33   :  { %v534_v57 = vmax.f32 %v406_v44, 0.0  ;;  %v408_v58 = vadd.f32 %v825_v42, %v238_v45  ;;  %658 = vst [vmem:[%s1827_s3 + $0x180] sm:$0xff] %v530_v49  ;;  %659 = vst [vmem:[%s1827_s3 + $0x188] sm:$0xff] %v531_v50  ;;  %v240_v63 = vmul.f32 %v774_v14, %v70_v46  ;;  %v241_v0 = vmul.f32 %v778_v16, %v71_v47 }
  0x34   :  { %660 = vst [vmem:[%s1827_s3 + $0x190] sm:$0xff] %v532_v51  ;;  %v535_v62 = vmax.f32 %v407_v52, 0.0  ;;  %v242_v1 = vmul.f32 %v788_v20, %v72_v48  ;;  %661 = vst [vmem:[%s1827_s3 + $0x198] sm:$0xff] %v533_v56  ;;  %v409_v4 = vadd.f32 %v857_v59, %v239_v60  ;;  %v243_v5 = vmul.f32 %v792_v22, %v73_v53  ;;  %v84_v48 = vld [vmem:[%s1826_s0 + $0x230] sm:$0xff] }
  0x35   :  { %662 = vst [vmem:[%s1827_s3 + $0x1a0] sm:$0xff] %v534_v57  ;;  %v536_v3 = vmax.f32 %v408_v58, 0.0  ;;  %v244_v6 = vmul.f32 %v801_v27, %v74_v55  ;;  %v410_v7 = vadd.f32 %v776_v15, %v240_v63  ;;  %v411_v8 = vadd.f32 %v780_v17, %v241_v0  ;;  %v85_v58 = vld [vmem:[%s1826_s0 + $0x238] sm:$0xff]  ;;  %v86_v0 = vld [vmem:[%s1826_s0 + $0x240] sm:$0xff] }
  0x36   :  { %663 = vst [vmem:[%s1827_s3 + $0x1a8] sm:$0xff] %v535_v62  ;;  %v412_v9 = vadd.f32 %v790_v21, %v242_v1  ;;  %v245_v10 = vmul.f32 %v810_v32, %v75_v61  ;;  %v537_v12 = vmax.f32 %v409_v4, 0.0  ;;  %v413_v13 = vadd.f32 %v794_v23, %v243_v5  ;;  %v87_v1 = vld [vmem:[%s1826_s0 + $0x248] sm:$0xff] }
  0x37   :  { %664 = vst [vmem:[%s1827_s3 + $0x1b0] sm:$0xff] %v536_v3  ;;  %v414_v18 = vadd.f32 %v803_v28, %v244_v6  ;;  %v246_v19 = vmul.f32 %v820_v38, %v76_v2  ;;  %v538_v29 = vmax.f32 %v410_v7, 0.0  ;;  %v539_v30 = vmax.f32 %v411_v8, 0.0  ;;  %v88_v2 = vld [vmem:[%s1826_s0 + $0x250] sm:$0xff]  ;;  %v89_v7 = vld [vmem:[%s1826_s0 + $0x258] sm:$0xff]  ;;  %v90_v8 = vld [vmem:[%s1826_s0 + $0x260] sm:$0xff] }
  0x38   :  { %v540_v31 = vmax.f32 %v412_v9, 0.0  ;;  %v415_v34 = vadd.f32 %v812_v33, %v245_v10  ;;  %665 = vst [vmem:[%s1827_s3 + $0x1b8] sm:$0xff] %v537_v12  ;;  %v541_v37 = vmax.f32 %v413_v13, 0.0  ;;  %v247_v41 = vmul.f32 %v842_v54, %v77_v11  ;;  %v91_v13 = vld [vmem:[%s1826_s0 + $0x268] sm:$0xff] }
  0x39   :  { %v542_v39 = vmax.f32 %v414_v18, 0.0  ;;  %v416_v40 = vadd.f32 %v825_v42, %v246_v19  ;;  %666 = vst [vmem:[%s1827_s3 + $0x1c0] sm:$0xff] %v538_v29  ;;  %667 = vst [vmem:[%s1827_s3 + $0x1c8] sm:$0xff] %v539_v30  ;;  %v248_v45 = vmul.f32 %v774_v14, %v78_v24  ;;  %v249_v46 = vmul.f32 %v778_v16, %v79_v25 }
  0x3a   :  { %668 = vst [vmem:[%s1827_s3 + $0x1d0] sm:$0xff] %v540_v31  ;;  %v543_v44 = vmax.f32 %v415_v34, 0.0  ;;  %v250_v47 = vmul.f32 %v788_v20, %v80_v26  ;;  %669 = vst [vmem:[%s1827_s3 + $0x1d8] sm:$0xff] %v541_v37  ;;  %v417_v50 = vadd.f32 %v857_v59, %v247_v41  ;;  %v251_v51 = vmul.f32 %v792_v22, %v81_v35  ;;  %v92_v26 = vld [vmem:[%s1826_s0 + $0x270] sm:$0xff] }
  0x3b   :  { %670 = vst [vmem:[%s1827_s3 + $0x1e0] sm:$0xff] %v542_v39  ;;  %v544_v49 = vmax.f32 %v416_v40, 0.0  ;;  %v252_v52 = vmul.f32 %v801_v27, %v82_v36  ;;  %v418_v53 = vadd.f32 %v776_v15, %v248_v45  ;;  %v419_v55 = vadd.f32 %v780_v17, %v249_v46  ;;  %v93_v40 = vld [vmem:[%s1826_s0 + $0x278] sm:$0xff]  ;;  %v94_v46 = vld [vmem:[%s1826_s0 + $0x280] sm:$0xff] }
  0x3c   :  { %671 = vst [vmem:[%s1827_s3 + $0x1e8] sm:$0xff] %v543_v44  ;;  %v420_v56 = vadd.f32 %v790_v21, %v250_v47  ;;  %v253_v57 = vmul.f32 %v810_v32, %v83_v43  ;;  %v545_v60 = vmax.f32 %v417_v50, 0.0  ;;  %v421_v61 = vadd.f32 %v794_v23, %v251_v51  ;;  %v95_v47 = vld [vmem:[%s1826_s0 + $0x288] sm:$0xff] }
  0x3d   :  { %672 = vst [vmem:[%s1827_s3 + $0x1f0] sm:$0xff] %v544_v49  ;;  %v422_v62 = vadd.f32 %v803_v28, %v252_v52  ;;  %v254_v63 = vmul.f32 %v820_v38, %v84_v48  ;;  %v546_v3 = vmax.f32 %v418_v53, 0.0  ;;  %v547_v4 = vmax.f32 %v419_v55, 0.0  ;;  %v96_v48 = vld [vmem:[%s1826_s0 + $0x290] sm:$0xff]  ;;  %v97_v53 = vld [vmem:[%s1826_s0 + $0x298] sm:$0xff]  ;;  %v98_v55 = vld [vmem:[%s1826_s0 + $0x2a0] sm:$0xff] }
  0x3e   :  { %v548_v5 = vmax.f32 %v420_v56, 0.0  ;;  %v423_v6 = vadd.f32 %v812_v33, %v253_v57  ;;  %673 = vst [vmem:[%s1827_s3 + $0x1f8] sm:$0xff] %v545_v60  ;;  %v549_v9 = vmax.f32 %v421_v61, 0.0  ;;  %v255_v12 = vmul.f32 %v842_v54, %v85_v58  ;;  %v99_v61 = vld [vmem:[%s1826_s0 + $0x2a8] sm:$0xff] }
  0x3f   :  { %v550_v10 = vmax.f32 %v422_v62, 0.0  ;;  %v424_v11 = vadd.f32 %v825_v42, %v254_v63  ;;  %674 = vst [vmem:[%s1827_s3 + $0x200] sm:$0xff] %v546_v3  ;;  %675 = vst [vmem:[%s1827_s3 + $0x208] sm:$0xff] %v547_v4  ;;  %v256_v19 = vmul.f32 %v774_v14, %v86_v0  ;;  %v257_v24 = vmul.f32 %v778_v16, %v87_v1 }
  0x40   :  { %676 = vst [vmem:[%s1827_s3 + $0x210] sm:$0xff] %v548_v5  ;;  %v551_v18 = vmax.f32 %v423_v6, 0.0  ;;  %v258_v25 = vmul.f32 %v788_v20, %v88_v2  ;;  %677 = vst [vmem:[%s1827_s3 + $0x218] sm:$0xff] %v549_v9  ;;  %v425_v30 = vadd.f32 %v857_v59, %v255_v12  ;;  %v259_v31 = vmul.f32 %v792_v22, %v89_v7  ;;  %v100_v2 = vld [vmem:[%s1826_s0 + $0x2b0] sm:$0xff] }
  0x41   :  { %678 = vst [vmem:[%s1827_s3 + $0x220] sm:$0xff] %v550_v10  ;;  %v552_v29 = vmax.f32 %v424_v11, 0.0  ;;  %v260_v34 = vmul.f32 %v801_v27, %v90_v8  ;;  %v426_v35 = vadd.f32 %v776_v15, %v256_v19  ;;  %v427_v36 = vadd.f32 %v780_v17, %v257_v24  ;;  %v101_v11 = vld [vmem:[%s1826_s0 + $0x2b8] sm:$0xff]  ;;  %v102_v24 = vld [vmem:[%s1826_s0 + $0x2c0] sm:$0xff] }
  0x42   :  { %679 = vst [vmem:[%s1827_s3 + $0x228] sm:$0xff] %v551_v18  ;;  %v428_v37 = vadd.f32 %v790_v21, %v258_v25  ;;  %v261_v39 = vmul.f32 %v810_v32, %v91_v13  ;;  %v553_v41 = vmax.f32 %v425_v30, 0.0  ;;  %v429_v43 = vadd.f32 %v794_v23, %v259_v31  ;;  %v103_v25 = vld [vmem:[%s1826_s0 + $0x2c8] sm:$0xff] }
  0x43   :  { %680 = vst [vmem:[%s1827_s3 + $0x230] sm:$0xff] %v552_v29  ;;  %v430_v44 = vadd.f32 %v803_v28, %v260_v34  ;;  %v262_v45 = vmul.f32 %v820_v38, %v92_v26  ;;  %v554_v49 = vmax.f32 %v426_v35, 0.0  ;;  %v555_v50 = vmax.f32 %v427_v36, 0.0  ;;  %v104_v26 = vld [vmem:[%s1826_s0 + $0x2d0] sm:$0xff]  ;;  %v105_v35 = vld [vmem:[%s1826_s0 + $0x2d8] sm:$0xff]  ;;  %v106_v36 = vld [vmem:[%s1826_s0 + $0x2e0] sm:$0xff] }
  0x44   :  { %v556_v51 = vmax.f32 %v428_v37, 0.0  ;;  %v431_v52 = vadd.f32 %v812_v33, %v261_v39  ;;  %681 = vst [vmem:[%s1827_s3 + $0x238] sm:$0xff] %v553_v41  ;;  %v557_v56 = vmax.f32 %v429_v43, 0.0  ;;  %v263_v60 = vmul.f32 %v842_v54, %v93_v40  ;;  %v107_v43 = vld [vmem:[%s1826_s0 + $0x2e8] sm:$0xff] }
  0x45   :  { %v558_v57 = vmax.f32 %v430_v44, 0.0  ;;  %v432_v58 = vadd.f32 %v825_v42, %v262_v45  ;;  %682 = vst [vmem:[%s1827_s3 + $0x240] sm:$0xff] %v554_v49  ;;  %683 = vst [vmem:[%s1827_s3 + $0x248] sm:$0xff] %v555_v50  ;;  %v264_v63 = vmul.f32 %v774_v14, %v94_v46  ;;  %v265_v0 = vmul.f32 %v778_v16, %v95_v47 }
  0x46   :  { %684 = vst [vmem:[%s1827_s3 + $0x250] sm:$0xff] %v556_v51  ;;  %v559_v62 = vmax.f32 %v431_v52, 0.0  ;;  %v266_v1 = vmul.f32 %v788_v20, %v96_v48  ;;  %685 = vst [vmem:[%s1827_s3 + $0x258] sm:$0xff] %v557_v56  ;;  %v433_v4 = vadd.f32 %v857_v59, %v263_v60  ;;  %v267_v5 = vmul.f32 %v792_v22, %v97_v53  ;;  %v108_v48 = vld [vmem:[%s1826_s0 + $0x2f0] sm:$0xff] }
  0x47   :  { %686 = vst [vmem:[%s1827_s3 + $0x260] sm:$0xff] %v558_v57  ;;  %v560_v3 = vmax.f32 %v432_v58, 0.0  ;;  %v268_v6 = vmul.f32 %v801_v27, %v98_v55  ;;  %v434_v7 = vadd.f32 %v776_v15, %v264_v63  ;;  %v435_v8 = vadd.f32 %v780_v17, %v265_v0  ;;  %v109_v58 = vld [vmem:[%s1826_s0 + $0x2f8] sm:$0xff]  ;;  %v110_v0 = vld [vmem:[%s1826_s0 + $0x300] sm:$0xff] }
  0x48   :  { %687 = vst [vmem:[%s1827_s3 + $0x268] sm:$0xff] %v559_v62  ;;  %v436_v9 = vadd.f32 %v790_v21, %v266_v1  ;;  %v269_v10 = vmul.f32 %v810_v32, %v99_v61  ;;  %v561_v12 = vmax.f32 %v433_v4, 0.0  ;;  %v437_v13 = vadd.f32 %v794_v23, %v267_v5  ;;  %v111_v1 = vld [vmem:[%s1826_s0 + $0x308] sm:$0xff] }
  0x49   :  { %688 = vst [vmem:[%s1827_s3 + $0x270] sm:$0xff] %v560_v3  ;;  %v438_v18 = vadd.f32 %v803_v28, %v268_v6  ;;  %v270_v19 = vmul.f32 %v820_v38, %v100_v2  ;;  %v562_v29 = vmax.f32 %v434_v7, 0.0  ;;  %v563_v30 = vmax.f32 %v435_v8, 0.0  ;;  %v112_v2 = vld [vmem:[%s1826_s0 + $0x310] sm:$0xff]  ;;  %v113_v7 = vld [vmem:[%s1826_s0 + $0x318] sm:$0xff]  ;;  %v114_v8 = vld [vmem:[%s1826_s0 + $0x320] sm:$0xff] }
  0x4a   :  { %v564_v31 = vmax.f32 %v436_v9, 0.0  ;;  %v439_v34 = vadd.f32 %v812_v33, %v269_v10  ;;  %689 = vst [vmem:[%s1827_s3 + $0x278] sm:$0xff] %v561_v12  ;;  %v565_v37 = vmax.f32 %v437_v13, 0.0  ;;  %v271_v41 = vmul.f32 %v842_v54, %v101_v11  ;;  %v115_v13 = vld [vmem:[%s1826_s0 + $0x328] sm:$0xff] }
  0x4b   :  { %v566_v39 = vmax.f32 %v438_v18, 0.0  ;;  %v440_v40 = vadd.f32 %v825_v42, %v270_v19  ;;  %690 = vst [vmem:[%s1827_s3 + $0x280] sm:$0xff] %v562_v29  ;;  %691 = vst [vmem:[%s1827_s3 + $0x288] sm:$0xff] %v563_v30  ;;  %v272_v45 = vmul.f32 %v774_v14, %v102_v24  ;;  %v273_v46 = vmul.f32 %v778_v16, %v103_v25 }
  0x4c   :  { %692 = vst [vmem:[%s1827_s3 + $0x290] sm:$0xff] %v564_v31  ;;  %v567_v44 = vmax.f32 %v439_v34, 0.0  ;;  %v274_v47 = vmul.f32 %v788_v20, %v104_v26  ;;  %693 = vst [vmem:[%s1827_s3 + $0x298] sm:$0xff] %v565_v37  ;;  %v441_v50 = vadd.f32 %v857_v59, %v271_v41  ;;  %v275_v51 = vmul.f32 %v792_v22, %v105_v35  ;;  %v116_v26 = vld [vmem:[%s1826_s0 + $0x330] sm:$0xff] }
  0x4d   :  { %694 = vst [vmem:[%s1827_s3 + $0x2a0] sm:$0xff] %v566_v39  ;;  %v568_v49 = vmax.f32 %v440_v40, 0.0  ;;  %v276_v52 = vmul.f32 %v801_v27, %v106_v36  ;;  %v442_v53 = vadd.f32 %v776_v15, %v272_v45  ;;  %v443_v55 = vadd.f32 %v780_v17, %v273_v46  ;;  %v117_v40 = vld [vmem:[%s1826_s0 + $0x338] sm:$0xff]  ;;  %v118_v46 = vld [vmem:[%s1826_s0 + $0x340] sm:$0xff] }
  0x4e   :  { %695 = vst [vmem:[%s1827_s3 + $0x2a8] sm:$0xff] %v567_v44  ;;  %v444_v56 = vadd.f32 %v790_v21, %v274_v47  ;;  %v277_v57 = vmul.f32 %v810_v32, %v107_v43  ;;  %v569_v60 = vmax.f32 %v441_v50, 0.0  ;;  %v445_v61 = vadd.f32 %v794_v23, %v275_v51  ;;  %v119_v47 = vld [vmem:[%s1826_s0 + $0x348] sm:$0xff] }
  0x4f   :  { %696 = vst [vmem:[%s1827_s3 + $0x2b0] sm:$0xff] %v568_v49  ;;  %v446_v62 = vadd.f32 %v803_v28, %v276_v52  ;;  %v278_v63 = vmul.f32 %v820_v38, %v108_v48  ;;  %v570_v3 = vmax.f32 %v442_v53, 0.0  ;;  %v571_v4 = vmax.f32 %v443_v55, 0.0  ;;  %v120_v48 = vld [vmem:[%s1826_s0 + $0x350] sm:$0xff]  ;;  %v121_v53 = vld [vmem:[%s1826_s0 + $0x358] sm:$0xff]  ;;  %v122_v55 = vld [vmem:[%s1826_s0 + $0x360] sm:$0xff] }
  0x50   :  { %v572_v5 = vmax.f32 %v444_v56, 0.0  ;;  %v447_v6 = vadd.f32 %v812_v33, %v277_v57  ;;  %697 = vst [vmem:[%s1827_s3 + $0x2b8] sm:$0xff] %v569_v60  ;;  %v573_v9 = vmax.f32 %v445_v61, 0.0  ;;  %v279_v12 = vmul.f32 %v842_v54, %v109_v58  ;;  %v123_v61 = vld [vmem:[%s1826_s0 + $0x368] sm:$0xff] }
  0x51   :  { %v574_v10 = vmax.f32 %v446_v62, 0.0  ;;  %v448_v11 = vadd.f32 %v825_v42, %v278_v63  ;;  %698 = vst [vmem:[%s1827_s3 + $0x2c0] sm:$0xff] %v570_v3  ;;  %699 = vst [vmem:[%s1827_s3 + $0x2c8] sm:$0xff] %v571_v4  ;;  %v280_v19 = vmul.f32 %v774_v14, %v110_v0  ;;  %v281_v24 = vmul.f32 %v778_v16, %v111_v1 }
  0x52   :  { %700 = vst [vmem:[%s1827_s3 + $0x2d0] sm:$0xff] %v572_v5  ;;  %v575_v18 = vmax.f32 %v447_v6, 0.0  ;;  %v282_v25 = vmul.f32 %v788_v20, %v112_v2  ;;  %701 = vst [vmem:[%s1827_s3 + $0x2d8] sm:$0xff] %v573_v9  ;;  %v449_v30 = vadd.f32 %v857_v59, %v279_v12  ;;  %v283_v31 = vmul.f32 %v792_v22, %v113_v7  ;;  %v124_v2 = vld [vmem:[%s1826_s0 + $0x370] sm:$0xff] }
  0x53   :  { %702 = vst [vmem:[%s1827_s3 + $0x2e0] sm:$0xff] %v574_v10  ;;  %v576_v29 = vmax.f32 %v448_v11, 0.0  ;;  %v284_v34 = vmul.f32 %v801_v27, %v114_v8  ;;  %v450_v35 = vadd.f32 %v776_v15, %v280_v19  ;;  %v451_v36 = vadd.f32 %v780_v17, %v281_v24  ;;  %v125_v11 = vld [vmem:[%s1826_s0 + $0x378] sm:$0xff]  ;;  %v126_v24 = vld [vmem:[%s1826_s0 + $0x380] sm:$0xff] }
  0x54   :  { %703 = vst [vmem:[%s1827_s3 + $0x2e8] sm:$0xff] %v575_v18  ;;  %v452_v37 = vadd.f32 %v790_v21, %v282_v25  ;;  %v285_v39 = vmul.f32 %v810_v32, %v115_v13  ;;  %v577_v41 = vmax.f32 %v449_v30, 0.0  ;;  %v453_v43 = vadd.f32 %v794_v23, %v283_v31  ;;  %v127_v25 = vld [vmem:[%s1826_s0 + $0x388] sm:$0xff] }
  0x55   :  { %704 = vst [vmem:[%s1827_s3 + $0x2f0] sm:$0xff] %v576_v29  ;;  %v454_v44 = vadd.f32 %v803_v28, %v284_v34  ;;  %v286_v45 = vmul.f32 %v820_v38, %v116_v26  ;;  %v578_v49 = vmax.f32 %v450_v35, 0.0  ;;  %v579_v50 = vmax.f32 %v451_v36, 0.0  ;;  %v128_v26 = vld [vmem:[%s1826_s0 + $0x390] sm:$0xff]  ;;  %v129_v35 = vld [vmem:[%s1826_s0 + $0x398] sm:$0xff]  ;;  %v130_v36 = vld [vmem:[%s1826_s0 + $0x3a0] sm:$0xff] }
  0x56   :  { %v580_v51 = vmax.f32 %v452_v37, 0.0  ;;  %v455_v52 = vadd.f32 %v812_v33, %v285_v39  ;;  %705 = vst [vmem:[%s1827_s3 + $0x2f8] sm:$0xff] %v577_v41  ;;  %v581_v56 = vmax.f32 %v453_v43, 0.0  ;;  %v287_v60 = vmul.f32 %v842_v54, %v117_v40  ;;  %v131_v43 = vld [vmem:[%s1826_s0 + $0x3a8] sm:$0xff] }
  0x57   :  { %v582_v57 = vmax.f32 %v454_v44, 0.0  ;;  %v456_v58 = vadd.f32 %v825_v42, %v286_v45  ;;  %706 = vst [vmem:[%s1827_s3 + $0x300] sm:$0xff] %v578_v49  ;;  %707 = vst [vmem:[%s1827_s3 + $0x308] sm:$0xff] %v579_v50  ;;  %v288_v63 = vmul.f32 %v774_v14, %v118_v46  ;;  %v289_v0 = vmul.f32 %v778_v16, %v119_v47 }
  0x58   :  { %708 = vst [vmem:[%s1827_s3 + $0x310] sm:$0xff] %v580_v51  ;;  %v583_v62 = vmax.f32 %v455_v52, 0.0  ;;  %v290_v1 = vmul.f32 %v788_v20, %v120_v48  ;;  %709 = vst [vmem:[%s1827_s3 + $0x318] sm:$0xff] %v581_v56  ;;  %v457_v4 = vadd.f32 %v857_v59, %v287_v60  ;;  %v291_v5 = vmul.f32 %v792_v22, %v121_v53  ;;  %v132_v48 = vld [vmem:[%s1826_s0 + $0x3b0] sm:$0xff] }
  0x59   :  { %710 = vst [vmem:[%s1827_s3 + $0x320] sm:$0xff] %v582_v57  ;;  %v584_v3 = vmax.f32 %v456_v58, 0.0  ;;  %v292_v6 = vmul.f32 %v801_v27, %v122_v55  ;;  %v458_v7 = vadd.f32 %v776_v15, %v288_v63  ;;  %v459_v8 = vadd.f32 %v780_v17, %v289_v0  ;;  %v133_v58 = vld [vmem:[%s1826_s0 + $0x3b8] sm:$0xff]  ;;  %v134_v0 = vld [vmem:[%s1826_s0 + $0x3c0] sm:$0xff] }
  0x5a   :  { %711 = vst [vmem:[%s1827_s3 + $0x328] sm:$0xff] %v583_v62  ;;  %v460_v9 = vadd.f32 %v790_v21, %v290_v1  ;;  %v293_v10 = vmul.f32 %v810_v32, %v123_v61  ;;  %v585_v12 = vmax.f32 %v457_v4, 0.0  ;;  %v461_v13 = vadd.f32 %v794_v23, %v291_v5  ;;  %v135_v1 = vld [vmem:[%s1826_s0 + $0x3c8] sm:$0xff] }
  0x5b   :  { %712 = vst [vmem:[%s1827_s3 + $0x330] sm:$0xff] %v584_v3  ;;  %v462_v18 = vadd.f32 %v803_v28, %v292_v6  ;;  %v294_v19 = vmul.f32 %v820_v38, %v124_v2  ;;  %v586_v29 = vmax.f32 %v458_v7, 0.0  ;;  %v587_v30 = vmax.f32 %v459_v8, 0.0  ;;  %v136_v2 = vld [vmem:[%s1826_s0 + $0x3d0] sm:$0xff]  ;;  %v137_v7 = vld [vmem:[%s1826_s0 + $0x3d8] sm:$0xff]  ;;  %v138_v8 = vld [vmem:[%s1826_s0 + $0x3e0] sm:$0xff] }
  0x5c   :  { %v588_v31 = vmax.f32 %v460_v9, 0.0  ;;  %v463_v34 = vadd.f32 %v812_v33, %v293_v10  ;;  %713 = vst [vmem:[%s1827_s3 + $0x338] sm:$0xff] %v585_v12  ;;  %v589_v37 = vmax.f32 %v461_v13, 0.0  ;;  %v295_v41 = vmul.f32 %v842_v54, %v125_v11  ;;  %v139_v13 = vld [vmem:[%s1826_s0 + $0x3e8] sm:$0xff] }
  0x5d   :  { %v590_v39 = vmax.f32 %v462_v18, 0.0  ;;  %v464_v40 = vadd.f32 %v825_v42, %v294_v19  ;;  %714 = vst [vmem:[%s1827_s3 + $0x340] sm:$0xff] %v586_v29  ;;  %715 = vst [vmem:[%s1827_s3 + $0x348] sm:$0xff] %v587_v30  ;;  %v296_v45 = vmul.f32 %v774_v14, %v126_v24  ;;  %v297_v46 = vmul.f32 %v778_v16, %v127_v25 }
  0x5e   :  { %716 = vst [vmem:[%s1827_s3 + $0x350] sm:$0xff] %v588_v31  ;;  %v591_v44 = vmax.f32 %v463_v34, 0.0  ;;  %v298_v47 = vmul.f32 %v788_v20, %v128_v26  ;;  %717 = vst [vmem:[%s1827_s3 + $0x358] sm:$0xff] %v589_v37  ;;  %v465_v50 = vadd.f32 %v857_v59, %v295_v41  ;;  %v299_v51 = vmul.f32 %v792_v22, %v129_v35  ;;  %v140_v26 = vld [vmem:[%s1826_s0 + $0x3f0] sm:$0xff] }
  0x5f   :  { %718 = vst [vmem:[%s1827_s3 + $0x360] sm:$0xff] %v590_v39  ;;  %v592_v49 = vmax.f32 %v464_v40, 0.0  ;;  %v300_v52 = vmul.f32 %v801_v27, %v130_v36  ;;  %v466_v53 = vadd.f32 %v776_v15, %v296_v45  ;;  %v467_v55 = vadd.f32 %v780_v17, %v297_v46  ;;  %v141_v36 = vld [vmem:[%s1826_s0 + $0x3f8] sm:$0xff] }
  0x60   :  { %719 = vst [vmem:[%s1827_s3 + $0x368] sm:$0xff] %v591_v44  ;;  %v468_v56 = vadd.f32 %v790_v21, %v298_v47  ;;  %v301_v57 = vmul.f32 %v810_v32, %v131_v43  ;;  %v593_v60 = vmax.f32 %v465_v50, 0.0  ;;  %v469_v61 = vadd.f32 %v794_v23, %v299_v51 }
  0x61   :  { %720 = vst [vmem:[%s1827_s3 + $0x370] sm:$0xff] %v592_v49  ;;  %v470_v62 = vadd.f32 %v803_v28, %v300_v52  ;;  %v302_v63 = vmul.f32 %v820_v38, %v132_v48  ;;  %v594_v3 = vmax.f32 %v466_v53, 0.0  ;;  %v595_v4 = vmax.f32 %v467_v55, 0.0 }
  0x62   :  { %v596_v5 = vmax.f32 %v468_v56, 0.0  ;;  %v471_v6 = vadd.f32 %v812_v33, %v301_v57  ;;  %721 = vst [vmem:[%s1827_s3 + $0x378] sm:$0xff] %v593_v60  ;;  %v597_v9 = vmax.f32 %v469_v61, 0.0  ;;  %v303_v12 = vmul.f32 %v842_v54, %v133_v58 }
  0x63   :  { %v598_v10 = vmax.f32 %v470_v62, 0.0  ;;  %v472_v11 = vadd.f32 %v825_v42, %v302_v63  ;;  %722 = vst [vmem:[%s1827_s3 + $0x380] sm:$0xff] %v594_v3  ;;  %723 = vst [vmem:[%s1827_s3 + $0x388] sm:$0xff] %v595_v4  ;;  %v304_v19 = vmul.f32 %v774_v14, %v134_v0  ;;  %v305_v24 = vmul.f32 %v778_v16, %v135_v1 }
  0x64   :  { %724 = vst [vmem:[%s1827_s3 + $0x390] sm:$0xff] %v596_v5  ;;  %v599_v18 = vmax.f32 %v471_v6, 0.0  ;;  %v306_v25 = vmul.f32 %v788_v20, %v136_v2  ;;  %725 = vst [vmem:[%s1827_s3 + $0x398] sm:$0xff] %v597_v9  ;;  %v473_v30 = vadd.f32 %v857_v59, %v303_v12  ;;  %v307_v14 = vmul.f32 %v792_v22, %v137_v7 }
  0x65   :  { %726 = vst [vmem:[%s1827_s3 + $0x3a0] sm:$0xff] %v598_v10  ;;  %v600_v29 = vmax.f32 %v472_v11, 0.0  ;;  %v308_v16 = vmul.f32 %v801_v27, %v138_v8  ;;  %v474_v20 = vadd.f32 %v776_v15, %v304_v19  ;;  %v475_v31 = vadd.f32 %v780_v17, %v305_v24 }
  0x66   :  { %727 = vst [vmem:[%s1827_s3 + $0x3a8] sm:$0xff] %v599_v18  ;;  %v476_v34 = vadd.f32 %v790_v21, %v306_v25  ;;  %v309_v35 = vmul.f32 %v810_v32, %v139_v13  ;;  %v601_v22 = vmax.f32 %v473_v30, 0.0  ;;  %v477_v27 = vadd.f32 %v794_v23, %v307_v14 }
  0x67   :  { %728 = vst [vmem:[%s1827_s3 + $0x3b0] sm:$0xff] %v600_v29  ;;  %v478_v37 = vadd.f32 %v803_v28, %v308_v16  ;;  %v310_v15 = vmul.f32 %v820_v38, %v140_v26  ;;  %v602_v17 = vmax.f32 %v474_v20, 0.0  ;;  %v603_v39 = vmax.f32 %v475_v31, 0.0 }
  0x68   :  { %v604_v21 = vmax.f32 %v476_v34, 0.0  ;;  %v479_v32 = vadd.f32 %v812_v33, %v309_v35  ;;  %729 = vst [vmem:[%s1827_s3 + $0x3b8] sm:$0xff] %v601_v22  ;;  %v605_v40 = vmax.f32 %v477_v27, 0.0  ;;  %v311_v44 = vmul.f32 %v842_v54, %v141_v36 }
  0x69   :  { %v606_v41 = vmax.f32 %v478_v37, 0.0  ;;  %v480_v43 = vadd.f32 %v825_v42, %v310_v15  ;;  %730 = vst [vmem:[%s1827_s3 + $0x3c0] sm:$0xff] %v602_v17  ;;  %731 = vst [vmem:[%s1827_s3 + $0x3c8] sm:$0xff] %v603_v39 }
  0x6a   :  { %732 = vst [vmem:[%s1827_s3 + $0x3d0] sm:$0xff] %v604_v21  ;;  %v607_v23 = vmax.f32 %v479_v32, 0.0  ;;  %733 = vst [vmem:[%s1827_s3 + $0x3d8] sm:$0xff] %v605_v40  ;;  %v481_v33 = vadd.f32 %v857_v59, %v311_v44 }
  0x6b   :  { %734 = vst [vmem:[%s1827_s3 + $0x3e0] sm:$0xff] %v606_v41  ;;  %v608_v28 = vmax.f32 %v480_v43, 0.0 }
  0x6c   :  { %735 = vst [vmem:[%s1827_s3 + $0x3e8] sm:$0xff] %v607_v23  ;;  %v609_v38 = vmax.f32 %v481_v33, 0.0 }
  0x6d   :  { %736 = vst [vmem:[%s1827_s3 + $0x3f0] sm:$0xff] %v608_v28 }
  0x6e   :  { %737 = vst [vmem:[%s1827_s3 + $0x3f8] sm:$0xff] %v609_v38 }

// kernel: advection_core.64
= control target key start
LH: loop header
LB: loop body
LE: loop exit
PB: predicated region body
PF: predicated region fallthrough
CT: control target
= control target key end

     0   :  { %v17_v0 = vlaneseq  ;;  %v96_v1 = vmov 1983009808   ;;  %s129_s1 = inlined_call_operand.vmem [shape: f32[1,512], index: 1, kind: input, shape index: {}]   ;;  %s130_s2 = inlined_call_operand.vmem [shape: f32[1,512], index: 2, kind: input, shape index: {}]   ;;  %s131_s0 = inlined_call_operand.vmem [shape: f32[2,512], index: 0, kind: input, shape index: {}]   ;;  %s132_s3 = inlined_call_operand.vmem [shape: f32[2,512], index: 3, kind: output, shape index: {}]  }
   0x1   :  { %v36_v2 = vunpack.c.l.s4 %v96_v1  ;;  %v15_v4 = vld [vmem:[%s129_s1] sm:$0xf] }
   0x2   :  { %v18_v3 = vshrl.u32 %v17_v0, 7  ;;  %v52_v10 = vld [vmem:[%s130_s2] sm:$0xf] }
   0x3   :  { %v37_v5 = vunpack.c.0.s8 %v36_v2  ;;  %v14_v26 = vld [vmem:[%s131_s0] sm:$0xff] }
   0x4   :  { %v19_v6 = vsub.s32 0, %v18_v3  ;;  %v23_v7 = vsub.s32 1, %v18_v3  ;;  %v27_v8 = vsub.s32 2, %v18_v3  ;;  %v31_v9 = vsub.s32 3, %v18_v3 }
   0x5   :  { %v40_v11 = vsub.s32 %v37_v5, %v18_v3 }
   0x6   :  { %v20_v12 = vrot.slane %v15_v4, %v19_v6  ;;  %v24_v13 = vrot.slane %v15_v4, %v23_v7  ;;  %v28_v14 = vrot.slane %v15_v4, %v27_v8  ;;  %v32_v15 = vrot.slane %v15_v4, %v31_v9 }
   0x7   :  { %v57_v16 = vrot.slane %v52_v10, %v19_v6  ;;  %v61_v17 = vrot.slane %v52_v10, %v23_v7  ;;  %v65_v18 = vrot.slane %v52_v10, %v27_v8  ;;  %v69_v19 = vrot.slane %v52_v10, %v31_v9 }
   0x8   :  { %v33_v20 = vcombine.low %v20_v12, %v24_v13  ;;  %v34_v21 = vcombine.low %v28_v14, %v32_v15 }
   0x9   :  { %v70_v22 = vcombine.low %v57_v16, %v61_v17  ;;  %v71_v23 = vcombine.low %v65_v18, %v69_v19 }
   0xa   :  { %v41_v24 = vrot.slane %v33_v20, %v40_v11  ;;  %v48_v25 = vrot.slane %v34_v21, %v40_v11 }
   0xb   :  { %v78_v27 = vrot.slane %v70_v22, %v40_v11  ;;  %v85_v28 = vrot.slane %v71_v23, %v40_v11 }
   0xc   :  { %v49_v29 = vcombine.low %v41_v24, %v48_v25 }
   0xd   :  { %v86_v30 = vcombine.low %v78_v27, %v85_v28 }
   0xe   :  { %v51_v31 = vmul.f32 %v49_v29, %v14_v26 }
  0x10   :  { %v88_v32 = vadd.f32 %v86_v30, %v51_v31 }
  0x12   :  { %v89_v33 = vmax.f32 %v88_v32, 0.0 }
  0x14   :  { %90 = vst [vmem:[%s132_s3] sm:$0xff] %v89_v33 }

// kernel: advection_core.65
= control target key start
LH: loop header
LB: loop body
LE: loop exit
PB: predicated region body
PF: predicated region fallthrough
CT: control target
= control target key end

     0   :  { %v731_v36 = vmov 1983009808   ;;  %v20_v38 = vlaneseq  ;;  %vm519_vm0 = vcmask 1041408   ;;  %s971_s1 = inlined_call_operand.vmem [shape: bf16[512,256], index: 1, kind: input, shape index: {}]   ;;  %s972_s0 = inlined_call_operand.vmem [shape: f32[2,512], index: 0, kind: input, shape index: {}]   ;;  %s973_s2 = inlined_call_operand.vmem [shape: f32[2,256], index: 2, kind: output, shape index: {0}]   ;;  %s974_s3 = inlined_call_operand.vmem [shape: f32[8,256], index: 3, kind: output, shape index: {1}]   ;;  %s975_s4 = inlined_call_operand.vmem [shape: f32[8,256], index: 4, kind: output, shape index: {2}]  }
   0x1   :  { %v634_v0 = vld [vmem:[%s971_s1 + $0x4] ss:$8 sps:$4 sm:$0xff]   ;;  %v638_v2 = vld [vmem:[%s971_s1] ss:$8 sps:$4 sm:$0xff]   ;;  %v640_v4 = vld [vmem:[%s971_s1 + $0x14] ss:$8 sps:$4 sm:$0xff]   ;;  %v18_v37 = vunpack.c.l.s4 %v731_v36 }
   0x2   :  { %v636_v1 = vld [vmem:[%s971_s1 + $0x104] ss:$8 sps:$4 sm:$0xff]   ;;  %425 = vmatprep.subr.bf16.mxu1 %v634_v0  ;;  %v639_v3 = vld [vmem:[%s971_s1 + $0x100] ss:$8 sps:$4 sm:$0xff]   ;;  %v642_v5 = vld [vmem:[%s971_s1 + $0x114] ss:$8 sps:$4 sm:$0xff]  }
   0x3   :  { %466 = vmatprep.subr.bf16.mxu0 %v636_v1  ;;  %426 = vmatpush1.bf16.msra.mxu1 %v638_v2  ;;  %v644_v6 = vld [vmem:[%s971_s1 + $0x10] ss:$8 sps:$4 sm:$0xff]   ;;  %v646_v8 = vld [vmem:[%s971_s1 + $0x24] ss:$8 sps:$4 sm:$0xff]   ;;  %v650_v10 = vld [vmem:[%s971_s1 + $0x20] ss:$8 sps:$4 sm:$0xff]   ;;  %v19_v42 = vunpack.c.0.s8 %v18_v37 }
   0x4   :  { %467 = vmatpush1.bf16.msra.mxu0 %v639_v3  ;;  %427 = vmatprep.subr.bf16.mxu1 %v640_v4  ;;  %v645_v7 = vld [vmem:[%s971_s1 + $0x110] ss:$8 sps:$4 sm:$0xff]   ;;  %v648_v9 = vld [vmem:[%s971_s1 + $0x124] ss:$8 sps:$4 sm:$0xff]   ;;  %v651_v11 = vld [vmem:[%s971_s1 + $0x120] ss:$8 sps:$4 sm:$0xff]  }
   0x5   :  { %468 = vmatprep.subr.bf16.mxu0 %v642_v5  ;;  %v652_v12 = vld [vmem:[%s971_s1 + $0x34] ss:$8 sps:$4 sm:$0xff]   ;;  %v656_v14 = vld [vmem:[%s971_s1 + $0x30] ss:$8 sps:$4 sm:$0xff]   ;;  %v658_v16 = vld [vmem:[%s971_s1 + $0x44] ss:$8 sps:$4 sm:$0xff]  }
   0x6   :  { %v654_v13 = vld [vmem:[%s971_s1 + $0x134] ss:$8 sps:$4 sm:$0xff]   ;;  %v657_v15 = vld [vmem:[%s971_s1 + $0x130] ss:$8 sps:$4 sm:$0xff]   ;;  %v660_v17 = vld [vmem:[%s971_s1 + $0x144] ss:$8 sps:$4 sm:$0xff]  }
   0x7   :  { %428 = vmatpush1.bf16.msra.mxu1 %v644_v6  ;;  %v662_v18 = vld [vmem:[%s971_s1 + $0x40] ss:$8 sps:$4 sm:$0xff]   ;;  %v664_v20 = vld [vmem:[%s971_s1 + $0x54] ss:$8 sps:$4 sm:$0xff]   ;;  %v668_v22 = vld [vmem:[%s971_s1 + $0x50] ss:$8 sps:$4 sm:$0xff]  }
   0x8   :  { %469 = vmatpush1.bf16.msra.mxu0 %v645_v7  ;;  %429 = vmatprep.subr.bf16.mxu1 %v646_v8  ;;  %v663_v19 = vld [vmem:[%s971_s1 + $0x140] ss:$8 sps:$4 sm:$0xff]   ;;  %v666_v21 = vld [vmem:[%s971_s1 + $0x154] ss:$8 sps:$4 sm:$0xff]   ;;  %v669_v23 = vld [vmem:[%s971_s1 + $0x150] ss:$8 sps:$4 sm:$0xff]  }
   0x9   :  { %470 = vmatprep.subr.bf16.mxu0 %v648_v9  ;;  %v670_v24 = vld [vmem:[%s971_s1 + $0x64] ss:$8 sps:$4 sm:$0xff]   ;;  %v674_v26 = vld [vmem:[%s971_s1 + $0x60] ss:$8 sps:$4 sm:$0xff]   ;;  %v676_v28 = vld [vmem:[%s971_s1 + $0x74] ss:$8 sps:$4 sm:$0xff]  }
   0xa   :  { %v672_v25 = vld [vmem:[%s971_s1 + $0x164] ss:$8 sps:$4 sm:$0xff]   ;;  %v675_v27 = vld [vmem:[%s971_s1 + $0x160] ss:$8 sps:$4 sm:$0xff]   ;;  %v678_v29 = vld [vmem:[%s971_s1 + $0x174] ss:$8 sps:$4 sm:$0xff]  }
   0xb   :  { %430 = vmatpush1.bf16.msra.mxu1 %v650_v10  ;;  %v680_v30 = vld [vmem:[%s971_s1 + $0x70] ss:$8 sps:$4 sm:$0xff]   ;;  %v682_v32 = vld [vmem:[%s971_s1 + $0x84] ss:$8 sps:$4 sm:$0xff]   ;;  %v686_v34 = vld [vmem:[%s971_s1 + $0x80] ss:$8 sps:$4 sm:$0xff]  }
   0xc   :  { %471 = vmatpush1.bf16.msra.mxu0 %v651_v11  ;;  %431 = vmatprep.subr.bf16.mxu1 %v652_v12  ;;  %v681_v31 = vld [vmem:[%s971_s1 + $0x170] ss:$8 sps:$4 sm:$0xff]   ;;  %v684_v33 = vld [vmem:[%s971_s1 + $0x184] ss:$8 sps:$4 sm:$0xff]   ;;  %v687_v35 = vld [vmem:[%s971_s1 + $0x180] ss:$8 sps:$4 sm:$0xff]  }
   0xd   :  { %472 = vmatprep.subr.bf16.mxu0 %v654_v13  ;;  %v688_v39 = vld [vmem:[%s971_s1 + $0x94] ss:$8 sps:$4 sm:$0xff]   ;;  %v692_v41 = vld [vmem:[%s971_s1 + $0x90] ss:$8 sps:$4 sm:$0xff]   ;;  %v21_v43 = vshrl.u32 %v20_v38, 7  ;;  %v14_v52 = vld [vmem:[%s972_s0] sm:$0xff] }
   0xe   :  { %v690_v40 = vld [vmem:[%s971_s1 + $0x194] ss:$8 sps:$4 sm:$0xff]   ;;  %v693_v44 = vld [vmem:[%s971_s1 + $0x190] ss:$8 sps:$4 sm:$0xff]   ;;  %v694_v45 = vld [vmem:[%s971_s1 + $0xa4] ss:$8 sps:$4 sm:$0xff]   ;;  %v16_v54 = vcombine.high %v14_v52, %v14_v52 }
   0xf   :  { %432 = vmatpush1.bf16.msra.mxu1 %v656_v14  ;;  %v696_v46 = vld [vmem:[%s971_s1 + $0x1a4] ss:$8 sps:$4 sm:$0xff]   ;;  %v698_v47 = vld [vmem:[%s971_s1 + $0xa0] ss:$8 sps:$4 sm:$0xff]   ;;  %v22_v49 = vsub.s32 %v19_v42, %v21_v43  ;;  %v700_v50 = vld [vmem:[%s971_s1 + $0xb4] ss:$8 sps:$4 sm:$0xff]  }
  0x10   :  { %473 = vmatpush1.bf16.msra.mxu0 %v657_v15  ;;  %433 = vmatprep.subr.bf16.mxu1 %v658_v16  ;;  %v699_v48 = vld [vmem:[%s971_s1 + $0x1a0] ss:$8 sps:$4 sm:$0xff]   ;;  %v702_v51 = vld [vmem:[%s971_s1 + $0x1b4] ss:$8 sps:$4 sm:$0xff]   ;;  %v704_v55 = vld [vmem:[%s971_s1 + $0xb0] ss:$8 sps:$4 sm:$0xff]  }
  0x11   :  { %474 = vmatprep.subr.bf16.mxu0 %v660_v17  ;;  %v23_v53 = vrot.slane %v14_v52, %v22_v49  ;;  %v705_v56 = vld [vmem:[%s971_s1 + $0x1b0] ss:$8 sps:$4 sm:$0xff]   ;;  %v706_v57 = vld [vmem:[%s971_s1 + $0xc4] ss:$8 sps:$4 sm:$0xff]   ;;  %v30_v60 = vrot.slane %v16_v54, %v22_v49  ;;  %v710_v63 = vld [vmem:[%s971_s1 + $0xc0] ss:$8 sps:$4 sm:$0xff]  }
  0x12   :  { %v708_v58 = vld [vmem:[%s971_s1 + $0x1c4] ss:$8 sps:$4 sm:$0xff]   ;;  %v711_v0 = vld [vmem:[%s971_s1 + $0x1c0] ss:$8 sps:$4 sm:$0xff]   ;;  %v712_v1 = vld [vmem:[%s971_s1 + $0xd4] ss:$8 sps:$4 sm:$0xff]  }
  0x13   :  { %434 = vmatpush1.bf16.msra.mxu1 %v662_v18  ;;  %v31_v59 = vcombine.high %v23_v53, %v23_v53  ;;  %v32_v62 = vcombine.high %v30_v60, %v30_v60  ;;  %v714_v2 = vld [vmem:[%s971_s1 + $0x1d4] ss:$8 sps:$4 sm:$0xff]   ;;  %v716_v4 = vld [vmem:[%s971_s1 + $0xd0] ss:$8 sps:$4 sm:$0xff]   ;;  %v718_v6 = vld [vmem:[%s971_s1 + $0xe4] ss:$8 sps:$4 sm:$0xff]   ;;  %v37_v14 = vpack.c.bf16 %v23_v53, %v23_v53  ;;  %v39_v15 = vpack.c.bf16 %v30_v60, %v30_v60 }
  0x14   :  { %475 = vmatpush1.bf16.msra.mxu0 %v663_v19  ;;  %435 = vmatprep.subr.bf16.mxu1 %v664_v20  ;;  %v717_v5 = vld [vmem:[%s971_s1 + $0x1d0] ss:$8 sps:$4 sm:$0xff]   ;;  %v720_v7 = vld [vmem:[%s971_s1 + $0x1e4] ss:$8 sps:$4 sm:$0xff]   ;;  %v722_v8 = vld [vmem:[%s971_s1 + $0xe0] ss:$8 sps:$4 sm:$0xff]  }
  0x15   :  { %476 = vmatprep.subr.bf16.mxu0 %v666_v21  ;;  %v38_v61 = vpack.c.bf16 %v31_v59, %v31_v59  ;;  %v40_v3 = vpack.c.bf16 %v32_v62, %v32_v62  ;;  %v723_v9 = vld [vmem:[%s971_s1 + $0x1e0] ss:$8 sps:$4 sm:$0xff]   ;;  %v724_v10 = vld [vmem:[%s971_s1 + $0xf4] ss:$8 sps:$4 sm:$0xff]   ;;  %v728_v12 = vld [vmem:[%s971_s1 + $0xf0] ss:$8 sps:$4 sm:$0xff]  }
  0x16   :  { %v726_v11 = vld [vmem:[%s971_s1 + $0x1f4] ss:$8 sps:$4 sm:$0xff]   ;;  %v729_v13 = vld [vmem:[%s971_s1 + $0x1f0] ss:$8 sps:$4 sm:$0xff]  }
  0x17   :  { %436 = vmatpush1.bf16.msra.mxu1 %v668_v22  ;;  %457 = vmatprep.mubr.bf16.mxu1 %v38_v61 }
  0x18   :  { %477 = vmatpush1.bf16.msra.mxu0 %v669_v23  ;;  %437 = vmatprep.subr.bf16.mxu1 %v670_v24 }
  0x19   :  { %478 = vmatprep.subr.bf16.mxu0 %v672_v25  ;;  %498 = vmatprep.mubr.bf16.mxu0 %v40_v3 }
  0x1b   :  { %438 = vmatpush1.bf16.msra.mxu1 %v674_v26 }
  0x1c   :  { %479 = vmatpush1.bf16.msra.mxu0 %v675_v27  ;;  %439 = vmatprep.subr.bf16.mxu1 %v676_v28 }
  0x1d   :  { %480 = vmatprep.subr.bf16.mxu0 %v678_v29 }
  0x1f   :  { %440 = vmatpush1.bf16.msra.mxu1 %v680_v30 }
  0x20   :  { %481 = vmatpush1.bf16.msra.mxu0 %v681_v31  ;;  %441 = vmatprep.subr.bf16.mxu1 %v682_v32 }
  0x21   :  { %482 = vmatprep.subr.bf16.mxu0 %v684_v33 }
  0x23   :  { %442 = vmatpush1.bf16.msra.mxu1 %v686_v34 }
  0x24   :  { %483 = vmatpush1.bf16.msra.mxu0 %v687_v35  ;;  %443 = vmatprep.subr.bf16.mxu1 %v688_v39 }
  0x25   :  { %484 = vmatprep.subr.bf16.mxu0 %v690_v40 }
  0x27   :  { %444 = vmatpush1.bf16.msra.mxu1 %v692_v41 }
  0x28   :  { %485 = vmatpush1.bf16.msra.mxu0 %v693_v44  ;;  %445 = vmatprep.subr.bf16.mxu1 %v694_v45 }
  0x29   :  { %486 = vmatprep.subr.bf16.mxu0 %v696_v46 }
  0x2b   :  { %446 = vmatpush1.bf16.msra.mxu1 %v698_v47 }
  0x2c   :  { %487 = vmatpush1.bf16.msra.mxu0 %v699_v48  ;;  %447 = vmatprep.subr.bf16.mxu1 %v700_v50 }
  0x2d   :  { %488 = vmatprep.subr.bf16.mxu0 %v702_v51 }
  0x2f   :  { %448 = vmatpush1.bf16.msra.mxu1 %v704_v55 }
  0x30   :  { %489 = vmatpush1.bf16.msra.mxu0 %v705_v56  ;;  %449 = vmatprep.subr.bf16.mxu1 %v706_v57 }
  0x31   :  { %490 = vmatprep.subr.bf16.mxu0 %v708_v58 }
  0x33   :  { %450 = vmatpush1.bf16.msra.mxu1 %v710_v63 }
  0x34   :  { %491 = vmatpush1.bf16.msra.mxu0 %v711_v0  ;;  %451 = vmatprep.subr.bf16.mxu1 %v712_v1 }
  0x35   :  { %492 = vmatprep.subr.bf16.mxu0 %v714_v2 }
  0x37   :  { %452 = vmatpush1.bf16.msra.mxu1 %v716_v4 }
  0x38   :  { %493 = vmatpush1.bf16.msra.mxu0 %v717_v5  ;;  %453 = vmatprep.subr.bf16.mxu1 %v718_v6 }
  0x39   :  { %494 = vmatprep.subr.bf16.mxu0 %v720_v7 }
  0x3b   :  { %454 = vmatpush1.bf16.msra.mxu1 %v722_v8 }
  0x3c   :  { %495 = vmatpush1.bf16.msra.mxu0 %v723_v9  ;;  %455 = vmatprep.subr.bf16.mxu1 %v724_v10 }
  0x3d   :  { %496 = vmatprep.subr.bf16.mxu0 %v726_v11 }
  0x3f   :  { %456 = vmatpush1.bf16.msra.mxu1 %v728_v12 }
  0x40   :  { %497 = vmatpush1.bf16.msra.mxu0 %v729_v13 }
  0x42   :  { %458 = vmatmul.mubr.bf16.vlgmr.msra.gmra.mrb[0].mxu1 %v37_v14 }
  0x43   :  { %499 = vmatmul.mubr.bf16.vlgmr.msra.gmra.mrb[0].mxu0 %v39_v15 }
 0x115   :  { %v459_v16 = vpop.f32.mrb[0].mxu1 }
 0x116   :  { %v500_v17 = vpop.f32.mrb[0].mxu0  ;;  %v461_v19 = vpop.f32.mrb[1].mxu1 }
 0x117   :  { %v501_v18 = vadd.f32 %v500_v17, %v459_v16  ;;  %v502_v20 = vpop.f32.mrb[1].mxu0  ;;  %v463_v22 = vpop.f32.mrb[2].mxu1 }
 0x118   :  { %v503_v21 = vadd.f32 %v502_v20, %v461_v19  ;;  %v504_v23 = vpop.f32.mrb[2].mxu0  ;;  %v464_v26 = vpop.f32.mrb[3].mxu1 }
 0x119   :  { %v520_v24 = vsel %vm519_vm0, %v501_v18, 0.0  ;;  %v536_v25 = vmul.f32 %v501_v18, %v501_v18  ;;  %v505_v27 = vpop.f32.mrb[3].mxu0 }
 0x11a   :  { %v521_v28 = vrot.slane %v520_v24, 4  ;;  %v509_v29 = vcombine.low %v501_v18, %v503_v21  ;;  %v527_v30 = vsel %vm519_vm0, %v503_v21, 0.0  ;;  %v537_v31 = vmul.f32 %v503_v21, %v503_v21 }
 0x11b   :  { %v538_v32 = vsel %vm519_vm0, %v536_v25, 0.0  ;;  %v528_v33 = vrot.slane %v527_v30, 4 }
 0x11c   :  { %v522_v34 = vadd.f32 %v521_v28, %v520_v24  ;;  %v539_v35 = vrot.slane %v538_v32, 4  ;;  %630 = vst.sshfl [vmem:[%s973_s2] sm:$0x33 pattern:$0x76325410] %v509_v29  ;;  %v545_v36 = vsel %vm519_vm0, %v537_v31, 0.0 }
 0x11d   :  { %v529_v37 = vadd.f32 %v528_v33, %v527_v30  ;;  %v546_v38 = vrot.slane %v545_v36, 4 }
 0x11e   :  { %v523_v39 = vrot.slane %v522_v34, 2  ;;  %v540_v40 = vadd.f32 %v539_v35, %v538_v32 }
 0x11f   :  { %v530_v41 = vrot.slane %v529_v37, 2  ;;  %v547_v42 = vadd.f32 %v546_v38, %v545_v36 }
 0x120   :  { %v524_v43 = vadd.f32 %v523_v39, %v522_v34  ;;  %v541_v44 = vrot.slane %v540_v40, 2 }
 0x121   :  { %v531_v45 = vadd.f32 %v530_v41, %v529_v37  ;;  %v548_v46 = vrot.slane %v547_v42, 2 }
 0x122   :  { %v525_v47 = vrot.slane %v524_v43, 1  ;;  %v542_v48 = vadd.f32 %v541_v44, %v540_v40 }
 0x123   :  { %v532_v49 = vrot.slane %v531_v45, 1  ;;  %v549_v50 = vadd.f32 %v548_v46, %v547_v42 }
 0x124   :  { %v526_v51 = vadd.f32 %v525_v47, %v524_v43  ;;  %v543_v52 = vrot.slane %v542_v48, 1 }
 0x125   :  { %v533_v53 = vadd.f32 %v532_v49, %v531_v45  ;;  %v550_v54 = vrot.slane %v549_v50, 1 }
 0x126   :  { %534 = vst [vmem:[%s974_s3] sm:$0xff] %v526_v51  ;;  %v544_v55 = vadd.f32 %v543_v52, %v542_v48 }
 0x127   :  { %535 = vst [vmem:[%s974_s3 + $0x8] sm:$0xff] %v533_v53  ;;  %v551_v56 = vadd.f32 %v550_v54, %v549_v50 }
 0x128   :  { %552 = vst [vmem:[%s975_s4] sm:$0xff] %v544_v55 }
 0x129   :  { %553 = vst [vmem:[%s975_s4 + $0x8] sm:$0xff] %v551_v56 }

// kernel: advection_core.63
= control target key start
LH: loop header
LB: loop body
LE: loop exit
PB: predicated region body
PF: predicated region fallthrough
CT: control target
= control target key end

     0   :  { %v2703_v36 = vmov 1983009808   ;;  %v22_v38 = vlaneseq  ;;  %vm1955_vm0 = vcmask 1041408   ;;  %s3569_s1 = inlined_call_operand.vmem [shape: bf16[1024,512], index: 1, kind: input, shape index: {}]   ;;  %s3570_s0 = inlined_call_operand.vmem [shape: f32[2,1024], index: 0, kind: input, shape index: {}]   ;;  %s3571_s2 = inlined_call_operand.vmem [shape: f32[2,512], index: 2, kind: output, shape index: {0}]   ;;  %s3572_s3 = inlined_call_operand.vmem [shape: f32[8,512], index: 3, kind: output, shape index: {1}]   ;;  %s3573_s4 = inlined_call_operand.vmem [shape: f32[8,512], index: 4, kind: output, shape index: {2}]  }
   0x1   :  { %v2317_v0 = vld [vmem:[%s3569_s1 + $0x4] ss:$16 sps:$4 sm:$0xff]   ;;  %v2319_v1 = vld [vmem:[%s3569_s1 + $0xc] ss:$16 sps:$4 sm:$0xff]   ;;  %v2321_v2 = vld [vmem:[%s3569_s1] ss:$16 sps:$4 sm:$0xff]   ;;  %v20_v37 = vunpack.c.l.s4 %v2703_v36 }
   0x2   :  { %1604 = vmatprep.subr.bf16.mxu0 %v2317_v0  ;;  %v2322_v3 = vld [vmem:[%s3569_s1 + $0x8] ss:$16 sps:$4 sm:$0xff]   ;;  %1768 = vmatprep.subr.bf16.mxu1 %v2319_v1  ;;  %v2323_v4 = vld [vmem:[%s3569_s1 + $0x24] ss:$16 sps:$4 sm:$0xff]   ;;  %v2325_v5 = vld [vmem:[%s3569_s1 + $0x2c] ss:$16 sps:$4 sm:$0xff]  }
   0x3   :  { %1605 = vmatpush1.bf16.msra.mxu0 %v2321_v2  ;;  %1769 = vmatpush1.bf16.msra.mxu1 %v2322_v3  ;;  %v2327_v6 = vld [vmem:[%s3569_s1 + $0x20] ss:$16 sps:$4 sm:$0xff]   ;;  %v2328_v7 = vld [vmem:[%s3569_s1 + $0x28] ss:$16 sps:$4 sm:$0xff]   ;;  %v2329_v8 = vld [vmem:[%s3569_s1 + $0x44] ss:$16 sps:$4 sm:$0xff]   ;;  %v21_v42 = vunpack.c.0.s8 %v20_v37 }
   0x4   :  { %1606 = vmatprep.subr.bf16.mxu0 %v2323_v4  ;;  %1770 = vmatprep.subr.bf16.mxu1 %v2325_v5  ;;  %v2331_v9 = vld [vmem:[%s3569_s1 + $0x4c] ss:$16 sps:$4 sm:$0xff]   ;;  %v2333_v10 = vld [vmem:[%s3569_s1 + $0x40] ss:$16 sps:$4 sm:$0xff]   ;;  %v2334_v11 = vld [vmem:[%s3569_s1 + $0x48] ss:$16 sps:$4 sm:$0xff]  }
   0x5   :  { %v2335_v12 = vld [vmem:[%s3569_s1 + $0x64] ss:$16 sps:$4 sm:$0xff]   ;;  %v2337_v13 = vld [vmem:[%s3569_s1 + $0x6c] ss:$16 sps:$4 sm:$0xff]   ;;  %v2339_v14 = vld [vmem:[%s3569_s1 + $0x60] ss:$16 sps:$4 sm:$0xff]  }
   0x6   :  { %v2340_v15 = vld [vmem:[%s3569_s1 + $0x68] ss:$16 sps:$4 sm:$0xff]   ;;  %v2341_v16 = vld [vmem:[%s3569_s1 + $0x84] ss:$16 sps:$4 sm:$0xff]   ;;  %v2343_v17 = vld [vmem:[%s3569_s1 + $0x8c] ss:$16 sps:$4 sm:$0xff]  }
   0x7   :  { %1607 = vmatpush1.bf16.msra.mxu0 %v2327_v6  ;;  %1771 = vmatpush1.bf16.msra.mxu1 %v2328_v7  ;;  %v2345_v18 = vld [vmem:[%s3569_s1 + $0x80] ss:$16 sps:$4 sm:$0xff]   ;;  %v2346_v19 = vld [vmem:[%s3569_s1 + $0x88] ss:$16 sps:$4 sm:$0xff]   ;;  %v2347_v20 = vld [vmem:[%s3569_s1 + $0xa4] ss:$16 sps:$4 sm:$0xff]  }
   0x8   :  { %1608 = vmatprep.subr.bf16.mxu0 %v2329_v8  ;;  %1772 = vmatprep.subr.bf16.mxu1 %v2331_v9  ;;  %v2349_v21 = vld [vmem:[%s3569_s1 + $0xac] ss:$16 sps:$4 sm:$0xff]   ;;  %v2351_v22 = vld [vmem:[%s3569_s1 + $0xa0] ss:$16 sps:$4 sm:$0xff]   ;;  %v2352_v23 = vld [vmem:[%s3569_s1 + $0xa8] ss:$16 sps:$4 sm:$0xff]  }
   0x9   :  { %v2353_v24 = vld [vmem:[%s3569_s1 + $0xc4] ss:$16 sps:$4 sm:$0xff]   ;;  %v2355_v25 = vld [vmem:[%s3569_s1 + $0xcc] ss:$16 sps:$4 sm:$0xff]   ;;  %v2357_v26 = vld [vmem:[%s3569_s1 + $0xc0] ss:$16 sps:$4 sm:$0xff]  }
   0xa   :  { %v2358_v27 = vld [vmem:[%s3569_s1 + $0xc8] ss:$16 sps:$4 sm:$0xff]   ;;  %v2359_v28 = vld [vmem:[%s3569_s1 + $0xe4] ss:$16 sps:$4 sm:$0xff]   ;;  %v2361_v29 = vld [vmem:[%s3569_s1 + $0xec] ss:$16 sps:$4 sm:$0xff]  }
   0xb   :  { %1609 = vmatpush1.bf16.msra.mxu0 %v2333_v10  ;;  %1773 = vmatpush1.bf16.msra.mxu1 %v2334_v11  ;;  %v2363_v30 = vld [vmem:[%s3569_s1 + $0xe0] ss:$16 sps:$4 sm:$0xff]   ;;  %v2364_v31 = vld [vmem:[%s3569_s1 + $0xe8] ss:$16 sps:$4 sm:$0xff]   ;;  %v2365_v32 = vld [vmem:[%s3569_s1 + $0x104] ss:$16 sps:$4 sm:$0xff]  }
   0xc   :  { %1610 = vmatprep.subr.bf16.mxu0 %v2335_v12  ;;  %1774 = vmatprep.subr.bf16.mxu1 %v2337_v13  ;;  %v2367_v33 = vld [vmem:[%s3569_s1 + $0x10c] ss:$16 sps:$4 sm:$0xff]   ;;  %v2369_v34 = vld [vmem:[%s3569_s1 + $0x100] ss:$16 sps:$4 sm:$0xff]   ;;  %v2370_v35 = vld [vmem:[%s3569_s1 + $0x108] ss:$16 sps:$4 sm:$0xff]  }
   0xd   :  { %v2371_v39 = vld [vmem:[%s3569_s1 + $0x124] ss:$16 sps:$4 sm:$0xff]   ;;  %v2373_v40 = vld [vmem:[%s3569_s1 + $0x12c] ss:$16 sps:$4 sm:$0xff]   ;;  %v2375_v41 = vld [vmem:[%s3569_s1 + $0x120] ss:$16 sps:$4 sm:$0xff]  }
   0xe   :  { %v23_v43 = vshrl.u32 %v22_v38, 7  ;;  %v2376_v44 = vld [vmem:[%s3569_s1 + $0x128] ss:$16 sps:$4 sm:$0xff]   ;;  %v2377_v45 = vld [vmem:[%s3569_s1 + $0x144] ss:$16 sps:$4 sm:$0xff]  }
   0xf   :  { %1611 = vmatpush1.bf16.msra.mxu0 %v2339_v14  ;;  %1775 = vmatpush1.bf16.msra.mxu1 %v2340_v15  ;;  %v2379_v46 = vld [vmem:[%s3569_s1 + $0x14c] ss:$16 sps:$4 sm:$0xff]   ;;  %v2381_v47 = vld [vmem:[%s3569_s1 + $0x140] ss:$16 sps:$4 sm:$0xff]   ;;  %v2382_v48 = vld [vmem:[%s3569_s1 + $0x148] ss:$16 sps:$4 sm:$0xff]  }
  0x10   :  { %1612 = vmatprep.subr.bf16.mxu0 %v2341_v16  ;;  %1776 = vmatprep.subr.bf16.mxu1 %v2343_v17  ;;  %v2861_v49 = vsub.s32 %v21_v42, %v23_v43  ;;  %v2383_v50 = vld [vmem:[%s3569_s1 + $0x164] ss:$16 sps:$4 sm:$0xff]   ;;  %v2385_v51 = vld [vmem:[%s3569_s1 + $0x16c] ss:$16 sps:$4 sm:$0xff]   ;;  %v2387_v54 = vld [vmem:[%s3569_s1 + $0x160] ss:$16 sps:$4 sm:$0xff]  }
  0x11   :  { %v14_v52 = vld [vmem:[%s3570_s0] sm:$0xff]  ;;  %v2388_v55 = vld [vmem:[%s3569_s1 + $0x168] ss:$16 sps:$4 sm:$0xff]   ;;  %v2391_v57 = vld [vmem:[%s3569_s1 + $0x18c] ss:$16 sps:$4 sm:$0xff]  }
  0x12   :  { %v25_v53 = vrot.slane %v14_v52, %v2861_v49  ;;  %v2389_v56 = vld [vmem:[%s3569_s1 + $0x184] ss:$16 sps:$4 sm:$0xff]   ;;  %v2393_v60 = vld [vmem:[%s3569_s1 + $0x180] ss:$16 sps:$4 sm:$0xff]   ;;  %v2394_v61 = vld [vmem:[%s3569_s1 + $0x188] ss:$16 sps:$4 sm:$0xff]   ;;  %v18_v4 = vcombine.high %v14_v52, %v14_v52 }
  0x13   :  { %1613 = vmatpush1.bf16.msra.mxu0 %v2345_v18  ;;  %1777 = vmatpush1.bf16.msra.mxu1 %v2346_v19  ;;  %v2395_v62 = vld [vmem:[%s3569_s1 + $0x1a4] ss:$16 sps:$4 sm:$0xff]   ;;  %v2397_v63 = vld [vmem:[%s3569_s1 + $0x1ac] ss:$16 sps:$4 sm:$0xff]   ;;  %v2399_v0 = vld [vmem:[%s3569_s1 + $0x1a0] ss:$16 sps:$4 sm:$0xff]  }
  0x14   :  { %1614 = vmatprep.subr.bf16.mxu0 %v2347_v20  ;;  %1778 = vmatprep.subr.bf16.mxu1 %v2349_v21  ;;  %v33_v58 = vcombine.high %v25_v53, %v25_v53  ;;  %v2400_v1 = vld [vmem:[%s3569_s1 + $0x1a8] ss:$16 sps:$4 sm:$0xff]   ;;  %v2401_v2 = vld [vmem:[%s3569_s1 + $0x1c4] ss:$16 sps:$4 sm:$0xff]   ;;  %v2403_v3 = vld [vmem:[%s3569_s1 + $0x1cc] ss:$16 sps:$4 sm:$0xff]   ;;  %v2922_v9 = vrot.slane %v18_v4, %v2861_v49  ;;  %v60_v15 = vpack.c.bf16 %v25_v53, %v25_v53 }
  0x15   :  { %v2405_v5 = vld [vmem:[%s3569_s1 + $0x1c0] ss:$16 sps:$4 sm:$0xff]   ;;  %v2406_v6 = vld [vmem:[%s3569_s1 + $0x1c8] ss:$16 sps:$4 sm:$0xff]   ;;  %v2407_v7 = vld [vmem:[%s3569_s1 + $0x1e4] ss:$16 sps:$4 sm:$0xff]  }
  0x16   :  { %v61_v59 = vpack.c.bf16 %v33_v58, %v33_v58  ;;  %v2409_v8 = vld [vmem:[%s3569_s1 + $0x1ec] ss:$16 sps:$4 sm:$0xff]   ;;  %v2411_v10 = vld [vmem:[%s3569_s1 + $0x1e0] ss:$16 sps:$4 sm:$0xff]   ;;  %v2412_v11 = vld [vmem:[%s3569_s1 + $0x1e8] ss:$16 sps:$4 sm:$0xff]   ;;  %v34_v14 = vcombine.high %v2922_v9, %v2922_v9 }
  0x17   :  { %1615 = vmatpush1.bf16.msra.mxu0 %v2351_v22  ;;  %1779 = vmatpush1.bf16.msra.mxu1 %v2352_v23  ;;  %v2417_v12 = vld [vmem:[%s3569_s1 + $0x204] ss:$16 sps:$4 sm:$0xff]   ;;  %v2420_v13 = vld [vmem:[%s3569_s1 + $0x20c] ss:$16 sps:$4 sm:$0xff]   ;;  %v2415_v16 = vld [vmem:[%s3569_s1 + $0x200] ss:$16 sps:$4 sm:$0xff]  }
  0x18   :  { %1616 = vmatprep.subr.bf16.mxu0 %v2353_v24  ;;  %1780 = vmatprep.subr.bf16.mxu1 %v2355_v25  ;;  %v2418_v17 = vld [vmem:[%s3569_s1 + $0x208] ss:$16 sps:$4 sm:$0xff]   ;;  %v2423_v18 = vld [vmem:[%s3569_s1 + $0x224] ss:$16 sps:$4 sm:$0xff]   ;;  %v2426_v19 = vld [vmem:[%s3569_s1 + $0x22c] ss:$16 sps:$4 sm:$0xff]   ;;  %v63_v20 = vpack.c.bf16 %v34_v14, %v34_v14 }
  0x19   :  { %1636 = vmatprep.mubr.bf16.mxu0 %v61_v59  ;;  %1800 = vmatprep.mubr.bf16.mxu1 %v61_v59  ;;  %v2421_v21 = vld [vmem:[%s3569_s1 + $0x220] ss:$16 sps:$4 sm:$0xff]   ;;  %v2424_v22 = vld [vmem:[%s3569_s1 + $0x228] ss:$16 sps:$4 sm:$0xff]   ;;  %v2429_v23 = vld [vmem:[%s3569_s1 + $0x244] ss:$16 sps:$4 sm:$0xff]  }
  0x1a   :  { %v2432_v24 = vld [vmem:[%s3569_s1 + $0x24c] ss:$16 sps:$4 sm:$0xff]   ;;  %v2427_v25 = vld [vmem:[%s3569_s1 + $0x240] ss:$16 sps:$4 sm:$0xff]   ;;  %v2448_v38 = vld [vmem:[%s3569_s1 + $0x2a8] ss:$16 sps:$4 sm:$0xff]  }
  0x1b   :  { %1617 = vmatpush1.bf16.msra.mxu0 %v2357_v26  ;;  %1781 = vmatpush1.bf16.msra.mxu1 %v2358_v27  ;;  %v2430_v26 = vld [vmem:[%s3569_s1 + $0x248] ss:$16 sps:$4 sm:$0xff]   ;;  %v2435_v27 = vld [vmem:[%s3569_s1 + $0x264] ss:$16 sps:$4 sm:$0xff]   ;;  %v2450_v36 = vld [vmem:[%s3569_s1 + $0x2ac] ss:$16 sps:$4 sm:$0xff]  }
  0x1c   :  { %1618 = vmatprep.subr.bf16.mxu0 %v2359_v28  ;;  %1782 = vmatprep.subr.bf16.mxu1 %v2361_v29  ;;  %v2438_v28 = vld [vmem:[%s3569_s1 + $0x26c] ss:$16 sps:$4 sm:$0xff]   ;;  %v2433_v29 = vld [vmem:[%s3569_s1 + $0x260] ss:$16 sps:$4 sm:$0xff]   ;;  %v2454_v42 = vld [vmem:[%s3569_s1 + $0x2c8] ss:$16 sps:$4 sm:$0xff]  }
  0x1d   :  { %v2445_v37 = vld [vmem:[%s3569_s1 + $0x2a0] ss:$16 sps:$4 sm:$0xff]   ;;  %v2459_v43 = vld [vmem:[%s3569_s1 + $0x2e4] ss:$16 sps:$4 sm:$0xff]   ;;  %v2474_v53 = vld [vmem:[%s3569_s1 + $0x32c] ss:$16 sps:$4 sm:$0xff]  }
  0x1e   :  { %v2471_v52 = vld [vmem:[%s3569_s1 + $0x324] ss:$16 sps:$4 sm:$0xff]   ;;  %v2475_v58 = vld [vmem:[%s3569_s1 + $0x340] ss:$16 sps:$4 sm:$0xff]   ;;  %v2478_v59 = vld [vmem:[%s3569_s1 + $0x348] ss:$16 sps:$4 sm:$0xff]  }
  0x1f   :  { %1619 = vmatpush1.bf16.msra.mxu0 %v2363_v30  ;;  %1783 = vmatpush1.bf16.msra.mxu1 %v2364_v31  ;;  %v2436_v30 = vld [vmem:[%s3569_s1 + $0x268] ss:$16 sps:$4 sm:$0xff]   ;;  %v2441_v31 = vld [vmem:[%s3569_s1 + $0x284] ss:$16 sps:$4 sm:$0xff]  }
  0x20   :  { %1620 = vmatprep.subr.bf16.mxu0 %v2365_v32  ;;  %1784 = vmatprep.subr.bf16.mxu1 %v2367_v33  ;;  %v2444_v32 = vld [vmem:[%s3569_s1 + $0x28c] ss:$16 sps:$4 sm:$0xff]   ;;  %v2439_v33 = vld [vmem:[%s3569_s1 + $0x280] ss:$16 sps:$4 sm:$0xff]   ;;  %v2495_v4 = vld [vmem:[%s3569_s1 + $0x3a4] ss:$16 sps:$4 sm:$0xff]  }
  0x21   :  { %v2507_v14 = vld [vmem:[%s3569_s1 + $0x3e4] ss:$16 sps:$4 sm:$0xff]  }
  0x23   :  { %1621 = vmatpush1.bf16.msra.mxu0 %v2369_v34  ;;  %1785 = vmatpush1.bf16.msra.mxu1 %v2370_v35  ;;  %v2442_v34 = vld [vmem:[%s3569_s1 + $0x288] ss:$16 sps:$4 sm:$0xff]   ;;  %v2447_v35 = vld [vmem:[%s3569_s1 + $0x2a4] ss:$16 sps:$4 sm:$0xff]  }
  0x24   :  { %1622 = vmatprep.subr.bf16.mxu0 %v2371_v39  ;;  %1786 = vmatprep.subr.bf16.mxu1 %v2373_v40  ;;  %v2453_v39 = vld [vmem:[%s3569_s1 + $0x2c4] ss:$16 sps:$4 sm:$0xff]   ;;  %v2456_v40 = vld [vmem:[%s3569_s1 + $0x2cc] ss:$16 sps:$4 sm:$0xff]  }
  0x27   :  { %1623 = vmatpush1.bf16.msra.mxu0 %v2375_v41  ;;  %1787 = vmatpush1.bf16.msra.mxu1 %v2376_v44  ;;  %v2451_v41 = vld [vmem:[%s3569_s1 + $0x2c0] ss:$16 sps:$4 sm:$0xff]   ;;  %v2462_v44 = vld [vmem:[%s3569_s1 + $0x2ec] ss:$16 sps:$4 sm:$0xff]  }
  0x28   :  { %1624 = vmatprep.subr.bf16.mxu0 %v2377_v45  ;;  %1788 = vmatprep.subr.bf16.mxu1 %v2379_v46  ;;  %v2457_v45 = vld [vmem:[%s3569_s1 + $0x2e0] ss:$16 sps:$4 sm:$0xff]   ;;  %v2460_v46 = vld [vmem:[%s3569_s1 + $0x2e8] ss:$16 sps:$4 sm:$0xff]  }
  0x2b   :  { %1625 = vmatpush1.bf16.msra.mxu0 %v2381_v47  ;;  %1789 = vmatpush1.bf16.msra.mxu1 %v2382_v48  ;;  %v2465_v47 = vld [vmem:[%s3569_s1 + $0x304] ss:$16 sps:$4 sm:$0xff]   ;;  %v2468_v48 = vld [vmem:[%s3569_s1 + $0x30c] ss:$16 sps:$4 sm:$0xff]  }
  0x2c   :  { %1626 = vmatprep.subr.bf16.mxu0 %v2383_v50  ;;  %1790 = vmatprep.subr.bf16.mxu1 %v2385_v51  ;;  %v2463_v50 = vld [vmem:[%s3569_s1 + $0x300] ss:$16 sps:$4 sm:$0xff]   ;;  %v2466_v51 = vld [vmem:[%s3569_s1 + $0x308] ss:$16 sps:$4 sm:$0xff]  }
  0x2f   :  { %1627 = vmatpush1.bf16.msra.mxu0 %v2387_v54  ;;  %1791 = vmatpush1.bf16.msra.mxu1 %v2388_v55  ;;  %v2469_v54 = vld [vmem:[%s3569_s1 + $0x320] ss:$16 sps:$4 sm:$0xff]   ;;  %v2472_v55 = vld [vmem:[%s3569_s1 + $0x328] ss:$16 sps:$4 sm:$0xff]  }
  0x30   :  { %1628 = vmatprep.subr.bf16.mxu0 %v2389_v56  ;;  %1792 = vmatprep.subr.bf16.mxu1 %v2391_v57  ;;  %v2477_v56 = vld [vmem:[%s3569_s1 + $0x344] ss:$16 sps:$4 sm:$0xff]   ;;  %v2480_v57 = vld [vmem:[%s3569_s1 + $0x34c] ss:$16 sps:$4 sm:$0xff]  }
  0x33   :  { %1629 = vmatpush1.bf16.msra.mxu0 %v2393_v60  ;;  %1793 = vmatpush1.bf16.msra.mxu1 %v2394_v61  ;;  %v2483_v60 = vld [vmem:[%s3569_s1 + $0x364] ss:$16 sps:$4 sm:$0xff]   ;;  %v2486_v61 = vld [vmem:[%s3569_s1 + $0x36c] ss:$16 sps:$4 sm:$0xff]  }
  0x34   :  { %1630 = vmatprep.subr.bf16.mxu0 %v2395_v62  ;;  %1794 = vmatprep.subr.bf16.mxu1 %v2397_v63  ;;  %v2481_v62 = vld [vmem:[%s3569_s1 + $0x360] ss:$16 sps:$4 sm:$0xff]   ;;  %v2484_v63 = vld [vmem:[%s3569_s1 + $0x368] ss:$16 sps:$4 sm:$0xff]  }
  0x37   :  { %1631 = vmatpush1.bf16.msra.mxu0 %v2399_v0  ;;  %1795 = vmatpush1.bf16.msra.mxu1 %v2400_v1  ;;  %v2489_v0 = vld [vmem:[%s3569_s1 + $0x384] ss:$16 sps:$4 sm:$0xff]   ;;  %v2492_v1 = vld [vmem:[%s3569_s1 + $0x38c] ss:$16 sps:$4 sm:$0xff]  }
  0x38   :  { %1632 = vmatprep.subr.bf16.mxu0 %v2401_v2  ;;  %1796 = vmatprep.subr.bf16.mxu1 %v2403_v3  ;;  %v2487_v2 = vld [vmem:[%s3569_s1 + $0x380] ss:$16 sps:$4 sm:$0xff]   ;;  %v2490_v3 = vld [vmem:[%s3569_s1 + $0x388] ss:$16 sps:$4 sm:$0xff]  }
  0x3b   :  { %1633 = vmatpush1.bf16.msra.mxu0 %v2405_v5  ;;  %1797 = vmatpush1.bf16.msra.mxu1 %v2406_v6  ;;  %v2498_v5 = vld [vmem:[%s3569_s1 + $0x3ac] ss:$16 sps:$4 sm:$0xff]   ;;  %v2493_v6 = vld [vmem:[%s3569_s1 + $0x3a0] ss:$16 sps:$4 sm:$0xff]  }
  0x3c   :  { %1634 = vmatprep.subr.bf16.mxu0 %v2407_v7  ;;  %1798 = vmatprep.subr.bf16.mxu1 %v2409_v8  ;;  %v2496_v7 = vld [vmem:[%s3569_s1 + $0x3a8] ss:$16 sps:$4 sm:$0xff]   ;;  %v2501_v8 = vld [vmem:[%s3569_s1 + $0x3c4] ss:$16 sps:$4 sm:$0xff]  }
  0x3f   :  { %1635 = vmatpush1.bf16.msra.mxu0 %v2411_v10  ;;  %1799 = vmatpush1.bf16.msra.mxu1 %v2412_v11  ;;  %v2504_v10 = vld [vmem:[%s3569_s1 + $0x3cc] ss:$16 sps:$4 sm:$0xff]  }
  0x40   :  { %1645 = vmatprep.subr.bf16.mxu0 %v2417_v12  ;;  %1809 = vmatprep.subr.bf16.mxu1 %v2420_v13  ;;  %v3109_v11 = vld [vmem:[%s3570_s0 + $0x8] sm:$0xff]  ;;  %v2499_v12 = vld [vmem:[%s3569_s1 + $0x3c0] ss:$16 sps:$4 sm:$0xff]  }
  0x41   :  { %v2502_v13 = vld [vmem:[%s3569_s1 + $0x3c8] ss:$16 sps:$4 sm:$0xff]  }
  0x42   :  { %1637 = vmatmul.mubr.bf16.vlgmr.msra.gmra.mrb[0].mxu0 %v60_v15  ;;  %1801 = vmatmul.mubr.bf16.vlgmr.msra.gmra.mrb[0].mxu1 %v60_v15  ;;  %v2510_v15 = vld [vmem:[%s3569_s1 + $0x3ec] ss:$16 sps:$4 sm:$0xff]  }
  0x43   :  { %1646 = vmatpush1.bf16.msra.mxu0 %v2415_v16  ;;  %1810 = vmatpush1.bf16.msra.mxu1 %v2418_v17  ;;  %v3125_v16 = vrot.slane %v3109_v11, %v2861_v49  ;;  %v2505_v17 = vld [vmem:[%s3569_s1 + $0x3e0] ss:$16 sps:$4 sm:$0xff]  }
  0x44   :  { %1647 = vmatprep.subr.bf16.mxu0 %v2423_v18  ;;  %1811 = vmatprep.subr.bf16.mxu1 %v2426_v19  ;;  %v2508_v18 = vld [vmem:[%s3569_s1 + $0x3e8] ss:$16 sps:$4 sm:$0xff]   ;;  %v2513_v19 = vld [vmem:[%s3569_s1 + $0x404] ss:$16 sps:$4 sm:$0xff]  }
  0x45   :  { %1677 = vmatprep.mubr.bf16.mxu0 %v63_v20  ;;  %1841 = vmatprep.mubr.bf16.mxu1 %v63_v20  ;;  %v2516_v20 = vld [vmem:[%s3569_s1 + $0x40c] ss:$16 sps:$4 sm:$0xff]  }
  0x47   :  { %1648 = vmatpush1.bf16.msra.mxu0 %v2421_v21  ;;  %1812 = vmatpush1.bf16.msra.mxu1 %v2424_v22  ;;  %v50_v21 = vcombine.high %v3125_v16, %v3125_v16  ;;  %v62_v22 = vpack.c.bf16 %v2922_v9, %v2922_v9  ;;  %v2522_v9 = vld [vmem:[%s3569_s1 + $0x42c] ss:$16 sps:$4 sm:$0xff]  }
  0x48   :  { %1649 = vmatprep.subr.bf16.mxu0 %v2429_v23  ;;  %1813 = vmatprep.subr.bf16.mxu1 %v2432_v24  ;;  %v2511_v23 = vld [vmem:[%s3569_s1 + $0x400] ss:$16 sps:$4 sm:$0xff]   ;;  %v2514_v24 = vld [vmem:[%s3569_s1 + $0x408] ss:$16 sps:$4 sm:$0xff]  }
  0x4b   :  { %1650 = vmatpush1.bf16.msra.mxu0 %v2427_v25  ;;  %1814 = vmatpush1.bf16.msra.mxu1 %v2430_v26  ;;  %v2519_v25 = vld [vmem:[%s3569_s1 + $0x424] ss:$16 sps:$4 sm:$0xff]   ;;  %v65_v26 = vpack.c.bf16 %v50_v21, %v50_v21  ;;  %v2598_v21 = vld [vmem:[%s3569_s1 + $0x5c8] ss:$16 sps:$4 sm:$0xff]  }
  0x4c   :  { %1651 = vmatprep.subr.bf16.mxu0 %v2435_v27  ;;  %1815 = vmatprep.subr.bf16.mxu1 %v2438_v28  ;;  %v2517_v27 = vld [vmem:[%s3569_s1 + $0x420] ss:$16 sps:$4 sm:$0xff]   ;;  %v2520_v28 = vld [vmem:[%s3569_s1 + $0x428] ss:$16 sps:$4 sm:$0xff]  }
  0x4f   :  { %1652 = vmatpush1.bf16.msra.mxu0 %v2433_v29  ;;  %1816 = vmatpush1.bf16.msra.mxu1 %v2436_v30  ;;  %v2525_v29 = vld [vmem:[%s3569_s1 + $0x444] ss:$16 sps:$4 sm:$0xff]   ;;  %v2528_v30 = vld [vmem:[%s3569_s1 + $0x44c] ss:$16 sps:$4 sm:$0xff]  }
  0x50   :  { %1653 = vmatprep.subr.bf16.mxu0 %v2441_v31  ;;  %1817 = vmatprep.subr.bf16.mxu1 %v2444_v32  ;;  %v2523_v31 = vld [vmem:[%s3569_s1 + $0x440] ss:$16 sps:$4 sm:$0xff]   ;;  %v2526_v32 = vld [vmem:[%s3569_s1 + $0x448] ss:$16 sps:$4 sm:$0xff]  }
  0x53   :  { %1654 = vmatpush1.bf16.msra.mxu0 %v2439_v33  ;;  %1818 = vmatpush1.bf16.msra.mxu1 %v2442_v34  ;;  %v2531_v33 = vld [vmem:[%s3569_s1 + $0x464] ss:$16 sps:$4 sm:$0xff]   ;;  %v2534_v34 = vld [vmem:[%s3569_s1 + $0x46c] ss:$16 sps:$4 sm:$0xff]  }
  0x54   :  { %1655 = vmatprep.subr.bf16.mxu0 %v2447_v35  ;;  %1819 = vmatprep.subr.bf16.mxu1 %v2450_v36  ;;  %v2529_v35 = vld [vmem:[%s3569_s1 + $0x460] ss:$16 sps:$4 sm:$0xff]   ;;  %v2532_v36 = vld [vmem:[%s3569_s1 + $0x468] ss:$16 sps:$4 sm:$0xff]  }
  0x57   :  { %1656 = vmatpush1.bf16.msra.mxu0 %v2445_v37  ;;  %1820 = vmatpush1.bf16.msra.mxu1 %v2448_v38  ;;  %v2537_v37 = vld [vmem:[%s3569_s1 + $0x484] ss:$16 sps:$4 sm:$0xff]   ;;  %v2540_v38 = vld [vmem:[%s3569_s1 + $0x48c] ss:$16 sps:$4 sm:$0xff]  }
  0x58   :  { %1657 = vmatprep.subr.bf16.mxu0 %v2453_v39  ;;  %1821 = vmatprep.subr.bf16.mxu1 %v2456_v40  ;;  %v2535_v39 = vld [vmem:[%s3569_s1 + $0x480] ss:$16 sps:$4 sm:$0xff]   ;;  %v2538_v40 = vld [vmem:[%s3569_s1 + $0x488] ss:$16 sps:$4 sm:$0xff]  }
  0x5b   :  { %1658 = vmatpush1.bf16.msra.mxu0 %v2451_v41  ;;  %1822 = vmatpush1.bf16.msra.mxu1 %v2454_v42  ;;  %v2543_v41 = vld [vmem:[%s3569_s1 + $0x4a4] ss:$16 sps:$4 sm:$0xff]   ;;  %v2546_v42 = vld [vmem:[%s3569_s1 + $0x4ac] ss:$16 sps:$4 sm:$0xff]  }
  0x5c   :  { %1659 = vmatprep.subr.bf16.mxu0 %v2459_v43  ;;  %1823 = vmatprep.subr.bf16.mxu1 %v2462_v44  ;;  %v2541_v43 = vld [vmem:[%s3569_s1 + $0x4a0] ss:$16 sps:$4 sm:$0xff]   ;;  %v2544_v44 = vld [vmem:[%s3569_s1 + $0x4a8] ss:$16 sps:$4 sm:$0xff]  }
  0x5f   :  { %1660 = vmatpush1.bf16.msra.mxu0 %v2457_v45  ;;  %1824 = vmatpush1.bf16.msra.mxu1 %v2460_v46  ;;  %v2549_v45 = vld [vmem:[%s3569_s1 + $0x4c4] ss:$16 sps:$4 sm:$0xff]   ;;  %v2552_v46 = vld [vmem:[%s3569_s1 + $0x4cc] ss:$16 sps:$4 sm:$0xff]  }
  0x60   :  { %1661 = vmatprep.subr.bf16.mxu0 %v2465_v47  ;;  %1825 = vmatprep.subr.bf16.mxu1 %v2468_v48  ;;  %v2547_v47 = vld [vmem:[%s3569_s1 + $0x4c0] ss:$16 sps:$4 sm:$0xff]   ;;  %v2550_v48 = vld [vmem:[%s3569_s1 + $0x4c8] ss:$16 sps:$4 sm:$0xff]  }
  0x63   :  { %1662 = vmatpush1.bf16.msra.mxu0 %v2463_v50  ;;  %1826 = vmatpush1.bf16.msra.mxu1 %v2466_v51  ;;  %v2555_v50 = vld [vmem:[%s3569_s1 + $0x4e4] ss:$16 sps:$4 sm:$0xff]   ;;  %v2558_v51 = vld [vmem:[%s3569_s1 + $0x4ec] ss:$16 sps:$4 sm:$0xff]  }
  0x64   :  { %1663 = vmatprep.subr.bf16.mxu0 %v2471_v52  ;;  %1827 = vmatprep.subr.bf16.mxu1 %v2474_v53  ;;  %v2553_v52 = vld [vmem:[%s3569_s1 + $0x4e0] ss:$16 sps:$4 sm:$0xff]   ;;  %v2556_v53 = vld [vmem:[%s3569_s1 + $0x4e8] ss:$16 sps:$4 sm:$0xff]  }
  0x67   :  { %1664 = vmatpush1.bf16.msra.mxu0 %v2469_v54  ;;  %1828 = vmatpush1.bf16.msra.mxu1 %v2472_v55  ;;  %v2561_v54 = vld [vmem:[%s3569_s1 + $0x504] ss:$16 sps:$4 sm:$0xff]   ;;  %v2564_v55 = vld [vmem:[%s3569_s1 + $0x50c] ss:$16 sps:$4 sm:$0xff]  }
  0x68   :  { %1665 = vmatprep.subr.bf16.mxu0 %v2477_v56  ;;  %1829 = vmatprep.subr.bf16.mxu1 %v2480_v57  ;;  %v2559_v56 = vld [vmem:[%s3569_s1 + $0x500] ss:$16 sps:$4 sm:$0xff]   ;;  %v2562_v57 = vld [vmem:[%s3569_s1 + $0x508] ss:$16 sps:$4 sm:$0xff]  }
  0x6b   :  { %1666 = vmatpush1.bf16.msra.mxu0 %v2475_v58  ;;  %1830 = vmatpush1.bf16.msra.mxu1 %v2478_v59  ;;  %v2567_v58 = vld [vmem:[%s3569_s1 + $0x524] ss:$16 sps:$4 sm:$0xff]   ;;  %v2570_v59 = vld [vmem:[%s3569_s1 + $0x52c] ss:$16 sps:$4 sm:$0xff]  }
  0x6c   :  { %1667 = vmatprep.subr.bf16.mxu0 %v2483_v60  ;;  %1831 = vmatprep.subr.bf16.mxu1 %v2486_v61  ;;  %v2565_v60 = vld [vmem:[%s3569_s1 + $0x520] ss:$16 sps:$4 sm:$0xff]   ;;  %v2568_v61 = vld [vmem:[%s3569_s1 + $0x528] ss:$16 sps:$4 sm:$0xff]  }
  0x6f   :  { %1668 = vmatpush1.bf16.msra.mxu0 %v2481_v62  ;;  %1832 = vmatpush1.bf16.msra.mxu1 %v2484_v63  ;;  %v2573_v62 = vld [vmem:[%s3569_s1 + $0x544] ss:$16 sps:$4 sm:$0xff]   ;;  %v2576_v63 = vld [vmem:[%s3569_s1 + $0x54c] ss:$16 sps:$4 sm:$0xff]  }
  0x70   :  { %1669 = vmatprep.subr.bf16.mxu0 %v2489_v0  ;;  %1833 = vmatprep.subr.bf16.mxu1 %v2492_v1  ;;  %v2571_v0 = vld [vmem:[%s3569_s1 + $0x540] ss:$16 sps:$4 sm:$0xff]   ;;  %v2574_v1 = vld [vmem:[%s3569_s1 + $0x548] ss:$16 sps:$4 sm:$0xff]  }
  0x73   :  { %1670 = vmatpush1.bf16.msra.mxu0 %v2487_v2  ;;  %1834 = vmatpush1.bf16.msra.mxu1 %v2490_v3  ;;  %v2579_v2 = vld [vmem:[%s3569_s1 + $0x564] ss:$16 sps:$4 sm:$0xff]   ;;  %v2582_v3 = vld [vmem:[%s3569_s1 + $0x56c] ss:$16 sps:$4 sm:$0xff]  }
  0x74   :  { %1671 = vmatprep.subr.bf16.mxu0 %v2495_v4  ;;  %1835 = vmatprep.subr.bf16.mxu1 %v2498_v5  ;;  %v2577_v4 = vld [vmem:[%s3569_s1 + $0x560] ss:$16 sps:$4 sm:$0xff]   ;;  %v2580_v5 = vld [vmem:[%s3569_s1 + $0x568] ss:$16 sps:$4 sm:$0xff]  }
  0x77   :  { %1672 = vmatpush1.bf16.msra.mxu0 %v2493_v6  ;;  %1836 = vmatpush1.bf16.msra.mxu1 %v2496_v7  ;;  %v2585_v6 = vld [vmem:[%s3569_s1 + $0x584] ss:$16 sps:$4 sm:$0xff]   ;;  %v2588_v7 = vld [vmem:[%s3569_s1 + $0x58c] ss:$16 sps:$4 sm:$0xff]  }
  0x78   :  { %1673 = vmatprep.subr.bf16.mxu0 %v2501_v8  ;;  %1837 = vmatprep.subr.bf16.mxu1 %v2504_v10  ;;  %v2583_v8 = vld [vmem:[%s3569_s1 + $0x580] ss:$16 sps:$4 sm:$0xff]   ;;  %v2586_v10 = vld [vmem:[%s3569_s1 + $0x588] ss:$16 sps:$4 sm:$0xff]  }
  0x7b   :  { %1674 = vmatpush1.bf16.msra.mxu0 %v2499_v12  ;;  %1838 = vmatpush1.bf16.msra.mxu1 %v2502_v13  ;;  %v2591_v12 = vld [vmem:[%s3569_s1 + $0x5a4] ss:$16 sps:$4 sm:$0xff]   ;;  %v2594_v13 = vld [vmem:[%s3569_s1 + $0x5ac] ss:$16 sps:$4 sm:$0xff]  }
  0x7c   :  { %1675 = vmatprep.subr.bf16.mxu0 %v2507_v14  ;;  %1839 = vmatprep.subr.bf16.mxu1 %v2510_v15  ;;  %v2589_v14 = vld [vmem:[%s3569_s1 + $0x5a0] ss:$16 sps:$4 sm:$0xff]   ;;  %v2592_v15 = vld [vmem:[%s3569_s1 + $0x5a8] ss:$16 sps:$4 sm:$0xff]  }
  0x7f   :  { %1676 = vmatpush1.bf16.msra.mxu0 %v2505_v17  ;;  %1840 = vmatpush1.bf16.msra.mxu1 %v2508_v18  ;;  %v2597_v17 = vld [vmem:[%s3569_s1 + $0x5c4] ss:$16 sps:$4 sm:$0xff]   ;;  %v2600_v18 = vld [vmem:[%s3569_s1 + $0x5cc] ss:$16 sps:$4 sm:$0xff]  }
  0x80   :  { %1686 = vmatprep.subr.bf16.mxu0 %v2513_v19  ;;  %1850 = vmatprep.subr.bf16.mxu1 %v2516_v20  ;;  %v35_v19 = vcombine.high %v3109_v11, %v3109_v11  ;;  %v2595_v20 = vld [vmem:[%s3569_s1 + $0x5c0] ss:$16 sps:$4 sm:$0xff]   ;;  %v2606_v11 = vld [vmem:[%s3569_s1 + $0x5ec] ss:$16 sps:$4 sm:$0xff]  }
  0x82   :  { %1678 = vmatmul.mubr.bf16.vlgmr.msra.gmra.mrb[0].mxu0 %v62_v22  ;;  %1842 = vmatmul.mubr.bf16.vlgmr.msra.gmra.mrb[0].mxu1 %v62_v22  ;;  %v2603_v22 = vld [vmem:[%s3569_s1 + $0x5e4] ss:$16 sps:$4 sm:$0xff]  }
  0x83   :  { %1687 = vmatpush1.bf16.msra.mxu0 %v2511_v23  ;;  %1851 = vmatpush1.bf16.msra.mxu1 %v2514_v24  ;;  %v3326_v23 = vrot.slane %v35_v19, %v2861_v49  ;;  %v2601_v24 = vld [vmem:[%s3569_s1 + $0x5e0] ss:$16 sps:$4 sm:$0xff]   ;;  %v2687_v19 = vld [vmem:[%s3569_s1 + $0x7a4] ss:$16 sps:$4 sm:$0xff]  }
  0x84   :  { %1688 = vmatprep.subr.bf16.mxu0 %v2519_v25  ;;  %1852 = vmatprep.subr.bf16.mxu1 %v2522_v9  ;;  %v2604_v25 = vld [vmem:[%s3569_s1 + $0x5e8] ss:$16 sps:$4 sm:$0xff]   ;;  %v2609_v9 = vld [vmem:[%s3569_s1 + $0x604] ss:$16 sps:$4 sm:$0xff]  }
  0x85   :  { %1718 = vmatprep.mubr.bf16.mxu0 %v65_v26  ;;  %1882 = vmatprep.mubr.bf16.mxu1 %v65_v26  ;;  %v2612_v26 = vld [vmem:[%s3569_s1 + $0x60c] ss:$16 sps:$4 sm:$0xff]  }
  0x87   :  { %1689 = vmatpush1.bf16.msra.mxu0 %v2517_v27  ;;  %1853 = vmatpush1.bf16.msra.mxu1 %v2520_v28  ;;  %v51_v27 = vcombine.high %v3326_v23, %v3326_v23  ;;  %v64_v28 = vpack.c.bf16 %v3125_v16, %v3125_v16  ;;  %v2618_v16 = vld [vmem:[%s3569_s1 + $0x62c] ss:$16 sps:$4 sm:$0xff]  }
  0x88   :  { %1690 = vmatprep.subr.bf16.mxu0 %v2525_v29  ;;  %1854 = vmatprep.subr.bf16.mxu1 %v2528_v30  ;;  %v2607_v29 = vld [vmem:[%s3569_s1 + $0x600] ss:$16 sps:$4 sm:$0xff]   ;;  %v2610_v30 = vld [vmem:[%s3569_s1 + $0x608] ss:$16 sps:$4 sm:$0xff]  }
  0x8b   :  { %1691 = vmatpush1.bf16.msra.mxu0 %v2523_v31  ;;  %1855 = vmatpush1.bf16.msra.mxu1 %v2526_v32  ;;  %v2615_v31 = vld [vmem:[%s3569_s1 + $0x624] ss:$16 sps:$4 sm:$0xff]   ;;  %v67_v32 = vpack.c.bf16 %v51_v27, %v51_v27  ;;  %v2702_v27 = vld [vmem:[%s3569_s1 + $0x7ec] ss:$16 sps:$4 sm:$0xff]  }
  0x8c   :  { %1692 = vmatprep.subr.bf16.mxu0 %v2531_v33  ;;  %1856 = vmatprep.subr.bf16.mxu1 %v2534_v34  ;;  %v2613_v33 = vld [vmem:[%s3569_s1 + $0x620] ss:$16 sps:$4 sm:$0xff]   ;;  %v2616_v34 = vld [vmem:[%s3569_s1 + $0x628] ss:$16 sps:$4 sm:$0xff]  }
  0x8f   :  { %1693 = vmatpush1.bf16.msra.mxu0 %v2529_v35  ;;  %1857 = vmatpush1.bf16.msra.mxu1 %v2532_v36  ;;  %v2621_v35 = vld [vmem:[%s3569_s1 + $0x644] ss:$16 sps:$4 sm:$0xff]   ;;  %v2624_v36 = vld [vmem:[%s3569_s1 + $0x64c] ss:$16 sps:$4 sm:$0xff]  }
  0x90   :  { %1694 = vmatprep.subr.bf16.mxu0 %v2537_v37  ;;  %1858 = vmatprep.subr.bf16.mxu1 %v2540_v38  ;;  %v2619_v37 = vld [vmem:[%s3569_s1 + $0x640] ss:$16 sps:$4 sm:$0xff]   ;;  %v2622_v38 = vld [vmem:[%s3569_s1 + $0x648] ss:$16 sps:$4 sm:$0xff]  }
  0x93   :  { %1695 = vmatpush1.bf16.msra.mxu0 %v2535_v39  ;;  %1859 = vmatpush1.bf16.msra.mxu1 %v2538_v40  ;;  %v2627_v39 = vld [vmem:[%s3569_s1 + $0x664] ss:$16 sps:$4 sm:$0xff]   ;;  %v2630_v40 = vld [vmem:[%s3569_s1 + $0x66c] ss:$16 sps:$4 sm:$0xff]  }
  0x94   :  { %1696 = vmatprep.subr.bf16.mxu0 %v2543_v41  ;;  %1860 = vmatprep.subr.bf16.mxu1 %v2546_v42  ;;  %v2625_v41 = vld [vmem:[%s3569_s1 + $0x660] ss:$16 sps:$4 sm:$0xff]   ;;  %v2628_v42 = vld [vmem:[%s3569_s1 + $0x668] ss:$16 sps:$4 sm:$0xff]  }
  0x97   :  { %1697 = vmatpush1.bf16.msra.mxu0 %v2541_v43  ;;  %1861 = vmatpush1.bf16.msra.mxu1 %v2544_v44  ;;  %v2633_v43 = vld [vmem:[%s3569_s1 + $0x684] ss:$16 sps:$4 sm:$0xff]   ;;  %v2636_v44 = vld [vmem:[%s3569_s1 + $0x68c] ss:$16 sps:$4 sm:$0xff]  }
  0x98   :  { %1698 = vmatprep.subr.bf16.mxu0 %v2549_v45  ;;  %1862 = vmatprep.subr.bf16.mxu1 %v2552_v46  ;;  %v2631_v45 = vld [vmem:[%s3569_s1 + $0x680] ss:$16 sps:$4 sm:$0xff]   ;;  %v2634_v46 = vld [vmem:[%s3569_s1 + $0x688] ss:$16 sps:$4 sm:$0xff]  }
  0x9b   :  { %1699 = vmatpush1.bf16.msra.mxu0 %v2547_v47  ;;  %1863 = vmatpush1.bf16.msra.mxu1 %v2550_v48  ;;  %v2639_v47 = vld [vmem:[%s3569_s1 + $0x6a4] ss:$16 sps:$4 sm:$0xff]   ;;  %v2642_v48 = vld [vmem:[%s3569_s1 + $0x6ac] ss:$16 sps:$4 sm:$0xff]  }
  0x9c   :  { %1700 = vmatprep.subr.bf16.mxu0 %v2555_v50  ;;  %1864 = vmatprep.subr.bf16.mxu1 %v2558_v51  ;;  %v2637_v50 = vld [vmem:[%s3569_s1 + $0x6a0] ss:$16 sps:$4 sm:$0xff]   ;;  %v2640_v51 = vld [vmem:[%s3569_s1 + $0x6a8] ss:$16 sps:$4 sm:$0xff]  }
  0x9f   :  { %1701 = vmatpush1.bf16.msra.mxu0 %v2553_v52  ;;  %1865 = vmatpush1.bf16.msra.mxu1 %v2556_v53  ;;  %v2645_v52 = vld [vmem:[%s3569_s1 + $0x6c4] ss:$16 sps:$4 sm:$0xff]   ;;  %v2648_v53 = vld [vmem:[%s3569_s1 + $0x6cc] ss:$16 sps:$4 sm:$0xff]  }
  0xa0   :  { %1702 = vmatprep.subr.bf16.mxu0 %v2561_v54  ;;  %1866 = vmatprep.subr.bf16.mxu1 %v2564_v55  ;;  %v2643_v54 = vld [vmem:[%s3569_s1 + $0x6c0] ss:$16 sps:$4 sm:$0xff]   ;;  %v2646_v55 = vld [vmem:[%s3569_s1 + $0x6c8] ss:$16 sps:$4 sm:$0xff]  }
  0xa3   :  { %1703 = vmatpush1.bf16.msra.mxu0 %v2559_v56  ;;  %1867 = vmatpush1.bf16.msra.mxu1 %v2562_v57  ;;  %v2651_v56 = vld [vmem:[%s3569_s1 + $0x6e4] ss:$16 sps:$4 sm:$0xff]   ;;  %v2654_v57 = vld [vmem:[%s3569_s1 + $0x6ec] ss:$16 sps:$4 sm:$0xff]  }
  0xa4   :  { %1704 = vmatprep.subr.bf16.mxu0 %v2567_v58  ;;  %1868 = vmatprep.subr.bf16.mxu1 %v2570_v59  ;;  %v2649_v58 = vld [vmem:[%s3569_s1 + $0x6e0] ss:$16 sps:$4 sm:$0xff]   ;;  %v2652_v59 = vld [vmem:[%s3569_s1 + $0x6e8] ss:$16 sps:$4 sm:$0xff]  }
  0xa7   :  { %1705 = vmatpush1.bf16.msra.mxu0 %v2565_v60  ;;  %1869 = vmatpush1.bf16.msra.mxu1 %v2568_v61  ;;  %v2657_v60 = vld [vmem:[%s3569_s1 + $0x704] ss:$16 sps:$4 sm:$0xff]   ;;  %v2660_v61 = vld [vmem:[%s3569_s1 + $0x70c] ss:$16 sps:$4 sm:$0xff]  }
  0xa8   :  { %1706 = vmatprep.subr.bf16.mxu0 %v2573_v62  ;;  %1870 = vmatprep.subr.bf16.mxu1 %v2576_v63  ;;  %v2655_v62 = vld [vmem:[%s3569_s1 + $0x700] ss:$16 sps:$4 sm:$0xff]   ;;  %v2658_v63 = vld [vmem:[%s3569_s1 + $0x708] ss:$16 sps:$4 sm:$0xff]  }
  0xab   :  { %1707 = vmatpush1.bf16.msra.mxu0 %v2571_v0  ;;  %1871 = vmatpush1.bf16.msra.mxu1 %v2574_v1  ;;  %v2663_v0 = vld [vmem:[%s3569_s1 + $0x724] ss:$16 sps:$4 sm:$0xff]   ;;  %v2666_v1 = vld [vmem:[%s3569_s1 + $0x72c] ss:$16 sps:$4 sm:$0xff]  }
  0xac   :  { %1708 = vmatprep.subr.bf16.mxu0 %v2579_v2  ;;  %1872 = vmatprep.subr.bf16.mxu1 %v2582_v3  ;;  %v2661_v2 = vld [vmem:[%s3569_s1 + $0x720] ss:$16 sps:$4 sm:$0xff]   ;;  %v2664_v3 = vld [vmem:[%s3569_s1 + $0x728] ss:$16 sps:$4 sm:$0xff]  }
  0xaf   :  { %1709 = vmatpush1.bf16.msra.mxu0 %v2577_v4  ;;  %1873 = vmatpush1.bf16.msra.mxu1 %v2580_v5  ;;  %v2669_v4 = vld [vmem:[%s3569_s1 + $0x744] ss:$16 sps:$4 sm:$0xff]   ;;  %v2672_v5 = vld [vmem:[%s3569_s1 + $0x74c] ss:$16 sps:$4 sm:$0xff]  }
  0xb0   :  { %1710 = vmatprep.subr.bf16.mxu0 %v2585_v6  ;;  %1874 = vmatprep.subr.bf16.mxu1 %v2588_v7  ;;  %v2667_v6 = vld [vmem:[%s3569_s1 + $0x740] ss:$16 sps:$4 sm:$0xff]   ;;  %v2670_v7 = vld [vmem:[%s3569_s1 + $0x748] ss:$16 sps:$4 sm:$0xff]  }
  0xb3   :  { %1711 = vmatpush1.bf16.msra.mxu0 %v2583_v8  ;;  %1875 = vmatpush1.bf16.msra.mxu1 %v2586_v10  ;;  %v2675_v8 = vld [vmem:[%s3569_s1 + $0x764] ss:$16 sps:$4 sm:$0xff]   ;;  %v2678_v10 = vld [vmem:[%s3569_s1 + $0x76c] ss:$16 sps:$4 sm:$0xff]  }
  0xb4   :  { %1712 = vmatprep.subr.bf16.mxu0 %v2591_v12  ;;  %1876 = vmatprep.subr.bf16.mxu1 %v2594_v13  ;;  %v2673_v12 = vld [vmem:[%s3569_s1 + $0x760] ss:$16 sps:$4 sm:$0xff]   ;;  %v2676_v13 = vld [vmem:[%s3569_s1 + $0x768] ss:$16 sps:$4 sm:$0xff]  }
  0xb7   :  { %1713 = vmatpush1.bf16.msra.mxu0 %v2589_v14  ;;  %1877 = vmatpush1.bf16.msra.mxu1 %v2592_v15  ;;  %v2681_v14 = vld [vmem:[%s3569_s1 + $0x784] ss:$16 sps:$4 sm:$0xff]   ;;  %v2684_v15 = vld [vmem:[%s3569_s1 + $0x78c] ss:$16 sps:$4 sm:$0xff]  }
  0xb8   :  { %1714 = vmatprep.subr.bf16.mxu0 %v2597_v17  ;;  %1878 = vmatprep.subr.bf16.mxu1 %v2600_v18  ;;  %v2679_v17 = vld [vmem:[%s3569_s1 + $0x780] ss:$16 sps:$4 sm:$0xff]   ;;  %v2682_v18 = vld [vmem:[%s3569_s1 + $0x788] ss:$16 sps:$4 sm:$0xff]  }
  0xbb   :  { %1715 = vmatpush1.bf16.msra.mxu0 %v2595_v20  ;;  %1879 = vmatpush1.bf16.msra.mxu1 %v2598_v21  ;;  %v2690_v20 = vld [vmem:[%s3569_s1 + $0x7ac] ss:$16 sps:$4 sm:$0xff]   ;;  %v2685_v21 = vld [vmem:[%s3569_s1 + $0x7a0] ss:$16 sps:$4 sm:$0xff]  }
  0xbc   :  { %1716 = vmatprep.subr.bf16.mxu0 %v2603_v22  ;;  %1880 = vmatprep.subr.bf16.mxu1 %v2606_v11  ;;  %v2688_v22 = vld [vmem:[%s3569_s1 + $0x7a8] ss:$16 sps:$4 sm:$0xff]   ;;  %v2693_v11 = vld [vmem:[%s3569_s1 + $0x7c4] ss:$16 sps:$4 sm:$0xff]  }
  0xbf   :  { %1717 = vmatpush1.bf16.msra.mxu0 %v2601_v24  ;;  %1881 = vmatpush1.bf16.msra.mxu1 %v2604_v25  ;;  %v2696_v24 = vld [vmem:[%s3569_s1 + $0x7cc] ss:$16 sps:$4 sm:$0xff]   ;;  %v2691_v25 = vld [vmem:[%s3569_s1 + $0x7c0] ss:$16 sps:$4 sm:$0xff]  }
  0xc0   :  { %1727 = vmatprep.subr.bf16.mxu0 %v2609_v9  ;;  %1891 = vmatprep.subr.bf16.mxu1 %v2612_v26  ;;  %v2694_v9 = vld [vmem:[%s3569_s1 + $0x7c8] ss:$16 sps:$4 sm:$0xff]   ;;  %v2699_v26 = vld [vmem:[%s3569_s1 + $0x7e4] ss:$16 sps:$4 sm:$0xff]  }
  0xc2   :  { %1719 = vmatmul.mubr.bf16.vlgmr.msra.gmra.mrb[0].mxu0 %v64_v28  ;;  %1883 = vmatmul.mubr.bf16.vlgmr.msra.gmra.mrb[0].mxu1 %v64_v28  ;;  %v2697_v28 = vld [vmem:[%s3569_s1 + $0x7e0] ss:$16 sps:$4 sm:$0xff]  }
  0xc3   :  { %1728 = vmatpush1.bf16.msra.mxu0 %v2607_v29  ;;  %1892 = vmatpush1.bf16.msra.mxu1 %v2610_v30  ;;  %v2700_v29 = vld [vmem:[%s3569_s1 + $0x7e8] ss:$16 sps:$4 sm:$0xff]   ;;  %v66_v30 = vpack.c.bf16 %v3326_v23, %v3326_v23 }
  0xc4   :  { %1729 = vmatprep.subr.bf16.mxu0 %v2615_v31  ;;  %1893 = vmatprep.subr.bf16.mxu1 %v2618_v16 }
  0xc5   :  { %1759 = vmatprep.mubr.bf16.mxu0 %v67_v32  ;;  %1923 = vmatprep.mubr.bf16.mxu1 %v67_v32 }
  0xc7   :  { %1730 = vmatpush1.bf16.msra.mxu0 %v2613_v33  ;;  %1894 = vmatpush1.bf16.msra.mxu1 %v2616_v34 }
  0xc8   :  { %1731 = vmatprep.subr.bf16.mxu0 %v2621_v35  ;;  %1895 = vmatprep.subr.bf16.mxu1 %v2624_v36 }
  0xcb   :  { %1732 = vmatpush1.bf16.msra.mxu0 %v2619_v37  ;;  %1896 = vmatpush1.bf16.msra.mxu1 %v2622_v38 }
  0xcc   :  { %1733 = vmatprep.subr.bf16.mxu0 %v2627_v39  ;;  %1897 = vmatprep.subr.bf16.mxu1 %v2630_v40 }
  0xcf   :  { %1734 = vmatpush1.bf16.msra.mxu0 %v2625_v41  ;;  %1898 = vmatpush1.bf16.msra.mxu1 %v2628_v42 }
  0xd0   :  { %1735 = vmatprep.subr.bf16.mxu0 %v2633_v43  ;;  %1899 = vmatprep.subr.bf16.mxu1 %v2636_v44 }
  0xd3   :  { %1736 = vmatpush1.bf16.msra.mxu0 %v2631_v45  ;;  %1900 = vmatpush1.bf16.msra.mxu1 %v2634_v46 }
  0xd4   :  { %1737 = vmatprep.subr.bf16.mxu0 %v2639_v47  ;;  %1901 = vmatprep.subr.bf16.mxu1 %v2642_v48 }
  0xd7   :  { %1738 = vmatpush1.bf16.msra.mxu0 %v2637_v50  ;;  %1902 = vmatpush1.bf16.msra.mxu1 %v2640_v51 }
  0xd8   :  { %1739 = vmatprep.subr.bf16.mxu0 %v2645_v52  ;;  %1903 = vmatprep.subr.bf16.mxu1 %v2648_v53 }
  0xdb   :  { %1740 = vmatpush1.bf16.msra.mxu0 %v2643_v54  ;;  %1904 = vmatpush1.bf16.msra.mxu1 %v2646_v55 }
  0xdc   :  { %1741 = vmatprep.subr.bf16.mxu0 %v2651_v56  ;;  %1905 = vmatprep.subr.bf16.mxu1 %v2654_v57 }
  0xdf   :  { %1742 = vmatpush1.bf16.msra.mxu0 %v2649_v58  ;;  %1906 = vmatpush1.bf16.msra.mxu1 %v2652_v59 }
  0xe0   :  { %1743 = vmatprep.subr.bf16.mxu0 %v2657_v60  ;;  %1907 = vmatprep.subr.bf16.mxu1 %v2660_v61 }
  0xe3   :  { %1744 = vmatpush1.bf16.msra.mxu0 %v2655_v62  ;;  %1908 = vmatpush1.bf16.msra.mxu1 %v2658_v63 }
  0xe4   :  { %1745 = vmatprep.subr.bf16.mxu0 %v2663_v0  ;;  %1909 = vmatprep.subr.bf16.mxu1 %v2666_v1 }
  0xe7   :  { %1746 = vmatpush1.bf16.msra.mxu0 %v2661_v2  ;;  %1910 = vmatpush1.bf16.msra.mxu1 %v2664_v3 }
  0xe8   :  { %1747 = vmatprep.subr.bf16.mxu0 %v2669_v4  ;;  %1911 = vmatprep.subr.bf16.mxu1 %v2672_v5 }
  0xeb   :  { %1748 = vmatpush1.bf16.msra.mxu0 %v2667_v6  ;;  %1912 = vmatpush1.bf16.msra.mxu1 %v2670_v7 }
  0xec   :  { %1749 = vmatprep.subr.bf16.mxu0 %v2675_v8  ;;  %1913 = vmatprep.subr.bf16.mxu1 %v2678_v10 }
  0xef   :  { %1750 = vmatpush1.bf16.msra.mxu0 %v2673_v12  ;;  %1914 = vmatpush1.bf16.msra.mxu1 %v2676_v13 }
  0xf0   :  { %1751 = vmatprep.subr.bf16.mxu0 %v2681_v14  ;;  %1915 = vmatprep.subr.bf16.mxu1 %v2684_v15 }
  0xf3   :  { %1752 = vmatpush1.bf16.msra.mxu0 %v2679_v17  ;;  %1916 = vmatpush1.bf16.msra.mxu1 %v2682_v18 }
  0xf4   :  { %1753 = vmatprep.subr.bf16.mxu0 %v2687_v19  ;;  %1917 = vmatprep.subr.bf16.mxu1 %v2690_v20 }
  0xf7   :  { %1754 = vmatpush1.bf16.msra.mxu0 %v2685_v21  ;;  %1918 = vmatpush1.bf16.msra.mxu1 %v2688_v22 }
  0xf8   :  { %1755 = vmatprep.subr.bf16.mxu0 %v2693_v11  ;;  %1919 = vmatprep.subr.bf16.mxu1 %v2696_v24 }
  0xfb   :  { %1756 = vmatpush1.bf16.msra.mxu0 %v2691_v25  ;;  %1920 = vmatpush1.bf16.msra.mxu1 %v2694_v9 }
  0xfc   :  { %1757 = vmatprep.subr.bf16.mxu0 %v2699_v26  ;;  %1921 = vmatprep.subr.bf16.mxu1 %v2702_v27 }
  0xff   :  { %1758 = vmatpush1.bf16.msra.mxu0 %v2697_v28  ;;  %1922 = vmatpush1.bf16.msra.mxu1 %v2700_v29 }
 0x102   :  { %1760 = vmatmul.mubr.bf16.vlgmr.msra.gmra.mrb[0].mxu0 %v66_v30  ;;  %1924 = vmatmul.mubr.bf16.vlgmr.msra.gmra.mrb[0].mxu1 %v66_v30 }
 0x1d5   :  { %v1761_v31 = vpop.f32.mrb[0].mxu0  ;;  %v1925_v16 = vpop.f32.mrb[0].mxu1 }
 0x1d6   :  { %v1956_v32 = vsel %vm1955_vm0, %v1761_v31, 0.0  ;;  %v1988_v33 = vmul.f32 %v1761_v31, %v1761_v31  ;;  %v1970_v34 = vsel %vm1955_vm0, %v1925_v16, 0.0  ;;  %v1990_v35 = vmul.f32 %v1925_v16, %v1925_v16  ;;  %v1763_v36 = vpop.f32.mrb[1].mxu0  ;;  %v1927_v37 = vpop.f32.mrb[1].mxu1 }
 0x1d7   :  { %v1957_v38 = vrot.slane %v1956_v32, 4  ;;  %v1971_v39 = vrot.slane %v1970_v34, 4  ;;  %v1936_v40 = vcombine.low %v1761_v31, %v1763_v36  ;;  %v1963_v23 = vsel %vm1955_vm0, %v1763_v36, 0.0  ;;  %v1765_v41 = vpop.f32.mrb[2].mxu0  ;;  %v1929_v42 = vpop.f32.mrb[2].mxu1 }
 0x1d8   :  { %v1992_v43 = vsel %vm1955_vm0, %v1988_v33, 0.0  ;;  %v2006_v44 = vsel %vm1955_vm0, %v1990_v35, 0.0  ;;  %v1964_v45 = vrot.slane %v1963_v23, 4  ;;  %v1989_v46 = vmul.f32 %v1763_v36, %v1763_v36  ;;  %v1766_v47 = vpop.f32.mrb[3].mxu0  ;;  %v1930_v48 = vpop.f32.mrb[3].mxu1 }
 0x1d9   :  { %v1958_v50 = vadd.f32 %v1957_v38, %v1956_v32  ;;  %v1993_v51 = vrot.slane %v1992_v43, 4  ;;  %v1972_v52 = vadd.f32 %v1971_v39, %v1970_v34  ;;  %v2007_v53 = vrot.slane %v2006_v44, 4 }
 0x1da   :  { %v1944_v54 = vrot.slane %v1936_v40, %v2861_v49  ;;  %v1965_v55 = vadd.f32 %v1964_v45, %v1963_v23  ;;  %v1999_v56 = vsel %vm1955_vm0, %v1989_v46, 0.0  ;;  %v1937_v57 = vcombine.low %v1925_v16, %v1927_v37 }
 0x1db   :  { %v1959_v58 = vrot.slane %v1958_v50, 2  ;;  %v1994_v59 = vadd.f32 %v1993_v51, %v1992_v43  ;;  %v1973_v60 = vrot.slane %v1972_v52, 2  ;;  %v2008_v61 = vadd.f32 %v2007_v53, %v2006_v44 }
 0x1dc   :  { %v1966_v62 = vrot.slane %v1965_v55, 2  ;;  %v2000_v63 = vrot.slane %v1999_v56, 4  ;;  %v1951_v0 = vrot.slane %v1937_v57, %v2861_v49  ;;  %v1977_v1 = vsel %vm1955_vm0, %v1927_v37, 0.0 }
 0x1dd   :  { %v1960_v2 = vadd.f32 %v1959_v58, %v1958_v50  ;;  %v1995_v3 = vrot.slane %v1994_v59, 2  ;;  %v1974_v4 = vadd.f32 %v1973_v60, %v1972_v52  ;;  %v2009_v5 = vrot.slane %v2008_v61, 2 }
 0x1de   :  { %v1967_v6 = vadd.f32 %v1966_v62, %v1965_v55  ;;  %v2001_v7 = vadd.f32 %v2000_v63, %v1999_v56  ;;  %v1952_v8 = vcombine.low %v1944_v54, %v1951_v0  ;;  %v1978_v10 = vrot.slane %v1977_v1, 4 }
 0x1df   :  { %v1961_v12 = vrot.slane %v1960_v2, 1  ;;  %v1996_v13 = vadd.f32 %v1995_v3, %v1994_v59  ;;  %v1975_v14 = vrot.slane %v1974_v4, 1  ;;  %v2010_v15 = vadd.f32 %v2009_v5, %v2008_v61 }
 0x1e0   :  { %v1968_v17 = vrot.slane %v1967_v6, 1  ;;  %v2002_v18 = vrot.slane %v2001_v7, 2  ;;  %1954 = vst [vmem:[%s3571_s2] sm:$0xff] %v1952_v8  ;;  %v1979_v49 = vadd.f32 %v1978_v10, %v1977_v1  ;;  %v1991_v19 = vmul.f32 %v1927_v37, %v1927_v37 }
 0x1e1   :  { %v1962_v20 = vadd.f32 %v1961_v12, %v1960_v2  ;;  %v1997_v21 = vrot.slane %v1996_v13, 1  ;;  %v1976_v22 = vadd.f32 %v1975_v14, %v1974_v4  ;;  %v2011_v11 = vrot.slane %v2010_v15, 1 }
 0x1e2   :  { %v1969_v24 = vadd.f32 %v1968_v17, %v1967_v6  ;;  %v2003_v25 = vadd.f32 %v2002_v18, %v2001_v7  ;;  %v1980_v9 = vrot.slane %v1979_v49, 2  ;;  %v2013_v26 = vsel %vm1955_vm0, %v1991_v19, 0.0 }
 0x1e3   :  { %1984 = vst [vmem:[%s3572_s3] sm:$0xff] %v1962_v20  ;;  %v1998_v27 = vadd.f32 %v1997_v21, %v1996_v13  ;;  %1986 = vst [vmem:[%s3572_s3 + $0x10] sm:$0xff] %v1976_v22  ;;  %v2012_v28 = vadd.f32 %v2011_v11, %v2010_v15  ;;  %v2014_v29 = vrot.slane %v2013_v26, 4 }
 0x1e4   :  { %1985 = vst [vmem:[%s3572_s3 + $0x8] sm:$0xff] %v1969_v24  ;;  %v2004_v30 = vrot.slane %v2003_v25, 1  ;;  %v1981_v31 = vadd.f32 %v1980_v9, %v1979_v49 }
 0x1e5   :  { %2020 = vst [vmem:[%s3573_s4] sm:$0xff] %v1998_v27  ;;  %2022 = vst [vmem:[%s3573_s4 + $0x10] sm:$0xff] %v2012_v28  ;;  %v2015_v16 = vadd.f32 %v2014_v29, %v2013_v26 }
 0x1e6   :  { %v2005_v32 = vadd.f32 %v2004_v30, %v2003_v25  ;;  %v1982_v33 = vrot.slane %v1981_v31, 1 }
 0x1e7   :  { %v2016_v34 = vrot.slane %v2015_v16, 2 }
 0x1e8   :  { %2021 = vst [vmem:[%s3573_s4 + $0x8] sm:$0xff] %v2005_v32  ;;  %v1983_v35 = vadd.f32 %v1982_v33, %v1981_v31 }
 0x1e9   :  { %v2017_v36 = vadd.f32 %v2016_v34, %v2015_v16 }
 0x1ea   :  { %1987 = vst [vmem:[%s3572_s3 + $0x18] sm:$0xff] %v1983_v35 }
 0x1eb   :  { %v2018_v37 = vrot.slane %v2017_v36, 1 }
 0x1ed   :  { %v2019_v38 = vadd.f32 %v2018_v37, %v2017_v36 }
 0x1ef   :  { %2023 = vst [vmem:[%s3573_s4 + $0x18] sm:$0xff] %v2019_v38 }

// kernel: advection_core.66
= control target key start
LH: loop header
LB: loop body
LE: loop exit
PB: predicated region body
PF: predicated region fallthrough
CT: control target
= control target key end

     0   :  { %v17_v0 = vlaneseq  ;;  %v62_v1 = vmov 1983009808   ;;  %s95_s1 = inlined_call_operand.vmem [shape: f32[1,256], index: 1, kind: input, shape index: {}]   ;;  %s96_s2 = inlined_call_operand.vmem [shape: f32[1,256], index: 2, kind: input, shape index: {}]   ;;  %s97_s0 = inlined_call_operand.vmem [shape: f32[2,256], index: 0, kind: input, shape index: {}]   ;;  %s98_s3 = inlined_call_operand.vmem [shape: f32[2,256], index: 3, kind: output, shape index: {}]  }
   0x1   :  { %v27_v2 = vunpack.c.l.s4 %v62_v1  ;;  %v15_v4 = vld [vmem:[%s95_s1] sm:$0x3] }
   0x2   :  { %v18_v3 = vshrl.u32 %v17_v0, 7  ;;  %v35_v6 = vld [vmem:[%s96_s2] sm:$0x3] }
   0x3   :  { %v28_v5 = vunpack.c.0.s8 %v27_v2  ;;  %v14_v16 = vld [vmem:[%s97_s0] sm:$0xf] }
   0x4   :  { %v19_v7 = vsub.s32 0, %v18_v3  ;;  %v23_v8 = vsub.s32 1, %v18_v3 }
   0x5   :  { %v31_v9 = vsub.s32 %v28_v5, %v18_v3 }
   0x6   :  { %v20_v10 = vrot.slane %v15_v4, %v19_v7  ;;  %v24_v11 = vrot.slane %v15_v4, %v23_v8  ;;  %v40_v12 = vrot.slane %v35_v6, %v19_v7  ;;  %v44_v13 = vrot.slane %v35_v6, %v23_v8 }
   0x8   :  { %v25_v14 = vcombine.low %v20_v10, %v24_v11  ;;  %v45_v15 = vcombine.low %v40_v12, %v44_v13 }
   0xa   :  { %v32_v17 = vrot.slane %v25_v14, %v31_v9  ;;  %v52_v18 = vrot.slane %v45_v15, %v31_v9 }
   0xc   :  { %v34_v19 = vmul.f32 %v32_v17, %v14_v16 }
   0xe   :  { %v54_v20 = vadd.f32 %v52_v18, %v34_v19 }
  0x10   :  { %v55_v21 = vmax.f32 %v54_v20, 0.0 }
  0x12   :  { %56 = vst [vmem:[%s98_s3] sm:$0xf] %v55_v21 }

// kernel: advection_core.67
= control target key start
LH: loop header
LB: loop body
LE: loop exit
PB: predicated region body
PF: predicated region fallthrough
CT: control target
= control target key end

     0   :  { %vm204_vm0 = vcmask 74752   ;;  %s343_s1 = inlined_call_operand.vmem [shape: bf16[256,10], index: 1, kind: input, shape index: {}]   ;;  %s344_s0 = inlined_call_operand.vmem [shape: f32[2,256], index: 0, kind: input, shape index: {}]   ;;  %s345_s2 = inlined_call_operand.vmem [shape: f32[1,10], index: 2, kind: input, shape index: {}]   ;;  %s346_s3 = inlined_call_operand.vmem [shape: f32[2,10], index: 3, kind: output, shape index: {}]  }
   0x1   :  { %v250_v0 = vld [vmem:[%s343_s1 + $0x40] sm:$0xff]   ;;  %v252_v2 = vld [vmem:[%s343_s1 + $0x48] sm:$0xff]   ;;  %v254_v4 = vld [vmem:[%s343_s1 + $0x50] sm:$0xff]  }
   0x2   :  { %v251_v1 = vld [vmem:[%s343_s1] sm:$0xff]   ;;  %228 = vmatprep.subr.bf16.mxu0 %v250_v0  ;;  %v253_v3 = vld [vmem:[%s343_s1 + $0x8] sm:$0xff]   ;;  %v255_v5 = vld [vmem:[%s343_s1 + $0x10] sm:$0xff]  }
   0x3   :  { %229 = vmatpush3.bf16.msra.mxu0 %v251_v1  ;;  %v256_v6 = vld [vmem:[%s343_s1 + $0x58] sm:$0xff]   ;;  %v258_v8 = vld [vmem:[%s343_s1 + $0x60] sm:$0xff]   ;;  %v260_v10 = vld [vmem:[%s343_s1 + $0x68] sm:$0xff]  }
   0x4   :  { %230 = vmatprep.subr.bf16.mxu0 %v252_v2  ;;  %v257_v7 = vld [vmem:[%s343_s1 + $0x18] sm:$0xff]   ;;  %v259_v9 = vld [vmem:[%s343_s1 + $0x20] sm:$0xff]   ;;  %v261_v13 = vld [vmem:[%s343_s1 + $0x28] sm:$0xff]  }
   0x5   :  { %v210_v11 = vld.sshfl [vmem:[%s344_s0] sm:$0x33 pattern:$0x76325410]  ;;  %v262_v15 = vld [vmem:[%s343_s1 + $0x70] sm:$0xff]   ;;  %v264_v17 = vld [vmem:[%s343_s1 + $0x78] sm:$0xff]  }
   0x6   :  { %v24_v12 = vcombine.high %v210_v11, %v210_v11  ;;  %v263_v16 = vld [vmem:[%s343_s1 + $0x30] sm:$0xff]   ;;  %v265_v18 = vld [vmem:[%s343_s1 + $0x38] sm:$0xff]   ;;  %v27_v19 = vpack.c.bf16 %v210_v11, %v210_v11  ;;  %v211_v21 = vld [vmem:[%s345_s2] ss:$0 sm:$0xff] }
   0x7   :  { %231 = vmatpush3.bf16.msra.mxu0 %v253_v3 }
   0x8   :  { %232 = vmatprep.subr.bf16.mxu0 %v254_v4  ;;  %v28_v14 = vpack.c.bf16 %v24_v12, %v24_v12 }
   0xa   :  { %196 = vmatprep.mubr.bf16.mxu0 %v28_v14 }
   0xb   :  { %233 = vmatpush3.bf16.msra.mxu0 %v255_v5 }
   0xc   :  { %234 = vmatprep.subr.bf16.mxu0 %v256_v6 }
   0xf   :  { %235 = vmatpush3.bf16.msra.mxu0 %v257_v7 }
  0x10   :  { %236 = vmatprep.subr.bf16.mxu0 %v258_v8 }
  0x13   :  { %237 = vmatpush3.bf16.msra.mxu0 %v259_v9 }
  0x14   :  { %238 = vmatprep.subr.bf16.mxu0 %v260_v10 }
  0x17   :  { %239 = vmatpush3.bf16.msra.mxu0 %v261_v13 }
  0x18   :  { %240 = vmatprep.subr.bf16.mxu0 %v262_v15 }
  0x1b   :  { %241 = vmatpush3.bf16.msra.mxu0 %v263_v16 }
  0x1c   :  { %242 = vmatprep.subr.bf16.mxu0 %v264_v17 }
  0x1f   :  { %243 = vmatpush3.bf16.msra.mxu0 %v265_v18 }
  0x22   :  { %197 = vmatmul.mubr.bf16.vlgmr.msra.gmra.mrb[0].mxu0 %v27_v19 }
  0xf5   :  { %v244_v20 = vpop.f32.mrb[0].mxu0 }
  0xf6   :  { %v245_v22 = vpop.f32.mrb[1].mxu0 }
  0xf7   :  { %v246_v23 = vadd.f32 %v245_v22, %v244_v20  ;;  %v247_v24 = vpop.f32.mrb[2].mxu0 }
  0xf8   :  { %v248_v25 = vpop.f32.mrb[3].mxu0 }
  0xf9   :  { %v199_v26 = vadd.f32 %v246_v23, %v211_v21 }
  0xfb   :  { %205 = vst.msk [vmem:[%s346_s3] sm:$0x3] %vm204_vm0, %v199_v26 }

</bundles_post_ra>
